<compile_context>
chip_gen: v6e
topology: v6e:2x2x1
jax: 0.10.0
libtpu: 0.0.40
codegen_flags: <defaults>
</compile_context>

<pallas_src>
import numpy as np
import jax
import jax.numpy as jnp
from jax.experimental import pallas as pl
from jax.experimental.pallas import tpu as pltpu

# ---------------------------------------------------------------------------
# configuration (scaled-down shapes, structure identical to the PyTorch module)
# ---------------------------------------------------------------------------
NUM_CLASS = 115
CAT_NUM = 4
TOP_N = 4
IMG = 64          # input image size (stands in for 448)
PAD_SIDE = 32     # stands in for 224
PART_SIZE = 32    # stands in for 224
FEAT_CH = 256     # stands in for 2048 (ResNet-50 final channels)


def _round_up(x, m):
    return (x + m - 1) // m * m


# ---------------------------------------------------------------------------
# Pallas kernel 1: single-pass GEMM + bias (+ optional ReLU)
#   bf16 operands, f32 accumulation, full-K block, M-only grid, resident weight,
#   selectable output dtype (bf16 for intermediate activations, f32 for heads).
# ---------------------------------------------------------------------------
def _make_gemm_kernel(relu: bool):
    def kernel(x_ref, w_ref, b_ref, o_ref):
        acc = jnp.dot(x_ref[...], w_ref[...], preferred_element_type=jnp.float32)
        acc = acc + b_ref[...]
        if relu:
            acc = jnp.maximum(acc, 0.0)
        o_ref[...] = acc.astype(o_ref.dtype)
    return kernel


def _choose_tm(Mp, Kp, Np, out_bytes):
    """Pick the M tile: >=2 blocks when possible (v7x megacore), VMEM-budgeted."""
    budget = 24 << 20  # stay well under v7x's 32 MiB default scoped VMEM limit

    def vmem_need(tm):
        return (2 * tm * Kp * 2          # double-buffered bf16 activation tiles
                + 2 * Kp * Np * 2        # weight (default double-buffered), bf16
                + 2 * 1 * Np * 4         # bias
                + 2 * tm * Np * out_bytes)  # double-buffered output tiles

    if Mp >= 32:
        # at least 2 M blocks so v7x's two TensorCores both get work;
        # large blocks amortize the ~0.35us per-grid-step overhead (v5e/v6e).
        tm = min(1024, (Mp // 2) // 8 * 8)
    else:
        tm = Mp
    while tm > 8 and vmem_need(tm) > budget:
        tm = max(8, (tm // 2) // 8 * 8)
    return tm


def pallas_matmul_bias(x, w, b, relu=False, out_dtype=jnp.float32):
    """y = act(x @ w + b).  x:(M,K) w:(K,N) b:(N,).  Returns out_dtype (M,N)."""
    M, K = x.shape
    K2, N = w.shape
    assert K == K2

    Kp = _round_up(K, 16)           # bf16 packs 2 rows / sublane -> 16-align K
    Np = _round_up(N, 128)          # one lane-dense output tile
    Mp = _round_up(M, 8)
    out_bytes = jnp.dtype(out_dtype).itemsize
    tm = _choose_tm(Mp, Kp, Np, out_bytes)
    Mp = _round_up(Mp, tm)
    grid_m = Mp // tm

    xp = jnp.pad(x.astype(jnp.bfloat16), ((0, Mp - M), (0, Kp - K)))
    wp = jnp.pad(w.astype(jnp.bfloat16), ((0, Kp - K), (0, Np - N)))
    bp = jnp.pad(b.astype(jnp.float32).reshape(1, -1), ((0, 0), (0, Np - N)))

    out = pl.pallas_call(
        _make_gemm_kernel(relu),
        out_shape=jax.ShapeDtypeStruct((Mp, Np), out_dtype),
        grid_spec=pltpu.PrefetchScalarGridSpec(
            num_scalar_prefetch=0,
            grid=(grid_m,),
            in_specs=[
                pl.BlockSpec((tm, Kp), lambda i: (i, 0)),   # activations: new tile per step
                # TODO(synk): at real scale, mark weight/bias pipeline_mode=pl.Buffered(1)
                #             (constant index_map) to free the redundant second VMEM buffer.
                pl.BlockSpec((Kp, Np), lambda i: (0, 0)),   # weight: resident across grid
                pl.BlockSpec((1, Np), lambda i: (0, 0)),    # bias: resident
            ],
            out_specs=pl.BlockSpec((tm, Np), lambda i: (i, 0)),
        ),
        compiler_params=pltpu.CompilerParams(
            dimension_semantics=("parallel",)),
    )(xp, wp, bp)
    return out[:M, :N]


# ---------------------------------------------------------------------------
# Pallas kernel 2: global average pool (AdaptiveAvgPool2d(1)) -- one grid step,
# bf16 input read straight from HBM, f32 accumulation inside the kernel.
# ---------------------------------------------------------------------------
def _avgpool_kernel(x_ref, o_ref):
    # x_ref: (B, HW, C) (bf16 or f32), o_ref: (B, 1, C) f32
    o_ref[...] = jnp.mean(x_ref[...].astype(jnp.float32), axis=1, keepdims=True)


def pallas_global_avg_pool(x):
    """x: (B, HW, C) -> (B, C) f32.  Single block, single grid step."""
    B, HW, C = x.shape
    out = pl.pallas_call(
        _avgpool_kernel,
        out_shape=jax.ShapeDtypeStruct((B, 1, C), jnp.float32),
        grid_spec=pltpu.PrefetchScalarGridSpec(
            num_scalar_prefetch=0,
            grid=(1,),
            in_specs=[pl.BlockSpec((B, HW, C), lambda i: (0, 0, 0))],
            out_specs=pl.BlockSpec((B, 1, C), lambda i: (0, 0, 0)),
        ),
    )(x)
    return out.reshape(B, C)


# ---------------------------------------------------------------------------
# Conv2d = im2col (bf16, jit-fused glue) + Pallas GEMM kernel
# ---------------------------------------------------------------------------
def conv2d_nhwc(x, w, b, stride=1, padding=0, relu=False, out_dtype=jnp.bfloat16):
    """x: (B,H,W,Cin), w: (KH,KW,Cin,Cout), b: (Cout,). Returns (B,Ho,Wo,Cout)."""
    B, H, W, Cin = x.shape
    KH, KW, _, Cout = w.shape
    x = x.astype(jnp.bfloat16)                       # halve bytes of the col matrix
    xp = jnp.pad(x, ((0, 0), (padding, padding), (padding, padding), (0, 0)))
    Ho = (H + 2 * padding - KH) // stride + 1
    Wo = (W + 2 * padding - KW) // stride + 1
    patches = []
    for kh in range(KH):
        for kw in range(KW):
            patches.append(
                xp[:, kh:kh + stride * Ho:stride, kw:kw + stride * Wo:stride, :])
    col = jnp.concatenate(patches, axis=-1).reshape(B * Ho * Wo, KH * KW * Cin)
    wm = w.reshape(KH * KW * Cin, Cout)
    out = pallas_matmul_bias(col, wm, b, relu=relu, out_dtype=out_dtype)
    return out.reshape(B, Ho, Wo, Cout)


# ---------------------------------------------------------------------------
# Stand-in backbone (replaces pretrained ResNet-50): (logits, rpn_feature, feature)
# ---------------------------------------------------------------------------
def backbone_forward(p, x, with_logits=True):
    h = conv2d_nhwc(x, p["c1_w"], p["c1_b"], stride=2, padding=1, relu=True)   # 3   -> 64
    h = conv2d_nhwc(h, p["c2_w"], p["c2_b"], stride=2, padding=1, relu=True)   # 64  -> 128
    rpn_feature = conv2d_nhwc(h, p["c3_w"], p["c3_b"], stride=2, padding=1,
                              relu=True)                                        # 128 -> FEAT_CH (bf16)
    B, Hf, Wf, C = rpn_feature.shape
    feature = pallas_global_avg_pool(rpn_feature.reshape(B, Hf * Wf, C))        # (B, FEAT_CH) f32
    if with_logits:
        # tiny head GEMM (M == batch): plain f32 XLA dot, not worth a Pallas dispatch
        resnet_out = feature @ p["fc_w"] + p["fc_b"]                             # (B, 115)
    else:
        resnet_out = None                                                        # skipped for part images
    return resnet_out, rpn_feature, feature


# ---------------------------------------------------------------------------
# ProposalNet (Pallas convs), flattening matches PyTorch NCHW .view(B, -1)
# ---------------------------------------------------------------------------
def proposal_net_forward(p, x):
    d1 = conv2d_nhwc(x, p["down1_w"], p["down1_b"], stride=1, padding=1, relu=True)
    d2 = conv2d_nhwc(d1, p["down2_w"], p["down2_b"], stride=2, padding=1, relu=True)
    d3 = conv2d_nhwc(d2, p["down3_w"], p["down3_b"], stride=2, padding=1, relu=True)
    # tidy outputs feed the host-side NMS -> keep them f32
    t1 = conv2d_nhwc(d1, p["tidy1_w"], p["tidy1_b"], stride=1, padding=0,
                     out_dtype=jnp.float32)
    t2 = conv2d_nhwc(d2, p["tidy2_w"], p["tidy2_b"], stride=1, padding=0,
                     out_dtype=jnp.float32)
    t3 = conv2d_nhwc(d3, p["tidy3_w"], p["tidy3_b"], stride=1, padding=0,
                     out_dtype=jnp.float32)

    def flat_nchw(t):  # NHWC -> NCHW flatten order to match torch .view(B, -1)
        return jnp.transpose(t, (0, 3, 1, 2)).reshape(t.shape[0], -1)

    return jnp.concatenate([flat_nchw(t1), flat_nchw(t2), flat_nchw(t3)], axis=1)


# ---------------------------------------------------------------------------
# anchors + hard NMS (host-side numpy, same as the reference implementation)
# ---------------------------------------------------------------------------
def generate_default_anchor_maps():
    # anchor order matches NCHW flattening of tidy outputs: (anchor, y, x) per scale
    scales = [
        (IMG // 8, 8, [(12, 12), (16, 16), (20, 20), (12, 20), (20, 12), (16, 24)]),
        (IMG // 16, 16, [(24, 24), (32, 32), (24, 36), (36, 24), (28, 28), (32, 40)]),
        (IMG // 32, 32, [(40, 40), (48, 48), (56, 56), (40, 56), (56, 40),
                         (48, 64), (64, 48), (44, 60), (60, 44)]),
    ]
    anchors = []
    for fs, stride, sizes in scales:
        for (ah, aw) in sizes:
            for y in range(fs):
                for x in range(fs):
                    cy, cx = (y + 0.5) * stride, (x + 0.5) * stride
                    anchors.append([cy - ah / 2.0, cx - aw / 2.0,
                                    cy + ah / 2.0, cx + aw / 2.0])
    edge_anchors = np.array(anchors, dtype=np.float64)
    return None, edge_anchors, None


def hard_nms(cdds, topn=10, iou_thresh=0.25):
    cdds = cdds.copy()
    cdds = cdds[np.argsort(cdds[:, 0])]
    results = []
    res = cdds
    while res.shape[0] > 0:
        cdd = res[-1]
        results.append(cdd)
        if len(results) == topn:
            return np.array(results)
        res = res[:-1]
        start_max = np.maximum(res[:, 1:3], cdd[1:3])
        end_min = np.minimum(res[:, 3:5], cdd[3:5])
        lengths = end_min - start_max
        inter = lengths[:, 0] * lengths[:, 1]
        inter[np.logical_or(lengths[:, 0] < 0, lengths[:, 1] < 0)] = 0
        iou = inter / ((res[:, 3] - res[:, 1]) * (res[:, 4] - res[:, 2]) +
                       (cdd[3] - cdd[1]) * (cdd[4] - cdd[2]) - inter)
        res = res[iou < iou_thresh]
    out = np.array(results)
    # NOTE: the PyTorch reference does not pad when fewer than topn survive;
    # duplicating the last box keeps static shapes (degenerate case only).
    while out.shape[0] < topn:
        out = np.concatenate([out, out[-1:]], axis=0)
    return out


# ---------------------------------------------------------------------------
# device-side crop + bilinear resize (align_corners=True), static output shape
# -> no retracing, no per-crop host dispatch; vmapped over all B*topN boxes
# ---------------------------------------------------------------------------
def _crop_resize_one(img, box):
    """img: (Hp, Wp, 3) f32; box: (y0, x0, y1, x1) int32 -> (PART_SIZE, PART_SIZE, 3)."""
    Hp, Wp, _ = img.shape
    y0 = box[0].astype(jnp.float32)
    x0 = box[1].astype(jnp.float32)
    y1 = box[2].astype(jnp.float32)
    x1 = box[3].astype(jnp.float32)
    t = jnp.arange(PART_SIZE, dtype=jnp.float32) / float(PART_SIZE - 1)
    ys = y0 + t * (y1 - y0 - 1.0)          # align_corners source coords, absolute
    xs = x0 + t * (x1 - x0 - 1.0)
    y0i = jnp.clip(jnp.floor(ys).astype(jnp.int32), 0, Hp - 1)
    x0i = jnp.clip(jnp.floor(xs).astype(jnp.int32), 0, Wp - 1)
    y1i = jnp.minimum(y0i + 1, Hp - 1)
    x1i = jnp.minimum(x0i + 1, Wp - 1)
    wy = (ys - y0i.astype(jnp.float32))[:, None, None]
    wx = (xs - x0i.astype(jnp.float32))[None, :, None]
    Ia, Ib = img[y0i][:, x0i], img[y0i][:, x1i]
    Ic, Id = img[y1i][:, x0i], img[y1i][:, x1i]
    top = Ia * (1.0 - wx) + Ib * wx
    bot = Ic * (1.0 - wx) + Id * wx
    return top * (1.0 - wy) + bot * wy


# ---------------------------------------------------------------------------
# jitted device stages (host NMS sits between them)
# ---------------------------------------------------------------------------
@jax.jit
def _stage1(params, x):
    resnet_out, rpn_feature, feature = backbone_forward(params["backbone"], x)
    rpn_score = proposal_net_forward(params["proposal"],
                                     jax.lax.stop_gradient(rpn_feature))
    return resnet_out, feature, rpn_score


@jax.jit
def _stage2(params, x, boxes, top_n_index, feature, rpn_score):
    batch = x.shape[0]
    x_pad = jnp.pad(x, ((0, 0), (PAD_SIDE, PAD_SIDE), (PAD_SIDE, PAD_SIDE), (0, 0)))

    top_n_prob = jnp.take_along_axis(rpn_score, top_n_index, axis=1)

    img_idx = jnp.repeat(jnp.arange(batch), TOP_N)
    boxes_flat = boxes.reshape(batch * TOP_N, 4)
    part_imgs_flat = jax.vmap(_crop_resize_one)(x_pad[img_idx], boxes_flat)
    part_imgs = part_imgs_flat.reshape(batch, TOP_N, PART_SIZE, PART_SIZE, 3)

    _, _, part_features = backbone_forward(
        params["backbone"], jax.lax.stop_gradient(part_imgs_flat), with_logits=False)

    part_feature = part_features.reshape(batch, TOP_N, -1)[:, :CAT_NUM]
    part_feature = part_feature.reshape(batch, -1)

    concat_out = jnp.concatenate([part_feature, feature], axis=1)
    # classifier heads: tiny f32 GEMMs, plain XLA dots (launch-overhead-bound)
    concat_logits = concat_out @ params["concat_w"] + params["concat_b"]
    part_logits = (part_features @ params["partcls_w"] +
                   params["partcls_b"]).reshape(batch, TOP_N, -1)
    return concat_logits, part_logits, top_n_prob, part_imgs, concat_out


# ---------------------------------------------------------------------------
# attention_net forward
# ---------------------------------------------------------------------------
def attention_net_forward(params, x, edge_anchors, topN=TOP_N):
    resnet_out, feature, rpn_score = _stage1(params, x)

    # hard NMS is an inherently host-side, data-dependent loop (as in the reference)
    rpn_np = np.asarray(jax.device_get(rpn_score))
    all_cdds = [
        np.concatenate((s.reshape(-1, 1), edge_anchors.copy().astype(np.float64),
                        np.arange(0, len(s)).reshape(-1, 1)), axis=1)
        for s in rpn_np
    ]
    top_n_cdds = np.array([hard_nms(c, topn=topN, iou_thresh=0.25) for c in all_cdds])
    top_n_index_np = top_n_cdds[:, :, -1].astype(np.int32)
    boxes_np = top_n_cdds[:, :, 1:5].astype(np.int32)          # (B, topN, 4) y0,x0,y1,x1

    top_n_index = jnp.asarray(top_n_index_np, dtype=jnp.int32)
    boxes = jnp.asarray(boxes_np, dtype=jnp.int32)

    concat_logits, part_logits, top_n_prob, part_imgs, concat_out = _stage2(
        params, x, boxes, top_n_index, feature, rpn_score)

    raw_logits = resnet_out
    return [raw_logits, concat_logits, part_logits, top_n_index, top_n_prob,
            part_imgs, concat_out]


# ---------------------------------------------------------------------------
# deterministic parameter init
# ---------------------------------------------------------------------------
def init_params(key):
    ks = iter(jax.random.split(key, 32))

    def w(shape, scale=0.05):
        return jax.random.normal(next(ks), shape, jnp.float32) * scale

    def b(n):
        return jnp.zeros((n,), jnp.float32)

    backbone = dict(
        c1_w=w((3, 3, 3, 64)), c1_b=b(64),
        c2_w=w((3, 3, 64, 128)), c2_b=b(128),
        c3_w=w((3, 3, 128, FEAT_CH)), c3_b=b(FEAT_CH),
        fc_w=w((FEAT_CH, NUM_CLASS)), fc_b=b(NUM_CLASS),
    )
    proposal = dict(
        down1_w=w((3, 3, FEAT_CH, 128)), down1_b=b(128),
        down2_w=w((3, 3, 128, 128)), down2_b=b(128),
        down3_w=w((3, 3, 128, 128)), down3_b=b(128),
        tidy1_w=w((1, 1, 128, 6)), tidy1_b=b(6),
        tidy2_w=w((1, 1, 128, 6)), tidy2_b=b(6),
        tidy3_w=w((1, 1, 128, 9)), tidy3_b=b(9),
    )
    return dict(
        backbone=backbone,
        proposal=proposal,
        concat_w=w((FEAT_CH * (CAT_NUM + 1), NUM_CLASS)), concat_b=b(NUM_CLASS),
        partcls_w=w((FEAT_CH, NUM_CLASS)), partcls_b=b(NUM_CLASS),
    )


if __name__ == "__main__":
    key = jax.random.PRNGKey(0)
    pkey, xkey = jax.random.split(key)
    params = init_params(pkey)

    _, edge_anchors, _ = generate_default_anchor_maps()
    edge_anchors = (edge_anchors + PAD_SIDE).astype(int)

    x = jax.random.normal(xkey, (2, IMG, IMG, 3), jnp.float32)  # layout: NHWC

    outs = attention_net_forward(params, x, edge_anchors, topN=TOP_N)
    jax.block_until_ready(outs)

    raw_logits, concat_logits, part_logits, top_n_index, top_n_prob, part_imgs, concat_out = outs
    assert raw_logits.shape == (2, NUM_CLASS)
    assert concat_logits.shape == (2, NUM_CLASS)
    assert part_logits.shape == (2, TOP_N, NUM_CLASS)
    assert top_n_index.shape == (2, TOP_N)
    assert top_n_prob.shape == (2, TOP_N)
    assert part_imgs.shape == (2, TOP_N, PART_SIZE, PART_SIZE, 3)
    assert concat_out.shape == (2, FEAT_CH * (CAT_NUM + 1))
    assert bool(jnp.all(jnp.isfinite(concat_logits)))
    print("KERNEL_OK")
</pallas_src>

<mosaic_0001>
module attributes {stable_mosaic.version = 11 : i64} {
  func.func @kernel(%arg0: i32, %arg1: memref<1024x32xbf16, #tpu.memory_space<vmem>>, %arg2: memref<32x128xbf16, #tpu.memory_space<vmem>>, %arg3: memref<1x128xf32, #tpu.memory_space<vmem>>, %arg4: memref<1024x128xbf16, #tpu.memory_space<vmem>>) attributes {dimension_semantics = [#tpu.dimension_semantics<parallel>], iteration_bounds = array<i64: 2>, scalar_prefetch = 0 : i64, scratch_operands = 0 : i64, tpu.core_type = #tpu.core_type<tc>, window_params = [{transform_indices = @transform_0, window_bounds = array<i64: 1024, 32>}, {pipeline_mode = #tpu.pipeline_mode<synchronous>, transform_indices = @transform_1, window_bounds = array<i64: 32, 128>}, {pipeline_mode = #tpu.pipeline_mode<synchronous>, transform_indices = @transform_2, window_bounds = array<i64: 1, 128>}, {transform_indices = @transform_3, window_bounds = array<i64: 1024, 128>}]} {
    %c0 = arith.constant 0 : index
    %c0_0 = arith.constant 0 : index
    %0 = vector.load %arg1[%c0, %c0_0] : memref<1024x32xbf16, #tpu.memory_space<vmem>>, vector<1024x32xbf16>
    %c0_1 = arith.constant 0 : index
    %c0_2 = arith.constant 0 : index
    %1 = vector.load %arg2[%c0_1, %c0_2] : memref<32x128xbf16, #tpu.memory_space<vmem>>, vector<32x128xbf16>
    %cst = arith.constant dense<0.000000e+00> : vector<1024x128xf32>
    %2 = tpu.matmul %0, %1, %cst {dimension_numbers = #tpu.dot_dimension_numbers<[1], [0], [0], [1], [0, 0, 1, 1], [], []>} : vector<1024x32xbf16>, vector<32x128xbf16>, vector<1024x128xf32> -> vector<1024x128xf32>
    %c0_3 = arith.constant 0 : index
    %c0_4 = arith.constant 0 : index
    %3 = vector.load %arg3[%c0_3, %c0_4] : memref<1x128xf32, #tpu.memory_space<vmem>>, vector<1x128xf32>
    %4 = vector.broadcast %3 : vector<1x128xf32> to vector<1024x128xf32>
    %5 = arith.addf %2, %4 : vector<1024x128xf32>
    %cst_5 = arith.constant 0.000000e+00 : f32
    %6 = vector.broadcast %cst_5 : f32 to vector<1024x128xf32>
    %7 = arith.maximumf %5, %6 : vector<1024x128xf32>
    %8 = arith.truncf %7 : vector<1024x128xf32> to vector<1024x128xbf16>
    %c0_6 = arith.constant 0 : index
    %c0_7 = arith.constant 0 : index
    %9 = vector.load %arg4[%c0_6, %c0_7] : memref<1024x128xbf16, #tpu.memory_space<vmem>>, vector<1024x128xbf16>
    tpu.vector_store %arg4[%c0_6, %c0_7], %8 {strides = array<i32>} : memref<1024x128xbf16, #tpu.memory_space<vmem>>, vector<1024x128xbf16>,
    return
  }
  func.func @transform_0(%arg0: i32) -> (i32, i32) {
    %c0_i32 = arith.constant 0 : i32
    %c0_i32_0 = arith.constant 0 : i32
    return %arg0, %c0_i32 : i32, i32
  }
  func.func @transform_1(%arg0: i32) -> (i32, i32) {
    %c0_i32 = arith.constant 0 : i32
    %c0_i32_0 = arith.constant 0 : i32
    %c0_i32_1 = arith.constant 0 : i32
    return %c0_i32, %c0_i32_0 : i32, i32
  }
  func.func @transform_2(%arg0: i32) -> (i32, i32) {
    %c0_i32 = arith.constant 0 : i32
    %c0_i32_0 = arith.constant 0 : i32
    %c0_i32_1 = arith.constant 0 : i32
    return %c0_i32, %c0_i32_0 : i32, i32
  }
  func.func @transform_3(%arg0: i32) -> (i32, i32) {
    %c0_i32 = arith.constant 0 : i32
    %c0_i32_0 = arith.constant 0 : i32
    return %arg0, %c0_i32 : i32, i32
  }
}

module attributes {stable_mosaic.version = 11 : i64} {
  func.func @kernel(%arg0: i32, %arg1: memref<256x576xbf16, #tpu.memory_space<vmem>>, %arg2: memref<576x128xbf16, #tpu.memory_space<vmem>>, %arg3: memref<1x128xf32, #tpu.memory_space<vmem>>, %arg4: memref<256x128xbf16, #tpu.memory_space<vmem>>) attributes {dimension_semantics = [#tpu.dimension_semantics<parallel>], iteration_bounds = array<i64: 2>, scalar_prefetch = 0 : i64, scratch_operands = 0 : i64, tpu.core_type = #tpu.core_type<tc>, window_params = [{transform_indices = @transform_0, window_bounds = array<i64: 256, 576>}, {pipeline_mode = #tpu.pipeline_mode<synchronous>, transform_indices = @transform_1, window_bounds = array<i64: 576, 128>}, {pipeline_mode = #tpu.pipeline_mode<synchronous>, transform_indices = @transform_2, window_bounds = array<i64: 1, 128>}, {transform_indices = @transform_3, window_bounds = array<i64: 256, 128>}]} {
    %c0 = arith.constant 0 : index
    %c0_0 = arith.constant 0 : index
    %0 = vector.load %arg1[%c0, %c0_0] : memref<256x576xbf16, #tpu.memory_space<vmem>>, vector<256x576xbf16>
    %c0_1 = arith.constant 0 : index
    %c0_2 = arith.constant 0 : index
    %1 = vector.load %arg2[%c0_1, %c0_2] : memref<576x128xbf16, #tpu.memory_space<vmem>>, vector<576x128xbf16>
    %cst = arith.constant dense<0.000000e+00> : vector<256x128xf32>
    %2 = tpu.matmul %0, %1, %cst {dimension_numbers = #tpu.dot_dimension_numbers<[1], [0], [0], [1], [0, 0, 1, 1], [], []>} : vector<256x576xbf16>, vector<576x128xbf16>, vector<256x128xf32> -> vector<256x128xf32>
    %c0_3 = arith.constant 0 : index
    %c0_4 = arith.constant 0 : index
    %3 = vector.load %arg3[%c0_3, %c0_4] : memref<1x128xf32, #tpu.memory_space<vmem>>, vector<1x128xf32>
    %4 = vector.broadcast %3 : vector<1x128xf32> to vector<256x128xf32>
    %5 = arith.addf %2, %4 : vector<256x128xf32>
    %cst_5 = arith.constant 0.000000e+00 : f32
    %6 = vector.broadcast %cst_5 : f32 to vector<256x128xf32>
    %7 = arith.maximumf %5, %6 : vector<256x128xf32>
    %8 = arith.truncf %7 : vector<256x128xf32> to vector<256x128xbf16>
    %c0_6 = arith.constant 0 : index
    %c0_7 = arith.constant 0 : index
    %9 = vector.load %arg4[%c0_6, %c0_7] : memref<256x128xbf16, #tpu.memory_space<vmem>>, vector<256x128xbf16>
    tpu.vector_store %arg4[%c0_6, %c0_7], %8 {strides = array<i32>} : memref<256x128xbf16, #tpu.memory_space<vmem>>, vector<256x128xbf16>,
    return
  }
  func.func @transform_0(%arg0: i32) -> (i32, i32) {
    %c0_i32 = arith.constant 0 : i32
    %c0_i32_0 = arith.constant 0 : i32
    return %arg0, %c0_i32 : i32, i32
  }
  func.func @transform_1(%arg0: i32) -> (i32, i32) {
    %c0_i32 = arith.constant 0 : i32
    %c0_i32_0 = arith.constant 0 : i32
    %c0_i32_1 = arith.constant 0 : i32
    return %c0_i32, %c0_i32_0 : i32, i32
  }
  func.func @transform_2(%arg0: i32) -> (i32, i32) {
    %c0_i32 = arith.constant 0 : i32
    %c0_i32_0 = arith.constant 0 : i32
    %c0_i32_1 = arith.constant 0 : i32
    return %c0_i32, %c0_i32_0 : i32, i32
  }
  func.func @transform_3(%arg0: i32) -> (i32, i32) {
    %c0_i32 = arith.constant 0 : i32
    %c0_i32_0 = arith.constant 0 : i32
    return %arg0, %c0_i32 : i32, i32
  }
}

module attributes {stable_mosaic.version = 11 : i64} {
  func.func @kernel(%arg0: i32, %arg1: memref<64x1152xbf16, #tpu.memory_space<vmem>>, %arg2: memref<1152x256xbf16, #tpu.memory_space<vmem>>, %arg3: memref<1x256xf32, #tpu.memory_space<vmem>>, %arg4: memref<64x256xbf16, #tpu.memory_space<vmem>>) attributes {dimension_semantics = [#tpu.dimension_semantics<parallel>], iteration_bounds = array<i64: 2>, scalar_prefetch = 0 : i64, scratch_operands = 0 : i64, tpu.core_type = #tpu.core_type<tc>, window_params = [{transform_indices = @transform_0, window_bounds = array<i64: 64, 1152>}, {pipeline_mode = #tpu.pipeline_mode<synchronous>, transform_indices = @transform_1, window_bounds = array<i64: 1152, 256>}, {pipeline_mode = #tpu.pipeline_mode<synchronous>, transform_indices = @transform_2, window_bounds = array<i64: 1, 256>}, {transform_indices = @transform_3, window_bounds = array<i64: 64, 256>}]} {
    %c0 = arith.constant 0 : index
    %c0_0 = arith.constant 0 : index
    %0 = vector.load %arg1[%c0, %c0_0] : memref<64x1152xbf16, #tpu.memory_space<vmem>>, vector<64x1152xbf16>
    %c0_1 = arith.constant 0 : index
    %c0_2 = arith.constant 0 : index
    %1 = vector.load %arg2[%c0_1, %c0_2] : memref<1152x256xbf16, #tpu.memory_space<vmem>>, vector<1152x256xbf16>
    %cst = arith.constant dense<0.000000e+00> : vector<64x256xf32>
    %2 = tpu.matmul %0, %1, %cst {dimension_numbers = #tpu.dot_dimension_numbers<[1], [0], [0], [1], [0, 0, 1, 1], [], []>} : vector<64x1152xbf16>, vector<1152x256xbf16>, vector<64x256xf32> -> vector<64x256xf32>
    %c0_3 = arith.constant 0 : index
    %c0_4 = arith.constant 0 : index
    %3 = vector.load %arg3[%c0_3, %c0_4] : memref<1x256xf32, #tpu.memory_space<vmem>>, vector<1x256xf32>
    %4 = vector.broadcast %3 : vector<1x256xf32> to vector<64x256xf32>
    %5 = arith.addf %2, %4 : vector<64x256xf32>
    %cst_5 = arith.constant 0.000000e+00 : f32
    %6 = vector.broadcast %cst_5 : f32 to vector<64x256xf32>
    %7 = arith.maximumf %5, %6 : vector<64x256xf32>
    %8 = arith.truncf %7 : vector<64x256xf32> to vector<64x256xbf16>
    %c0_6 = arith.constant 0 : index
    %c0_7 = arith.constant 0 : index
    %9 = vector.load %arg4[%c0_6, %c0_7] : memref<64x256xbf16, #tpu.memory_space<vmem>>, vector<64x256xbf16>
    tpu.vector_store %arg4[%c0_6, %c0_7], %8 {strides = array<i32>} : memref<64x256xbf16, #tpu.memory_space<vmem>>, vector<64x256xbf16>,
    return
  }
  func.func @transform_0(%arg0: i32) -> (i32, i32) {
    %c0_i32 = arith.constant 0 : i32
    %c0_i32_0 = arith.constant 0 : i32
    return %arg0, %c0_i32 : i32, i32
  }
  func.func @transform_1(%arg0: i32) -> (i32, i32) {
    %c0_i32 = arith.constant 0 : i32
    %c0_i32_0 = arith.constant 0 : i32
    %c0_i32_1 = arith.constant 0 : i32
    return %c0_i32, %c0_i32_0 : i32, i32
  }
  func.func @transform_2(%arg0: i32) -> (i32, i32) {
    %c0_i32 = arith.constant 0 : i32
    %c0_i32_0 = arith.constant 0 : i32
    %c0_i32_1 = arith.constant 0 : i32
    return %c0_i32, %c0_i32_0 : i32, i32
  }
  func.func @transform_3(%arg0: i32) -> (i32, i32) {
    %c0_i32 = arith.constant 0 : i32
    %c0_i32_0 = arith.constant 0 : i32
    return %arg0, %c0_i32 : i32, i32
  }
}

module attributes {stable_mosaic.version = 11 : i64} {
  func.func @kernel(%arg0: i32, %arg1: memref<64x2304xbf16, #tpu.memory_space<vmem>>, %arg2: memref<2304x128xbf16, #tpu.memory_space<vmem>>, %arg3: memref<1x128xf32, #tpu.memory_space<vmem>>, %arg4: memref<64x128xbf16, #tpu.memory_space<vmem>>) attributes {dimension_semantics = [#tpu.dimension_semantics<parallel>], iteration_bounds = array<i64: 2>, scalar_prefetch = 0 : i64, scratch_operands = 0 : i64, tpu.core_type = #tpu.core_type<tc>, window_params = [{transform_indices = @transform_0, window_bounds = array<i64: 64, 2304>}, {pipeline_mode = #tpu.pipeline_mode<synchronous>, transform_indices = @transform_1, window_bounds = array<i64: 2304, 128>}, {pipeline_mode = #tpu.pipeline_mode<synchronous>, transform_indices = @transform_2, window_bounds = array<i64: 1, 128>}, {transform_indices = @transform_3, window_bounds = array<i64: 64, 128>}]} {
    %c0 = arith.constant 0 : index
    %c0_0 = arith.constant 0 : index
    %0 = vector.load %arg1[%c0, %c0_0] : memref<64x2304xbf16, #tpu.memory_space<vmem>>, vector<64x2304xbf16>
    %c0_1 = arith.constant 0 : index
    %c0_2 = arith.constant 0 : index
    %1 = vector.load %arg2[%c0_1, %c0_2] : memref<2304x128xbf16, #tpu.memory_space<vmem>>, vector<2304x128xbf16>
    %cst = arith.constant dense<0.000000e+00> : vector<64x128xf32>
    %2 = tpu.matmul %0, %1, %cst {dimension_numbers = #tpu.dot_dimension_numbers<[1], [0], [0], [1], [0, 0, 1, 1], [], []>} : vector<64x2304xbf16>, vector<2304x128xbf16>, vector<64x128xf32> -> vector<64x128xf32>
    %c0_3 = arith.constant 0 : index
    %c0_4 = arith.constant 0 : index
    %3 = vector.load %arg3[%c0_3, %c0_4] : memref<1x128xf32, #tpu.memory_space<vmem>>, vector<1x128xf32>
    %4 = vector.broadcast %3 : vector<1x128xf32> to vector<64x128xf32>
    %5 = arith.addf %2, %4 : vector<64x128xf32>
    %cst_5 = arith.constant 0.000000e+00 : f32
    %6 = vector.broadcast %cst_5 : f32 to vector<64x128xf32>
    %7 = arith.maximumf %5, %6 : vector<64x128xf32>
    %8 = arith.truncf %7 : vector<64x128xf32> to vector<64x128xbf16>
    %c0_6 = arith.constant 0 : index
    %c0_7 = arith.constant 0 : index
    %9 = vector.load %arg4[%c0_6, %c0_7] : memref<64x128xbf16, #tpu.memory_space<vmem>>, vector<64x128xbf16>
    tpu.vector_store %arg4[%c0_6, %c0_7], %8 {strides = array<i32>} : memref<64x128xbf16, #tpu.memory_space<vmem>>, vector<64x128xbf16>,
    return
  }
  func.func @transform_0(%arg0: i32) -> (i32, i32) {
    %c0_i32 = arith.constant 0 : i32
    %c0_i32_0 = arith.constant 0 : i32
    return %arg0, %c0_i32 : i32, i32
  }
  func.func @transform_1(%arg0: i32) -> (i32, i32) {
    %c0_i32 = arith.constant 0 : i32
    %c0_i32_0 = arith.constant 0 : i32
    %c0_i32_1 = arith.constant 0 : i32
    return %c0_i32, %c0_i32_0 : i32, i32
  }
  func.func @transform_2(%arg0: i32) -> (i32, i32) {
    %c0_i32 = arith.constant 0 : i32
    %c0_i32_0 = arith.constant 0 : i32
    %c0_i32_1 = arith.constant 0 : i32
    return %c0_i32, %c0_i32_0 : i32, i32
  }
  func.func @transform_3(%arg0: i32) -> (i32, i32) {
    %c0_i32 = arith.constant 0 : i32
    %c0_i32_0 = arith.constant 0 : i32
    return %arg0, %c0_i32 : i32, i32
  }
}

module attributes {stable_mosaic.version = 11 : i64} {
  func.func @kernel(%arg0: i32, %arg1: memref<16x1152xbf16, #tpu.memory_space<vmem>>, %arg2: memref<1152x128xbf16, #tpu.memory_space<vmem>>, %arg3: memref<1x128xf32, #tpu.memory_space<vmem>>, %arg4: memref<16x128xbf16, #tpu.memory_space<vmem>>) attributes {dimension_semantics = [#tpu.dimension_semantics<parallel>], iteration_bounds = array<i64: 2>, scalar_prefetch = 0 : i64, scratch_operands = 0 : i64, tpu.core_type = #tpu.core_type<tc>, window_params = [{transform_indices = @transform_0, window_bounds = array<i64: 16, 1152>}, {pipeline_mode = #tpu.pipeline_mode<synchronous>, transform_indices = @transform_1, window_bounds = array<i64: 1152, 128>}, {pipeline_mode = #tpu.pipeline_mode<synchronous>, transform_indices = @transform_2, window_bounds = array<i64: 1, 128>}, {transform_indices = @transform_3, window_bounds = array<i64: 16, 128>}]} {
    %c0 = arith.constant 0 : index
    %c0_0 = arith.constant 0 : index
    %0 = vector.load %arg1[%c0, %c0_0] : memref<16x1152xbf16, #tpu.memory_space<vmem>>, vector<16x1152xbf16>
    %c0_1 = arith.constant 0 : index
    %c0_2 = arith.constant 0 : index
    %1 = vector.load %arg2[%c0_1, %c0_2] : memref<1152x128xbf16, #tpu.memory_space<vmem>>, vector<1152x128xbf16>
    %cst = arith.constant dense<0.000000e+00> : vector<16x128xf32>
    %2 = tpu.matmul %0, %1, %cst {dimension_numbers = #tpu.dot_dimension_numbers<[1], [0], [0], [1], [0, 0, 1, 1], [], []>} : vector<16x1152xbf16>, vector<1152x128xbf16>, vector<16x128xf32> -> vector<16x128xf32>
    %c0_3 = arith.constant 0 : index
    %c0_4 = arith.constant 0 : index
    %3 = vector.load %arg3[%c0_3, %c0_4] : memref<1x128xf32, #tpu.memory_space<vmem>>, vector<1x128xf32>
    %4 = vector.broadcast %3 : vector<1x128xf32> to vector<16x128xf32>
    %5 = arith.addf %2, %4 : vector<16x128xf32>
    %cst_5 = arith.constant 0.000000e+00 : f32
    %6 = vector.broadcast %cst_5 : f32 to vector<16x128xf32>
    %7 = arith.maximumf %5, %6 : vector<16x128xf32>
    %8 = arith.truncf %7 : vector<16x128xf32> to vector<16x128xbf16>
    %c0_6 = arith.constant 0 : index
    %c0_7 = arith.constant 0 : index
    %9 = vector.load %arg4[%c0_6, %c0_7] : memref<16x128xbf16, #tpu.memory_space<vmem>>, vector<16x128xbf16>
    tpu.vector_store %arg4[%c0_6, %c0_7], %8 {strides = array<i32>} : memref<16x128xbf16, #tpu.memory_space<vmem>>, vector<16x128xbf16>,
    return
  }
  func.func @transform_0(%arg0: i32) -> (i32, i32) {
    %c0_i32 = arith.constant 0 : i32
    %c0_i32_0 = arith.constant 0 : i32
    return %arg0, %c0_i32 : i32, i32
  }
  func.func @transform_1(%arg0: i32) -> (i32, i32) {
    %c0_i32 = arith.constant 0 : i32
    %c0_i32_0 = arith.constant 0 : i32
    %c0_i32_1 = arith.constant 0 : i32
    return %c0_i32, %c0_i32_0 : i32, i32
  }
  func.func @transform_2(%arg0: i32) -> (i32, i32) {
    %c0_i32 = arith.constant 0 : i32
    %c0_i32_0 = arith.constant 0 : i32
    %c0_i32_1 = arith.constant 0 : i32
    return %c0_i32, %c0_i32_0 : i32, i32
  }
  func.func @transform_3(%arg0: i32) -> (i32, i32) {
    %c0_i32 = arith.constant 0 : i32
    %c0_i32_0 = arith.constant 0 : i32
    return %arg0, %c0_i32 : i32, i32
  }
}

module attributes {stable_mosaic.version = 11 : i64} {
  func.func @kernel(%arg0: i32, %arg1: memref<8x128xbf16, #tpu.memory_space<vmem>>, %arg2: memref<128x128xbf16, #tpu.memory_space<vmem>>, %arg3: memref<1x128xf32, #tpu.memory_space<vmem>>, %arg4: memref<8x128xf32, #tpu.memory_space<vmem>>) attributes {dimension_semantics = [#tpu.dimension_semantics<parallel>], iteration_bounds = array<i64: 1>, scalar_prefetch = 0 : i64, scratch_operands = 0 : i64, tpu.core_type = #tpu.core_type<tc>, window_params = [{transform_indices = @transform_0, window_bounds = array<i64: 8, 128>}, {pipeline_mode = #tpu.pipeline_mode<synchronous>, transform_indices = @transform_1, window_bounds = array<i64: 128, 128>}, {pipeline_mode = #tpu.pipeline_mode<synchronous>, transform_indices = @transform_2, window_bounds = array<i64: 1, 128>}, {transform_indices = @transform_3, window_bounds = array<i64: 8, 128>}]} {
    %c0 = arith.constant 0 : index
    %c0_0 = arith.constant 0 : index
    %0 = vector.load %arg1[%c0, %c0_0] : memref<8x128xbf16, #tpu.memory_space<vmem>>, vector<8x128xbf16>
    %c0_1 = arith.constant 0 : index
    %c0_2 = arith.constant 0 : index
    %1 = vector.load %arg2[%c0_1, %c0_2] : memref<128x128xbf16, #tpu.memory_space<vmem>>, vector<128x128xbf16>
    %cst = arith.constant dense<0.000000e+00> : vector<8x128xf32>
    %2 = tpu.matmul %0, %1, %cst {dimension_numbers = #tpu.dot_dimension_numbers<[1], [0], [0], [1], [0, 0, 1, 1], [], []>} : vector<8x128xbf16>, vector<128x128xbf16>, vector<8x128xf32> -> vector<8x128xf32>
    %c0_3 = arith.constant 0 : index
    %c0_4 = arith.constant 0 : index
    %3 = vector.load %arg3[%c0_3, %c0_4] : memref<1x128xf32, #tpu.memory_space<vmem>>, vector<1x128xf32>
    %4 = vector.broadcast %3 : vector<1x128xf32> to vector<8x128xf32>
    %5 = arith.addf %2, %4 : vector<8x128xf32>
    %c0_5 = arith.constant 0 : index
    %c0_6 = arith.constant 0 : index
    %6 = vector.load %arg4[%c0_5, %c0_6] : memref<8x128xf32, #tpu.memory_space<vmem>>, vector<8x128xf32>
    tpu.vector_store %arg4[%c0_5, %c0_6], %5 {strides = array<i32>} : memref<8x128xf32, #tpu.memory_space<vmem>>, vector<8x128xf32>,
    return
  }
  func.func @transform_0(%arg0: i32) -> (i32, i32) {
    %c0_i32 = arith.constant 0 : i32
    %c0_i32_0 = arith.constant 0 : i32
    return %arg0, %c0_i32 : i32, i32
  }
  func.func @transform_1(%arg0: i32) -> (i32, i32) {
    %c0_i32 = arith.constant 0 : i32
    %c0_i32_0 = arith.constant 0 : i32
    %c0_i32_1 = arith.constant 0 : i32
    return %c0_i32, %c0_i32_0 : i32, i32
  }
  func.func @transform_2(%arg0: i32) -> (i32, i32) {
    %c0_i32 = arith.constant 0 : i32
    %c0_i32_0 = arith.constant 0 : i32
    %c0_i32_1 = arith.constant 0 : i32
    return %c0_i32, %c0_i32_0 : i32, i32
  }
  func.func @transform_3(%arg0: i32) -> (i32, i32) {
    %c0_i32 = arith.constant 0 : i32
    %c0_i32_0 = arith.constant 0 : i32
    return %arg0, %c0_i32 : i32, i32
  }
}

module attributes {stable_mosaic.version = 11 : i64} {
  func.func @kernel(%arg0: i32, %arg1: memref<8x1152xbf16, #tpu.memory_space<vmem>>, %arg2: memref<1152x128xbf16, #tpu.memory_space<vmem>>, %arg3: memref<1x128xf32, #tpu.memory_space<vmem>>, %arg4: memref<8x128xbf16, #tpu.memory_space<vmem>>) attributes {dimension_semantics = [#tpu.dimension_semantics<parallel>], iteration_bounds = array<i64: 1>, scalar_prefetch = 0 : i64, scratch_operands = 0 : i64, tpu.core_type = #tpu.core_type<tc>, window_params = [{transform_indices = @transform_0, window_bounds = array<i64: 8, 1152>}, {pipeline_mode = #tpu.pipeline_mode<synchronous>, transform_indices = @transform_1, window_bounds = array<i64: 1152, 128>}, {pipeline_mode = #tpu.pipeline_mode<synchronous>, transform_indices = @transform_2, window_bounds = array<i64: 1, 128>}, {transform_indices = @transform_3, window_bounds = array<i64: 8, 128>}]} {
    %c0 = arith.constant 0 : index
    %c0_0 = arith.constant 0 : index
    %0 = vector.load %arg1[%c0, %c0_0] : memref<8x1152xbf16, #tpu.memory_space<vmem>>, vector<8x1152xbf16>
    %c0_1 = arith.constant 0 : index
    %c0_2 = arith.constant 0 : index
    %1 = vector.load %arg2[%c0_1, %c0_2] : memref<1152x128xbf16, #tpu.memory_space<vmem>>, vector<1152x128xbf16>
    %cst = arith.constant dense<0.000000e+00> : vector<8x128xf32>
    %2 = tpu.matmul %0, %1, %cst {dimension_numbers = #tpu.dot_dimension_numbers<[1], [0], [0], [1], [0, 0, 1, 1], [], []>} : vector<8x1152xbf16>, vector<1152x128xbf16>, vector<8x128xf32> -> vector<8x128xf32>
    %c0_3 = arith.constant 0 : index
    %c0_4 = arith.constant 0 : index
    %3 = vector.load %arg3[%c0_3, %c0_4] : memref<1x128xf32, #tpu.memory_space<vmem>>, vector<1x128xf32>
    %4 = vector.broadcast %3 : vector<1x128xf32> to vector<8x128xf32>
    %5 = arith.addf %2, %4 : vector<8x128xf32>
    %cst_5 = arith.constant 0.000000e+00 : f32
    %6 = vector.broadcast %cst_5 : f32 to vector<8x128xf32>
    %7 = arith.maximumf %5, %6 : vector<8x128xf32>
    %8 = arith.truncf %7 : vector<8x128xf32> to vector<8x128xbf16>
    %c0_6 = arith.constant 0 : index
    %c0_7 = arith.constant 0 : index
    %9 = vector.load %arg4[%c0_6, %c0_7] : memref<8x128xbf16, #tpu.memory_space<vmem>>, vector<8x128xbf16>
    tpu.vector_store %arg4[%c0_6, %c0_7], %8 {strides = array<i32>} : memref<8x128xbf16, #tpu.memory_space<vmem>>, vector<8x128xbf16>,
    return
  }
  func.func @transform_0(%arg0: i32) -> (i32, i32) {
    %c0_i32 = arith.constant 0 : i32
    %c0_i32_0 = arith.constant 0 : i32
    return %arg0, %c0_i32 : i32, i32
  }
  func.func @transform_1(%arg0: i32) -> (i32, i32) {
    %c0_i32 = arith.constant 0 : i32
    %c0_i32_0 = arith.constant 0 : i32
    %c0_i32_1 = arith.constant 0 : i32
    return %c0_i32, %c0_i32_0 : i32, i32
  }
  func.func @transform_2(%arg0: i32) -> (i32, i32) {
    %c0_i32 = arith.constant 0 : i32
    %c0_i32_0 = arith.constant 0 : i32
    %c0_i32_1 = arith.constant 0 : i32
    return %c0_i32, %c0_i32_0 : i32, i32
  }
  func.func @transform_3(%arg0: i32) -> (i32, i32) {
    %c0_i32 = arith.constant 0 : i32
    %c0_i32_0 = arith.constant 0 : i32
    return %arg0, %c0_i32 : i32, i32
  }
}

module attributes {stable_mosaic.version = 11 : i64} {
  func.func @kernel(%arg0: i32, %arg1: memref<16x128xbf16, #tpu.memory_space<vmem>>, %arg2: memref<128x128xbf16, #tpu.memory_space<vmem>>, %arg3: memref<1x128xf32, #tpu.memory_space<vmem>>, %arg4: memref<16x128xf32, #tpu.memory_space<vmem>>) attributes {dimension_semantics = [#tpu.dimension_semantics<parallel>], iteration_bounds = array<i64: 2>, scalar_prefetch = 0 : i64, scratch_operands = 0 : i64, tpu.core_type = #tpu.core_type<tc>, window_params = [{transform_indices = @transform_0, window_bounds = array<i64: 16, 128>}, {pipeline_mode = #tpu.pipeline_mode<synchronous>, transform_indices = @transform_1, window_bounds = array<i64: 128, 128>}, {pipeline_mode = #tpu.pipeline_mode<synchronous>, transform_indices = @transform_2, window_bounds = array<i64: 1, 128>}, {transform_indices = @transform_3, window_bounds = array<i64: 16, 128>}]} {
    %c0 = arith.constant 0 : index
    %c0_0 = arith.constant 0 : index
    %0 = vector.load %arg1[%c0, %c0_0] : memref<16x128xbf16, #tpu.memory_space<vmem>>, vector<16x128xbf16>
    %c0_1 = arith.constant 0 : index
    %c0_2 = arith.constant 0 : index
    %1 = vector.load %arg2[%c0_1, %c0_2] : memref<128x128xbf16, #tpu.memory_space<vmem>>, vector<128x128xbf16>
    %cst = arith.constant dense<0.000000e+00> : vector<16x128xf32>
    %2 = tpu.matmul %0, %1, %cst {dimension_numbers = #tpu.dot_dimension_numbers<[1], [0], [0], [1], [0, 0, 1, 1], [], []>} : vector<16x128xbf16>, vector<128x128xbf16>, vector<16x128xf32> -> vector<16x128xf32>
    %c0_3 = arith.constant 0 : index
    %c0_4 = arith.constant 0 : index
    %3 = vector.load %arg3[%c0_3, %c0_4] : memref<1x128xf32, #tpu.memory_space<vmem>>, vector<1x128xf32>
    %4 = vector.broadcast %3 : vector<1x128xf32> to vector<16x128xf32>
    %5 = arith.addf %2, %4 : vector<16x128xf32>
    %c0_5 = arith.constant 0 : index
    %c0_6 = arith.constant 0 : index
    %6 = vector.load %arg4[%c0_5, %c0_6] : memref<16x128xf32, #tpu.memory_space<vmem>>, vector<16x128xf32>
    tpu.vector_store %arg4[%c0_5, %c0_6], %5 {strides = array<i32>} : memref<16x128xf32, #tpu.memory_space<vmem>>, vector<16x128xf32>,
    return
  }
  func.func @transform_0(%arg0: i32) -> (i32, i32) {
    %c0_i32 = arith.constant 0 : i32
    %c0_i32_0 = arith.constant 0 : i32
    return %arg0, %c0_i32 : i32, i32
  }
  func.func @transform_1(%arg0: i32) -> (i32, i32) {
    %c0_i32 = arith.constant 0 : i32
    %c0_i32_0 = arith.constant 0 : i32
    %c0_i32_1 = arith.constant 0 : i32
    return %c0_i32, %c0_i32_0 : i32, i32
  }
  func.func @transform_2(%arg0: i32) -> (i32, i32) {
    %c0_i32 = arith.constant 0 : i32
    %c0_i32_0 = arith.constant 0 : i32
    %c0_i32_1 = arith.constant 0 : i32
    return %c0_i32, %c0_i32_0 : i32, i32
  }
  func.func @transform_3(%arg0: i32) -> (i32, i32) {
    %c0_i32 = arith.constant 0 : i32
    %c0_i32_0 = arith.constant 0 : i32
    return %arg0, %c0_i32 : i32, i32
  }
}

module attributes {stable_mosaic.version = 11 : i64} {
  func.func @kernel(%arg0: i32, %arg1: memref<64x128xbf16, #tpu.memory_space<vmem>>, %arg2: memref<128x128xbf16, #tpu.memory_space<vmem>>, %arg3: memref<1x128xf32, #tpu.memory_space<vmem>>, %arg4: memref<64x128xf32, #tpu.memory_space<vmem>>) attributes {dimension_semantics = [#tpu.dimension_semantics<parallel>], iteration_bounds = array<i64: 2>, scalar_prefetch = 0 : i64, scratch_operands = 0 : i64, tpu.core_type = #tpu.core_type<tc>, window_params = [{transform_indices = @transform_0, window_bounds = array<i64: 64, 128>}, {pipeline_mode = #tpu.pipeline_mode<synchronous>, transform_indices = @transform_1, window_bounds = array<i64: 128, 128>}, {pipeline_mode = #tpu.pipeline_mode<synchronous>, transform_indices = @transform_2, window_bounds = array<i64: 1, 128>}, {transform_indices = @transform_3, window_bounds = array<i64: 64, 128>}]} {
    %c0 = arith.constant 0 : index
    %c0_0 = arith.constant 0 : index
    %0 = vector.load %arg1[%c0, %c0_0] : memref<64x128xbf16, #tpu.memory_space<vmem>>, vector<64x128xbf16>
    %c0_1 = arith.constant 0 : index
    %c0_2 = arith.constant 0 : index
    %1 = vector.load %arg2[%c0_1, %c0_2] : memref<128x128xbf16, #tpu.memory_space<vmem>>, vector<128x128xbf16>
    %cst = arith.constant dense<0.000000e+00> : vector<64x128xf32>
    %2 = tpu.matmul %0, %1, %cst {dimension_numbers = #tpu.dot_dimension_numbers<[1], [0], [0], [1], [0, 0, 1, 1], [], []>} : vector<64x128xbf16>, vector<128x128xbf16>, vector<64x128xf32> -> vector<64x128xf32>
    %c0_3 = arith.constant 0 : index
    %c0_4 = arith.constant 0 : index
    %3 = vector.load %arg3[%c0_3, %c0_4] : memref<1x128xf32, #tpu.memory_space<vmem>>, vector<1x128xf32>
    %4 = vector.broadcast %3 : vector<1x128xf32> to vector<64x128xf32>
    %5 = arith.addf %2, %4 : vector<64x128xf32>
    %c0_5 = arith.constant 0 : index
    %c0_6 = arith.constant 0 : index
    %6 = vector.load %arg4[%c0_5, %c0_6] : memref<64x128xf32, #tpu.memory_space<vmem>>, vector<64x128xf32>
    tpu.vector_store %arg4[%c0_5, %c0_6], %5 {strides = array<i32>} : memref<64x128xf32, #tpu.memory_space<vmem>>, vector<64x128xf32>,
    return
  }
  func.func @transform_0(%arg0: i32) -> (i32, i32) {
    %c0_i32 = arith.constant 0 : i32
    %c0_i32_0 = arith.constant 0 : i32
    return %arg0, %c0_i32 : i32, i32
  }
  func.func @transform_1(%arg0: i32) -> (i32, i32) {
    %c0_i32 = arith.constant 0 : i32
    %c0_i32_0 = arith.constant 0 : i32
    %c0_i32_1 = arith.constant 0 : i32
    return %c0_i32, %c0_i32_0 : i32, i32
  }
  func.func @transform_2(%arg0: i32) -> (i32, i32) {
    %c0_i32 = arith.constant 0 : i32
    %c0_i32_0 = arith.constant 0 : i32
    %c0_i32_1 = arith.constant 0 : i32
    return %c0_i32, %c0_i32_0 : i32, i32
  }
  func.func @transform_3(%arg0: i32) -> (i32, i32) {
    %c0_i32 = arith.constant 0 : i32
    %c0_i32_0 = arith.constant 0 : i32
    return %arg0, %c0_i32 : i32, i32
  }
}

module attributes {stable_mosaic.version = 11 : i64} {
  func.func @_avgpool_kernel(%arg0: i32, %arg1: memref<2x64x256xbf16, #tpu.memory_space<vmem>>, %arg2: memref<2x1x256xf32, #tpu.memory_space<vmem>>) attributes {dimension_semantics = [#tpu.dimension_semantics<arbitrary>], iteration_bounds = array<i64: 1>, scalar_prefetch = 0 : i64, scratch_operands = 0 : i64, tpu.core_type = #tpu.core_type<tc>, window_params = [{pipeline_mode = #tpu.pipeline_mode<synchronous>, transform_indices = @transform_0, window_bounds = array<i64: 2, 64, 256>}, {pipeline_mode = #tpu.pipeline_mode<synchronous>, transform_indices = @transform_1, window_bounds = array<i64: 2, 1, 256>}]} {
    %c0 = arith.constant 0 : index
    %c0_0 = arith.constant 0 : index
    %c0_1 = arith.constant 0 : index
    %0 = vector.load %arg1[%c0, %c0_0, %c0_1] : memref<2x64x256xbf16, #tpu.memory_space<vmem>>, vector<2x64x256xbf16>
    %1 = arith.extf %0 : vector<2x64x256xbf16> to vector<2x64x256xf32>
    %cst = arith.constant dense<0.000000e+00> : vector<2x256xf32>
    %2 = vector.multi_reduction <add>, %1, %cst [1] : vector<2x64x256xf32> to vector<2x256xf32>
    %3 = vector.shape_cast %2 : vector<2x256xf32> to vector<2x1x256xf32>
    %cst_2 = arith.constant 6.400000e+01 : f32
    %4 = vector.broadcast %cst_2 : f32 to vector<2x1x256xf32>
    %5 = arith.divf %3, %4 : vector<2x1x256xf32>
    %c0_3 = arith.constant 0 : index
    %c0_4 = arith.constant 0 : index
    %c0_5 = arith.constant 0 : index
    %6 = vector.load %arg2[%c0_3, %c0_4, %c0_5] : memref<2x1x256xf32, #tpu.memory_space<vmem>>, vector<2x1x256xf32>
    tpu.vector_store %arg2[%c0_3, %c0_4, %c0_5], %5 {strides = array<i32>} : memref<2x1x256xf32, #tpu.memory_space<vmem>>, vector<2x1x256xf32>,
    return
  }
  func.func @transform_0(%arg0: i32) -> (i32, i32, i32) {
    %c0_i32 = arith.constant 0 : i32
    %c0_i32_0 = arith.constant 0 : i32
    %c0_i32_1 = arith.constant 0 : i32
    %c0_i32_2 = arith.constant 0 : i32
    return %c0_i32, %c0_i32_0, %c0_i32_1 : i32, i32, i32
  }
  func.func @transform_1(%arg0: i32) -> (i32, i32, i32) {
    %c0_i32 = arith.constant 0 : i32
    %c0_i32_0 = arith.constant 0 : i32
    %c0_i32_1 = arith.constant 0 : i32
    %c0_i32_2 = arith.constant 0 : i32
    return %c0_i32, %c0_i32_0, %c0_i32_1 : i32, i32, i32
  }
}

</mosaic_0001>

<bundles_post_ra>
// kernel: _stage1.10
= control target key start
LH: loop header
LB: loop body
LE: loop exit
PB: predicated region body
PF: predicated region fallthrough
CT: control target
= control target key end

     0   :  { %s3293_s12 = smov 0   ;;  %s3652_s0 = inlined_call_operand.vmem [shape: bf16[2048,32], index: 0, kind: input, shape index: {}]   ;;  %s3653_s1 = inlined_call_operand.vmem [shape: bf16[32,128], index: 1, kind: input, shape index: {}]   ;;  %s3654_s2 = inlined_call_operand.vmem [shape: f32[1,128], index: 2, kind: input, shape index: {}]   ;;  %s3655_s3 = inlined_call_operand.vmem [shape: bf16[2048,128], index: 3, kind: output, shape index: {}]  }
   0x1 LB: > { %s2208_s13 = sadd.s32 4294967295, %s3271_s12   ;;  %p2212_p0 = scmp.ge.s32.totalorder %s3271_s12, 1  ;;  %s3271_s12 = sphi %s3293_s12, %s13_s12  }
   0x2   : > { %p138_p1 = scmp.lt.s32.totalorder %s3271_s12, 3 }
   0x4   : > { %p139_p2 = pnand %p2212_p0, %p138_p1 }
   0x5   : > { %s2213_s16 = sshll.u32 (!%p139_p2), %s2208_s13, 7 }
   0x6   : > { %142 = sbr.rel (%p139_p2) target bundleno = 346 (0x15a), region = 32  ;;  %p163_p3 = scmp.lt.s32.totalorder (!%p139_p2), %s2213_s16, 255 }
   0xb   : > { %v3199_v0 = vld [vmem:[%s3653_s1 + $0x8] sm:$0xff]   ;;  %v3200_v1 = vld [vmem:[%s3653_s1] sm:$0xff]   ;;  %s3657_s16 = smov (!%p163_p3, %s2213_s16), 255  ;;  %vm646_vm0 = vcmask 261120  }
   0xc   : > { %3055 = vmatprep.subr.bf16.mxu0 %v3199_v0  ;;  %3187 = vmatprep.subr.bf16.mxu1 %v3199_v0  ;;  %s2214_s19 = sshll.u32 %s3657_s16, 2 }
   0xd   : > { %3056 = vmatpush3.bf16.msra.mxu0 %v3199_v0  ;;  %3189 = vmatpush3.bf16.msra.mxu1 %v3199_v0  ;;  %s3315_s22 = scalar_lea.vmem %s3652_s0, %s2214_s19  ;;  %s3462_s27 = scalar_lea.vmem %s3655_s3, %s2214_s19 }
   0xe   : > { %3057 = vmatprep.subr.bf16.mxu0 %v3200_v1  ;;  %3188 = vmatprep.subr.bf16.mxu1 %v3200_v1  ;;  %v3201_v2 = vld [vmem:[%s3315_s22] sm:$0xff]   ;;  %v3203_v4 = vld [vmem:[%s3315_s22 + $0x8] sm:$0xff]   ;;  %v3205_v6 = vld [vmem:[%s3315_s22 + $0x10] sm:$0xff]  }
   0xf   : > { %v3202_v3 = vld [vmem:[%s3315_s22 + $0x100] sm:$0xff]   ;;  %3059 = vmatprep.mubr.msk.bf16.mxu0 %vm646_vm0, %v3201_v2  ;;  %v3204_v5 = vld [vmem:[%s3315_s22 + $0x108] sm:$0xff]   ;;  %v3206_v7 = vld [vmem:[%s3315_s22 + $0x110] sm:$0xff]  }
  0x10   : > { %3123 = vmatprep.mubr.msk.bf16.mxu1 %vm646_vm0, %v3202_v3  ;;  %v3207_v8 = vld [vmem:[%s3315_s22 + $0x18] sm:$0xff]   ;;  %v3209_v10 = vld [vmem:[%s3315_s22 + $0x20] sm:$0xff]   ;;  %v3211_v12 = vld [vmem:[%s3315_s22 + $0x28] sm:$0xff]  }
  0x11   : > { %3058 = vmatpush3.bf16.msra.mxu0 %v3200_v1  ;;  %3190 = vmatpush3.bf16.msra.mxu1 %v3200_v1  ;;  %v3208_v9 = vld [vmem:[%s3315_s22 + $0x118] sm:$0xff]   ;;  %v3210_v11 = vld [vmem:[%s3315_s22 + $0x120] sm:$0xff]   ;;  %v3212_v13 = vld [vmem:[%s3315_s22 + $0x128] sm:$0xff]  }
  0x12   : > { %v3213_v14 = vld [vmem:[%s3315_s22 + $0x30] sm:$0xff]   ;;  %v3215_v16 = vld [vmem:[%s3315_s22 + $0x38] sm:$0xff]   ;;  %v3217_v18 = vld [vmem:[%s3315_s22 + $0x40] sm:$0xff]  }
  0x13   : > { %v3214_v15 = vld [vmem:[%s3315_s22 + $0x130] sm:$0xff]   ;;  %v3216_v17 = vld [vmem:[%s3315_s22 + $0x138] sm:$0xff]   ;;  %v3218_v19 = vld [vmem:[%s3315_s22 + $0x140] sm:$0xff]  }
  0x14   : > { %3060 = vmatmul.mubr.msk.bf16.vlgmr.msra.gmra.mxu0 %vm646_vm0, %v3203_v4  ;;  %3124 = vmatmul.mubr.msk.bf16.vlgmr.msra.gmra.mxu1 %vm646_vm0, %v3204_v5  ;;  %v3219_v20 = vld [vmem:[%s3315_s22 + $0x48] sm:$0xff]   ;;  %v3221_v22 = vld [vmem:[%s3315_s22 + $0x50] sm:$0xff]   ;;  %v3223_v24 = vld [vmem:[%s3315_s22 + $0x58] sm:$0xff]  }
  0x15   : > { %3063 = vmatprep.mubr.msk.bf16.mxu0 %vm646_vm0, %v3205_v6  ;;  %3127 = vmatprep.mubr.msk.bf16.mxu1 %vm646_vm0, %v3206_v7  ;;  %v3220_v21 = vld [vmem:[%s3315_s22 + $0x148] sm:$0xff]   ;;  %v3222_v23 = vld [vmem:[%s3315_s22 + $0x150] sm:$0xff]   ;;  %v3224_v25 = vld [vmem:[%s3315_s22 + $0x158] sm:$0xff]  }
  0x16   : > { %v3225_v26 = vld [vmem:[%s3315_s22 + $0x60] sm:$0xff]   ;;  %v3227_v28 = vld [vmem:[%s3315_s22 + $0x68] sm:$0xff]   ;;  %v3229_v30 = vld [vmem:[%s3315_s22 + $0x70] sm:$0xff]  }
  0x17   : > { %v3226_v27 = vld [vmem:[%s3315_s22 + $0x160] sm:$0xff]   ;;  %v3228_v29 = vld [vmem:[%s3315_s22 + $0x168] sm:$0xff]   ;;  %v3230_v31 = vld [vmem:[%s3315_s22 + $0x170] sm:$0xff]  }
  0x18   : > { %v3231_v32 = vld [vmem:[%s3315_s22 + $0x78] sm:$0xff]   ;;  %v3233_v34 = vld [vmem:[%s3315_s22 + $0x80] sm:$0xff]   ;;  %v3235_v36 = vld [vmem:[%s3315_s22 + $0x88] sm:$0xff]  }
  0x19   : > { %v3232_v33 = vld [vmem:[%s3315_s22 + $0x178] sm:$0xff]   ;;  %v3234_v35 = vld [vmem:[%s3315_s22 + $0x180] sm:$0xff]   ;;  %v3236_v37 = vld [vmem:[%s3315_s22 + $0x188] sm:$0xff]  }
  0x1a   : > { %v3237_v38 = vld [vmem:[%s3315_s22 + $0x90] sm:$0xff]   ;;  %v3239_v40 = vld [vmem:[%s3315_s22 + $0x98] sm:$0xff]   ;;  %v3241_v42 = vld [vmem:[%s3315_s22 + $0xa0] sm:$0xff]  }
  0x1b   : > { %v3238_v39 = vld [vmem:[%s3315_s22 + $0x190] sm:$0xff]   ;;  %v3240_v41 = vld [vmem:[%s3315_s22 + $0x198] sm:$0xff]   ;;  %v3242_v43 = vld [vmem:[%s3315_s22 + $0x1a0] sm:$0xff]  }
  0x1c   : > { %3064 = vmatmul.mubr.msk.bf16.gmra.mxu0 %vm646_vm0, %v3207_v8  ;;  %3128 = vmatmul.mubr.msk.bf16.gmra.mxu1 %vm646_vm0, %v3208_v9  ;;  %v3243_v44 = vld [vmem:[%s3315_s22 + $0xa8] sm:$0xff]   ;;  %v3245_v46 = vld [vmem:[%s3315_s22 + $0xb0] sm:$0xff]   ;;  %v3247_v48 = vld [vmem:[%s3315_s22 + $0xb8] sm:$0xff]  }
  0x1d   : > { %3067 = vmatprep.mubr.msk.bf16.mxu0 %vm646_vm0, %v3209_v10  ;;  %3131 = vmatprep.mubr.msk.bf16.mxu1 %vm646_vm0, %v3210_v11  ;;  %v3244_v45 = vld [vmem:[%s3315_s22 + $0x1a8] sm:$0xff]   ;;  %v3246_v47 = vld [vmem:[%s3315_s22 + $0x1b0] sm:$0xff]   ;;  %v3248_v49 = vld [vmem:[%s3315_s22 + $0x1b8] sm:$0xff]  }
  0x1e   : > { %v3249_v50 = vld [vmem:[%s3315_s22 + $0xc0] sm:$0xff]   ;;  %v3251_v52 = vld [vmem:[%s3315_s22 + $0xc8] sm:$0xff]   ;;  %v3253_v54 = vld [vmem:[%s3315_s22 + $0xd0] sm:$0xff]  }
  0x1f   : > { %v3250_v51 = vld [vmem:[%s3315_s22 + $0x1c0] sm:$0xff]   ;;  %v3252_v53 = vld [vmem:[%s3315_s22 + $0x1c8] sm:$0xff]   ;;  %v3254_v55 = vld [vmem:[%s3315_s22 + $0x1d0] sm:$0xff]  }
  0x20   : > { %v3255_v56 = vld [vmem:[%s3315_s22 + $0xd8] sm:$0xff]   ;;  %v3257_v58 = vld [vmem:[%s3315_s22 + $0xe0] sm:$0xff]   ;;  %v3259_v60 = vld [vmem:[%s3315_s22 + $0xe8] sm:$0xff]  }
  0x21   : > { %v3256_v57 = vld [vmem:[%s3315_s22 + $0x1d8] sm:$0xff]   ;;  %v3258_v59 = vld [vmem:[%s3315_s22 + $0x1e0] sm:$0xff]   ;;  %v3260_v61 = vld [vmem:[%s3315_s22 + $0x1e8] sm:$0xff]  }
  0x22   : > { %v3261_v62 = vld [vmem:[%s3315_s22 + $0xf0] sm:$0xff]   ;;  %v3263_v0 = vld [vmem:[%s3315_s22 + $0xf8] sm:$0xff]   ;;  %v3448_v3 = vld [vmem:[%s3654_s2] ss:$0 sm:$0xff] }
  0x23   : > { %v3262_v63 = vld [vmem:[%s3315_s22 + $0x1f0] sm:$0xff]   ;;  %v3264_v1 = vld [vmem:[%s3315_s22 + $0x1f8] sm:$0xff]  }
  0x24   : > { %3068 = vmatmul.mubr.msk.bf16.gmra.mxu0 %vm646_vm0, %v3211_v12  ;;  %3132 = vmatmul.mubr.msk.bf16.gmra.mxu1 %vm646_vm0, %v3212_v13 }
  0x25   : > { %3071 = vmatprep.mubr.msk.bf16.mxu0 %vm646_vm0, %v3213_v14  ;;  %3135 = vmatprep.mubr.msk.bf16.mxu1 %vm646_vm0, %v3214_v15 }
  0x2c   : > { %3072 = vmatmul.mubr.msk.bf16.gmra.mxu0 %vm646_vm0, %v3215_v16  ;;  %3136 = vmatmul.mubr.msk.bf16.gmra.mxu1 %vm646_vm0, %v3216_v17 }
  0x2d   : > { %3075 = vmatprep.mubr.msk.bf16.mxu0 %vm646_vm0, %v3217_v18  ;;  %3139 = vmatprep.mubr.msk.bf16.mxu1 %vm646_vm0, %v3218_v19 }
  0x34   : > { %3076 = vmatmul.mubr.msk.bf16.gmra.mxu0 %vm646_vm0, %v3219_v20  ;;  %3140 = vmatmul.mubr.msk.bf16.gmra.mxu1 %vm646_vm0, %v3220_v21 }
  0x35   : > { %3079 = vmatprep.mubr.msk.bf16.mxu0 %vm646_vm0, %v3221_v22  ;;  %3143 = vmatprep.mubr.msk.bf16.mxu1 %vm646_vm0, %v3222_v23 }
  0x3c   : > { %3080 = vmatmul.mubr.msk.bf16.gmra.mxu0 %vm646_vm0, %v3223_v24  ;;  %3144 = vmatmul.mubr.msk.bf16.gmra.mxu1 %vm646_vm0, %v3224_v25 }
  0x3d   : > { %3083 = vmatprep.mubr.msk.bf16.mxu0 %vm646_vm0, %v3225_v26  ;;  %3147 = vmatprep.mubr.msk.bf16.mxu1 %vm646_vm0, %v3226_v27 }
  0x44   : > { %3084 = vmatmul.mubr.msk.bf16.gmra.mxu0 %vm646_vm0, %v3227_v28  ;;  %3148 = vmatmul.mubr.msk.bf16.gmra.mxu1 %vm646_vm0, %v3228_v29 }
  0x45   : > { %3087 = vmatprep.mubr.msk.bf16.mxu0 %vm646_vm0, %v3229_v30  ;;  %3151 = vmatprep.mubr.msk.bf16.mxu1 %vm646_vm0, %v3230_v31 }
  0x4c   : > { %3088 = vmatmul.mubr.msk.bf16.gmra.mxu0 %vm646_vm0, %v3231_v32  ;;  %3152 = vmatmul.mubr.msk.bf16.gmra.mxu1 %vm646_vm0, %v3232_v33 }
  0x4d   : > { %3091 = vmatprep.mubr.msk.bf16.mxu0 %vm646_vm0, %v3233_v34  ;;  %3155 = vmatprep.mubr.msk.bf16.mxu1 %vm646_vm0, %v3234_v35 }
  0x54   : > { %3092 = vmatmul.mubr.msk.bf16.gmra.mxu0 %vm646_vm0, %v3235_v36  ;;  %3156 = vmatmul.mubr.msk.bf16.gmra.mxu1 %vm646_vm0, %v3236_v37 }
  0x55   : > { %3095 = vmatprep.mubr.msk.bf16.mxu0 %vm646_vm0, %v3237_v38  ;;  %3159 = vmatprep.mubr.msk.bf16.mxu1 %vm646_vm0, %v3238_v39 }
  0x5c   : > { %3096 = vmatmul.mubr.msk.bf16.gmra.mxu0 %vm646_vm0, %v3239_v40  ;;  %3160 = vmatmul.mubr.msk.bf16.gmra.mxu1 %vm646_vm0, %v3240_v41 }
  0x5d   : > { %3099 = vmatprep.mubr.msk.bf16.mxu0 %vm646_vm0, %v3241_v42  ;;  %3163 = vmatprep.mubr.msk.bf16.mxu1 %vm646_vm0, %v3242_v43 }
  0x64   : > { %3100 = vmatmul.mubr.msk.bf16.gmra.mxu0 %vm646_vm0, %v3243_v44  ;;  %3164 = vmatmul.mubr.msk.bf16.gmra.mxu1 %vm646_vm0, %v3244_v45 }
  0x65   : > { %3103 = vmatprep.mubr.msk.bf16.mxu0 %vm646_vm0, %v3245_v46  ;;  %3167 = vmatprep.mubr.msk.bf16.mxu1 %vm646_vm0, %v3246_v47 }
  0x6c   : > { %3104 = vmatmul.mubr.msk.bf16.gmra.mxu0 %vm646_vm0, %v3247_v48  ;;  %3168 = vmatmul.mubr.msk.bf16.gmra.mxu1 %vm646_vm0, %v3248_v49 }
  0x6d   : > { %3107 = vmatprep.mubr.msk.bf16.mxu0 %vm646_vm0, %v3249_v50  ;;  %3171 = vmatprep.mubr.msk.bf16.mxu1 %vm646_vm0, %v3250_v51 }
  0x74   : > { %3108 = vmatmul.mubr.msk.bf16.gmra.mxu0 %vm646_vm0, %v3251_v52  ;;  %3172 = vmatmul.mubr.msk.bf16.gmra.mxu1 %vm646_vm0, %v3252_v53 }
  0x75   : > { %3111 = vmatprep.mubr.msk.bf16.mxu0 %vm646_vm0, %v3253_v54  ;;  %3175 = vmatprep.mubr.msk.bf16.mxu1 %vm646_vm0, %v3254_v55 }
  0x7c   : > { %3112 = vmatmul.mubr.msk.bf16.gmra.mxu0 %vm646_vm0, %v3255_v56  ;;  %3176 = vmatmul.mubr.msk.bf16.gmra.mxu1 %vm646_vm0, %v3256_v57 }
  0x7d   : > { %3115 = vmatprep.mubr.msk.bf16.mxu0 %vm646_vm0, %v3257_v58  ;;  %3179 = vmatprep.mubr.msk.bf16.mxu1 %vm646_vm0, %v3258_v59 }
  0x84   : > { %3116 = vmatmul.mubr.msk.bf16.gmra.mxu0 %vm646_vm0, %v3259_v60  ;;  %3180 = vmatmul.mubr.msk.bf16.gmra.mxu1 %vm646_vm0, %v3260_v61 }
  0x85   : > { %3119 = vmatprep.mubr.msk.bf16.mxu0 %vm646_vm0, %v3261_v62  ;;  %3183 = vmatprep.mubr.msk.bf16.mxu1 %vm646_vm0, %v3262_v63 }
  0x8c   : > { %3120 = vmatmul.mubr.msk.bf16.gmra.mxu0 %vm646_vm0, %v3263_v0  ;;  %3184 = vmatmul.mubr.msk.bf16.gmra.mxu1 %vm646_vm0, %v3264_v1 }
  0xd4   : > { %v3061_v2 = vpop.f32.mrf.mxu0  ;;  %v3125_v4 = vpop.f32.mrf.mxu1 }
  0xd5   : > { %v882_v6 = vadd.f32 %v3061_v2, %v3448_v3  ;;  %v1138_v8 = vadd.f32 %v3125_v4, %v3448_v3 }
  0xd6   : > { %v873_v5 = vpop.f32.mrf.mxu0  ;;  %v1129_v7 = vpop.f32.mrf.mxu1 }
  0xd7   : > { %v874_v10 = vadd.f32 %v3448_v3, %v873_v5  ;;  %v1130_v13 = vadd.f32 %v3448_v3, %v1129_v7  ;;  %v1386_v16 = vmax.f32 %v882_v6, 0.0  ;;  %v1450_v20 = vmax.f32 %v1138_v8, 0.0 }
  0xd8   : > { %v3062_v9 = vpop.f32.mrf.mxu0  ;;  %v3126_v12 = vpop.f32.mrf.mxu1 }
  0xd9   : > { %v885_v11 = vadd.f32 %v3062_v9, %v3448_v3  ;;  %v1141_v14 = vadd.f32 %v3126_v12, %v3448_v3  ;;  %v1384_v24 = vmax.f32 %v874_v10, 0.0  ;;  %v1448_v28 = vmax.f32 %v1130_v13, 0.0 }
  0xda   : > { %v876_v15 = vpop.f32.mrf.mxu0  ;;  %v1132_v19 = vpop.f32.mrf.mxu1 }
  0xdb   : > { %v1387_v17 = vmax.f32 %v885_v11, 0.0  ;;  %v877_v18 = vadd.f32 %v3448_v3, %v876_v15  ;;  %v1451_v21 = vmax.f32 %v1141_v14, 0.0  ;;  %v1133_v22 = vadd.f32 %v3448_v3, %v1132_v19 }
  0xdc   : > { %v3065_v23 = vpop.f32.mrf.mxu0  ;;  %v3129_v27 = vpop.f32.mrf.mxu1 }
  0xdd   : > { %v2614_v25 = vpack.c.bf16 %v1387_v17, %v1386_v16  ;;  %v1385_v26 = vmax.f32 %v877_v18, 0.0  ;;  %v2774_v29 = vpack.c.bf16 %v1451_v21, %v1450_v20  ;;  %v1449_v30 = vmax.f32 %v1133_v22, 0.0 }
  0xde   : > { %v889_v31 = vpop.f32.mrf.mxu0  ;;  %v898_v33 = vadd.f32 %v3065_v23, %v3448_v3  ;;  %v1145_v34 = vpop.f32.mrf.mxu1  ;;  %v1154_v36 = vadd.f32 %v3129_v27, %v3448_v3 }
  0xdf   : > { %2926 = vst [vmem:[%s3462_s27 + $0x8] sm:$0xff] %v2614_v25   ;;  %v2609_v32 = vpack.c.bf16 %v1385_v26, %v1384_v24  ;;  %2958 = vst [vmem:[%s3462_s27 + $0x108] sm:$0xff] %v2774_v29   ;;  %v2769_v35 = vpack.c.bf16 %v1449_v30, %v1448_v28  ;;  %v890_v38 = vadd.f32 %v3448_v3, %v889_v31 }
  0xe0   : > { %v3066_v37 = vpop.f32.mrf.mxu0  ;;  %v3130_v40 = vpop.f32.mrf.mxu1  ;;  %v1146_v41 = vadd.f32 %v3448_v3, %v1145_v34  ;;  %v1390_v44 = vmax.f32 %v898_v33, 0.0  ;;  %v1454_v48 = vmax.f32 %v1154_v36, 0.0 }
  0xe1   : > { %2610 = vst [vmem:[%s3462_s27] sm:$0xff] %v2609_v32   ;;  %v901_v39 = vadd.f32 %v3066_v37, %v3448_v3  ;;  %2957 = vst [vmem:[%s3462_s27 + $0x100] sm:$0xff] %v2769_v35   ;;  %v1157_v42 = vadd.f32 %v3130_v40, %v3448_v3  ;;  %v1388_v52 = vmax.f32 %v890_v38, 0.0 }
  0xe2   : > { %v892_v43 = vpop.f32.mrf.mxu0  ;;  %v1148_v47 = vpop.f32.mrf.mxu1  ;;  %v1452_v56 = vmax.f32 %v1146_v41, 0.0 }
  0xe3   : > { %v1391_v45 = vmax.f32 %v901_v39, 0.0  ;;  %v893_v46 = vadd.f32 %v3448_v3, %v892_v43  ;;  %v1455_v49 = vmax.f32 %v1157_v42, 0.0  ;;  %v1149_v50 = vadd.f32 %v3448_v3, %v1148_v47 }
  0xe4   : > { %v3069_v51 = vpop.f32.mrf.mxu0  ;;  %v3133_v55 = vpop.f32.mrf.mxu1 }
  0xe5   : > { %v2624_v53 = vpack.c.bf16 %v1391_v45, %v1390_v44  ;;  %v1389_v54 = vmax.f32 %v893_v46, 0.0  ;;  %v2784_v57 = vpack.c.bf16 %v1455_v49, %v1454_v48  ;;  %v1453_v58 = vmax.f32 %v1149_v50, 0.0 }
  0xe6   : > { %v905_v59 = vpop.f32.mrf.mxu0  ;;  %v914_v61 = vadd.f32 %v3069_v51, %v3448_v3  ;;  %v1161_v62 = vpop.f32.mrf.mxu1  ;;  %v1170_v0 = vadd.f32 %v3133_v55, %v3448_v3 }
  0xe7   : > { %2928 = vst [vmem:[%s3462_s27 + $0x18] sm:$0xff] %v2624_v53   ;;  %v2619_v60 = vpack.c.bf16 %v1389_v54, %v1388_v52  ;;  %2960 = vst [vmem:[%s3462_s27 + $0x118] sm:$0xff] %v2784_v57   ;;  %v2779_v63 = vpack.c.bf16 %v1453_v58, %v1452_v56  ;;  %v906_v2 = vadd.f32 %v3448_v3, %v905_v59 }
  0xe8   : > { %v3070_v1 = vpop.f32.mrf.mxu0  ;;  %v3134_v5 = vpop.f32.mrf.mxu1  ;;  %v1162_v6 = vadd.f32 %v3448_v3, %v1161_v62  ;;  %v1394_v9 = vmax.f32 %v914_v61, 0.0  ;;  %v1458_v13 = vmax.f32 %v1170_v0, 0.0 }
  0xe9   : > { %2927 = vst [vmem:[%s3462_s27 + $0x10] sm:$0xff] %v2619_v60   ;;  %v917_v4 = vadd.f32 %v3070_v1, %v3448_v3  ;;  %2959 = vst [vmem:[%s3462_s27 + $0x110] sm:$0xff] %v2779_v63   ;;  %v1173_v7 = vadd.f32 %v3134_v5, %v3448_v3  ;;  %v1392_v17 = vmax.f32 %v906_v2, 0.0 }
  0xea   : > { %v908_v8 = vpop.f32.mrf.mxu0  ;;  %v1164_v12 = vpop.f32.mrf.mxu1  ;;  %v1456_v21 = vmax.f32 %v1162_v6, 0.0 }
  0xeb   : > { %v1395_v10 = vmax.f32 %v917_v4, 0.0  ;;  %v909_v11 = vadd.f32 %v3448_v3, %v908_v8  ;;  %v1459_v14 = vmax.f32 %v1173_v7, 0.0  ;;  %v1165_v15 = vadd.f32 %v3448_v3, %v1164_v12 }
  0xec   : > { %v3073_v16 = vpop.f32.mrf.mxu0  ;;  %v3137_v20 = vpop.f32.mrf.mxu1 }
  0xed   : > { %v2634_v18 = vpack.c.bf16 %v1395_v10, %v1394_v9  ;;  %v1393_v19 = vmax.f32 %v909_v11, 0.0  ;;  %v2794_v22 = vpack.c.bf16 %v1459_v14, %v1458_v13  ;;  %v1457_v23 = vmax.f32 %v1165_v15, 0.0 }
  0xee   : > { %v921_v24 = vpop.f32.mrf.mxu0  ;;  %v930_v26 = vadd.f32 %v3073_v16, %v3448_v3  ;;  %v1177_v27 = vpop.f32.mrf.mxu1  ;;  %v1186_v29 = vadd.f32 %v3137_v20, %v3448_v3 }
  0xef   : > { %2930 = vst [vmem:[%s3462_s27 + $0x28] sm:$0xff] %v2634_v18   ;;  %v2629_v25 = vpack.c.bf16 %v1393_v19, %v1392_v17  ;;  %2962 = vst [vmem:[%s3462_s27 + $0x128] sm:$0xff] %v2794_v22   ;;  %v2789_v28 = vpack.c.bf16 %v1457_v23, %v1456_v21  ;;  %v922_v31 = vadd.f32 %v3448_v3, %v921_v24 }
  0xf0   : > { %v3074_v30 = vpop.f32.mrf.mxu0  ;;  %v3138_v33 = vpop.f32.mrf.mxu1  ;;  %v1178_v34 = vadd.f32 %v3448_v3, %v1177_v27  ;;  %v1398_v37 = vmax.f32 %v930_v26, 0.0  ;;  %v1462_v41 = vmax.f32 %v1186_v29, 0.0 }
  0xf1   : > { %2929 = vst [vmem:[%s3462_s27 + $0x20] sm:$0xff] %v2629_v25   ;;  %v933_v32 = vadd.f32 %v3074_v30, %v3448_v3  ;;  %2961 = vst [vmem:[%s3462_s27 + $0x120] sm:$0xff] %v2789_v28   ;;  %v1189_v35 = vadd.f32 %v3138_v33, %v3448_v3  ;;  %v1396_v45 = vmax.f32 %v922_v31, 0.0 }
  0xf2   : > { %v924_v36 = vpop.f32.mrf.mxu0  ;;  %v1180_v40 = vpop.f32.mrf.mxu1  ;;  %v1460_v49 = vmax.f32 %v1178_v34, 0.0 }
  0xf3   : > { %v1399_v38 = vmax.f32 %v933_v32, 0.0  ;;  %v925_v39 = vadd.f32 %v3448_v3, %v924_v36  ;;  %v1463_v42 = vmax.f32 %v1189_v35, 0.0  ;;  %v1181_v43 = vadd.f32 %v3448_v3, %v1180_v40 }
  0xf4   : > { %v3077_v44 = vpop.f32.mrf.mxu0  ;;  %v3141_v48 = vpop.f32.mrf.mxu1 }
  0xf5   : > { %v2644_v46 = vpack.c.bf16 %v1399_v38, %v1398_v37  ;;  %v1397_v47 = vmax.f32 %v925_v39, 0.0  ;;  %v2804_v50 = vpack.c.bf16 %v1463_v42, %v1462_v41  ;;  %v1461_v51 = vmax.f32 %v1181_v43, 0.0 }
  0xf6   : > { %v937_v52 = vpop.f32.mrf.mxu0  ;;  %v946_v54 = vadd.f32 %v3077_v44, %v3448_v3  ;;  %v1193_v55 = vpop.f32.mrf.mxu1  ;;  %v1202_v57 = vadd.f32 %v3141_v48, %v3448_v3 }
  0xf7   : > { %2932 = vst [vmem:[%s3462_s27 + $0x38] sm:$0xff] %v2644_v46   ;;  %v2639_v53 = vpack.c.bf16 %v1397_v47, %v1396_v45  ;;  %2964 = vst [vmem:[%s3462_s27 + $0x138] sm:$0xff] %v2804_v50   ;;  %v2799_v56 = vpack.c.bf16 %v1461_v51, %v1460_v49  ;;  %v938_v59 = vadd.f32 %v3448_v3, %v937_v52 }
  0xf8   : > { %v3078_v58 = vpop.f32.mrf.mxu0  ;;  %v3142_v61 = vpop.f32.mrf.mxu1  ;;  %v1194_v62 = vadd.f32 %v3448_v3, %v1193_v55  ;;  %v1402_v1 = vmax.f32 %v946_v54, 0.0  ;;  %v1466_v6 = vmax.f32 %v1202_v57, 0.0 }
  0xf9   : > { %2931 = vst [vmem:[%s3462_s27 + $0x30] sm:$0xff] %v2639_v53   ;;  %v949_v60 = vadd.f32 %v3078_v58, %v3448_v3  ;;  %2963 = vst [vmem:[%s3462_s27 + $0x130] sm:$0xff] %v2799_v56   ;;  %v1205_v63 = vadd.f32 %v3142_v61, %v3448_v3  ;;  %v1400_v10 = vmax.f32 %v938_v59, 0.0 }
  0xfa   : > { %v940_v0 = vpop.f32.mrf.mxu0  ;;  %v1196_v5 = vpop.f32.mrf.mxu1  ;;  %v1464_v14 = vmax.f32 %v1194_v62, 0.0 }
  0xfb   : > { %v1403_v2 = vmax.f32 %v949_v60, 0.0  ;;  %v941_v4 = vadd.f32 %v3448_v3, %v940_v0  ;;  %v1467_v7 = vmax.f32 %v1205_v63, 0.0  ;;  %v1197_v8 = vadd.f32 %v3448_v3, %v1196_v5 }
  0xfc   : > { %v3081_v9 = vpop.f32.mrf.mxu0  ;;  %v3145_v13 = vpop.f32.mrf.mxu1 }
  0xfd   : > { %v2654_v11 = vpack.c.bf16 %v1403_v2, %v1402_v1  ;;  %v1401_v12 = vmax.f32 %v941_v4, 0.0  ;;  %v2814_v15 = vpack.c.bf16 %v1467_v7, %v1466_v6  ;;  %v1465_v16 = vmax.f32 %v1197_v8, 0.0 }
  0xfe   : > { %v953_v17 = vpop.f32.mrf.mxu0  ;;  %v962_v19 = vadd.f32 %v3081_v9, %v3448_v3  ;;  %v1209_v20 = vpop.f32.mrf.mxu1  ;;  %v1218_v22 = vadd.f32 %v3145_v13, %v3448_v3 }
  0xff   : > { %2934 = vst [vmem:[%s3462_s27 + $0x48] sm:$0xff] %v2654_v11   ;;  %v2649_v18 = vpack.c.bf16 %v1401_v12, %v1400_v10  ;;  %2966 = vst [vmem:[%s3462_s27 + $0x148] sm:$0xff] %v2814_v15   ;;  %v2809_v21 = vpack.c.bf16 %v1465_v16, %v1464_v14  ;;  %v954_v24 = vadd.f32 %v3448_v3, %v953_v17 }
 0x100   : > { %v3082_v23 = vpop.f32.mrf.mxu0  ;;  %v3146_v26 = vpop.f32.mrf.mxu1  ;;  %v1210_v27 = vadd.f32 %v3448_v3, %v1209_v20  ;;  %v1406_v30 = vmax.f32 %v962_v19, 0.0  ;;  %v1470_v34 = vmax.f32 %v1218_v22, 0.0 }
 0x101   : > { %2933 = vst [vmem:[%s3462_s27 + $0x40] sm:$0xff] %v2649_v18   ;;  %v965_v25 = vadd.f32 %v3082_v23, %v3448_v3  ;;  %2965 = vst [vmem:[%s3462_s27 + $0x140] sm:$0xff] %v2809_v21   ;;  %v1221_v28 = vadd.f32 %v3146_v26, %v3448_v3  ;;  %v1404_v38 = vmax.f32 %v954_v24, 0.0 }
 0x102   : > { %v956_v29 = vpop.f32.mrf.mxu0  ;;  %v1212_v33 = vpop.f32.mrf.mxu1  ;;  %v1468_v42 = vmax.f32 %v1210_v27, 0.0 }
 0x103   : > { %v1407_v31 = vmax.f32 %v965_v25, 0.0  ;;  %v957_v32 = vadd.f32 %v3448_v3, %v956_v29  ;;  %v1471_v35 = vmax.f32 %v1221_v28, 0.0  ;;  %v1213_v36 = vadd.f32 %v3448_v3, %v1212_v33 }
 0x104   : > { %v3085_v37 = vpop.f32.mrf.mxu0  ;;  %v3149_v41 = vpop.f32.mrf.mxu1 }
 0x105   : > { %v2664_v39 = vpack.c.bf16 %v1407_v31, %v1406_v30  ;;  %v1405_v40 = vmax.f32 %v957_v32, 0.0  ;;  %v2824_v43 = vpack.c.bf16 %v1471_v35, %v1470_v34  ;;  %v1469_v44 = vmax.f32 %v1213_v36, 0.0 }
 0x106   : > { %v969_v45 = vpop.f32.mrf.mxu0  ;;  %v978_v47 = vadd.f32 %v3085_v37, %v3448_v3  ;;  %v1225_v48 = vpop.f32.mrf.mxu1  ;;  %v1234_v50 = vadd.f32 %v3149_v41, %v3448_v3 }
 0x107   : > { %2936 = vst [vmem:[%s3462_s27 + $0x58] sm:$0xff] %v2664_v39   ;;  %v2659_v46 = vpack.c.bf16 %v1405_v40, %v1404_v38  ;;  %2968 = vst [vmem:[%s3462_s27 + $0x158] sm:$0xff] %v2824_v43   ;;  %v2819_v49 = vpack.c.bf16 %v1469_v44, %v1468_v42  ;;  %v970_v52 = vadd.f32 %v3448_v3, %v969_v45 }
 0x108   : > { %v3086_v51 = vpop.f32.mrf.mxu0  ;;  %v3150_v54 = vpop.f32.mrf.mxu1  ;;  %v1226_v55 = vadd.f32 %v3448_v3, %v1225_v48  ;;  %v1410_v58 = vmax.f32 %v978_v47, 0.0  ;;  %v1474_v62 = vmax.f32 %v1234_v50, 0.0 }
 0x109   : > { %2935 = vst [vmem:[%s3462_s27 + $0x50] sm:$0xff] %v2659_v46   ;;  %v981_v53 = vadd.f32 %v3086_v51, %v3448_v3  ;;  %2967 = vst [vmem:[%s3462_s27 + $0x150] sm:$0xff] %v2819_v49   ;;  %v1237_v56 = vadd.f32 %v3150_v54, %v3448_v3  ;;  %v1408_v2 = vmax.f32 %v970_v52, 0.0 }
 0x10a   : > { %v972_v57 = vpop.f32.mrf.mxu0  ;;  %v1228_v61 = vpop.f32.mrf.mxu1  ;;  %v1472_v7 = vmax.f32 %v1226_v55, 0.0 }
 0x10b   : > { %v1411_v59 = vmax.f32 %v981_v53, 0.0  ;;  %v973_v60 = vadd.f32 %v3448_v3, %v972_v57  ;;  %v1475_v63 = vmax.f32 %v1237_v56, 0.0  ;;  %v1229_v0 = vadd.f32 %v3448_v3, %v1228_v61 }
 0x10c   : > { %v3089_v1 = vpop.f32.mrf.mxu0  ;;  %v3153_v6 = vpop.f32.mrf.mxu1 }
 0x10d   : > { %v2674_v4 = vpack.c.bf16 %v1411_v59, %v1410_v58  ;;  %v1409_v5 = vmax.f32 %v973_v60, 0.0  ;;  %v2834_v8 = vpack.c.bf16 %v1475_v63, %v1474_v62  ;;  %v1473_v9 = vmax.f32 %v1229_v0, 0.0 }
 0x10e   : > { %v985_v10 = vpop.f32.mrf.mxu0  ;;  %v994_v12 = vadd.f32 %v3089_v1, %v3448_v3  ;;  %v1241_v13 = vpop.f32.mrf.mxu1  ;;  %v1250_v15 = vadd.f32 %v3153_v6, %v3448_v3 }
 0x10f   : > { %2938 = vst [vmem:[%s3462_s27 + $0x68] sm:$0xff] %v2674_v4   ;;  %v2669_v11 = vpack.c.bf16 %v1409_v5, %v1408_v2  ;;  %2970 = vst [vmem:[%s3462_s27 + $0x168] sm:$0xff] %v2834_v8   ;;  %v2829_v14 = vpack.c.bf16 %v1473_v9, %v1472_v7  ;;  %v986_v17 = vadd.f32 %v3448_v3, %v985_v10 }
 0x110   : > { %v3090_v16 = vpop.f32.mrf.mxu0  ;;  %v3154_v19 = vpop.f32.mrf.mxu1  ;;  %v1242_v20 = vadd.f32 %v3448_v3, %v1241_v13  ;;  %v1414_v23 = vmax.f32 %v994_v12, 0.0  ;;  %v1478_v27 = vmax.f32 %v1250_v15, 0.0 }
 0x111   : > { %2937 = vst [vmem:[%s3462_s27 + $0x60] sm:$0xff] %v2669_v11   ;;  %v997_v18 = vadd.f32 %v3090_v16, %v3448_v3  ;;  %2969 = vst [vmem:[%s3462_s27 + $0x160] sm:$0xff] %v2829_v14   ;;  %v1253_v21 = vadd.f32 %v3154_v19, %v3448_v3  ;;  %v1412_v31 = vmax.f32 %v986_v17, 0.0 }
 0x112   : > { %v988_v22 = vpop.f32.mrf.mxu0  ;;  %v1244_v26 = vpop.f32.mrf.mxu1  ;;  %v1476_v35 = vmax.f32 %v1242_v20, 0.0 }
 0x113   : > { %v1415_v24 = vmax.f32 %v997_v18, 0.0  ;;  %v989_v25 = vadd.f32 %v3448_v3, %v988_v22  ;;  %v1479_v28 = vmax.f32 %v1253_v21, 0.0  ;;  %v1245_v29 = vadd.f32 %v3448_v3, %v1244_v26 }
 0x114   : > { %v3093_v30 = vpop.f32.mrf.mxu0  ;;  %v3157_v34 = vpop.f32.mrf.mxu1 }
 0x115   : > { %v2684_v32 = vpack.c.bf16 %v1415_v24, %v1414_v23  ;;  %v1413_v33 = vmax.f32 %v989_v25, 0.0  ;;  %v2844_v36 = vpack.c.bf16 %v1479_v28, %v1478_v27  ;;  %v1477_v37 = vmax.f32 %v1245_v29, 0.0 }
 0x116   : > { %v1001_v38 = vpop.f32.mrf.mxu0  ;;  %v1010_v40 = vadd.f32 %v3093_v30, %v3448_v3  ;;  %v1257_v41 = vpop.f32.mrf.mxu1  ;;  %v1266_v43 = vadd.f32 %v3157_v34, %v3448_v3 }
 0x117   : > { %2940 = vst [vmem:[%s3462_s27 + $0x78] sm:$0xff] %v2684_v32   ;;  %v2679_v39 = vpack.c.bf16 %v1413_v33, %v1412_v31  ;;  %2972 = vst [vmem:[%s3462_s27 + $0x178] sm:$0xff] %v2844_v36   ;;  %v2839_v42 = vpack.c.bf16 %v1477_v37, %v1476_v35  ;;  %v1002_v45 = vadd.f32 %v3448_v3, %v1001_v38 }
 0x118   : > { %v3094_v44 = vpop.f32.mrf.mxu0  ;;  %v3158_v47 = vpop.f32.mrf.mxu1  ;;  %v1258_v48 = vadd.f32 %v3448_v3, %v1257_v41  ;;  %v1418_v51 = vmax.f32 %v1010_v40, 0.0  ;;  %v1482_v55 = vmax.f32 %v1266_v43, 0.0 }
 0x119   : > { %2939 = vst [vmem:[%s3462_s27 + $0x70] sm:$0xff] %v2679_v39   ;;  %v1013_v46 = vadd.f32 %v3094_v44, %v3448_v3  ;;  %2971 = vst [vmem:[%s3462_s27 + $0x170] sm:$0xff] %v2839_v42   ;;  %v1269_v49 = vadd.f32 %v3158_v47, %v3448_v3  ;;  %v1416_v59 = vmax.f32 %v1002_v45, 0.0 }
 0x11a   : > { %v1004_v50 = vpop.f32.mrf.mxu0  ;;  %v1260_v54 = vpop.f32.mrf.mxu1  ;;  %v1480_v63 = vmax.f32 %v1258_v48, 0.0 }
 0x11b   : > { %v1419_v52 = vmax.f32 %v1013_v46, 0.0  ;;  %v1005_v53 = vadd.f32 %v3448_v3, %v1004_v50  ;;  %v1483_v56 = vmax.f32 %v1269_v49, 0.0  ;;  %v1261_v57 = vadd.f32 %v3448_v3, %v1260_v54 }
 0x11c   : > { %v3097_v58 = vpop.f32.mrf.mxu0  ;;  %v3161_v62 = vpop.f32.mrf.mxu1 }
 0x11d   : > { %v2694_v60 = vpack.c.bf16 %v1419_v52, %v1418_v51  ;;  %v1417_v61 = vmax.f32 %v1005_v53, 0.0  ;;  %v2854_v0 = vpack.c.bf16 %v1483_v56, %v1482_v55  ;;  %v1481_v1 = vmax.f32 %v1261_v57, 0.0 }
 0x11e   : > { %v1017_v2 = vpop.f32.mrf.mxu0  ;;  %v1026_v5 = vadd.f32 %v3097_v58, %v3448_v3  ;;  %v1273_v6 = vpop.f32.mrf.mxu1  ;;  %v1282_v8 = vadd.f32 %v3161_v62, %v3448_v3 }
 0x11f   : > { %2942 = vst [vmem:[%s3462_s27 + $0x88] sm:$0xff] %v2694_v60   ;;  %v2689_v4 = vpack.c.bf16 %v1417_v61, %v1416_v59  ;;  %2974 = vst [vmem:[%s3462_s27 + $0x188] sm:$0xff] %v2854_v0   ;;  %v2849_v7 = vpack.c.bf16 %v1481_v1, %v1480_v63  ;;  %v1018_v10 = vadd.f32 %v3448_v3, %v1017_v2 }
 0x120   : > { %v3098_v9 = vpop.f32.mrf.mxu0  ;;  %v3162_v12 = vpop.f32.mrf.mxu1  ;;  %v1274_v13 = vadd.f32 %v3448_v3, %v1273_v6  ;;  %v1422_v16 = vmax.f32 %v1026_v5, 0.0  ;;  %v1486_v20 = vmax.f32 %v1282_v8, 0.0 }
 0x121   : > { %2941 = vst [vmem:[%s3462_s27 + $0x80] sm:$0xff] %v2689_v4   ;;  %v1029_v11 = vadd.f32 %v3098_v9, %v3448_v3  ;;  %2973 = vst [vmem:[%s3462_s27 + $0x180] sm:$0xff] %v2849_v7   ;;  %v1285_v14 = vadd.f32 %v3162_v12, %v3448_v3  ;;  %v1420_v24 = vmax.f32 %v1018_v10, 0.0 }
 0x122   : > { %v1020_v15 = vpop.f32.mrf.mxu0  ;;  %v1276_v19 = vpop.f32.mrf.mxu1  ;;  %v1484_v28 = vmax.f32 %v1274_v13, 0.0 }
 0x123   : > { %v1423_v17 = vmax.f32 %v1029_v11, 0.0  ;;  %v1021_v18 = vadd.f32 %v3448_v3, %v1020_v15  ;;  %v1487_v21 = vmax.f32 %v1285_v14, 0.0  ;;  %v1277_v22 = vadd.f32 %v3448_v3, %v1276_v19 }
 0x124   : > { %v3101_v23 = vpop.f32.mrf.mxu0  ;;  %v3165_v27 = vpop.f32.mrf.mxu1 }
 0x125   : > { %v2704_v25 = vpack.c.bf16 %v1423_v17, %v1422_v16  ;;  %v1421_v26 = vmax.f32 %v1021_v18, 0.0  ;;  %v2864_v29 = vpack.c.bf16 %v1487_v21, %v1486_v20  ;;  %v1485_v30 = vmax.f32 %v1277_v22, 0.0 }
 0x126   : > { %v1033_v31 = vpop.f32.mrf.mxu0  ;;  %v1042_v33 = vadd.f32 %v3101_v23, %v3448_v3  ;;  %v1289_v34 = vpop.f32.mrf.mxu1  ;;  %v1298_v36 = vadd.f32 %v3165_v27, %v3448_v3 }
 0x127   : > { %2944 = vst [vmem:[%s3462_s27 + $0x98] sm:$0xff] %v2704_v25   ;;  %v2699_v32 = vpack.c.bf16 %v1421_v26, %v1420_v24  ;;  %2976 = vst [vmem:[%s3462_s27 + $0x198] sm:$0xff] %v2864_v29   ;;  %v2859_v35 = vpack.c.bf16 %v1485_v30, %v1484_v28  ;;  %v1034_v38 = vadd.f32 %v3448_v3, %v1033_v31 }
 0x128   : > { %v3102_v37 = vpop.f32.mrf.mxu0  ;;  %v3166_v40 = vpop.f32.mrf.mxu1  ;;  %v1290_v41 = vadd.f32 %v3448_v3, %v1289_v34  ;;  %v1426_v44 = vmax.f32 %v1042_v33, 0.0  ;;  %v1490_v48 = vmax.f32 %v1298_v36, 0.0 }
 0x129   : > { %2943 = vst [vmem:[%s3462_s27 + $0x90] sm:$0xff] %v2699_v32   ;;  %v1045_v39 = vadd.f32 %v3102_v37, %v3448_v3  ;;  %2975 = vst [vmem:[%s3462_s27 + $0x190] sm:$0xff] %v2859_v35   ;;  %v1301_v42 = vadd.f32 %v3166_v40, %v3448_v3  ;;  %v1424_v52 = vmax.f32 %v1034_v38, 0.0 }
 0x12a   : > { %v1036_v43 = vpop.f32.mrf.mxu0  ;;  %v1292_v47 = vpop.f32.mrf.mxu1  ;;  %v1488_v56 = vmax.f32 %v1290_v41, 0.0 }
 0x12b   : > { %v1427_v45 = vmax.f32 %v1045_v39, 0.0  ;;  %v1037_v46 = vadd.f32 %v3448_v3, %v1036_v43  ;;  %v1491_v49 = vmax.f32 %v1301_v42, 0.0  ;;  %v1293_v50 = vadd.f32 %v3448_v3, %v1292_v47 }
 0x12c   : > { %v3105_v51 = vpop.f32.mrf.mxu0  ;;  %v3169_v55 = vpop.f32.mrf.mxu1 }
 0x12d   : > { %v2714_v53 = vpack.c.bf16 %v1427_v45, %v1426_v44  ;;  %v1425_v54 = vmax.f32 %v1037_v46, 0.0  ;;  %v2874_v57 = vpack.c.bf16 %v1491_v49, %v1490_v48  ;;  %v1489_v58 = vmax.f32 %v1293_v50, 0.0 }
 0x12e   : > { %v1049_v59 = vpop.f32.mrf.mxu0  ;;  %v1058_v61 = vadd.f32 %v3105_v51, %v3448_v3  ;;  %v1305_v62 = vpop.f32.mrf.mxu1  ;;  %v1314_v0 = vadd.f32 %v3169_v55, %v3448_v3 }
 0x12f   : > { %2946 = vst [vmem:[%s3462_s27 + $0xa8] sm:$0xff] %v2714_v53   ;;  %v2709_v60 = vpack.c.bf16 %v1425_v54, %v1424_v52  ;;  %2978 = vst [vmem:[%s3462_s27 + $0x1a8] sm:$0xff] %v2874_v57   ;;  %v2869_v63 = vpack.c.bf16 %v1489_v58, %v1488_v56  ;;  %v1050_v2 = vadd.f32 %v3448_v3, %v1049_v59 }
 0x130   : > { %v3106_v1 = vpop.f32.mrf.mxu0  ;;  %v3170_v5 = vpop.f32.mrf.mxu1  ;;  %v1306_v6 = vadd.f32 %v3448_v3, %v1305_v62  ;;  %v1430_v9 = vmax.f32 %v1058_v61, 0.0  ;;  %v1494_v13 = vmax.f32 %v1314_v0, 0.0 }
 0x131   : > { %2945 = vst [vmem:[%s3462_s27 + $0xa0] sm:$0xff] %v2709_v60   ;;  %v1061_v4 = vadd.f32 %v3106_v1, %v3448_v3  ;;  %2977 = vst [vmem:[%s3462_s27 + $0x1a0] sm:$0xff] %v2869_v63   ;;  %v1317_v7 = vadd.f32 %v3170_v5, %v3448_v3  ;;  %v1428_v17 = vmax.f32 %v1050_v2, 0.0 }
 0x132   : > { %v1052_v8 = vpop.f32.mrf.mxu0  ;;  %v1308_v12 = vpop.f32.mrf.mxu1  ;;  %v1492_v21 = vmax.f32 %v1306_v6, 0.0 }
 0x133   : > { %v1431_v10 = vmax.f32 %v1061_v4, 0.0  ;;  %v1053_v11 = vadd.f32 %v3448_v3, %v1052_v8  ;;  %v1495_v14 = vmax.f32 %v1317_v7, 0.0  ;;  %v1309_v15 = vadd.f32 %v3448_v3, %v1308_v12 }
 0x134   : > { %v3109_v16 = vpop.f32.mrf.mxu0  ;;  %v3173_v20 = vpop.f32.mrf.mxu1 }
 0x135   : > { %v2724_v18 = vpack.c.bf16 %v1431_v10, %v1430_v9  ;;  %v1429_v19 = vmax.f32 %v1053_v11, 0.0  ;;  %v2884_v22 = vpack.c.bf16 %v1495_v14, %v1494_v13  ;;  %v1493_v23 = vmax.f32 %v1309_v15, 0.0 }
 0x136   : > { %v1065_v24 = vpop.f32.mrf.mxu0  ;;  %v1074_v26 = vadd.f32 %v3109_v16, %v3448_v3  ;;  %v1321_v27 = vpop.f32.mrf.mxu1  ;;  %v1330_v29 = vadd.f32 %v3173_v20, %v3448_v3 }
 0x137   : > { %2948 = vst [vmem:[%s3462_s27 + $0xb8] sm:$0xff] %v2724_v18   ;;  %v2719_v25 = vpack.c.bf16 %v1429_v19, %v1428_v17  ;;  %2980 = vst [vmem:[%s3462_s27 + $0x1b8] sm:$0xff] %v2884_v22   ;;  %v2879_v28 = vpack.c.bf16 %v1493_v23, %v1492_v21  ;;  %v1066_v31 = vadd.f32 %v3448_v3, %v1065_v24 }
 0x138   : > { %v3110_v30 = vpop.f32.mrf.mxu0  ;;  %v3174_v33 = vpop.f32.mrf.mxu1  ;;  %v1322_v34 = vadd.f32 %v3448_v3, %v1321_v27  ;;  %v1434_v37 = vmax.f32 %v1074_v26, 0.0  ;;  %v1498_v41 = vmax.f32 %v1330_v29, 0.0 }
 0x139   : > { %2947 = vst [vmem:[%s3462_s27 + $0xb0] sm:$0xff] %v2719_v25   ;;  %v1077_v32 = vadd.f32 %v3110_v30, %v3448_v3  ;;  %2979 = vst [vmem:[%s3462_s27 + $0x1b0] sm:$0xff] %v2879_v28   ;;  %v1333_v35 = vadd.f32 %v3174_v33, %v3448_v3  ;;  %v1432_v45 = vmax.f32 %v1066_v31, 0.0 }
 0x13a   : > { %v1068_v36 = vpop.f32.mrf.mxu0  ;;  %v1324_v40 = vpop.f32.mrf.mxu1  ;;  %v1496_v49 = vmax.f32 %v1322_v34, 0.0 }
 0x13b   : > { %v1435_v38 = vmax.f32 %v1077_v32, 0.0  ;;  %v1069_v39 = vadd.f32 %v3448_v3, %v1068_v36  ;;  %v1499_v42 = vmax.f32 %v1333_v35, 0.0  ;;  %v1325_v43 = vadd.f32 %v3448_v3, %v1324_v40 }
 0x13c   : > { %v3113_v44 = vpop.f32.mrf.mxu0  ;;  %v3177_v48 = vpop.f32.mrf.mxu1 }
 0x13d   : > { %v2734_v46 = vpack.c.bf16 %v1435_v38, %v1434_v37  ;;  %v1433_v47 = vmax.f32 %v1069_v39, 0.0  ;;  %v2894_v50 = vpack.c.bf16 %v1499_v42, %v1498_v41  ;;  %v1497_v51 = vmax.f32 %v1325_v43, 0.0 }
 0x13e   : > { %v1081_v52 = vpop.f32.mrf.mxu0  ;;  %v1090_v54 = vadd.f32 %v3113_v44, %v3448_v3  ;;  %v1337_v55 = vpop.f32.mrf.mxu1  ;;  %v1346_v57 = vadd.f32 %v3177_v48, %v3448_v3 }
 0x13f   : > { %2950 = vst [vmem:[%s3462_s27 + $0xc8] sm:$0xff] %v2734_v46   ;;  %v2729_v53 = vpack.c.bf16 %v1433_v47, %v1432_v45  ;;  %2982 = vst [vmem:[%s3462_s27 + $0x1c8] sm:$0xff] %v2894_v50   ;;  %v2889_v56 = vpack.c.bf16 %v1497_v51, %v1496_v49  ;;  %v1082_v59 = vadd.f32 %v3448_v3, %v1081_v52 }
 0x140   : > { %v3114_v58 = vpop.f32.mrf.mxu0  ;;  %v3178_v61 = vpop.f32.mrf.mxu1  ;;  %v1338_v62 = vadd.f32 %v3448_v3, %v1337_v55  ;;  %v1438_v1 = vmax.f32 %v1090_v54, 0.0  ;;  %v1502_v6 = vmax.f32 %v1346_v57, 0.0 }
 0x141   : > { %2949 = vst [vmem:[%s3462_s27 + $0xc0] sm:$0xff] %v2729_v53   ;;  %v1093_v60 = vadd.f32 %v3114_v58, %v3448_v3  ;;  %2981 = vst [vmem:[%s3462_s27 + $0x1c0] sm:$0xff] %v2889_v56   ;;  %v1349_v63 = vadd.f32 %v3178_v61, %v3448_v3  ;;  %v1436_v10 = vmax.f32 %v1082_v59, 0.0 }
 0x142   : > { %v1084_v0 = vpop.f32.mrf.mxu0  ;;  %v1340_v5 = vpop.f32.mrf.mxu1  ;;  %v1500_v14 = vmax.f32 %v1338_v62, 0.0 }
 0x143   : > { %v1439_v2 = vmax.f32 %v1093_v60, 0.0  ;;  %v1085_v4 = vadd.f32 %v3448_v3, %v1084_v0  ;;  %v1503_v7 = vmax.f32 %v1349_v63, 0.0  ;;  %v1341_v8 = vadd.f32 %v3448_v3, %v1340_v5 }
 0x144   : > { %v3117_v9 = vpop.f32.mrf.mxu0  ;;  %v3181_v13 = vpop.f32.mrf.mxu1 }
 0x145   : > { %v2744_v11 = vpack.c.bf16 %v1439_v2, %v1438_v1  ;;  %v1437_v12 = vmax.f32 %v1085_v4, 0.0  ;;  %v2904_v15 = vpack.c.bf16 %v1503_v7, %v1502_v6  ;;  %v1501_v16 = vmax.f32 %v1341_v8, 0.0 }
 0x146   : > { %v1097_v17 = vpop.f32.mrf.mxu0  ;;  %v1106_v19 = vadd.f32 %v3117_v9, %v3448_v3  ;;  %v1353_v20 = vpop.f32.mrf.mxu1  ;;  %v1362_v22 = vadd.f32 %v3181_v13, %v3448_v3 }
 0x147   : > { %2952 = vst [vmem:[%s3462_s27 + $0xd8] sm:$0xff] %v2744_v11   ;;  %v2739_v18 = vpack.c.bf16 %v1437_v12, %v1436_v10  ;;  %2984 = vst [vmem:[%s3462_s27 + $0x1d8] sm:$0xff] %v2904_v15   ;;  %v2899_v21 = vpack.c.bf16 %v1501_v16, %v1500_v14  ;;  %v1098_v24 = vadd.f32 %v3448_v3, %v1097_v17 }
 0x148   : > { %v3118_v23 = vpop.f32.mrf.mxu0  ;;  %v3182_v26 = vpop.f32.mrf.mxu1  ;;  %v1354_v27 = vadd.f32 %v3448_v3, %v1353_v20  ;;  %v1442_v30 = vmax.f32 %v1106_v19, 0.0  ;;  %v1506_v34 = vmax.f32 %v1362_v22, 0.0 }
 0x149   : > { %2951 = vst [vmem:[%s3462_s27 + $0xd0] sm:$0xff] %v2739_v18   ;;  %v1109_v25 = vadd.f32 %v3118_v23, %v3448_v3  ;;  %2983 = vst [vmem:[%s3462_s27 + $0x1d0] sm:$0xff] %v2899_v21   ;;  %v1365_v28 = vadd.f32 %v3182_v26, %v3448_v3  ;;  %v1440_v38 = vmax.f32 %v1098_v24, 0.0 }
 0x14a   : > { %v1100_v29 = vpop.f32.mrf.mxu0  ;;  %v1356_v33 = vpop.f32.mrf.mxu1  ;;  %v1504_v42 = vmax.f32 %v1354_v27, 0.0 }
 0x14b   : > { %v1443_v31 = vmax.f32 %v1109_v25, 0.0  ;;  %v1101_v32 = vadd.f32 %v3448_v3, %v1100_v29  ;;  %v1507_v35 = vmax.f32 %v1365_v28, 0.0  ;;  %v1357_v36 = vadd.f32 %v3448_v3, %v1356_v33 }
 0x14c   : > { %v3121_v37 = vpop.f32.mrf.mxu0  ;;  %v3185_v41 = vpop.f32.mrf.mxu1 }
 0x14d   : > { %v2754_v39 = vpack.c.bf16 %v1443_v31, %v1442_v30  ;;  %v1441_v40 = vmax.f32 %v1101_v32, 0.0  ;;  %v2914_v43 = vpack.c.bf16 %v1507_v35, %v1506_v34  ;;  %v1505_v44 = vmax.f32 %v1357_v36, 0.0 }
 0x14e   : > { %v1113_v45 = vpop.f32.mrf.mxu0  ;;  %v1122_v47 = vadd.f32 %v3121_v37, %v3448_v3  ;;  %v1369_v48 = vpop.f32.mrf.mxu1  ;;  %v1378_v50 = vadd.f32 %v3185_v41, %v3448_v3 }
 0x14f   : > { %2954 = vst [vmem:[%s3462_s27 + $0xe8] sm:$0xff] %v2754_v39   ;;  %v2749_v46 = vpack.c.bf16 %v1441_v40, %v1440_v38  ;;  %2986 = vst [vmem:[%s3462_s27 + $0x1e8] sm:$0xff] %v2914_v43   ;;  %v2909_v49 = vpack.c.bf16 %v1505_v44, %v1504_v42  ;;  %v1114_v52 = vadd.f32 %v3448_v3, %v1113_v45 }
 0x150   : > { %v3122_v51 = vpop.f32.mrf.mxu0  ;;  %v3186_v54 = vpop.f32.mrf.mxu1  ;;  %v1370_v55 = vadd.f32 %v3448_v3, %v1369_v48  ;;  %v1446_v58 = vmax.f32 %v1122_v47, 0.0  ;;  %v1510_v62 = vmax.f32 %v1378_v50, 0.0 }
 0x151   : > { %2953 = vst [vmem:[%s3462_s27 + $0xe0] sm:$0xff] %v2749_v46   ;;  %v1125_v53 = vadd.f32 %v3122_v51, %v3448_v3  ;;  %2985 = vst [vmem:[%s3462_s27 + $0x1e0] sm:$0xff] %v2909_v49   ;;  %v1381_v56 = vadd.f32 %v3186_v54, %v3448_v3  ;;  %v1444_v1 = vmax.f32 %v1114_v52, 0.0 }
 0x152   : > { %v1116_v57 = vpop.f32.mrf.mxu0  ;;  %v1372_v61 = vpop.f32.mrf.mxu1  ;;  %v1508_v5 = vmax.f32 %v1370_v55, 0.0 }
 0x153   : > { %v1447_v59 = vmax.f32 %v1125_v53, 0.0  ;;  %v1117_v60 = vadd.f32 %v3448_v3, %v1116_v57  ;;  %v1511_v63 = vmax.f32 %v1381_v56, 0.0  ;;  %v1373_v0 = vadd.f32 %v3448_v3, %v1372_v61 }
 0x155   : > { %v2764_v2 = vpack.c.bf16 %v1447_v59, %v1446_v58  ;;  %v1445_v4 = vmax.f32 %v1117_v60, 0.0  ;;  %v2924_v6 = vpack.c.bf16 %v1511_v63, %v1510_v62  ;;  %v1509_v7 = vmax.f32 %v1373_v0, 0.0 }
 0x157   : > { %2956 = vst [vmem:[%s3462_s27 + $0xf8] sm:$0xff] %v2764_v2   ;;  %v2759_v8 = vpack.c.bf16 %v1445_v4, %v1444_v1  ;;  %2988 = vst [vmem:[%s3462_s27 + $0x1f8] sm:$0xff] %v2924_v6   ;;  %v2919_v9 = vpack.c.bf16 %v1509_v7, %v1508_v5 }
 0x159   : > { %2955 = vst [vmem:[%s3462_s27 + $0xf0] sm:$0xff] %v2759_v8   ;;  %2987 = vst [vmem:[%s3462_s27 + $0x1f0] sm:$0xff] %v2919_v9  }
 0x15a PF: > { %s13_s12 = sadd.s32 1, %s3271_s12  }
 0x15b   : > { %p10_p4 = scmp.ge.s32.totalorder %s13_s12, 4  }
 0x15d   :  { %12 = sbr.rel (!%p10_p4) target bundleno = 1 (0x1), region = 62 }

// kernel: _stage1.11
= control target key start
LH: loop header
LB: loop body
LE: loop exit
PB: predicated region body
PF: predicated region fallthrough
CT: control target
= control target key end

     0   :  { %s2537_s12 = smov 0   ;;  %s3047_s0 = inlined_call_operand.vmem [shape: bf16[512,576], index: 0, kind: input, shape index: {}]   ;;  %s3048_s1 = inlined_call_operand.vmem [shape: bf16[576,128], index: 1, kind: input, shape index: {}]   ;;  %s3049_s2 = inlined_call_operand.vmem [shape: f32[1,128], index: 2, kind: input, shape index: {}]   ;;  %s3050_s3 = inlined_call_operand.vmem [shape: bf16[512,128], index: 3, kind: output, shape index: {}]  }
   0x1 LB: > { %s1749_s13 = sadd.s32 4294967295, %s2515_s12   ;;  %p1753_p0 = scmp.ge.s32.totalorder %s2515_s12, 1  ;;  %s2515_s12 = sphi %s2537_s12, %s13_s12  }
   0x2   : > { %p139_p1 = scmp.lt.s32.totalorder %s2515_s12, 3 }
   0x4   : > { %p140_p2 = pnand %p1753_p0, %p139_p1 }
   0x6   : > { %143 = sbr.rel (%p140_p2) target bundleno = 406 (0x196), region = 32 }
   0xb   : > { %v2361_v0 = vld [vmem:[%s3048_s1 + $0x78] sm:$0xff]   ;;  %s1754_s16 = sshll.u32 %s1749_s13, 5  ;;  %v2363_v2 = vld [vmem:[%s3048_s1 + $0x70] sm:$0xff]   ;;  %v2365_v4 = vld [vmem:[%s3048_s1 + $0x68] sm:$0xff]   ;;  %vm969_vm0 = vcmask 523264  }
   0xc   : > { %v2362_v1 = vld [vmem:[%s3048_s1 + $0x38] sm:$0xff]   ;;  %2052 = vmatprep.subr.bf16.mxu0 %v2361_v0  ;;  %2336 = vmatprep.subr.bf16.mxu1 %v2361_v0  ;;  %p165_p3 = scmp.lt.s32.totalorder %s1754_s16, 63  ;;  %v2364_v3 = vld [vmem:[%s3048_s1 + $0x30] sm:$0xff]   ;;  %v2366_v5 = vld [vmem:[%s3048_s1 + $0x28] sm:$0xff]  }
   0xd   : > { %2053 = vmatpush3.bf16.msra.mxu0 %v2362_v1  ;;  %2344 = vmatpush3.bf16.msra.mxu1 %v2362_v1  ;;  %v2367_v6 = vld [vmem:[%s3048_s1 + $0x60] sm:$0xff]   ;;  %v2369_v8 = vld [vmem:[%s3048_s1 + $0x58] sm:$0xff]   ;;  %v2371_v10 = vld [vmem:[%s3048_s1 + $0x50] sm:$0xff]  }
   0xe   : > { %2054 = vmatprep.subr.bf16.mxu0 %v2363_v2  ;;  %2337 = vmatprep.subr.bf16.mxu1 %v2363_v2  ;;  %s3096_s16 = smov (!%p165_p3, %s1754_s16), 63  ;;  %v2368_v7 = vld [vmem:[%s3048_s1 + $0x20] sm:$0xff]   ;;  %v2370_v9 = vld [vmem:[%s3048_s1 + $0x18] sm:$0xff]   ;;  %v2372_v13 = vld [vmem:[%s3048_s1 + $0x10] sm:$0xff]  }
   0xf   : > { %s2352_s29 = smul.u32 20, %s3096_s16  ;;  %v2373_v14 = vld [vmem:[%s3048_s1 + $0x48] sm:$0xff]   ;;  %v2375_v16 = vld [vmem:[%s3048_s1 + $0x40] sm:$0xff]   ;;  %v2383_v18 = vld [vmem:[%s3048_s1 + $0xf8] sm:$0xff]   ;;  %s1757_s19 = sshll.u32 %s3096_s16, 2 }
  0x10   : > { %v2374_v15 = vld [vmem:[%s3048_s1 + $0x8] sm:$0xff]   ;;  %v2376_v17 = vld [vmem:[%s3048_s1] sm:$0xff]   ;;  %v2386_v19 = vld [vmem:[%s3048_s1 + $0x118] sm:$0xff]   ;;  %s2922_s21 = scalar_lea.vmem %s3050_s3, %s1757_s19 }
  0x11   : > { %2055 = vmatpush3.bf16.msra.mxu0 %v2364_v3  ;;  %2345 = vmatpush3.bf16.msra.mxu1 %v2364_v3  ;;  %s2578_s9 = scalar_lea.vmem %s3047_s0, %s2352_s29  ;;  %v2384_v22 = vld [vmem:[%s3048_s1 + $0xb8] sm:$0xff]   ;;  %v2385_v23 = vld [vmem:[%s3048_s1 + $0xf0] sm:$0xff]   ;;  %v2394_v28 = vld [vmem:[%s3048_s1 + $0xe8] sm:$0xff]  }
  0x12   : > { %2056 = vmatprep.subr.bf16.mxu0 %v2365_v4  ;;  %2338 = vmatprep.subr.bf16.mxu1 %v2365_v4  ;;  %v2379_v11 = vld [vmem:[%s2578_s9 + $0x4] ss:$20 sps:$4 sm:$0xff]   ;;  %v2377_v20 = vld [vmem:[%s2578_s9] ss:$20 sps:$4 sm:$0xff]   ;;  %v2392_v27 = vld [vmem:[%s2578_s9 + $0x28] ss:$20 sps:$4 sm:$0xff]  }
  0x13   : > { %v2382_v12 = vld [vmem:[%s2578_s9 + $0x1e4] ss:$20 sps:$4 sm:$0xff]   ;;  %1050 = vmatprep.mubr.bf16.mxu0 %v2379_v11  ;;  %v2380_v21 = vld [vmem:[%s2578_s9 + $0x1e0] ss:$20 sps:$4 sm:$0xff]   ;;  %v2393_v29 = vld [vmem:[%s2578_s9 + $0x208] ss:$20 sps:$4 sm:$0xff]  }
  0x14   : > { %1146 = vmatprep.mubr.bf16.mxu1 %v2382_v12  ;;  %v2388_v24 = vld [vmem:[%s2578_s9 + $0x2c] ss:$20 sps:$4 sm:$0xff]   ;;  %v2387_v26 = vld [vmem:[%s3048_s1 + $0xb0] sm:$0xff]   ;;  %v2404_v37 = vld [vmem:[%s3048_s1 + $0xd8] sm:$0xff]  }
  0x15   : > { %2057 = vmatpush3.bf16.msra.mxu0 %v2366_v5  ;;  %2346 = vmatpush3.bf16.msra.mxu1 %v2366_v5  ;;  %v2390_v25 = vld [vmem:[%s2578_s9 + $0x20c] ss:$20 sps:$4 sm:$0xff]   ;;  %v2398_v32 = vld [vmem:[%s2578_s9 + $0x54] ss:$20 sps:$4 sm:$0xff]   ;;  %v2402_v36 = vld [vmem:[%s2578_s9 + $0x50] ss:$20 sps:$4 sm:$0xff]  }
  0x16   : > { %2058 = vmatprep.subr.bf16.mxu0 %v2367_v6  ;;  %2339 = vmatprep.subr.bf16.mxu1 %v2367_v6  ;;  %v2395_v30 = vld [vmem:[%s3048_s1 + $0xa8] sm:$0xff]   ;;  %v2396_v31 = vld [vmem:[%s3048_s1 + $0xe0] sm:$0xff]   ;;  %v2417_v35 = vld [vmem:[%s3048_s1 + $0x110] sm:$0xff]  }
  0x17   : > { %v2400_v33 = vld [vmem:[%s2578_s9 + $0x234] ss:$20 sps:$4 sm:$0xff]   ;;  %v2397_v34 = vld [vmem:[%s3048_s1 + $0xa0] sm:$0xff]   ;;  %v2405_v39 = vld [vmem:[%s3048_s1 + $0x98] sm:$0xff]  }
  0x18   : > { %v2403_v38 = vld [vmem:[%s2578_s9 + $0x230] ss:$20 sps:$4 sm:$0xff]   ;;  %v2412_v44 = vld [vmem:[%s2578_s9 + $0x78] ss:$20 sps:$4 sm:$0xff]   ;;  %v2421_v53 = vld [vmem:[%s2578_s9 + $0x8] ss:$20 sps:$4 sm:$0xff]  }
  0x19   : > { %2059 = vmatpush3.bf16.msra.mxu0 %v2368_v7  ;;  %2347 = vmatpush3.bf16.msra.mxu1 %v2368_v7  ;;  %v2406_v40 = vld [vmem:[%s3048_s1 + $0xd0] sm:$0xff]   ;;  %v2413_v45 = vld [vmem:[%s2578_s9 + $0x258] ss:$20 sps:$4 sm:$0xff]   ;;  %v2416_v49 = vld [vmem:[%s3048_s1 + $0xc0] sm:$0xff]  }
  0x1a   : > { %2060 = vmatprep.subr.bf16.mxu0 %v2369_v8  ;;  %2340 = vmatprep.subr.bf16.mxu1 %v2369_v8  ;;  %v2408_v41 = vld [vmem:[%s2578_s9 + $0x7c] ss:$20 sps:$4 sm:$0xff]   ;;  %v2414_v46 = vld [vmem:[%s3048_s1 + $0xc8] sm:$0xff]   ;;  %v2419_v50 = vld [vmem:[%s2578_s9 + $0xa4] ss:$20 sps:$4 sm:$0xff]  }
  0x1b   : > { %v2410_v42 = vld [vmem:[%s2578_s9 + $0x25c] ss:$20 sps:$4 sm:$0xff]   ;;  %v2437_v47 = vld [vmem:[%s3048_s1 + $0x108] sm:$0xff]   ;;  %v2418_v52 = vld [vmem:[%s3048_s1 + $0x80] sm:$0xff]  }
  0x1c   : > { %v2407_v43 = vld [vmem:[%s3048_s1 + $0x90] sm:$0xff]   ;;  %v2415_v48 = vld [vmem:[%s3048_s1 + $0x88] sm:$0xff]   ;;  %v2456_v56 = vld [vmem:[%s3048_s1 + $0x100] sm:$0xff]  }
  0x1d   : > { %2061 = vmatpush3.bf16.msra.mxu0 %v2370_v9  ;;  %2348 = vmatpush3.bf16.msra.mxu1 %v2370_v9  ;;  %v2423_v51 = vld [vmem:[%s2578_s9 + $0xc] ss:$20 sps:$4 sm:$0xff]   ;;  %v2427_v57 = vld [vmem:[%s2578_s9 + $0x34] ss:$20 sps:$4 sm:$0xff]   ;;  %v2430_v59 = vld [vmem:[%s2578_s9 + $0x30] ss:$20 sps:$4 sm:$0xff]  }
  0x1e   : > { %2062 = vmatprep.subr.bf16.mxu0 %v2371_v10  ;;  %2341 = vmatprep.subr.bf16.mxu1 %v2371_v10  ;;  %v2424_v54 = vld [vmem:[%s2578_s9 + $0xa0] ss:$20 sps:$4 sm:$0xff]   ;;  %v2429_v58 = vld [vmem:[%s2578_s9 + $0xc8] ss:$20 sps:$4 sm:$0xff]   ;;  %v2435_v62 = vld [vmem:[%s2578_s9 + $0xf0] ss:$20 sps:$4 sm:$0xff]  }
  0x1f   : > { %v2425_v55 = vld [vmem:[%s2578_s9 + $0xcc] ss:$20 sps:$4 sm:$0xff]   ;;  %v2431_v60 = vld [vmem:[%s2578_s9 + $0xf4] ss:$20 sps:$4 sm:$0xff]   ;;  %v2433_v61 = vld [vmem:[%s2578_s9 + $0x5c] ss:$20 sps:$4 sm:$0xff]  }
  0x20   : > { %v2436_v63 = vld [vmem:[%s2578_s9 + $0x58] ss:$20 sps:$4 sm:$0xff]   ;;  %v2438_v0 = vld [vmem:[%s2578_s9 + $0x11c] ss:$20 sps:$4 sm:$0xff]   ;;  %v2443_v3 = vld [vmem:[%s2578_s9 + $0x80] ss:$20 sps:$4 sm:$0xff]  }
  0x21   : > { %2063 = vmatpush3.bf16.msra.mxu0 %v2372_v13  ;;  %2349 = vmatpush3.bf16.msra.mxu1 %v2372_v13  ;;  %v2440_v1 = vld [vmem:[%s2578_s9 + $0x84] ss:$20 sps:$4 sm:$0xff]   ;;  %v2446_v5 = vld [vmem:[%s2578_s9 + $0xac] ss:$20 sps:$4 sm:$0xff]   ;;  %v2449_v7 = vld [vmem:[%s2578_s9 + $0xa8] ss:$20 sps:$4 sm:$0xff]  }
  0x22   : > { %2064 = vmatprep.subr.bf16.mxu0 %v2373_v14  ;;  %2342 = vmatprep.subr.bf16.mxu1 %v2373_v14  ;;  %v2442_v2 = vld [vmem:[%s2578_s9 + $0x118] ss:$20 sps:$4 sm:$0xff]   ;;  %v2448_v6 = vld [vmem:[%s2578_s9 + $0x140] ss:$20 sps:$4 sm:$0xff]   ;;  %v2454_v10 = vld [vmem:[%s2578_s9 + $0x168] ss:$20 sps:$4 sm:$0xff]  }
  0x23   : > { %v2444_v4 = vld [vmem:[%s2578_s9 + $0x144] ss:$20 sps:$4 sm:$0xff]   ;;  %v2450_v8 = vld [vmem:[%s2578_s9 + $0x16c] ss:$20 sps:$4 sm:$0xff]   ;;  %v2452_v9 = vld [vmem:[%s2578_s9 + $0xd4] ss:$20 sps:$4 sm:$0xff]  }
  0x24   : > { %v2455_v11 = vld [vmem:[%s2578_s9 + $0xd0] ss:$20 sps:$4 sm:$0xff]   ;;  %v2457_v12 = vld [vmem:[%s2578_s9 + $0x194] ss:$20 sps:$4 sm:$0xff]  }
  0x25   : > { %2065 = vmatpush3.bf16.msra.mxu0 %v2374_v15  ;;  %2350 = vmatpush3.bf16.msra.mxu1 %v2374_v15  ;;  %v2459_v13 = vld [vmem:[%s2578_s9 + $0xfc] ss:$20 sps:$4 sm:$0xff]   ;;  %v2462_v15 = vld [vmem:[%s2578_s9 + $0xf8] ss:$20 sps:$4 sm:$0xff]  }
  0x26   : > { %2066 = vmatprep.subr.bf16.mxu0 %v2375_v16  ;;  %2343 = vmatprep.subr.bf16.mxu1 %v2375_v16  ;;  %v2461_v14 = vld [vmem:[%s2578_s9 + $0x190] ss:$20 sps:$4 sm:$0xff]  }
  0x27   : > { %v2463_v16 = vld [vmem:[%s2578_s9 + $0x1bc] ss:$20 sps:$4 sm:$0xff]  }
  0x29   : > { %2067 = vmatpush3.bf16.msra.mxu0 %v2376_v17  ;;  %2351 = vmatpush3.bf16.msra.mxu1 %v2376_v17  ;;  %v2465_v17 = vld [vmem:[%s2578_s9 + $0x124] ss:$20 sps:$4 sm:$0xff]  }
  0x2a   : > { %2164 = vmatprep.subr.bf16.mxu1 %v2383_v18  ;;  %2296 = vmatprep.subr.bf16.mxu0 %v2386_v19  ;;  %v2467_v18 = vld [vmem:[%s2578_s9 + $0x1b8] ss:$20 sps:$4 sm:$0xff]  }
  0x2c   : > { %1051 = vmatmul.mubr.bf16.vlgmr.msra.gmra.mxu0 %v2377_v20  ;;  %1147 = vmatmul.mubr.bf16.vlgmr.msra.gmra.mxu1 %v2380_v21  ;;  %v2469_v20 = vld [vmem:[%s2578_s9 + $0x14c] ss:$20 sps:$4 sm:$0xff]   ;;  %v2471_v21 = vld [vmem:[%s2578_s9 + $0x10] ss:$20 sps:$4 sm:$0xff]  }
  0x2d   : > { %2165 = vmatpush3.bf16.msra.mxu1 %v2384_v22  ;;  %2297 = vmatpush3.bf16.msra.mxu0 %v2386_v19  ;;  %v2468_v19 = vld [vmem:[%s2578_s9 + $0x120] ss:$20 sps:$4 sm:$0xff]   ;;  %v2472_v22 = vld [vmem:[%s2578_s9 + $0x148] ss:$20 sps:$4 sm:$0xff]  }
  0x2e   : > { %2166 = vmatprep.subr.bf16.mxu1 %v2385_v23  ;;  %1058 = vmatprep.mubr.bf16.mxu0 %v2388_v24  ;;  %v2473_v23 = vld [vmem:[%s2578_s9 + $0x38] ss:$20 sps:$4 sm:$0xff]   ;;  %v2474_v24 = vld [vmem:[%s2578_s9 + $0x174] ss:$20 sps:$4 sm:$0xff]  }
  0x2f   : > { %1154 = vmatprep.mubr.bf16.mxu1 %v2390_v25  ;;  %2298 = vmatprep.subr.bf16.mxu0 %v2417_v35  ;;  %v2476_v25 = vld [vmem:[%s2578_s9 + $0x60] ss:$20 sps:$4 sm:$0xff]  }
  0x31   : > { %2167 = vmatpush3.bf16.msra.mxu1 %v2387_v26  ;;  %2299 = vmatpush3.bf16.msra.mxu0 %v2417_v35  ;;  %v2477_v26 = vld [vmem:[%s2578_s9 + $0x170] ss:$20 sps:$4 sm:$0xff]   ;;  %v2488_v35 = vld [vmem:[%s2578_s9 + $0x128] ss:$20 sps:$4 sm:$0xff]  }
  0x32   : > { %2168 = vmatprep.subr.bf16.mxu1 %v2394_v28  ;;  %2300 = vmatprep.subr.bf16.mxu0 %v2437_v47  ;;  %v2479_v28 = vld [vmem:[%s2578_s9 + $0x19c] ss:$20 sps:$4 sm:$0xff]  }
  0x34   : > { %1059 = vmatmul.mubr.bf16.gmra.mxu0 %v2392_v27  ;;  %1155 = vmatmul.mubr.bf16.gmra.mxu1 %v2393_v29  ;;  %v2478_v27 = vld [vmem:[%s2578_s9 + $0x88] ss:$20 sps:$4 sm:$0xff]   ;;  %v2481_v29 = vld [vmem:[%s2578_s9 + $0xb0] ss:$20 sps:$4 sm:$0xff]  }
  0x35   : > { %2169 = vmatpush3.bf16.msra.mxu1 %v2395_v30  ;;  %1066 = vmatprep.mubr.bf16.mxu0 %v2398_v32  ;;  %v2482_v30 = vld [vmem:[%s2578_s9 + $0x198] ss:$20 sps:$4 sm:$0xff]  }
  0x36   : > { %2170 = vmatprep.subr.bf16.mxu1 %v2396_v31  ;;  %1162 = vmatprep.mubr.bf16.mxu1 %v2400_v33  ;;  %v2483_v31 = vld [vmem:[%s2578_s9 + $0xd8] ss:$20 sps:$4 sm:$0xff]   ;;  %v2486_v33 = vld [vmem:[%s2578_s9 + $0x100] ss:$20 sps:$4 sm:$0xff]  }
  0x37   : > { %2301 = vmatpush3.bf16.msra.mxu0 %v2437_v47  ;;  %v2484_v32 = vld [vmem:[%s2578_s9 + $0x1c4] ss:$20 sps:$4 sm:$0xff]  }
  0x38   : > { %2302 = vmatprep.subr.bf16.mxu0 %v2456_v56  ;;  %v2503_v47 = vld [vmem:[%s2578_s9 + $0x218] ss:$20 sps:$4 sm:$0xff]  }
  0x39   : > { %2171 = vmatpush3.bf16.msra.mxu1 %v2397_v34  ;;  %v2487_v34 = vld [vmem:[%s2578_s9 + $0x1c0] ss:$20 sps:$4 sm:$0xff]  }
  0x3a   : > { %2172 = vmatprep.subr.bf16.mxu1 %v2404_v37  ;;  %v2491_v37 = vld [vmem:[%s2578_s9 + $0x150] ss:$20 sps:$4 sm:$0xff]  }
  0x3b   : > { %2303 = vmatpush3.bf16.msra.mxu0 %v2456_v56 }
  0x3c   : > { %1067 = vmatmul.mubr.bf16.gmra.mxu0 %v2402_v36  ;;  %1163 = vmatmul.mubr.bf16.gmra.mxu1 %v2403_v38  ;;  %v2489_v36 = vld [vmem:[%s2578_s9 + $0x1ec] ss:$20 sps:$4 sm:$0xff]   ;;  %v2492_v38 = vld [vmem:[%s2578_s9 + $0x1e8] ss:$20 sps:$4 sm:$0xff]  }
  0x3d   : > { %2173 = vmatpush3.bf16.msra.mxu1 %v2405_v39  ;;  %1074 = vmatprep.mubr.bf16.mxu0 %v2408_v41  ;;  %v2493_v39 = vld [vmem:[%s2578_s9 + $0x178] ss:$20 sps:$4 sm:$0xff]   ;;  %v2496_v41 = vld [vmem:[%s2578_s9 + $0x1a0] ss:$20 sps:$4 sm:$0xff]  }
  0x3e   : > { %2174 = vmatprep.subr.bf16.mxu1 %v2406_v40  ;;  %1170 = vmatprep.mubr.bf16.mxu1 %v2410_v42  ;;  %v2494_v40 = vld [vmem:[%s2578_s9 + $0x214] ss:$20 sps:$4 sm:$0xff]   ;;  %v2497_v42 = vld [vmem:[%s2578_s9 + $0x210] ss:$20 sps:$4 sm:$0xff]  }
  0x41   : > { %2175 = vmatpush3.bf16.msra.mxu1 %v2407_v43  ;;  %v2498_v43 = vld [vmem:[%s2578_s9 + $0x1c8] ss:$20 sps:$4 sm:$0xff]  }
  0x42   : > { %2176 = vmatprep.subr.bf16.mxu1 %v2414_v46  ;;  %v2502_v46 = vld [vmem:[%s2578_s9 + $0x238] ss:$20 sps:$4 sm:$0xff]  }
  0x44   : > { %1075 = vmatmul.mubr.bf16.gmra.mxu0 %v2412_v44  ;;  %1171 = vmatmul.mubr.bf16.gmra.mxu1 %v2413_v45  ;;  %v2499_v44 = vld [vmem:[%s2578_s9 + $0x23c] ss:$20 sps:$4 sm:$0xff]  }
  0x45   : > { %2177 = vmatpush3.bf16.msra.mxu1 %v2415_v48  ;;  %1082 = vmatprep.mubr.bf16.mxu0 %v2419_v50  ;;  %v2501_v45 = vld [vmem:[%s2578_s9 + $0x1f0] ss:$20 sps:$4 sm:$0xff]   ;;  %v2507_v50 = vld [vmem:[%s2578_s9 + $0x260] ss:$20 sps:$4 sm:$0xff]  }
  0x46   : > { %2178 = vmatprep.subr.bf16.mxu1 %v2416_v49  ;;  %1211 = vmatprep.mubr.bf16.mxu1 %v2423_v51  ;;  %v2504_v48 = vld [vmem:[%s2578_s9 + $0x264] ss:$20 sps:$4 sm:$0xff]   ;;  %v2506_v49 = vld [vmem:[%s2578_s9 + $0x240] ss:$20 sps:$4 sm:$0xff]   ;;  %v2508_v51 = vld [vmem:[%s2578_s9 + $0x268] ss:$20 sps:$4 sm:$0xff]  }
  0x49   : > { %2179 = vmatpush3.bf16.msra.mxu1 %v2418_v52 }
  0x4c   : > { %1083 = vmatmul.mubr.bf16.gmra.mxu0 %v2424_v54  ;;  %1212 = vmatmul.mubr.bf16.vlgmr.msra.gmra.mxu1 %v2421_v53 }
  0x4d   : > { %1090 = vmatprep.mubr.bf16.mxu0 %v2425_v55  ;;  %1219 = vmatprep.mubr.bf16.mxu1 %v2427_v57 }
  0x54   : > { %1091 = vmatmul.mubr.bf16.gmra.mxu0 %v2429_v58  ;;  %1220 = vmatmul.mubr.bf16.gmra.mxu1 %v2430_v59 }
  0x55   : > { %1098 = vmatprep.mubr.bf16.mxu0 %v2431_v60  ;;  %1227 = vmatprep.mubr.bf16.mxu1 %v2433_v61 }
  0x5c   : > { %1099 = vmatmul.mubr.bf16.gmra.mxu0 %v2435_v62  ;;  %1228 = vmatmul.mubr.bf16.gmra.mxu1 %v2436_v63 }
  0x5d   : > { %1106 = vmatprep.mubr.bf16.mxu0 %v2438_v0  ;;  %1235 = vmatprep.mubr.bf16.mxu1 %v2440_v1 }
  0x64   : > { %1107 = vmatmul.mubr.bf16.gmra.mxu0 %v2442_v2  ;;  %1236 = vmatmul.mubr.bf16.gmra.mxu1 %v2443_v3 }
  0x65   : > { %1114 = vmatprep.mubr.bf16.mxu0 %v2444_v4  ;;  %1243 = vmatprep.mubr.bf16.mxu1 %v2446_v5 }
  0x6c   : > { %1115 = vmatmul.mubr.bf16.gmra.mxu0 %v2448_v6  ;;  %1244 = vmatmul.mubr.bf16.gmra.mxu1 %v2449_v7 }
  0x6d   : > { %1122 = vmatprep.mubr.bf16.mxu0 %v2450_v8  ;;  %1251 = vmatprep.mubr.bf16.mxu1 %v2452_v9 }
  0x74   : > { %1123 = vmatmul.mubr.bf16.gmra.mxu0 %v2454_v10  ;;  %1252 = vmatmul.mubr.bf16.gmra.mxu1 %v2455_v11 }
  0x75   : > { %1130 = vmatprep.mubr.bf16.mxu0 %v2457_v12  ;;  %1259 = vmatprep.mubr.bf16.mxu1 %v2459_v13 }
  0x7c   : > { %1131 = vmatmul.mubr.bf16.gmra.mxu0 %v2461_v14  ;;  %1260 = vmatmul.mubr.bf16.gmra.mxu1 %v2462_v15 }
  0x7d   : > { %1138 = vmatprep.mubr.bf16.mxu0 %v2463_v16  ;;  %1267 = vmatprep.mubr.bf16.mxu1 %v2465_v17 }
  0x84   : > { %1139 = vmatmul.mubr.bf16.gmra.mxu0 %v2467_v18  ;;  %1268 = vmatmul.mubr.bf16.gmra.mxu1 %v2468_v19 }
  0x85   : > { %1275 = vmatprep.mubr.bf16.mxu1 %v2469_v20  ;;  %2304 = vmatprep.mubr.msk.bf16.mxu0 %vm969_vm0, %v2471_v21 }
  0x8c   : > { %1276 = vmatmul.mubr.bf16.gmra.mxu1 %v2472_v22  ;;  %2305 = vmatmul.mubr.msk.bf16.vlgmr.msra.gmra.mxu0 %vm969_vm0, %v2473_v23 }
  0x8d   : > { %1283 = vmatprep.mubr.bf16.mxu1 %v2474_v24  ;;  %2308 = vmatprep.mubr.msk.bf16.mxu0 %vm969_vm0, %v2476_v25 }
  0x94   : > { %1284 = vmatmul.mubr.bf16.gmra.mxu1 %v2477_v26  ;;  %2309 = vmatmul.mubr.msk.bf16.gmra.mxu0 %vm969_vm0, %v2478_v27 }
  0x95   : > { %1291 = vmatprep.mubr.bf16.mxu1 %v2479_v28  ;;  %2312 = vmatprep.mubr.msk.bf16.mxu0 %vm969_vm0, %v2481_v29 }
  0x9c   : > { %1292 = vmatmul.mubr.bf16.gmra.mxu1 %v2482_v30  ;;  %2313 = vmatmul.mubr.msk.bf16.gmra.mxu0 %vm969_vm0, %v2483_v31 }
  0x9d   : > { %1299 = vmatprep.mubr.bf16.mxu1 %v2484_v32  ;;  %2316 = vmatprep.mubr.msk.bf16.mxu0 %vm969_vm0, %v2486_v33 }
  0xa4   : > { %1300 = vmatmul.mubr.bf16.gmra.mxu1 %v2487_v34  ;;  %2317 = vmatmul.mubr.msk.bf16.gmra.mxu0 %vm969_vm0, %v2488_v35 }
  0xa5   : > { %1307 = vmatprep.mubr.bf16.mxu1 %v2489_v36  ;;  %2320 = vmatprep.mubr.msk.bf16.mxu0 %vm969_vm0, %v2491_v37 }
  0xac   : > { %1308 = vmatmul.mubr.bf16.gmra.mxu1 %v2492_v38  ;;  %2321 = vmatmul.mubr.msk.bf16.gmra.mxu0 %vm969_vm0, %v2493_v39  ;;  %v2790_v38 = vld [vmem:[%s3049_s2] ss:$0 sm:$0xff] }
  0xad   : > { %1315 = vmatprep.mubr.bf16.mxu1 %v2494_v40  ;;  %2324 = vmatprep.mubr.msk.bf16.mxu0 %vm969_vm0, %v2496_v41 }
  0xb4   : > { %1316 = vmatmul.mubr.bf16.gmra.mxu1 %v2497_v42  ;;  %2325 = vmatmul.mubr.msk.bf16.gmra.mxu0 %vm969_vm0, %v2498_v43 }
  0xb5   : > { %1323 = vmatprep.mubr.bf16.mxu1 %v2499_v44  ;;  %2328 = vmatprep.mubr.msk.bf16.mxu0 %vm969_vm0, %v2501_v45 }
  0xbc   : > { %1324 = vmatmul.mubr.bf16.gmra.mxu1 %v2502_v46  ;;  %2329 = vmatmul.mubr.msk.bf16.gmra.mxu0 %vm969_vm0, %v2503_v47 }
  0xbd   : > { %1331 = vmatprep.mubr.bf16.mxu1 %v2504_v48  ;;  %2332 = vmatprep.mubr.msk.bf16.mxu0 %vm969_vm0, %v2506_v49 }
  0xc4   : > { %1332 = vmatmul.mubr.bf16.gmra.mxu1 %v2507_v50  ;;  %2333 = vmatmul.mubr.msk.bf16.gmra.mxu0 %vm969_vm0, %v2508_v51 }
  0xec   : > { %v2068_v52 = vpop.f32.mrf.mxu0  ;;  %v2140_v53 = vpop.f32.mrf.mxu1 }
  0xee   : > { %v2069_v54 = vpop.f32.mrf.mxu0  ;;  %v2141_v55 = vpop.f32.mrf.mxu1 }
  0xef   : > { %v2070_v56 = vadd.f32 %v2069_v54, %v2068_v52  ;;  %v2757_v57 = vadd.f32 %v2141_v55, %v2140_v53 }
  0xf0   : > { %v2071_v58 = vpop.f32.mrf.mxu0  ;;  %v2143_v59 = vpop.f32.mrf.mxu1 }
  0xf1   : > { %3051 = vst [vmem:[#allocation2_spill] sm:$0xff] %v2757_v57  ;;  %v1053_v41 = vadd.f32 %v2070_v56, %v2790_v38 }
  0xf2   : > { %v2072_v60 = vpop.f32.mrf.mxu0  ;;  %v2144_v61 = vpop.f32.mrf.mxu1 }
  0xf3   : > { %v2759_v62 = vadd.f32 %v2072_v60, %v2071_v58  ;;  %v2761_v63 = vadd.f32 %v2144_v61, %v2143_v59 }
  0xf4   : > { %v2074_v0 = vpop.f32.mrf.mxu0  ;;  %v2146_v1 = vpop.f32.mrf.mxu1 }
  0xf5   : > { %3052 = vst [vmem:[#allocation3_spill] sm:$0xff] %v2761_v63 }
  0xf6   : > { %v2075_v2 = vpop.f32.mrf.mxu0  ;;  %v2147_v3 = vpop.f32.mrf.mxu1 }
  0xf7   : > { %v2763_v4 = vadd.f32 %v2075_v2, %v2074_v0  ;;  %v2765_v5 = vadd.f32 %v2147_v3, %v2146_v1 }
  0xf8   : > { %v2077_v6 = vpop.f32.mrf.mxu0  ;;  %v2149_v7 = vpop.f32.mrf.mxu1 }
  0xf9   : > { %3053 = vst [vmem:[#allocation4_spill] sm:$0xff] %v2765_v5 }
  0xfa   : > { %v2078_v8 = vpop.f32.mrf.mxu0  ;;  %v2150_v9 = vpop.f32.mrf.mxu1 }
  0xfb   : > { %v2767_v10 = vadd.f32 %v2078_v8, %v2077_v6  ;;  %v2769_v11 = vadd.f32 %v2150_v9, %v2149_v7 }
  0xfc   : > { %v2080_v12 = vpop.f32.mrf.mxu0  ;;  %v2152_v13 = vpop.f32.mrf.mxu1 }
  0xfd   : > { %3054 = vst [vmem:[#allocation5_spill] sm:$0xff] %v2769_v11 }
  0xfe   : > { %v2081_v14 = vpop.f32.mrf.mxu0  ;;  %v2153_v15 = vpop.f32.mrf.mxu1 }
  0xff   : > { %v2771_v16 = vadd.f32 %v2081_v14, %v2080_v12  ;;  %v2773_v17 = vadd.f32 %v2153_v15, %v2152_v13 }
 0x100   : > { %v2083_v18 = vpop.f32.mrf.mxu0  ;;  %v2155_v19 = vpop.f32.mrf.mxu1 }
 0x101   : > { %3055 = vst [vmem:[#allocation6_spill] sm:$0xff] %v2773_v17 }
 0x102   : > { %v2084_v20 = vpop.f32.mrf.mxu0  ;;  %v2156_v21 = vpop.f32.mrf.mxu1 }
 0x103   : > { %v2775_v22 = vadd.f32 %v2084_v20, %v2083_v18  ;;  %v2777_v23 = vadd.f32 %v2156_v21, %v2155_v19 }
 0x104   : > { %v2086_v24 = vpop.f32.mrf.mxu0  ;;  %v2158_v25 = vpop.f32.mrf.mxu1 }
 0x105   : > { %3056 = vst [vmem:[#allocation7_spill] sm:$0xff] %v2777_v23 }
 0x106   : > { %v2087_v26 = vpop.f32.mrf.mxu0  ;;  %v2159_v27 = vpop.f32.mrf.mxu1 }
 0x107   : > { %v2779_v28 = vadd.f32 %v2087_v26, %v2086_v24  ;;  %v2781_v29 = vadd.f32 %v2159_v27, %v2158_v25 }
 0x108   : > { %v2089_v30 = vpop.f32.mrf.mxu0  ;;  %v2161_v31 = vpop.f32.mrf.mxu1 }
 0x109   : > { %3057 = vst [vmem:[#allocation8_spill] sm:$0xff] %v2781_v29 }
 0x10a   : > { %v2090_v32 = vpop.f32.mrf.mxu0  ;;  %v2162_v33 = vpop.f32.mrf.mxu1 }
 0x10b   : > { %v2783_v34 = vadd.f32 %v2090_v32, %v2089_v30  ;;  %v2785_v35 = vadd.f32 %v2162_v33, %v2161_v31 }
 0x10c   : > { %v2092_v36 = vpop.f32.mrf.mxu0  ;;  %v2180_v37 = vpop.f32.mrf.mxu1 }
 0x10d   : > { %3058 = vst [vmem:[#allocation9_spill] sm:$0xff] %v2785_v35 }
 0x10e   : > { %v2093_v39 = vpop.f32.mrf.mxu0  ;;  %v2181_v40 = vpop.f32.mrf.mxu1 }
 0x10f   : > { %v2793_v42 = vadd.f32 %v2093_v39, %v2092_v36  ;;  %v2182_v43 = vadd.f32 %v2181_v40, %v2180_v37 }
 0x110   : > { %v2095_v44 = vpop.f32.mrf.mxu0  ;;  %v2795_v45 = vpop.f32.mrf.mxu1 }
 0x111   : > { %v2797_v46 = vadd.f32 %v2182_v43, %v1053_v41 }
 0x112   : > { %v2096_v47 = vpop.f32.mrf.mxu0  ;;  %v2799_v48 = vpop.f32.mrf.mxu1 }
 0x113   : > { %v2801_v49 = vadd.f32 %v2096_v47, %v2095_v44 }
 0x114   : > { %v2098_v50 = vpop.f32.mrf.mxu0  ;;  %v2186_v51 = vpop.f32.mrf.mxu1 }
 0x116   : > { %v2099_v52 = vpop.f32.mrf.mxu0  ;;  %v2187_v53 = vpop.f32.mrf.mxu1 }
 0x117   : > { %v2803_v54 = vadd.f32 %v2099_v52, %v2098_v50  ;;  %v2188_v5 = vadd.f32 %v2187_v53, %v2186_v51 }
 0x118   : > { %v2101_v55 = vpop.f32.mrf.mxu0  ;;  %v2189_v56 = vpop.f32.mrf.mxu1 }
 0x11a   : > { %v2102_v58 = vpop.f32.mrf.mxu0  ;;  %v2190_v59 = vpop.f32.mrf.mxu1 }
 0x11b   : > { %v2805_v60 = vadd.f32 %v2102_v58, %v2101_v55 }
 0x11c   : > { %v2104_v61 = vpop.f32.mrf.mxu0  ;;  %v2807_v0 = vpop.f32.mrf.mxu1 }
 0x11e   : > { %v2105_v1 = vpop.f32.mrf.mxu0  ;;  %v2809_v2 = vpop.f32.mrf.mxu1 }
 0x11f   : > { %v2811_v3 = vadd.f32 %v2105_v1, %v2104_v61 }
 0x120   : > { %v2107_v6 = vpop.f32.mrf.mxu0  ;;  %v2813_v7 = vpop.f32.mrf.mxu1 }
 0x122   : > { %v2108_v8 = vpop.f32.mrf.mxu0  ;;  %v2815_v9 = vpop.f32.mrf.mxu1 }
 0x123   : > { %v2817_v12 = vadd.f32 %v2108_v8, %v2107_v6 }
 0x124   : > { %v2819_v13 = vpop.f32.mrf.mxu0  ;;  %v2198_v14 = vpop.f32.mrf.mxu1 }
 0x126   : > { %v2821_v15 = vpop.f32.mrf.mxu0  ;;  %v2199_v18 = vpop.f32.mrf.mxu1 }
 0x128   : > { %v2823_v19 = vpop.f32.mrf.mxu0  ;;  %v2201_v20 = vpop.f32.mrf.mxu1 }
 0x12a   : > { %v2825_v21 = vpop.f32.mrf.mxu0  ;;  %v2202_v24 = vpop.f32.mrf.mxu1 }
 0x12c   : > { %v2827_v25 = vpop.f32.mrf.mxu0  ;;  %v2829_v26 = vpop.f32.mrf.mxu1 }
 0x12e   : > { %v2831_v27 = vpop.f32.mrf.mxu0  ;;  %v2833_v30 = vpop.f32.mrf.mxu1 }
 0x12f   : > { %3059 = vst [vmem:[#allocation10_spill] sm:$0xff] %v2831_v27 }
 0x130   : > { %v2835_v31 = vpop.f32.mrf.mxu0  ;;  %v2837_v32 = vpop.f32.mrf.mxu1 }
 0x131   : > { %3060 = vst [vmem:[#allocation11_spill] sm:$0xff] %v2835_v31 }
 0x132   : > { %v2839_v33 = vpop.f32.mrf.mxu0  ;;  %v2841_v36 = vpop.f32.mrf.mxu1 }
 0x133   : > { %3061 = vst [vmem:[#allocation12_spill] sm:$0xff] %v2839_v33 }
 0x134   : > { %v2843_v37 = vpop.f32.mrf.mxu0  ;;  %v2845_v39 = vpop.f32.mrf.mxu1 }
 0x136   : > { %v2847_v40 = vpop.f32.mrf.mxu0  ;;  %v2849_v41 = vpop.f32.mrf.mxu1 }
 0x138   : > { %v2851_v43 = vpop.f32.mrf.mxu0  ;;  %v2853_v44 = vpop.f32.mrf.mxu1 }
 0x139   : > { %3062 = vst [vmem:[#allocation13_spill] sm:$0xff] %v2851_v43 }
 0x13a   : > { %v2855_v47 = vpop.f32.mrf.mxu0  ;;  %v2857_v50 = vpop.f32.mrf.mxu1 }
 0x13b   : > { %3063 = vst [vmem:[#allocation14_spill] sm:$0xff] %v2855_v47 }
 0x13c   : > { %v2859_v52 = vpop.f32.mrf.mxu0  ;;  %v2861_v55 = vpop.f32.mrf.mxu1 }
 0x13d   : > { %3064 = vst [vmem:[#allocation15_spill] sm:$0xff] %v2859_v52  ;;  %v2191_v52 = vadd.f32 %v2190_v59, %v2189_v56  ;;  %v2200_v59 = vadd.f32 %v2199_v18, %v2198_v14  ;;  %v1069_v14 = vadd.f32 %v2771_v16, %v2790_v38 }
 0x13e   : > { %v2863_v58 = vpop.f32.mrf.mxu0  ;;  %v2865_v61 = vpop.f32.mrf.mxu1 }
 0x13f   : > { %3065 = vst [vmem:[#allocation16_spill] sm:$0xff] %v2863_v58 }
 0x140   : > { %v2867_v1 = vpop.f32.mrf.mxu0  ;;  %v2869_v6 = vpop.f32.mrf.mxu1 }
 0x141   : > { %3066 = vst [vmem:[#allocation17_spill] sm:$0xff] %v2867_v1 }
 0x142   : > { %v2871_v8 = vpop.f32.mrf.mxu0  ;;  %v2873_v35 = vpop.f32.mrf.mxu1 }
 0x143   : > { %3067 = vst [vmem:[#allocation18_spill] sm:$0xff] %v2871_v8  ;;  %v1061_v8 = vadd.f32 %v2763_v4, %v2790_v38 }
 0x144   : > { %v2875_v29 = vpop.f32.mrf.mxu0  ;;  %v2877_v23 = vpop.f32.mrf.mxu1 }
 0x145   : > { %3068 = vst [vmem:[#allocation19_spill] sm:$0xff] %v2875_v29  ;;  %v1222_v31 = vadd.f32 %v2188_v5, %v1061_v8  ;;  %v1077_v5 = vadd.f32 %v2779_v28, %v2790_v38 }
 0x146   : > { %v2879_v17 = vpop.f32.mrf.mxu0  ;;  %v2881_v63 = vpop.f32.mrf.mxu1 }
 0x147   : > { %3069 = vst [vmem:[#allocation20_spill] sm:$0xff] %v2879_v17  ;;  %v1064_v17 = vadd.f32 %v2767_v10, %v2790_v38  ;;  %v1238_v16 = vadd.f32 %v2200_v59, %v1077_v5 }
 0x148   : > { %v2883_v11 = vpop.f32.mrf.mxu0  ;;  %v2885_v57 = vpop.f32.mrf.mxu1 }
 0x149   : > { %3070 = vst [vmem:[#allocation21_spill] sm:$0xff] %v2883_v11  ;;  %v2185_v11 = vadd.f32 %v2799_v48, %v2795_v45  ;;  %v1225_v4 = vadd.f32 %v2191_v52, %v1064_v17  ;;  %v2194_v45 = vadd.f32 %v2809_v2, %v2807_v0 }
 0x14a   : > { %v2887_v1 = vpop.f32.mrf.mxu0  ;;  %v2889_v58 = vpop.f32.mrf.mxu1 }
 0x14b   : > { %3071 = vst [vmem:[#allocation22_spill] sm:$0xff] %v2887_v1  ;;  %v1056_v1 = vadd.f32 %v2759_v62, %v2790_v38 }
 0x14c   : > { %v2893_v29 = vpop.f32.mrf.mxu1  ;;  %v2306_v33 = vpop.f32.mrf.mxu0 }
 0x14d   : > { %3072 = vst [vmem:[#allocation23_spill] sm:$0xff] %v2893_v29  ;;  %v1383_v47 = vadd.f32 %v2306_v33, %v1222_v31  ;;  %v1217_v27 = vadd.f32 %v2185_v11, %v1056_v1  ;;  %v2203_v31 = vadd.f32 %v2202_v24, %v2201_v20  ;;  %v2197_v11 = vadd.f32 %v2815_v9, %v2813_v7 }
 0x14e   : > { %v2899_v51 = vpop.f32.mrf.mxu1  ;;  %v1374_v53 = vpop.f32.mrf.mxu0 }
 0x14f   : > { %v1375_v29 = vadd.f32 %v1374_v53, %v2797_v46  ;;  %v1503_v17 = vmax.f32 %v1383_v47, 0.0  ;;  %v1080_v46 = vadd.f32 %v2783_v34, %v2790_v38  ;;  %v1072_v34 = vadd.f32 %v2775_v22, %v2790_v38 }
 0x150   : > { %v2903_v43 = vpop.f32.mrf.mxu1  ;;  %v2307_v56 = vpop.f32.mrf.mxu0  ;;  %v1230_v47 = vadd.f32 %v2194_v45, %v1069_v14  ;;  %v1093_v22 = vadd.f32 %v2803_v54, %v2790_v38  ;;  %v2209_v54 = vadd.f32 %v2841_v36, %v2837_v32 }
 0x151   : > { %v1386_v10 = vadd.f32 %v2307_v56, %v1225_v4  ;;  %v1501_v2 = vmax.f32 %v1375_v29, 0.0  ;;  %v1241_v1 = vadd.f32 %v2203_v31, %v1080_v46  ;;  %v2212_v29 = vadd.f32 %v2849_v41, %v2845_v39 }
 0x152   : > { %v2911_v48 = vpop.f32.mrf.mxu1  ;;  %v1377_v62 = vpop.f32.mrf.mxu0  ;;  %v1233_v59 = vadd.f32 %v2197_v11, %v1072_v34  ;;  %v1085_v41 = vadd.f32 %v2793_v42, %v2790_v38  ;;  %v1088_v46 = vadd.f32 %v2801_v49, %v2790_v38  ;;  %v2112_v42 = vadd.f32 %v2821_v15, %v2819_v13 }
 0x153   : > { %v1504_v33 = vmax.f32 %v1386_v10, 0.0  ;;  %v1378_v52 = vadd.f32 %v1377_v62, %v1217_v27  ;;  %v2206_v10 = vadd.f32 %v2833_v30, %v2829_v26  ;;  %v2215_v62 = vadd.f32 %v2857_v50, %v2853_v44 }
 0x154   : > { %v2924_v28 = vpop.f32.mrf.mxu1  ;;  %v2310_v0 = vpop.f32.mrf.mxu0  ;;  %v1254_v50 = vadd.f32 %v2212_v29, %v1093_v22  ;;  %v2224_v49 = vadd.f32 %v2881_v63, %v2877_v23  ;;  %v1249_v15 = vadd.f32 %v2209_v54, %v1088_v46  ;;  %v1101_v63 = vadd.f32 %v2811_v3, %v2790_v38 }
 0x155   : > { %v1965_v18 = vpack.c.bf16 %v1504_v33, %v1503_v17  ;;  %v1502_v20 = vmax.f32 %v1378_v52, 0.0  ;;  %v1399_v27 = vadd.f32 %v2310_v0, %v1238_v16  ;;  %v1096_v33 = vadd.f32 %v2805_v60, %v2790_v38 }
 0x156   : > { %v2928_v24 = vpop.f32.mrf.mxu1  ;;  %v1390_v7 = vpop.f32.mrf.mxu0  ;;  %v1246_v36 = vadd.f32 %v2206_v10, %v1085_v41  ;;  %v2221_v29 = vadd.f32 %v2873_v35, %v2869_v6  ;;  %v3073_v6 = vld [vmem:[#allocation10_spill] sm:$0xff] }
 0x157   : > { %2037 = vst [vmem:[%s2922_s21 + $0x8] sm:$0xff] %v1965_v18   ;;  %v1960_v9 = vpack.c.bf16 %v1502_v20, %v1501_v2  ;;  %v1391_v4 = vadd.f32 %v1390_v7, %v1230_v47  ;;  %v1507_v31 = vmax.f32 %v1399_v27, 0.0  ;;  %v1257_v2 = vadd.f32 %v2215_v62, %v1096_v33  ;;  %v3075_v41 = vld [vmem:[#allocation14_spill] sm:$0xff] }
 0x158   : > { %v2931_v8 = vpop.f32.mrf.mxu1  ;;  %v2311_v53 = vpop.f32.mrf.mxu0  ;;  %v2115_v18 = vadd.f32 %v2825_v21, %v2823_v19  ;;  %v1109_v7 = vadd.f32 %v2112_v42, %v2790_v38  ;;  %v2227_v19 = vadd.f32 %v2889_v58, %v2885_v57  ;;  %v1104_v57 = vadd.f32 %v2817_v12, %v2790_v38  ;;  %v3078_v42 = vld [vmem:[#allocation23_spill] sm:$0xff] }
 0x159   : > { %1961 = vst [vmem:[%s2922_s21] sm:$0xff] %v1960_v9   ;;  %v1402_v56 = vadd.f32 %v2311_v53, %v1241_v1  ;;  %v1505_v52 = vmax.f32 %v1391_v4, 0.0  ;;  %v2218_v9 = vadd.f32 %v2865_v61, %v2861_v55  ;;  %v2124_v58 = vadd.f32 %v2847_v40, %v2843_v37 }
 0x15a   : > { %v2940_v5 = vpop.f32.mrf.mxu1  ;;  %v1393_v45 = vpop.f32.mrf.mxu0  ;;  %v1112_v23 = vadd.f32 %v2115_v18, %v2790_v38  ;;  %v1270_v22 = vadd.f32 %v2224_v49, %v1109_v7  ;;  %v2236_v12 = vadd.f32 %v2928_v24, %v2924_v28 }
 0x15b   : > { %v1508_v17 = vmax.f32 %v1402_v56, 0.0  ;;  %v1394_v39 = vadd.f32 %v1393_v45, %v1233_v59  ;;  %v1125_v46 = vadd.f32 %v2124_v58, %v2790_v38 }
 0x15c   : > { %v2950_v26 = vpop.f32.mrf.mxu1  ;;  %v2314_v30 = vpop.f32.mrf.mxu0  ;;  %v1273_v35 = vadd.f32 %v2227_v19, %v1112_v23 }
 0x15d   : > { %v1975_v14 = vpack.c.bf16 %v1508_v17, %v1507_v31  ;;  %v1506_v44 = vmax.f32 %v1394_v39, 0.0  ;;  %v1415_v32 = vadd.f32 %v2314_v30, %v1254_v50  ;;  %v1262_v31 = vadd.f32 %v2218_v9, %v1101_v63  ;;  %v3074_v39 = vld [vmem:[#allocation13_spill] sm:$0xff]  ;;  %v3080_v9 = vld [vmem:[#allocation20_spill] sm:$0xff] }
 0x15e   : > { %v2956_v11 = vpop.f32.mrf.mxu1  ;;  %v1406_v60 = vpop.f32.mrf.mxu0  ;;  %v2118_v17 = vadd.f32 %v3073_v6, %v2827_v25  ;;  %v2127_v33 = vadd.f32 %v3075_v41, %v3074_v39  ;;  %v2230_v25 = vadd.f32 %v2899_v51, %v3078_v42  ;;  %v1286_v7 = vadd.f32 %v2236_v12, %v1125_v46 }
 0x15f   : > { %2039 = vst [vmem:[%s2922_s21 + $0x18] sm:$0xff] %v1975_v14   ;;  %v1970_v0 = vpack.c.bf16 %v1506_v44, %v1505_v52  ;;  %v1407_v34 = vadd.f32 %v1406_v60, %v1246_v36  ;;  %v1511_v21 = vmax.f32 %v1415_v32, 0.0  ;;  %v1265_v52 = vadd.f32 %v2221_v29, %v1104_v57  ;;  %v3076_v14 = vld [vmem:[#allocation11_spill] sm:$0xff]  ;;  %v3077_v44 = vld [vmem:[#allocation12_spill] sm:$0xff] }
 0x160   : > { %v2961_v20 = vpop.f32.mrf.mxu1  ;;  %v2315_v16 = vpop.f32.mrf.mxu0  ;;  %v2121_v50 = vadd.f32 %v3077_v44, %v3076_v14  ;;  %v2239_v32 = vadd.f32 %v2940_v5, %v2931_v8  ;;  %v1128_v18 = vadd.f32 %v2127_v33, %v2790_v38  ;;  %v3079_v5 = vld [vmem:[#allocation19_spill] sm:$0xff] }
 0x161   : > { %2038 = vst [vmem:[%s2922_s21 + $0x10] sm:$0xff] %v1970_v0   ;;  %v1418_v13 = vadd.f32 %v2315_v16, %v1257_v2  ;;  %v1509_v61 = vmax.f32 %v1407_v34, 0.0  ;;  %v1117_v2 = vadd.f32 %v2118_v17, %v2790_v38  ;;  %v2233_v16 = vadd.f32 %v2911_v48, %v2903_v43  ;;  %v3081_v43 = vld [vmem:[#allocation15_spill] sm:$0xff]  ;;  %v3082_v48 = vld [vmem:[#allocation16_spill] sm:$0xff] }
 0x162   : > { %v2969_v27 = vpop.f32.mrf.mxu1  ;;  %v1409_v47 = vpop.f32.mrf.mxu0  ;;  %v1120_v8 = vadd.f32 %v2121_v50, %v2790_v38  ;;  %v1289_v23 = vadd.f32 %v2239_v32, %v1128_v18  ;;  %v2130_v29 = vadd.f32 %v3082_v48, %v3081_v43  ;;  %v2242_v17 = vadd.f32 %v2956_v11, %v2950_v26  ;;  %v3087_v18 = vld [vmem:[#allocation4_spill] sm:$0xff] }
 0x163   : > { %v1512_v1 = vmax.f32 %v1418_v13, 0.0  ;;  %v1410_v53 = vadd.f32 %v1409_v47, %v1249_v15  ;;  %v2136_v47 = vadd.f32 %v3080_v9, %v3079_v5  ;;  %v1278_v63 = vadd.f32 %v2230_v25, %v1117_v2  ;;  %v3088_v9 = vld [vmem:[#allocation2_spill] sm:$0xff] }
 0x164   : > { %v2246_v4 = vpop.f32.mrf.mxu1  ;;  %v2318_v55 = vpop.f32.mrf.mxu0 }
 0x165   : > { %v1985_v56 = vpack.c.bf16 %v1512_v1, %v1511_v21  ;;  %v1510_v59 = vmax.f32 %v1410_v53, 0.0  ;;  %v1431_v62 = vadd.f32 %v2318_v55, %v1270_v22  ;;  %v3083_v55 = vld [vmem:[#allocation21_spill] sm:$0xff]  ;;  %v1141_v6 = vadd.f32 %v2136_v47, %v2790_v38 }
 0x166   : > { %v2247_v10 = vpop.f32.mrf.mxu1  ;;  %v1422_v3 = vpop.f32.mrf.mxu0  ;;  %v1149_v47 = vadd.f32 %v3088_v9, %v2790_v38 }
 0x167   : > { %2041 = vst [vmem:[%s2922_s21 + $0x28] sm:$0xff] %v1985_v56   ;;  %v1980_v45 = vpack.c.bf16 %v1510_v59, %v1509_v61  ;;  %v1423_v37 = vadd.f32 %v1422_v3, %v1262_v31  ;;  %v1515_v36 = vmax.f32 %v1431_v62, 0.0  ;;  %v3084_v61 = vld [vmem:[#allocation22_spill] sm:$0xff]  ;;  %v2248_v57 = vadd.f32 %v2247_v10, %v2246_v4  ;;  %v3085_v62 = vld [vmem:[#allocation17_spill] sm:$0xff] }
 0x168   : > { %v2249_v54 = vpop.f32.mrf.mxu1  ;;  %v2319_v30 = vpop.f32.mrf.mxu0  ;;  %v2139_v56 = vadd.f32 %v3084_v61, %v3083_v55  ;;  %v3086_v31 = vld [vmem:[#allocation18_spill] sm:$0xff]  ;;  %v1133_v4 = vadd.f32 %v2130_v29, %v2790_v38  ;;  %v3090_v29 = vld [vmem:[#allocation3_spill] sm:$0xff] }
 0x169   : > { %2040 = vst [vmem:[%s2922_s21 + $0x20] sm:$0xff] %v1980_v45   ;;  %v1434_v40 = vadd.f32 %v2319_v30, %v1273_v35  ;;  %v1513_v13 = vmax.f32 %v1423_v37, 0.0  ;;  %v1281_v45 = vadd.f32 %v2233_v16, %v1120_v8  ;;  %v2133_v35 = vadd.f32 %v3086_v31, %v3085_v62 }
 0x16a   : > { %v2250_v60 = vpop.f32.mrf.mxu1  ;;  %v1425_v0 = vpop.f32.mrf.mxu0  ;;  %v1144_v10 = vadd.f32 %v2139_v56, %v2790_v38  ;;  %v1302_v11 = vadd.f32 %v2248_v57, %v1141_v6  ;;  %v1157_v16 = vadd.f32 %v3087_v18, %v2790_v38  ;;  %v1152_v55 = vadd.f32 %v3090_v29, %v2790_v38  ;;  %v3094_v18 = vld [vmem:[#allocation9_spill] sm:$0xff] }
 0x16b   : > { %v1516_v28 = vmax.f32 %v1434_v40, 0.0  ;;  %v1426_v24 = vadd.f32 %v1425_v0, %v1265_v52  ;;  %v2251_v33 = vadd.f32 %v2250_v60, %v2249_v54  ;;  %v2245_v40 = vadd.f32 %v2969_v27, %v2961_v20 }
 0x16c   : > { %v2252_v49 = vpop.f32.mrf.mxu1  ;;  %v2322_v34 = vpop.f32.mrf.mxu0  ;;  %v1136_v54 = vadd.f32 %v2133_v35, %v2790_v38  ;;  %v1294_v0 = vadd.f32 %v2242_v17, %v1133_v4 }
 0x16d   : > { %v1995_v51 = vpack.c.bf16 %v1516_v28, %v1515_v36  ;;  %v1514_v15 = vmax.f32 %v1426_v24, 0.0  ;;  %v1447_v53 = vadd.f32 %v2322_v34, %v1286_v7  ;;  %v1305_v32 = vadd.f32 %v2251_v33, %v1144_v10 }
 0x16e   : > { %v2253_v19 = vpop.f32.mrf.mxu1  ;;  %v1438_v21 = vpop.f32.mrf.mxu0  ;;  %v1297_v2 = vadd.f32 %v2245_v40, %v1136_v54 }
 0x16f   : > { %2043 = vst [vmem:[%s2922_s21 + $0x38] sm:$0xff] %v1995_v51   ;;  %v1990_v1 = vpack.c.bf16 %v1514_v15, %v1513_v13  ;;  %v1439_v58 = vadd.f32 %v1438_v21, %v1278_v63  ;;  %v1519_v30 = vmax.f32 %v1447_v53, 0.0  ;;  %v2254_v34 = vadd.f32 %v2253_v19, %v2252_v49  ;;  %v3089_v21 = vld [vmem:[#allocation5_spill] sm:$0xff] }
 0x170   : > { %v2255_v59 = vpop.f32.mrf.mxu1  ;;  %v2323_v22 = vpop.f32.mrf.mxu0 }
 0x171   : > { %2042 = vst [vmem:[%s2922_s21 + $0x30] sm:$0xff] %v1990_v1   ;;  %v1450_v3 = vadd.f32 %v2323_v22, %v1289_v23  ;;  %v1517_v44 = vmax.f32 %v1439_v58, 0.0  ;;  %v1160_v1 = vadd.f32 %v3089_v21, %v2790_v38  ;;  %v1310_v58 = vadd.f32 %v2254_v34, %v1149_v47 }
 0x172   : > { %v2256_v39 = vpop.f32.mrf.mxu1  ;;  %v1441_v41 = vpop.f32.mrf.mxu0 }
 0x173   : > { %v1520_v12 = vmax.f32 %v1450_v3, 0.0  ;;  %v1442_v37 = vadd.f32 %v1441_v41, %v1281_v45  ;;  %v2257_v53 = vadd.f32 %v2256_v39, %v2255_v59 }
 0x174   : > { %v2258_v52 = vpop.f32.mrf.mxu1  ;;  %v2326_v14 = vpop.f32.mrf.mxu0 }
 0x175   : > { %v2005_v50 = vpack.c.bf16 %v1520_v12, %v1519_v30  ;;  %v1518_v26 = vmax.f32 %v1442_v37, 0.0  ;;  %v1463_v60 = vadd.f32 %v2326_v14, %v1302_v11  ;;  %v1313_v35 = vadd.f32 %v2257_v53, %v1152_v55  ;;  %v3091_v12 = vld [vmem:[#allocation6_spill] sm:$0xff] }
 0x176   : > { %v2259_v46 = vpop.f32.mrf.mxu1  ;;  %v1454_v42 = vpop.f32.mrf.mxu0  ;;  %v1165_v37 = vadd.f32 %v3091_v12, %v2790_v38 }
 0x177   : > { %2045 = vst [vmem:[%s2922_s21 + $0x48] sm:$0xff] %v2005_v50   ;;  %v2000_v25 = vpack.c.bf16 %v1518_v26, %v1517_v44  ;;  %v2260_v20 = vadd.f32 %v2259_v46, %v2258_v52  ;;  %v1455_v27 = vadd.f32 %v1454_v42, %v1294_v0  ;;  %v1523_v15 = vmax.f32 %v1463_v60, 0.0  ;;  %v3092_v50 = vld [vmem:[#allocation7_spill] sm:$0xff]  ;;  %v3093_v46 = vld [vmem:[#allocation8_spill] sm:$0xff] }
 0x178   : > { %v2261_v36 = vpop.f32.mrf.mxu1  ;;  %v2327_v28 = vpop.f32.mrf.mxu0  ;;  %v1168_v26 = vadd.f32 %v3092_v50, %v2790_v38  ;;  %v1173_v42 = vadd.f32 %v3093_v46, %v2790_v38 }
 0x179   : > { %2044 = vst [vmem:[%s2922_s21 + $0x40] sm:$0xff] %v2000_v25   ;;  %v1466_v24 = vadd.f32 %v2327_v28, %v1305_v32  ;;  %v1521_v43 = vmax.f32 %v1455_v27, 0.0  ;;  %v1318_v19 = vadd.f32 %v2260_v20, %v1157_v16  ;;  %v1176_v16 = vadd.f32 %v3094_v18, %v2790_v38 }
 0x17a   : > { %v2262_v13 = vpop.f32.mrf.mxu1  ;;  %v1457_v51 = vpop.f32.mrf.mxu0 }
 0x17b   : > { %v1524_v7 = vmax.f32 %v1466_v24, 0.0  ;;  %v2263_v8 = vadd.f32 %v2262_v13, %v2261_v36  ;;  %v1458_v5 = vadd.f32 %v1457_v51, %v1297_v2 }
 0x17c   : > { %v2264_v63 = vpop.f32.mrf.mxu1  ;;  %v2330_v23 = vpop.f32.mrf.mxu0 }
 0x17d   : > { %v2015_v48 = vpack.c.bf16 %v1524_v7, %v1523_v15  ;;  %v1522_v49 = vmax.f32 %v1458_v5, 0.0  ;;  %v1479_v57 = vadd.f32 %v2330_v23, %v1318_v19  ;;  %v1321_v3 = vadd.f32 %v2263_v8, %v1160_v1 }
 0x17e   : > { %v2265_v61 = vpop.f32.mrf.mxu1  ;;  %v1470_v56 = vpop.f32.mrf.mxu0 }
 0x17f   : > { %2047 = vst [vmem:[%s2922_s21 + $0x58] sm:$0xff] %v2015_v48   ;;  %v2010_v22 = vpack.c.bf16 %v1522_v49, %v1521_v43  ;;  %v1471_v59 = vadd.f32 %v1470_v56, %v1310_v58  ;;  %v1527_v39 = vmax.f32 %v1479_v57, 0.0  ;;  %v2266_v41 = vadd.f32 %v2265_v61, %v2264_v63 }
 0x180   : > { %v2267_v45 = vpop.f32.mrf.mxu1  ;;  %v2331_v62 = vpop.f32.mrf.mxu0 }
 0x181   : > { %2046 = vst [vmem:[%s2922_s21 + $0x50] sm:$0xff] %v2010_v22   ;;  %v1482_v31 = vadd.f32 %v2331_v62, %v1321_v3  ;;  %v1525_v40 = vmax.f32 %v1471_v59, 0.0  ;;  %v1326_v0 = vadd.f32 %v2266_v41, %v1165_v37 }
 0x182   : > { %v2268_v6 = vpop.f32.mrf.mxu1  ;;  %v1473_v17 = vpop.f32.mrf.mxu0 }
 0x183   : > { %v1528_v33 = vmax.f32 %v1482_v31, 0.0  ;;  %v1474_v30 = vadd.f32 %v1473_v17, %v1313_v35  ;;  %v2269_v14 = vadd.f32 %v2268_v6, %v2267_v45 }
 0x184   : > { %v2270_v4 = vpop.f32.mrf.mxu1  ;;  %v2334_v10 = vpop.f32.mrf.mxu0 }
 0x185   : > { %v2025_v52 = vpack.c.bf16 %v1528_v33, %v1527_v39  ;;  %v1526_v44 = vmax.f32 %v1474_v30, 0.0  ;;  %v1329_v27 = vadd.f32 %v2269_v14, %v1168_v26 }
 0x186   : > { %v2271_v11 = vpop.f32.mrf.mxu1  ;;  %v1486_v54 = vpop.f32.mrf.mxu0 }
 0x187   : > { %2049 = vst [vmem:[%s2922_s21 + $0x68] sm:$0xff] %v2025_v52   ;;  %v2020_v25 = vpack.c.bf16 %v1526_v44, %v1525_v40  ;;  %v2272_v60 = vadd.f32 %v2271_v11, %v2270_v4  ;;  %v1487_v20 = vadd.f32 %v1486_v54, %v1326_v0 }
 0x188   : > { %v2273_v32 = vpop.f32.mrf.mxu1  ;;  %v2335_v36 = vpop.f32.mrf.mxu0 }
 0x189   : > { %2048 = vst [vmem:[%s2922_s21 + $0x60] sm:$0xff] %v2020_v25   ;;  %v1334_v28 = vadd.f32 %v2272_v60, %v1173_v42  ;;  %v1529_v15 = vmax.f32 %v1487_v20, 0.0 }
 0x18a   : > { %v2274_v24 = vpop.f32.mrf.mxu1  ;;  %v1489_v2 = vpop.f32.mrf.mxu0 }
 0x18b   : > { %v2275_v34 = vadd.f32 %v2274_v24, %v2273_v32  ;;  %v1490_v13 = vadd.f32 %v1489_v2, %v1329_v27  ;;  %v1495_v51 = vadd.f32 %v2334_v10, %v1334_v28 }
 0x18d   : > { %v1337_v7 = vadd.f32 %v2275_v34, %v1176_v16  ;;  %v1530_v8 = vmax.f32 %v1490_v13, 0.0  ;;  %v1531_v47 = vmax.f32 %v1495_v51, 0.0 }
 0x18f   : > { %v1498_v5 = vadd.f32 %v2335_v36, %v1337_v7  ;;  %v2030_v9 = vpack.c.bf16 %v1530_v8, %v1529_v15 }
 0x191   : > { %v1532_v21 = vmax.f32 %v1498_v5, 0.0  ;;  %2050 = vst [vmem:[%s2922_s21 + $0x70] sm:$0xff] %v2030_v9  }
 0x193   : > { %v2035_v1 = vpack.c.bf16 %v1532_v21, %v1531_v47 }
 0x195   : > { %2051 = vst [vmem:[%s2922_s21 + $0x78] sm:$0xff] %v2035_v1  }
 0x196 PF: > { %s13_s12 = sadd.s32 1, %s2515_s12  }
 0x197   : > { %p10_p4 = scmp.ge.s32.totalorder %s13_s12, 4  }
 0x199   :  { %12 = sbr.rel (!%p10_p4) target bundleno = 1 (0x1), region = 62 }

// kernel: _stage1.12
= control target key start
LH: loop header
LB: loop body
LE: loop exit
PB: predicated region body
PF: predicated region fallthrough
CT: control target
= control target key end

     0   :  { %s2307_s12 = smov 0   ;;  %s2927_s0 = inlined_call_operand.vmem [shape: bf16[128,1152], index: 0, kind: input, shape index: {}]   ;;  %s2928_s1 = inlined_call_operand.vmem [shape: bf16[1152,256], index: 1, kind: input, shape index: {}]   ;;  %s2929_s2 = inlined_call_operand.vmem [shape: f32[1,256], index: 2, kind: input, shape index: {}]   ;;  %s2930_s3 = inlined_call_operand.vmem [shape: bf16[128,256], index: 3, kind: output, shape index: {}]  }
   0x1 LB: > { %s1775_s13 = sadd.s32 4294967295, %s2284_s12   ;;  %p1779_p0 = scmp.ge.s32.totalorder %s2284_s12, 1  ;;  %s2284_s12 = sphi %s2307_s12, %s13_s12  }
   0x2   : > { %p139_p1 = scmp.lt.s32.totalorder %s2284_s12, 3 }
   0x4   : > { %p140_p2 = pnand %p1779_p0, %p139_p1 }
   0x6   : > { %143 = sbr.rel (%p140_p2) target bundleno = 387 (0x183), region = 32 }
   0xb   : > { %v2010_v0 = vld [vmem:[%s2928_s1 + $0x74] ss:$8 sps:$4 sm:$0xff]   ;;  %v2014_v2 = vld [vmem:[%s2928_s1 + $0x70] ss:$8 sps:$4 sm:$0xff]   ;;  %v2016_v4 = vld [vmem:[%s2928_s1 + $0x64] ss:$8 sps:$4 sm:$0xff]  }
   0xc   : > { %v2012_v1 = vld [vmem:[%s2928_s1 + $0x174] ss:$8 sps:$4 sm:$0xff]   ;;  %1280 = vmatprep.subr.bf16.mxu0 %v2010_v0  ;;  %v2015_v3 = vld [vmem:[%s2928_s1 + $0x170] ss:$8 sps:$4 sm:$0xff]   ;;  %v2018_v5 = vld [vmem:[%s2928_s1 + $0x164] ss:$8 sps:$4 sm:$0xff]  }
   0xd   : > { %1353 = vmatprep.subr.bf16.mxu1 %v2012_v1  ;;  %1281 = vmatpush1.bf16.msra.mxu0 %v2014_v2  ;;  %v2020_v6 = vld [vmem:[%s2928_s1 + $0x60] ss:$8 sps:$4 sm:$0xff]   ;;  %v2022_v8 = vld [vmem:[%s2928_s1 + $0x54] ss:$8 sps:$4 sm:$0xff]   ;;  %v2026_v10 = vld [vmem:[%s2928_s1 + $0x50] ss:$8 sps:$4 sm:$0xff]  }
   0xe   : > { %1354 = vmatpush1.bf16.msra.mxu1 %v2015_v3  ;;  %1282 = vmatprep.subr.bf16.mxu0 %v2016_v4  ;;  %v2021_v7 = vld [vmem:[%s2928_s1 + $0x160] ss:$8 sps:$4 sm:$0xff]   ;;  %v2024_v9 = vld [vmem:[%s2928_s1 + $0x154] ss:$8 sps:$4 sm:$0xff]   ;;  %v2027_v11 = vld [vmem:[%s2928_s1 + $0x150] ss:$8 sps:$4 sm:$0xff]  }
   0xf   : > { %1355 = vmatprep.subr.bf16.mxu1 %v2018_v5  ;;  %v2028_v12 = vld [vmem:[%s2928_s1 + $0x44] ss:$8 sps:$4 sm:$0xff]   ;;  %v2032_v14 = vld [vmem:[%s2928_s1 + $0x40] ss:$8 sps:$4 sm:$0xff]   ;;  %v2034_v16 = vld [vmem:[%s2928_s1 + $0x34] ss:$8 sps:$4 sm:$0xff]  }
  0x10   : > { %v2030_v13 = vld [vmem:[%s2928_s1 + $0x144] ss:$8 sps:$4 sm:$0xff]   ;;  %v2033_v15 = vld [vmem:[%s2928_s1 + $0x140] ss:$8 sps:$4 sm:$0xff]   ;;  %v2036_v17 = vld [vmem:[%s2928_s1 + $0x134] ss:$8 sps:$4 sm:$0xff]  }
  0x11   : > { %1283 = vmatpush1.bf16.msra.mxu0 %v2020_v6  ;;  %v2038_v18 = vld [vmem:[%s2928_s1 + $0x30] ss:$8 sps:$4 sm:$0xff]   ;;  %v2040_v20 = vld [vmem:[%s2928_s1 + $0x24] ss:$8 sps:$4 sm:$0xff]   ;;  %v2044_v22 = vld [vmem:[%s2928_s1 + $0x20] ss:$8 sps:$4 sm:$0xff]  }
  0x12   : > { %1356 = vmatpush1.bf16.msra.mxu1 %v2021_v7  ;;  %1284 = vmatprep.subr.bf16.mxu0 %v2022_v8  ;;  %v2039_v19 = vld [vmem:[%s2928_s1 + $0x130] ss:$8 sps:$4 sm:$0xff]   ;;  %v2042_v21 = vld [vmem:[%s2928_s1 + $0x124] ss:$8 sps:$4 sm:$0xff]   ;;  %v2045_v23 = vld [vmem:[%s2928_s1 + $0x120] ss:$8 sps:$4 sm:$0xff]  }
  0x13   : > { %1357 = vmatprep.subr.bf16.mxu1 %v2024_v9  ;;  %v2046_v24 = vld [vmem:[%s2928_s1 + $0x14] ss:$8 sps:$4 sm:$0xff]   ;;  %v2050_v26 = vld [vmem:[%s2928_s1 + $0x10] ss:$8 sps:$4 sm:$0xff]   ;;  %v2052_v28 = vld [vmem:[%s2928_s1 + $0x4] ss:$8 sps:$4 sm:$0xff]  }
  0x14   : > { %v2048_v25 = vld [vmem:[%s2928_s1 + $0x114] ss:$8 sps:$4 sm:$0xff]   ;;  %v2051_v27 = vld [vmem:[%s2928_s1 + $0x110] ss:$8 sps:$4 sm:$0xff]   ;;  %v2054_v29 = vld [vmem:[%s2928_s1 + $0x104] ss:$8 sps:$4 sm:$0xff]  }
  0x15   : > { %1285 = vmatpush1.bf16.msra.mxu0 %v2026_v10  ;;  %s1780_s24 = sshll.u32 %s1775_s13, 3  ;;  %v2056_v30 = vld [vmem:[%s2928_s1] ss:$8 sps:$4 sm:$0xff]   ;;  %v2058_v32 = vld [vmem:[%s2928_s1 + $0xf4] ss:$8 sps:$4 sm:$0xff]  }
  0x16   : > { %1358 = vmatpush1.bf16.msra.mxu1 %v2027_v11  ;;  %1286 = vmatprep.subr.bf16.mxu0 %v2028_v12  ;;  %v2057_v31 = vld [vmem:[%s2928_s1 + $0x100] ss:$8 sps:$4 sm:$0xff]   ;;  %p166_p3 = scmp.lt.s32.totalorder %s1780_s24, 15  ;;  %v2060_v33 = vld [vmem:[%s2928_s1 + $0x1f4] ss:$8 sps:$4 sm:$0xff]  }
  0x17   : > { %1359 = vmatprep.subr.bf16.mxu1 %v2030_v13  ;;  %v2062_v34 = vld [vmem:[%s2928_s1 + $0xf0] ss:$8 sps:$4 sm:$0xff]   ;;  %v2064_v36 = vld [vmem:[%s2928_s1 + $0xe4] ss:$8 sps:$4 sm:$0xff]   ;;  %v2068_v38 = vld [vmem:[%s2928_s1 + $0xe0] ss:$8 sps:$4 sm:$0xff]  }
  0x18   : > { %v2063_v35 = vld [vmem:[%s2928_s1 + $0x1f0] ss:$8 sps:$4 sm:$0xff]   ;;  %s2954_s24 = smov (!%p166_p3, %s1780_s24), 15  ;;  %v2066_v37 = vld [vmem:[%s2928_s1 + $0x1e4] ss:$8 sps:$4 sm:$0xff]  }
  0x19   : > { %1287 = vmatpush1.bf16.msra.mxu0 %v2032_v14  ;;  %v2069_v39 = vld [vmem:[%s2928_s1 + $0x1e0] ss:$8 sps:$4 sm:$0xff]   ;;  %v2070_v40 = vld [vmem:[%s2928_s1 + $0xd4] ss:$8 sps:$4 sm:$0xff]   ;;  %s2000_s21 = smul.u32 36, %s2954_s24  ;;  %s1975_s15 = sshll.u32 %s2954_s24, 3 }
  0x1a   : > { %1360 = vmatpush1.bf16.msra.mxu1 %v2033_v15  ;;  %1288 = vmatprep.subr.bf16.mxu0 %v2034_v16  ;;  %v2072_v41 = vld [vmem:[%s2928_s1 + $0x1d4] ss:$8 sps:$4 sm:$0xff]   ;;  %v2074_v42 = vld [vmem:[%s2928_s1 + $0xd0] ss:$8 sps:$4 sm:$0xff]   ;;  %v2076_v44 = vld [vmem:[%s2928_s1 + $0xc4] ss:$8 sps:$4 sm:$0xff]   ;;  %s2906_s17 = scalar_lea.vmem %s2930_s3, %s1975_s15 }
  0x1b   : > { %1361 = vmatprep.subr.bf16.mxu1 %v2036_v17  ;;  %v2075_v43 = vld [vmem:[%s2928_s1 + $0x1d0] ss:$8 sps:$4 sm:$0xff]   ;;  %s2458_s13 = scalar_lea.vmem %s2927_s0, %s2000_s21  ;;  %v2078_v45 = vld [vmem:[%s2928_s1 + $0x1c4] ss:$8 sps:$4 sm:$0xff]   ;;  %v2080_v46 = vld [vmem:[%s2928_s1 + $0xc0] ss:$8 sps:$4 sm:$0xff]  }
  0x1c   : > { %v2081_v47 = vld [vmem:[%s2928_s1 + $0x1c0] ss:$8 sps:$4 sm:$0xff]   ;;  %v2082_v48 = vld [vmem:[%s2928_s1 + $0xb4] ss:$8 sps:$4 sm:$0xff]   ;;  %v2111_v51 = vld [vmem:[%s2458_s13 + $0xc] ss:$36 sps:$4 sm:$0xff]  }
  0x1d   : > { %1289 = vmatpush1.bf16.msra.mxu0 %v2038_v18  ;;  %v2108_v49 = vld [vmem:[%s2458_s13 + $0x4] ss:$36 sps:$4 sm:$0xff]   ;;  %v2084_v50 = vld [vmem:[%s2928_s1 + $0x1b4] ss:$8 sps:$4 sm:$0xff]   ;;  %v2086_v52 = vld [vmem:[%s2928_s1 + $0xb0] ss:$8 sps:$4 sm:$0xff]   ;;  %1385 = vmatprep.mubr.bf16.mxu1 %v2111_v51 }
  0x1e   : > { %1362 = vmatpush1.bf16.msra.mxu1 %v2039_v19  ;;  %1290 = vmatprep.subr.bf16.mxu0 %v2040_v20  ;;  %v2087_v53 = vld [vmem:[%s2928_s1 + $0x1b0] ss:$8 sps:$4 sm:$0xff]   ;;  %v2088_v54 = vld [vmem:[%s2928_s1 + $0xa4] ss:$8 sps:$4 sm:$0xff]   ;;  %v2092_v56 = vld [vmem:[%s2928_s1 + $0xa0] ss:$8 sps:$4 sm:$0xff]  }
  0x1f   : > { %1363 = vmatprep.subr.bf16.mxu1 %v2042_v21  ;;  %1312 = vmatprep.mubr.bf16.mxu0 %v2108_v49  ;;  %v2090_v55 = vld [vmem:[%s2928_s1 + $0x1a4] ss:$8 sps:$4 sm:$0xff]   ;;  %v2093_v57 = vld [vmem:[%s2928_s1 + $0x1a0] ss:$8 sps:$4 sm:$0xff]   ;;  %v2094_v58 = vld [vmem:[%s2928_s1 + $0x94] ss:$8 sps:$4 sm:$0xff]  }
  0x20   : > { %v2096_v59 = vld [vmem:[%s2928_s1 + $0x194] ss:$8 sps:$4 sm:$0xff]   ;;  %v2098_v60 = vld [vmem:[%s2928_s1 + $0x90] ss:$8 sps:$4 sm:$0xff]   ;;  %v2100_v62 = vld [vmem:[%s2928_s1 + $0x84] ss:$8 sps:$4 sm:$0xff]  }
  0x21   : > { %1291 = vmatpush1.bf16.msra.mxu0 %v2044_v22  ;;  %v2099_v61 = vld [vmem:[%s2928_s1 + $0x190] ss:$8 sps:$4 sm:$0xff]   ;;  %v2102_v63 = vld [vmem:[%s2928_s1 + $0x184] ss:$8 sps:$4 sm:$0xff]   ;;  %v2104_v0 = vld [vmem:[%s2928_s1 + $0x80] ss:$8 sps:$4 sm:$0xff]  }
  0x22   : > { %1364 = vmatpush1.bf16.msra.mxu1 %v2045_v23  ;;  %1292 = vmatprep.subr.bf16.mxu0 %v2046_v24  ;;  %v2105_v1 = vld [vmem:[%s2928_s1 + $0x180] ss:$8 sps:$4 sm:$0xff]   ;;  %v2114_v2 = vld [vmem:[%s2928_s1 + $0x274] ss:$8 sps:$4 sm:$0xff]   ;;  %v2112_v6 = vld [vmem:[%s2928_s1 + $0x270] ss:$8 sps:$4 sm:$0xff]  }
  0x23   : > { %1365 = vmatprep.subr.bf16.mxu1 %v2048_v25  ;;  %v2117_v3 = vld [vmem:[%s2928_s1 + $0x374] ss:$8 sps:$4 sm:$0xff]   ;;  %v2106_v4 = vld [vmem:[%s2458_s13] ss:$36 sps:$4 sm:$0xff]   ;;  %v2109_v5 = vld [vmem:[%s2458_s13 + $0x8] ss:$36 sps:$4 sm:$0xff]  }
  0x24   : > { %v2115_v7 = vld [vmem:[%s2928_s1 + $0x370] ss:$8 sps:$4 sm:$0xff]   ;;  %v2120_v8 = vld [vmem:[%s2928_s1 + $0x264] ss:$8 sps:$4 sm:$0xff]   ;;  %v2118_v10 = vld [vmem:[%s2928_s1 + $0x260] ss:$8 sps:$4 sm:$0xff]  }
  0x25   : > { %1293 = vmatpush1.bf16.msra.mxu0 %v2050_v26  ;;  %v2123_v9 = vld [vmem:[%s2928_s1 + $0x364] ss:$8 sps:$4 sm:$0xff]   ;;  %v2121_v12 = vld [vmem:[%s2928_s1 + $0x360] ss:$8 sps:$4 sm:$0xff]   ;;  %v2126_v13 = vld [vmem:[%s2928_s1 + $0x254] ss:$8 sps:$4 sm:$0xff]  }
  0x26   : > { %1366 = vmatpush1.bf16.msra.mxu1 %v2051_v27  ;;  %1294 = vmatprep.subr.bf16.mxu0 %v2052_v28  ;;  %v2160_v11 = vld [vmem:[%s2458_s13 + $0x4c] ss:$36 sps:$4 sm:$0xff]   ;;  %v2129_v14 = vld [vmem:[%s2928_s1 + $0x354] ss:$8 sps:$4 sm:$0xff]   ;;  %v2130_v22 = vld [vmem:[%s2928_s1 + $0x240] ss:$8 sps:$4 sm:$0xff]  }
  0x27   : > { %1367 = vmatprep.subr.bf16.mxu1 %v2054_v29  ;;  %v2124_v15 = vld [vmem:[%s2928_s1 + $0x250] ss:$8 sps:$4 sm:$0xff]   ;;  %v2168_v17 = vld [vmem:[%s2458_s13 + $0x48] ss:$36 sps:$4 sm:$0xff]   ;;  %v2138_v25 = vld [vmem:[%s2928_s1 + $0x234] ss:$8 sps:$4 sm:$0xff]  }
  0x28   : > { %v2127_v16 = vld [vmem:[%s2928_s1 + $0x350] ss:$8 sps:$4 sm:$0xff]   ;;  %v2132_v20 = vld [vmem:[%s2928_s1 + $0x244] ss:$8 sps:$4 sm:$0xff]   ;;  %v2133_v24 = vld [vmem:[%s2928_s1 + $0x340] ss:$8 sps:$4 sm:$0xff]  }
  0x29   : > { %1295 = vmatpush1.bf16.msra.mxu0 %v2056_v30  ;;  %v2169_v18 = vld [vmem:[%s2458_s13 + $0x54] ss:$36 sps:$4 sm:$0xff]   ;;  %v2135_v21 = vld [vmem:[%s2928_s1 + $0x344] ss:$8 sps:$4 sm:$0xff]   ;;  %v2187_v30 = vld [vmem:[%s2458_s13 + $0x9c] ss:$36 sps:$4 sm:$0xff]  }
  0x2a   : > { %1368 = vmatpush1.bf16.msra.mxu1 %v2057_v31  ;;  %1296 = vmatprep.subr.bf16.mxu0 %v2058_v32  ;;  %v2171_v19 = vld [vmem:[%s2458_s13 + $0x50] ss:$36 sps:$4 sm:$0xff]   ;;  %v2189_v31 = vld [vmem:[%s2458_s13 + $0x98] ss:$36 sps:$4 sm:$0xff]   ;;  %v2144_v32 = vld [vmem:[%s2928_s1 + $0x224] ss:$8 sps:$4 sm:$0xff]  }
  0x2b   : > { %1369 = vmatprep.subr.bf16.mxu1 %v2060_v33  ;;  %v2178_v23 = vld [vmem:[%s2458_s13 + $0x94] ss:$36 sps:$4 sm:$0xff]   ;;  %v2147_v33 = vld [vmem:[%s2928_s1 + $0x324] ss:$8 sps:$4 sm:$0xff]  }
  0x2c   : > { %v2141_v26 = vld [vmem:[%s2928_s1 + $0x334] ss:$8 sps:$4 sm:$0xff]   ;;  %v2136_v27 = vld [vmem:[%s2928_s1 + $0x230] ss:$8 sps:$4 sm:$0xff]  }
  0x2d   : > { %1297 = vmatpush2.bf16.msra.mxu0 %v2062_v34  ;;  %v2139_v28 = vld [vmem:[%s2928_s1 + $0x330] ss:$8 sps:$4 sm:$0xff]   ;;  %v2142_v34 = vld [vmem:[%s2928_s1 + $0x220] ss:$8 sps:$4 sm:$0xff]   ;;  %v2167_v49 = vld [vmem:[%s2928_s1 + $0x3f4] ss:$8 sps:$4 sm:$0xff]  }
  0x2e   : > { %1370 = vmatpush2.bf16.msra.mxu1 %v2063_v35  ;;  %1298 = vmatprep.subr.bf16.mxu0 %v2064_v36  ;;  %v2186_v29 = vld [vmem:[%s2458_s13 + $0x90] ss:$36 sps:$4 sm:$0xff]   ;;  %v2196_v35 = vld [vmem:[%s2458_s13 + $0xdc] ss:$36 sps:$4 sm:$0xff]  }
  0x2f   : > { %1371 = vmatprep.subr.bf16.mxu1 %v2066_v37  ;;  %v2145_v36 = vld [vmem:[%s2928_s1 + $0x320] ss:$8 sps:$4 sm:$0xff]   ;;  %v2150_v37 = vld [vmem:[%s2928_s1 + $0x214] ss:$8 sps:$4 sm:$0xff]   ;;  %v2165_v51 = vld [vmem:[%s2928_s1 + $0x3f0] ss:$8 sps:$4 sm:$0xff]  }
  0x31   : > { %1299 = vmatpush2.bf16.msra.mxu0 %v2068_v38  ;;  %v2153_v38 = vld [vmem:[%s2928_s1 + $0x314] ss:$8 sps:$4 sm:$0xff]  }
  0x32   : > { %1372 = vmatpush2.bf16.msra.mxu1 %v2069_v39  ;;  %1300 = vmatprep.subr.bf16.mxu0 %v2070_v40  ;;  %v2148_v39 = vld [vmem:[%s2928_s1 + $0x210] ss:$8 sps:$4 sm:$0xff]  }
  0x33   : > { %1373 = vmatprep.subr.bf16.mxu1 %v2072_v41  ;;  %v2151_v40 = vld [vmem:[%s2928_s1 + $0x310] ss:$8 sps:$4 sm:$0xff]  }
  0x34   : > { %v2204_v41 = vld [vmem:[%s2458_s13 + $0xd8] ss:$36 sps:$4 sm:$0xff]  }
  0x35   : > { %1301 = vmatpush2.bf16.msra.mxu0 %v2074_v42  ;;  %v2205_v42 = vld [vmem:[%s2458_s13 + $0xe4] ss:$36 sps:$4 sm:$0xff]  }
  0x36   : > { %1374 = vmatpush2.bf16.msra.mxu1 %v2075_v43  ;;  %1302 = vmatprep.subr.bf16.mxu0 %v2076_v44  ;;  %v2207_v43 = vld [vmem:[%s2458_s13 + $0xe0] ss:$36 sps:$4 sm:$0xff]  }
  0x37   : > { %1375 = vmatprep.subr.bf16.mxu1 %v2078_v45  ;;  %v2156_v44 = vld [vmem:[%s2928_s1 + $0x204] ss:$8 sps:$4 sm:$0xff]  }
  0x38   : > { %v2159_v45 = vld [vmem:[%s2928_s1 + $0x304] ss:$8 sps:$4 sm:$0xff]  }
  0x39   : > { %1303 = vmatpush2.bf16.msra.mxu0 %v2080_v46  ;;  %v2154_v46 = vld [vmem:[%s2928_s1 + $0x200] ss:$8 sps:$4 sm:$0xff]  }
  0x3a   : > { %1376 = vmatpush2.bf16.msra.mxu1 %v2081_v47  ;;  %1304 = vmatprep.subr.bf16.mxu0 %v2082_v48  ;;  %v2157_v47 = vld [vmem:[%s2928_s1 + $0x300] ss:$8 sps:$4 sm:$0xff]   ;;  %v2164_v48 = vld [vmem:[%s2928_s1 + $0x2f4] ss:$8 sps:$4 sm:$0xff]  }
  0x3b   : > { %1377 = vmatprep.subr.bf16.mxu1 %v2084_v50  ;;  %v2162_v50 = vld [vmem:[%s2928_s1 + $0x2f0] ss:$8 sps:$4 sm:$0xff]  }
  0x3d   : > { %1305 = vmatpush2.bf16.msra.mxu0 %v2086_v52  ;;  %v2174_v52 = vld [vmem:[%s2928_s1 + $0x2e4] ss:$8 sps:$4 sm:$0xff]  }
  0x3e   : > { %1378 = vmatpush2.bf16.msra.mxu1 %v2087_v53  ;;  %1306 = vmatprep.subr.bf16.mxu0 %v2088_v54  ;;  %v2177_v53 = vld [vmem:[%s2928_s1 + $0x3e4] ss:$8 sps:$4 sm:$0xff]   ;;  %v2228_v54 = vld [vmem:[%s2458_s13 + $0x14] ss:$36 sps:$4 sm:$0xff]  }
  0x3f   : > { %1379 = vmatprep.subr.bf16.mxu1 %v2090_v55  ;;  %v2231_v55 = vld [vmem:[%s2458_s13 + $0x1c] ss:$36 sps:$4 sm:$0xff]  }
  0x41   : > { %1307 = vmatpush2.bf16.msra.mxu0 %v2092_v56  ;;  %v2172_v56 = vld [vmem:[%s2928_s1 + $0x2e0] ss:$8 sps:$4 sm:$0xff]  }
  0x42   : > { %1380 = vmatpush2.bf16.msra.mxu1 %v2093_v57  ;;  %1308 = vmatprep.subr.bf16.mxu0 %v2094_v58  ;;  %v2175_v57 = vld [vmem:[%s2928_s1 + $0x3e0] ss:$8 sps:$4 sm:$0xff]   ;;  %v2182_v58 = vld [vmem:[%s2928_s1 + $0x2d4] ss:$8 sps:$4 sm:$0xff]  }
  0x43   : > { %1381 = vmatprep.subr.bf16.mxu1 %v2096_v59  ;;  %v2185_v59 = vld [vmem:[%s2928_s1 + $0x3d4] ss:$8 sps:$4 sm:$0xff]  }
  0x45   : > { %1309 = vmatpush2.bf16.msra.mxu0 %v2098_v60  ;;  %v2180_v60 = vld [vmem:[%s2928_s1 + $0x2d0] ss:$8 sps:$4 sm:$0xff]  }
  0x46   : > { %1382 = vmatpush2.bf16.msra.mxu1 %v2099_v61  ;;  %1310 = vmatprep.subr.bf16.mxu0 %v2100_v62  ;;  %v2183_v61 = vld [vmem:[%s2928_s1 + $0x3d0] ss:$8 sps:$4 sm:$0xff]   ;;  %v2192_v62 = vld [vmem:[%s2928_s1 + $0x2c4] ss:$8 sps:$4 sm:$0xff]  }
  0x47   : > { %1383 = vmatprep.subr.bf16.mxu1 %v2102_v63  ;;  %v2195_v63 = vld [vmem:[%s2928_s1 + $0x3c4] ss:$8 sps:$4 sm:$0xff]  }
  0x49   : > { %1311 = vmatpush2.bf16.msra.mxu0 %v2104_v0  ;;  %v2190_v0 = vld [vmem:[%s2928_s1 + $0x2c0] ss:$8 sps:$4 sm:$0xff]  }
  0x4a   : > { %1384 = vmatpush2.bf16.msra.mxu1 %v2105_v1  ;;  %1426 = vmatprep.subr.bf16.mxu0 %v2114_v2  ;;  %v2193_v1 = vld [vmem:[%s2928_s1 + $0x3c0] ss:$8 sps:$4 sm:$0xff]   ;;  %v2200_v2 = vld [vmem:[%s2928_s1 + $0x2b4] ss:$8 sps:$4 sm:$0xff]  }
  0x4b   : > { %1499 = vmatprep.subr.bf16.mxu1 %v2117_v3  ;;  %v2203_v3 = vld [vmem:[%s2928_s1 + $0x3b4] ss:$8 sps:$4 sm:$0xff]  }
  0x4c   : > { %1313 = vmatmul.mubr.bf16.vlgmr.msra.gmra.mxu0 %v2106_v4  ;;  %v2198_v4 = vld [vmem:[%s2928_s1 + $0x2b0] ss:$8 sps:$4 sm:$0xff]  }
  0x4d   : > { %1386 = vmatmul.mubr.bf16.vlgmr.msra.gmra.mxu1 %v2109_v5  ;;  %1427 = vmatpush1.bf16.msra.mxu0 %v2112_v6  ;;  %v2201_v5 = vld [vmem:[%s2928_s1 + $0x3b0] ss:$8 sps:$4 sm:$0xff]   ;;  %v2210_v6 = vld [vmem:[%s2928_s1 + $0x2a4] ss:$8 sps:$4 sm:$0xff]  }
  0x4e   : > { %1500 = vmatpush1.bf16.msra.mxu1 %v2115_v7  ;;  %1428 = vmatprep.subr.bf16.mxu0 %v2120_v8  ;;  %v2213_v7 = vld [vmem:[%s2928_s1 + $0x3a4] ss:$8 sps:$4 sm:$0xff]   ;;  %v2208_v8 = vld [vmem:[%s2928_s1 + $0x2a0] ss:$8 sps:$4 sm:$0xff]  }
  0x4f   : > { %1501 = vmatprep.subr.bf16.mxu1 %v2123_v9  ;;  %1322 = vmatprep.mubr.bf16.mxu0 %v2160_v11  ;;  %v2211_v9 = vld [vmem:[%s2928_s1 + $0x3a0] ss:$8 sps:$4 sm:$0xff]   ;;  %v2219_v11 = vld [vmem:[%s2928_s1 + $0x394] ss:$8 sps:$4 sm:$0xff]  }
  0x50   : > { %1395 = vmatprep.mubr.bf16.mxu1 %v2169_v18  ;;  %v2234_v18 = vld [vmem:[%s2928_s1 + $0x474] ss:$8 sps:$4 sm:$0xff]  }
  0x51   : > { %1429 = vmatpush1.bf16.msra.mxu0 %v2118_v10  ;;  %v2216_v10 = vld [vmem:[%s2928_s1 + $0x294] ss:$8 sps:$4 sm:$0xff]  }
  0x52   : > { %1502 = vmatpush1.bf16.msra.mxu1 %v2121_v12  ;;  %1430 = vmatprep.subr.bf16.mxu0 %v2126_v13  ;;  %v2214_v12 = vld [vmem:[%s2928_s1 + $0x290] ss:$8 sps:$4 sm:$0xff]  }
  0x53   : > { %1503 = vmatprep.subr.bf16.mxu1 %v2129_v14  ;;  %v2217_v13 = vld [vmem:[%s2928_s1 + $0x390] ss:$8 sps:$4 sm:$0xff]   ;;  %v2222_v14 = vld [vmem:[%s2928_s1 + $0x284] ss:$8 sps:$4 sm:$0xff]  }
  0x54   : > { %1323 = vmatmul.mubr.bf16.gmra.mxu0 %v2168_v17  ;;  %v2223_v17 = vld [vmem:[%s2928_s1 + $0x380] ss:$8 sps:$4 sm:$0xff]  }
  0x55   : > { %1396 = vmatmul.mubr.bf16.gmra.mxu1 %v2171_v19  ;;  %1431 = vmatpush1.bf16.msra.mxu0 %v2124_v15  ;;  %v2225_v15 = vld [vmem:[%s2928_s1 + $0x384] ss:$8 sps:$4 sm:$0xff]   ;;  %v2226_v19 = vld [vmem:[%s2458_s13 + $0x10] ss:$36 sps:$4 sm:$0xff]  }
  0x56   : > { %1504 = vmatpush1.bf16.msra.mxu1 %v2127_v16  ;;  %1432 = vmatprep.subr.bf16.mxu0 %v2132_v20  ;;  %v2220_v16 = vld [vmem:[%s2928_s1 + $0x280] ss:$8 sps:$4 sm:$0xff]   ;;  %v2229_v20 = vld [vmem:[%s2458_s13 + $0x18] ss:$36 sps:$4 sm:$0xff]  }
  0x57   : > { %1505 = vmatprep.subr.bf16.mxu1 %v2135_v21  ;;  %1332 = vmatprep.mubr.bf16.mxu0 %v2178_v23  ;;  %v2232_v21 = vld [vmem:[%s2928_s1 + $0x470] ss:$8 sps:$4 sm:$0xff]   ;;  %v2238_v23 = vld [vmem:[%s2458_s13 + $0x5c] ss:$36 sps:$4 sm:$0xff]  }
  0x58   : > { %1405 = vmatprep.mubr.bf16.mxu1 %v2187_v30  ;;  %v2249_v30 = vld [vmem:[%s2928_s1 + $0x444] ss:$8 sps:$4 sm:$0xff]  }
  0x59   : > { %1433 = vmatpush1.bf16.msra.mxu0 %v2130_v22  ;;  %v2237_v22 = vld [vmem:[%s2928_s1 + $0x464] ss:$8 sps:$4 sm:$0xff]  }
  0x5a   : > { %1506 = vmatpush1.bf16.msra.mxu1 %v2133_v24  ;;  %1434 = vmatprep.subr.bf16.mxu0 %v2138_v25  ;;  %v2240_v24 = vld [vmem:[%s2458_s13 + $0x64] ss:$36 sps:$4 sm:$0xff]  }
  0x5b   : > { %1507 = vmatprep.subr.bf16.mxu1 %v2141_v26  ;;  %v2235_v25 = vld [vmem:[%s2928_s1 + $0x460] ss:$8 sps:$4 sm:$0xff]   ;;  %v2246_v26 = vld [vmem:[%s2928_s1 + $0x454] ss:$8 sps:$4 sm:$0xff]  }
  0x5c   : > { %1333 = vmatmul.mubr.bf16.gmra.mxu0 %v2186_v29  ;;  %v2244_v29 = vld [vmem:[%s2928_s1 + $0x450] ss:$8 sps:$4 sm:$0xff]  }
  0x5d   : > { %1406 = vmatmul.mubr.bf16.gmra.mxu1 %v2189_v31  ;;  %1435 = vmatpush1.bf16.msra.mxu0 %v2136_v27  ;;  %v2242_v27 = vld [vmem:[%s2458_s13 + $0x58] ss:$36 sps:$4 sm:$0xff]   ;;  %v2250_v31 = vld [vmem:[%s2458_s13 + $0xa4] ss:$36 sps:$4 sm:$0xff]  }
  0x5e   : > { %1508 = vmatpush1.bf16.msra.mxu1 %v2139_v28  ;;  %1436 = vmatprep.subr.bf16.mxu0 %v2144_v32  ;;  %v2243_v28 = vld [vmem:[%s2458_s13 + $0x60] ss:$36 sps:$4 sm:$0xff]   ;;  %v2252_v32 = vld [vmem:[%s2458_s13 + $0xac] ss:$36 sps:$4 sm:$0xff]  }
  0x5f   : > { %1509 = vmatprep.subr.bf16.mxu1 %v2147_v33  ;;  %1342 = vmatprep.mubr.bf16.mxu0 %v2196_v35  ;;  %v2247_v33 = vld [vmem:[%s2928_s1 + $0x440] ss:$8 sps:$4 sm:$0xff]  }
  0x60   : > { %1415 = vmatprep.mubr.bf16.mxu1 %v2205_v42  ;;  %v2254_v35 = vld [vmem:[%s2458_s13 + $0xa0] ss:$36 sps:$4 sm:$0xff]   ;;  %v2270_v42 = vld [vmem:[%s2928_s1 + $0x414] ss:$8 sps:$4 sm:$0xff]  }
  0x61   : > { %1437 = vmatpush1.bf16.msra.mxu0 %v2142_v34  ;;  %v2258_v34 = vld [vmem:[%s2928_s1 + $0x434] ss:$8 sps:$4 sm:$0xff]  }
  0x62   : > { %1510 = vmatpush1.bf16.msra.mxu1 %v2145_v36  ;;  %1438 = vmatprep.subr.bf16.mxu0 %v2150_v37  ;;  %v2255_v36 = vld [vmem:[%s2458_s13 + $0xa8] ss:$36 sps:$4 sm:$0xff]   ;;  %v2256_v37 = vld [vmem:[%s2928_s1 + $0x430] ss:$8 sps:$4 sm:$0xff]  }
  0x63   : > { %1511 = vmatprep.subr.bf16.mxu1 %v2153_v38  ;;  %v2261_v38 = vld [vmem:[%s2928_s1 + $0x424] ss:$8 sps:$4 sm:$0xff]  }
  0x64   : > { %1343 = vmatmul.mubr.bf16.gmra.mxu0 %v2204_v41  ;;  %v2259_v41 = vld [vmem:[%s2928_s1 + $0x420] ss:$8 sps:$4 sm:$0xff]  }
  0x65   : > { %1416 = vmatmul.mubr.bf16.gmra.mxu1 %v2207_v43  ;;  %1439 = vmatpush1.bf16.msra.mxu0 %v2148_v39  ;;  %v2262_v39 = vld [vmem:[%s2458_s13 + $0xec] ss:$36 sps:$4 sm:$0xff]  }
  0x66   : > { %1512 = vmatpush1.bf16.msra.mxu1 %v2151_v40  ;;  %1440 = vmatprep.subr.bf16.mxu0 %v2156_v44  ;;  %v2264_v40 = vld [vmem:[%s2458_s13 + $0xf4] ss:$36 sps:$4 sm:$0xff]   ;;  %v2266_v43 = vld [vmem:[%s2458_s13 + $0xe8] ss:$36 sps:$4 sm:$0xff]  }
  0x67   : > { %1513 = vmatprep.subr.bf16.mxu1 %v2159_v45  ;;  %1458 = vmatprep.mubr.bf16.mxu0 %v2228_v54  ;;  %v2267_v44 = vld [vmem:[%s2458_s13 + $0xf0] ss:$36 sps:$4 sm:$0xff]  }
  0x68   : > { %1531 = vmatprep.mubr.bf16.mxu1 %v2231_v55  ;;  %v2268_v45 = vld [vmem:[%s2928_s1 + $0x410] ss:$8 sps:$4 sm:$0xff]  }
  0x69   : > { %1441 = vmatpush1.bf16.msra.mxu0 %v2154_v46  ;;  %v2273_v46 = vld [vmem:[%s2928_s1 + $0x404] ss:$8 sps:$4 sm:$0xff]  }
  0x6a   : > { %1514 = vmatpush1.bf16.msra.mxu1 %v2157_v47  ;;  %1442 = vmatprep.subr.bf16.mxu0 %v2164_v48  ;;  %v2271_v47 = vld [vmem:[%s2928_s1 + $0x400] ss:$8 sps:$4 sm:$0xff]   ;;  %v2286_v48 = vmov 0  }
  0x6b   : > { %1515 = vmatprep.subr.bf16.mxu1 %v2167_v49  ;;  %v2274_v49 = vld [vmem:[%s2458_s13 + $0x20] ss:$36 sps:$4 sm:$0xff]  }
  0x6d   : > { %1443 = vmatpush2.bf16.msra.mxu0 %v2162_v50  ;;  %v2275_v50 = vld [vmem:[%s2458_s13 + $0xb0] ss:$36 sps:$4 sm:$0xff]  }
  0x6e   : > { %1516 = vmatpush2.bf16.msra.mxu1 %v2165_v51  ;;  %1444 = vmatprep.subr.bf16.mxu0 %v2174_v52  ;;  %v2276_v51 = vld [vmem:[%s2458_s13 + $0x68] ss:$36 sps:$4 sm:$0xff]   ;;  %v2277_v52 = vld [vmem:[%s2458_s13 + $0xf8] ss:$36 sps:$4 sm:$0xff]  }
  0x6f   : > { %1517 = vmatprep.subr.bf16.mxu1 %v2177_v53 }
  0x71   : > { %1445 = vmatpush2.bf16.msra.mxu0 %v2172_v56 }
  0x72   : > { %1518 = vmatpush2.bf16.msra.mxu1 %v2175_v57  ;;  %1446 = vmatprep.subr.bf16.mxu0 %v2182_v58 }
  0x73   : > { %1519 = vmatprep.subr.bf16.mxu1 %v2185_v59 }
  0x75   : > { %1447 = vmatpush2.bf16.msra.mxu0 %v2180_v60 }
  0x76   : > { %1520 = vmatpush2.bf16.msra.mxu1 %v2183_v61  ;;  %1448 = vmatprep.subr.bf16.mxu0 %v2192_v62 }
  0x77   : > { %1521 = vmatprep.subr.bf16.mxu1 %v2195_v63 }
  0x79   : > { %1449 = vmatpush2.bf16.msra.mxu0 %v2190_v0 }
  0x7a   : > { %1522 = vmatpush2.bf16.msra.mxu1 %v2193_v1  ;;  %1450 = vmatprep.subr.bf16.mxu0 %v2200_v2 }
  0x7b   : > { %1523 = vmatprep.subr.bf16.mxu1 %v2203_v3 }
  0x7d   : > { %1451 = vmatpush2.bf16.msra.mxu0 %v2198_v4 }
  0x7e   : > { %1524 = vmatpush2.bf16.msra.mxu1 %v2201_v5  ;;  %1452 = vmatprep.subr.bf16.mxu0 %v2210_v6 }
  0x7f   : > { %1525 = vmatprep.subr.bf16.mxu1 %v2213_v7 }
  0x81   : > { %1453 = vmatpush2.bf16.msra.mxu0 %v2208_v8 }
  0x82   : > { %1526 = vmatpush2.bf16.msra.mxu1 %v2211_v9  ;;  %1454 = vmatprep.subr.bf16.mxu0 %v2216_v10 }
  0x83   : > { %1527 = vmatprep.subr.bf16.mxu1 %v2219_v11 }
  0x85   : > { %1455 = vmatpush2.bf16.msra.mxu0 %v2214_v12 }
  0x86   : > { %1528 = vmatpush2.bf16.msra.mxu1 %v2217_v13  ;;  %1456 = vmatprep.subr.bf16.mxu0 %v2222_v14 }
  0x87   : > { %1529 = vmatprep.subr.bf16.mxu1 %v2225_v15 }
  0x89   : > { %1457 = vmatpush2.bf16.msra.mxu0 %v2220_v16 }
  0x8a   : > { %1530 = vmatpush2.bf16.msra.mxu1 %v2223_v17  ;;  %1572 = vmatprep.subr.bf16.mxu0 %v2234_v18 }
  0x8b   : > { %1984 = vmatprep.subr.bf16.mxu1 %v2234_v18 }
  0x8c   : > { %1459 = vmatmul.mubr.bf16.vlgmr.msra.gmra.mxu0 %v2226_v19 }
  0x8d   : > { %1532 = vmatmul.mubr.bf16.vlgmr.msra.gmra.mxu1 %v2229_v20  ;;  %1573 = vmatpush1.bf16.msra.mxu0 %v2232_v21 }
  0x8e   : > { %1992 = vmatpush1.bf16.msra.mxu1 %v2232_v21  ;;  %1574 = vmatprep.subr.bf16.mxu0 %v2237_v22 }
  0x8f   : > { %1985 = vmatprep.subr.bf16.mxu1 %v2237_v22  ;;  %1468 = vmatprep.mubr.bf16.mxu0 %v2238_v23 }
  0x90   : > { %1541 = vmatprep.mubr.bf16.mxu1 %v2240_v24 }
  0x91   : > { %1575 = vmatpush1.bf16.msra.mxu0 %v2235_v25 }
  0x92   : > { %1993 = vmatpush1.bf16.msra.mxu1 %v2235_v25  ;;  %1576 = vmatprep.subr.bf16.mxu0 %v2246_v26 }
  0x93   : > { %1986 = vmatprep.subr.bf16.mxu1 %v2246_v26 }
  0x94   : > { %1469 = vmatmul.mubr.bf16.gmra.mxu0 %v2242_v27  ;;  %v366_v27 = vlaneseq }
  0x95   : > { %1542 = vmatmul.mubr.bf16.gmra.mxu1 %v2243_v28  ;;  %1577 = vmatpush1.bf16.msra.mxu0 %v2244_v29 }
  0x96   : > { %1994 = vmatpush1.bf16.msra.mxu1 %v2244_v29  ;;  %1578 = vmatprep.subr.bf16.mxu0 %v2249_v30 }
  0x97   : > { %1987 = vmatprep.subr.bf16.mxu1 %v2249_v30  ;;  %1478 = vmatprep.mubr.bf16.mxu0 %v2250_v31 }
  0x98   : > { %1551 = vmatprep.mubr.bf16.mxu1 %v2252_v32  ;;  %v367_v32 = vshrl.u32 %v366_v27, 7 }
  0x99   : > { %1579 = vmatpush1.bf16.msra.mxu0 %v2247_v33 }
  0x9a   : > { %1995 = vmatpush1.bf16.msra.mxu1 %v2247_v33  ;;  %1580 = vmatprep.subr.bf16.mxu0 %v2258_v34 }
  0x9b   : > { %1988 = vmatprep.subr.bf16.mxu1 %v2258_v34 }
  0x9c   : > { %1479 = vmatmul.mubr.bf16.gmra.mxu0 %v2254_v35 }
  0x9d   : > { %1552 = vmatmul.mubr.bf16.gmra.mxu1 %v2255_v36  ;;  %1581 = vmatpush1.bf16.msra.mxu0 %v2256_v37 }
  0x9e   : > { %1996 = vmatpush1.bf16.msra.mxu1 %v2256_v37  ;;  %1582 = vmatprep.subr.bf16.mxu0 %v2261_v38  ;;  %v368_v37 = vsub.s32 0, %v367_v32 }
  0x9f   : > { %1989 = vmatprep.subr.bf16.mxu1 %v2261_v38  ;;  %1488 = vmatprep.mubr.bf16.mxu0 %v2262_v39  ;;  %v364_v38 = vld [vmem:[%s2929_s2] sm:$0x3]  ;;  %v372_v39 = vsub.s32 1, %v367_v32 }
  0xa0   : > { %1561 = vmatprep.mubr.bf16.mxu1 %v2264_v40 }
  0xa1   : > { %1583 = vmatpush1.bf16.msra.mxu0 %v2259_v41 }
  0xa2   : > { %1997 = vmatpush1.bf16.msra.mxu1 %v2259_v41  ;;  %1584 = vmatprep.subr.bf16.mxu0 %v2270_v42 }
  0xa3   : > { %1990 = vmatprep.subr.bf16.mxu1 %v2270_v42 }
  0xa4   : > { %1489 = vmatmul.mubr.bf16.gmra.mxu0 %v2266_v43 }
  0xa5   : > { %1562 = vmatmul.mubr.bf16.gmra.mxu1 %v2267_v44  ;;  %1585 = vmatpush1.bf16.msra.mxu0 %v2268_v45  ;;  %v369_v44 = vrot.slane %v364_v38, %v368_v37 }
  0xa6   : > { %1998 = vmatpush1.bf16.msra.mxu1 %v2268_v45  ;;  %1586 = vmatprep.subr.bf16.mxu0 %v2273_v46  ;;  %v373_v45 = vrot.slane %v364_v38, %v372_v39 }
  0xa7   : > { %1991 = vmatprep.subr.bf16.mxu1 %v2273_v46  ;;  %1604 = vmatprep.mubr.bf16.mxu0 %v2286_v48 }
  0xa8   : > { %1624 = vmatprep.mubr.bf16.mxu1 %v2286_v48 }
  0xa9   : > { %1587 = vmatpush1.bf16.msra.mxu0 %v2271_v47 }
  0xaa   : > { %1999 = vmatpush1.bf16.msra.mxu1 %v2271_v47 }
  0xac   : > { %1605 = vmatmul.mubr.bf16.vlgmr.msra.gmra.mxu0 %v2274_v49 }
  0xad   : > { %1625 = vmatmul.mubr.bf16.vlgmr.msra.gmra.mxu1 %v2275_v50  ;;  %1614 = vmatprep.mubr.bf16.mxu0 %v2286_v48 }
  0xae   : > { %1634 = vmatprep.mubr.bf16.mxu1 %v2286_v48 }
  0xb4   : > { %1615 = vmatmul.mubr.bf16.gmra.mxu0 %v2276_v51 }
  0xb5   : > { %1635 = vmatmul.mubr.bf16.gmra.mxu1 %v2277_v52 }
 0x10c   : > { %v1314_v53 = vpop.f32.mrf.mxu0 }
 0x10d   : > { %v2793_v54 = vpop.f32.mrf.mxu1  ;;  %v1315_v50 = vadd.f32 %v1314_v53, %v369_v44 }
 0x10e   : > { %v1316_v55 = vpop.f32.mrf.mxu0 }
 0x10f   : > { %v2795_v56 = vpop.f32.mrf.mxu1  ;;  %v1317_v52 = vadd.f32 %v1316_v55, %v373_v45  ;;  %v1388_v37 = vadd.f32 %v2793_v54, %v1315_v50 }
 0x110   : > { %v1318_v57 = vpop.f32.mrf.mxu0 }
 0x111   : > { %v2797_v58 = vpop.f32.mrf.mxu1  ;;  %v1319_v27 = vadd.f32 %v1318_v57, %v369_v44  ;;  %v1390_v53 = vadd.f32 %v2795_v56, %v1317_v52 }
 0x112   : > { %v1320_v59 = vpop.f32.mrf.mxu0 }
 0x113   : > { %v2799_v60 = vpop.f32.mrf.mxu1  ;;  %v1392_v55 = vadd.f32 %v2797_v58, %v1319_v27 }
 0x114   : > { %v1324_v61 = vpop.f32.mrf.mxu0 }
 0x115   : > { %v2801_v62 = vpop.f32.mrf.mxu1 }
 0x116   : > { %v1326_v63 = vpop.f32.mrf.mxu0 }
 0x117   : > { %v2803_v0 = vpop.f32.mrf.mxu1 }
 0x118   : > { %v1328_v1 = vpop.f32.mrf.mxu0 }
 0x119   : > { %v2805_v2 = vpop.f32.mrf.mxu1  ;;  %v1329_v38 = vadd.f32 %v1328_v1, %v369_v44 }
 0x11a   : > { %v1330_v3 = vpop.f32.mrf.mxu0 }
 0x11b   : > { %v2807_v4 = vpop.f32.mrf.mxu1  ;;  %v1331_v39 = vadd.f32 %v1330_v3, %v373_v45 }
 0x11c   : > { %v1334_v5 = vpop.f32.mrf.mxu0 }
 0x11d   : > { %v1407_v6 = vpop.f32.mrf.mxu1  ;;  %v1335_v51 = vadd.f32 %v1334_v5, %v369_v44 }
 0x11e   : > { %v1336_v7 = vpop.f32.mrf.mxu0 }
 0x11f   : > { %v2809_v8 = vpop.f32.mrf.mxu1  ;;  %v1337_v32 = vadd.f32 %v1336_v7, %v373_v45 }
 0x120   : > { %v1338_v9 = vpop.f32.mrf.mxu0 }
 0x121   : > { %v2811_v10 = vpop.f32.mrf.mxu1  ;;  %v1339_v57 = vadd.f32 %v1338_v9, %v369_v44  ;;  %v1404_v9 = vadd.f32 %v2807_v4, %v1331_v39 }
 0x122   : > { %v1340_v11 = vpop.f32.mrf.mxu0 }
 0x123   : > { %v2813_v12 = vpop.f32.mrf.mxu1  ;;  %v1341_v5 = vadd.f32 %v1340_v11, %v373_v45 }
 0x124   : > { %v1344_v13 = vpop.f32.mrf.mxu0 }
 0x125   : > { %v2815_v14 = vpop.f32.mrf.mxu1 }
 0x126   : > { %v2817_v15 = vpop.f32.mrf.mxu0 }
 0x127   : > { %v2819_v16 = vpop.f32.mrf.mxu1  ;;  %v1347_v56 = vadd.f32 %v2817_v15, %v373_v45 }
 0x128   : > { %v2821_v17 = vpop.f32.mrf.mxu0 }
 0x129   : > { %v2823_v18 = vpop.f32.mrf.mxu1 }
 0x12a   : > { %v2825_v19 = vpop.f32.mrf.mxu0 }
 0x12b   : > { %v2827_v20 = vpop.f32.mrf.mxu1 }
 0x14c   : > { %v1460_v21 = vpop.f32.mrf.mxu0 }
 0x14d   : > { %v2829_v22 = vpop.f32.mrf.mxu1 }
 0x14e   : > { %v1462_v23 = vpop.f32.mrf.mxu0 }
 0x14f   : > { %v2831_v24 = vpop.f32.mrf.mxu1  ;;  %v1463_v11 = vadd.f32 %v1462_v23, %v1390_v53  ;;  %v1420_v23 = vadd.f32 %v2819_v16, %v1347_v56 }
 0x150   : > { %v2833_v25 = vpop.f32.mrf.mxu0 }
 0x151   : > { %v2835_v26 = vpop.f32.mrf.mxu1 }
 0x152   : > { %2931 = vst [vmem:[#allocation2_spill] sm:$0xff] %v2835_v26  ;;  %v2837_v28 = vpop.f32.mrf.mxu0  ;;  %v1408_v26 = vadd.f32 %v1407_v6, %v1335_v51  ;;  %v1402_v6 = vadd.f32 %v2805_v2, %v1329_v38  ;;  %v1465_v2 = vadd.f32 %v2833_v25, %v1392_v55 }
 0x153   : > { %v2839_v29 = vpop.f32.mrf.mxu1 }
 0x154   : > { %2932 = vst [vmem:[#allocation3_spill] sm:$0xff] %v2839_v29  ;;  %v2841_v30 = vpop.f32.mrf.mxu0 }
 0x155   : > { %v2843_v31 = vpop.f32.mrf.mxu1 }
 0x156   : > { %2933 = vst [vmem:[#allocation4_spill] sm:$0xff] %v2843_v31  ;;  %v2845_v33 = vpop.f32.mrf.mxu0 }
 0x157   : > { %v2847_v34 = vpop.f32.mrf.mxu1 }
 0x158   : > { %2934 = vst [vmem:[#allocation5_spill] sm:$0xff] %v2847_v34  ;;  %v2849_v35 = vpop.f32.mrf.mxu0  ;;  %v1325_v34 = vadd.f32 %v1324_v61, %v369_v44  ;;  %v1345_v61 = vadd.f32 %v1344_v13, %v369_v44  ;;  %v1412_v13 = vadd.f32 %v2811_v10, %v1339_v57 }
 0x159   : > { %2935 = vst [vmem:[#allocation6_spill] sm:$0xff] %v2849_v35  ;;  %v2851_v36 = vpop.f32.mrf.mxu1 }
 0x15a   : > { %2936 = vst [vmem:[#allocation7_spill] sm:$0xff] %v2851_v36  ;;  %v2856_v40 = vpop.f32.mrf.mxu0  ;;  %v1398_v54 = vadd.f32 %v2801_v62, %v1325_v34  ;;  %v1351_v62 = vadd.f32 %v2825_v19, %v373_v45  ;;  %v1418_v15 = vadd.f32 %v2815_v14, %v1345_v61 }
 0x15b   : > { %2937 = vst [vmem:[#allocation8_spill] sm:$0xff] %v2856_v40  ;;  %v2858_v41 = vpop.f32.mrf.mxu1  ;;  %v1321_v40 = vadd.f32 %v1320_v59, %v373_v45  ;;  %v1410_v59 = vadd.f32 %v2809_v8, %v1337_v32  ;;  %v2943_v51 = vld [vmem:[#allocation3_spill] sm:$0xff] }
 0x15c   : > { %2938 = vst [vmem:[#allocation9_spill] sm:$0xff] %v2858_v41  ;;  %v1480_v42 = vpop.f32.mrf.mxu0  ;;  %v1327_v41 = vadd.f32 %v1326_v63, %v373_v45  ;;  %v1461_v63 = vadd.f32 %v1460_v21, %v1388_v37  ;;  %v1414_v21 = vadd.f32 %v2813_v12, %v1341_v5  ;;  %v1471_v12 = vadd.f32 %v2841_v30, %v1398_v54 }
 0x15d   : > { %v1553_v43 = vpop.f32.mrf.mxu1  ;;  %v1481_v7 = vadd.f32 %v1480_v42, %v1408_v26  ;;  %v1424_v25 = vadd.f32 %v2827_v20, %v1351_v62 }
 0x15e   : > { %v1482_v46 = vpop.f32.mrf.mxu0  ;;  %v1400_v1 = vadd.f32 %v2803_v0, %v1327_v41  ;;  %v1534_v34 = vadd.f32 %v2829_v22, %v1461_v63  ;;  %v1536_v41 = vadd.f32 %v2831_v24, %v1463_v11 }
 0x15f   : > { %v1555_v47 = vpop.f32.mrf.mxu1  ;;  %v1483_v8 = vadd.f32 %v1482_v46, %v1410_v59  ;;  %v1554_v4 = vadd.f32 %v1553_v43, %v1481_v7  ;;  %v2946_v53 = vld [vmem:[#allocation5_spill] sm:$0xff] }
 0x160   : > { %v1484_v48 = vpop.f32.mrf.mxu0  ;;  %v1473_v43 = vadd.f32 %v2845_v33, %v1400_v1  ;;  %v2948_v63 = vld [vmem:[#allocation6_spill] sm:$0xff] }
 0x161   : > { %v2860_v49 = vpop.f32.mrf.mxu1  ;;  %v1556_v42 = vadd.f32 %v1555_v47, %v1483_v8  ;;  %v2944_v47 = vld [vmem:[#allocation4_spill] sm:$0xff]  ;;  %v1475_v7 = vadd.f32 %v2948_v63, %v1402_v6 }
 0x162   : > { %2939 = vst [vmem:[#allocation10_spill] sm:$0xff] %v2860_v49  ;;  %v1486_v36 = vpop.f32.mrf.mxu0  ;;  %v1544_v52 = vadd.f32 %v2944_v47, %v1471_v12  ;;  %v1546_v55 = vadd.f32 %v2946_v53, %v1473_v43  ;;  %v2950_v8 = vld [vmem:[#allocation8_spill] sm:$0xff] }
 0x163   : > { %v2862_v35 = vpop.f32.mrf.mxu1  ;;  %v1487_v16 = vadd.f32 %v1486_v36, %v1414_v21 }
 0x164   : > { %2940 = vst [vmem:[#allocation11_spill] sm:$0xff] %v2862_v35  ;;  %v1490_v31 = vpop.f32.mrf.mxu0 }
 0x165   : > { %v2864_v29 = vpop.f32.mrf.mxu1  ;;  %v1491_v46 = vadd.f32 %v1490_v31, %v1418_v15 }
 0x166   : > { %2941 = vst [vmem:[#allocation12_spill] sm:$0xff] %v2864_v29  ;;  %v1492_v49 = vpop.f32.mrf.mxu0  ;;  %v1394_v29 = vadd.f32 %v2799_v60, %v1321_v40  ;;  %v1349_v60 = vadd.f32 %v2821_v17, %v369_v44  ;;  %v1485_v17 = vadd.f32 %v1484_v48, %v1412_v13  ;;  %v1477_v13 = vadd.f32 %v2950_v8, %v1404_v9 }
 0x167   : > { %v2869_v35 = vpop.f32.mrf.mxu1 }
 0x168   : > { %v1494_v3 = vpop.f32.mrf.mxu0  ;;  %v1467_v10 = vadd.f32 %v2837_v28, %v1394_v29  ;;  %v1422_v22 = vadd.f32 %v2823_v18, %v1349_v60  ;;  %v2942_v29 = vld [vmem:[#allocation2_spill] sm:$0xff]  ;;  %v1493_v18 = vadd.f32 %v1492_v49, %v1420_v23 }
 0x169   : > { %v2876_v58 = vpop.f32.mrf.mxu1  ;;  %v1538_v30 = vadd.f32 %v2942_v29, %v1465_v2  ;;  %v2945_v27 = vld [vmem:[#allocation10_spill] sm:$0xff]  ;;  %v2952_v29 = vld [vmem:[#allocation9_spill] sm:$0xff] }
 0x16a   : > { %v1496_v0 = vpop.f32.mrf.mxu0  ;;  %v1540_v24 = vadd.f32 %v2943_v51, %v1467_v10  ;;  %v1558_v32 = vadd.f32 %v2945_v27, %v1485_v17  ;;  %v1495_v21 = vadd.f32 %v1494_v3, %v1422_v22  ;;  %v1566_v2 = vadd.f32 %v2869_v35, %v1493_v18 }
 0x16b   : > { %v2884_v26 = vpop.f32.mrf.mxu1  ;;  %v2947_v57 = vld [vmem:[#allocation11_spill] sm:$0xff] }
 0x16c   : > { %v1606_v40 = vpop.f32.mrf.mxu0  ;;  %v1560_v31 = vadd.f32 %v2947_v57, %v1487_v16 }
 0x16d   : > { %v1626_v19 = vpop.f32.mrf.mxu1  ;;  %v1607_v44 = vadd.f32 %v1606_v40, %v1534_v34  ;;  %v2949_v54 = vld [vmem:[#allocation12_spill] sm:$0xff] }
 0x16e   : > { %v1627_v14 = vadd.f32 %v1626_v19, %v1554_v4  ;;  %v1608_v45 = vpop.f32.mrf.mxu0  ;;  %v1564_v1 = vadd.f32 %v2949_v54, %v1491_v46  ;;  %v1497_v4 = vadd.f32 %v1496_v0, %v1424_v25 }
 0x16f   : > { %v1628_v28 = vpop.f32.mrf.mxu1  ;;  %v1609_v48 = vadd.f32 %v1608_v45, %v1536_v41  ;;  %v1645_v38 = vmax.f32 %v1607_v44, 0.0 }
 0x170   : > { %v1629_v50 = vadd.f32 %v1628_v28, %v1556_v42  ;;  %v1610_v37 = vpop.f32.mrf.mxu0  ;;  %v1653_v33 = vmax.f32 %v1627_v14, 0.0  ;;  %v2951_v42 = vld [vmem:[#allocation7_spill] sm:$0xff]  ;;  %v1568_v14 = vadd.f32 %v2876_v58, %v1495_v21  ;;  %v1570_v46 = vadd.f32 %v2884_v26, %v1497_v4 }
 0x171   : > { %v1630_v20 = vpop.f32.mrf.mxu1  ;;  %v1646_v36 = vmax.f32 %v1609_v48, 0.0  ;;  %v1611_v5 = vadd.f32 %v1610_v37, %v1538_v30  ;;  %v1548_v44 = vadd.f32 %v2951_v42, %v1475_v7  ;;  %v1550_v30 = vadd.f32 %v2952_v29, %v1477_v13 }
 0x172   : > { %v1654_v39 = vmax.f32 %v1629_v50, 0.0  ;;  %v1631_v59 = vadd.f32 %v1630_v20, %v1558_v32  ;;  %v1612_v49 = vpop.f32.mrf.mxu0 }
 0x173   : > { %v1632_v61 = vpop.f32.mrf.mxu1  ;;  %v1976_v56 = vpack.c.bf16 %v1646_v36, %v1645_v38  ;;  %v1613_v60 = vadd.f32 %v1612_v49, %v1540_v24  ;;  %v1647_v12 = vmax.f32 %v1611_v5, 0.0 }
 0x174   : > { %v1980_v11 = vpack.c.bf16 %v1654_v39, %v1653_v33  ;;  %v1633_v62 = vadd.f32 %v1632_v61, %v1560_v31  ;;  %v1616_v15 = vpop.f32.mrf.mxu0  ;;  %v1655_v6 = vmax.f32 %v1631_v59, 0.0 }
 0x175   : > { %v1636_v34 = vpop.f32.mrf.mxu1  ;;  %1709 = vst [vmem:[%s2906_s17] sm:$0xff] %v1976_v56  ;;  %v1617_v23 = vadd.f32 %v1616_v15, %v1544_v52  ;;  %v1648_v17 = vmax.f32 %v1613_v60, 0.0 }
 0x176   : > { %1713 = vst [vmem:[%s2906_s17 + $0x20] sm:$0xff] %v1980_v11  ;;  %v1637_v10 = vadd.f32 %v1636_v34, %v1564_v1  ;;  %v1656_v40 = vmax.f32 %v1633_v62, 0.0  ;;  %v1618_v19 = vpop.f32.mrf.mxu0 }
 0x177   : > { %v1638_v41 = vpop.f32.mrf.mxu1  ;;  %v1619_v3 = vadd.f32 %v1618_v19, %v1546_v55  ;;  %v1977_v35 = vpack.c.bf16 %v1648_v17, %v1647_v12  ;;  %v1649_v43 = vmax.f32 %v1617_v23, 0.0 }
 0x178   : > { %v1639_v9 = vadd.f32 %v1638_v41, %v1566_v2  ;;  %v1981_v0 = vpack.c.bf16 %v1656_v40, %v1655_v6  ;;  %v1620_v22 = vpop.f32.mrf.mxu0  ;;  %v1657_v16 = vmax.f32 %v1637_v10, 0.0 }
 0x179   : > { %v1640_v25 = vpop.f32.mrf.mxu1  ;;  %v1650_v45 = vmax.f32 %v1619_v3, 0.0  ;;  %1710 = vst [vmem:[%s2906_s17 + $0x8] sm:$0xff] %v1977_v35  ;;  %v1621_v48 = vadd.f32 %v1620_v22, %v1548_v44 }
 0x17a   : > { %v1658_v28 = vmax.f32 %v1639_v9, 0.0  ;;  %1714 = vst [vmem:[%s2906_s17 + $0x28] sm:$0xff] %v1981_v0  ;;  %v1641_v50 = vadd.f32 %v1640_v25, %v1568_v14  ;;  %v1622_v58 = vpop.f32.mrf.mxu0 }
 0x17b   : > { %v1642_v51 = vpop.f32.mrf.mxu1  ;;  %v1978_v24 = vpack.c.bf16 %v1650_v45, %v1649_v43  ;;  %v1623_v52 = vadd.f32 %v1622_v58, %v1550_v30  ;;  %v1651_v32 = vmax.f32 %v1621_v48, 0.0 }
 0x17c   : > { %v1982_v47 = vpack.c.bf16 %v1658_v28, %v1657_v16  ;;  %v1643_v27 = vadd.f32 %v1642_v51, %v1570_v46  ;;  %v1659_v18 = vmax.f32 %v1641_v50, 0.0 }
 0x17d   : > { %1711 = vst [vmem:[%s2906_s17 + $0x10] sm:$0xff] %v1978_v24  ;;  %v1652_v37 = vmax.f32 %v1623_v52, 0.0 }
 0x17e   : > { %1715 = vst [vmem:[%s2906_s17 + $0x30] sm:$0xff] %v1982_v47  ;;  %v1660_v20 = vmax.f32 %v1643_v27, 0.0 }
 0x17f   : > { %v1979_v38 = vpack.c.bf16 %v1652_v37, %v1651_v32 }
 0x180   : > { %v1983_v26 = vpack.c.bf16 %v1660_v20, %v1659_v18 }
 0x181   : > { %1712 = vst [vmem:[%s2906_s17 + $0x18] sm:$0xff] %v1979_v38 }
 0x182   : > { %1716 = vst [vmem:[%s2906_s17 + $0x38] sm:$0xff] %v1983_v26 }
 0x183 PF: > { %s13_s12 = sadd.s32 1, %s2284_s12  }
 0x184   : > { %p10_p4 = scmp.ge.s32.totalorder %s13_s12, 4  }
 0x186   :  { %12 = sbr.rel (!%p10_p4) target bundleno = 1 (0x1), region = 62 }

// kernel: _stage1.14
= control target key start
LH: loop header
LB: loop body
LE: loop exit
PB: predicated region body
PF: predicated region fallthrough
CT: control target
= control target key end

     0   :  { %s3390_s12 = smov 0   ;;  %s4048_s0 = inlined_call_operand.vmem [shape: bf16[128,2304], index: 0, kind: input, shape index: {}]   ;;  %s4049_s1 = inlined_call_operand.vmem [shape: bf16[2304,128], index: 1, kind: input, shape index: {}]   ;;  %s4050_s2 = inlined_call_operand.vmem [shape: f32[1,128], index: 2, kind: input, shape index: {}]   ;;  %s4051_s3 = inlined_call_operand.vmem [shape: bf16[128,128], index: 3, kind: output, shape index: {}]  }
   0x1 LB: > { %s2458_s13 = sadd.s32 4294967295, %s3368_s12   ;;  %p2462_p0 = scmp.ge.s32.totalorder %s3368_s12, 1  ;;  %s3368_s12 = sphi %s3390_s12, %s13_s12  }
   0x2   : > { %p139_p1 = scmp.lt.s32.totalorder %s3368_s12, 3 }
   0x4   : > { %p140_p2 = pnand %p2462_p0, %p139_p1 }
   0x6   : > { %143 = sbr.rel (%p140_p2) target bundleno = 390 (0x186), region = 32 }
   0xb   : > { %v3110_v0 = vld [vmem:[%s4049_s1 + $0x78] sm:$0xff]   ;;  %v3114_v4 = vld [vmem:[%s4049_s1 + $0x70] sm:$0xff]   ;;  %v3118_v8 = vld [vmem:[%s4049_s1 + $0x68] sm:$0xff]   ;;  %s2463_s19 = sshll.u32 %s2458_s13, 3 }
   0xc   : > { %v3111_v1 = vld [vmem:[%s4049_s1 + $0xf8] sm:$0xff]   ;;  %2725 = vmatprep.subr.bf16.mxu0 %v3110_v0  ;;  %v3115_v5 = vld [vmem:[%s4049_s1 + $0xf0] sm:$0xff]   ;;  %v3119_v9 = vld [vmem:[%s4049_s1 + $0xe8] sm:$0xff]   ;;  %p165_p3 = scmp.lt.s32.totalorder %s2463_s19, 15 }
   0xd   : > { %v3112_v2 = vld [vmem:[%s4049_s1 + $0x38] sm:$0xff]   ;;  %2765 = vmatprep.subr.bf16.mxu1 %v3111_v1  ;;  %v3116_v6 = vld [vmem:[%s4049_s1 + $0x30] sm:$0xff]   ;;  %v3120_v10 = vld [vmem:[%s4049_s1 + $0x28] sm:$0xff]  }
   0xe   : > { %v3113_v3 = vld [vmem:[%s4049_s1 + $0xb8] sm:$0xff]   ;;  %2726 = vmatpush3.bf16.msra.mxu0 %v3112_v2  ;;  %v3117_v7 = vld [vmem:[%s4049_s1 + $0xb0] sm:$0xff]   ;;  %v3121_v11 = vld [vmem:[%s4049_s1 + $0xa8] sm:$0xff]   ;;  %s4081_s19 = smov (!%p165_p3, %s2463_s19), 15 }
   0xf   : > { %2766 = vmatpush3.bf16.msra.mxu1 %v3113_v3  ;;  %2727 = vmatprep.subr.bf16.mxu0 %v3114_v4  ;;  %v3122_v12 = vld [vmem:[%s4049_s1 + $0x60] sm:$0xff]   ;;  %v3126_v16 = vld [vmem:[%s4049_s1 + $0x58] sm:$0xff]   ;;  %v3130_v20 = vld [vmem:[%s4049_s1 + $0x50] sm:$0xff]   ;;  %s3101_s16 = smul.u32 72, %s4081_s19 }
  0x10   : > { %2767 = vmatprep.subr.bf16.mxu1 %v3115_v5  ;;  %v3123_v13 = vld [vmem:[%s4049_s1 + $0xe0] sm:$0xff]   ;;  %v3127_v17 = vld [vmem:[%s4049_s1 + $0xd8] sm:$0xff]   ;;  %v3131_v21 = vld [vmem:[%s4049_s1 + $0xd0] sm:$0xff]  }
  0x11   : > { %v3124_v14 = vld [vmem:[%s4049_s1 + $0x20] sm:$0xff]   ;;  %v3128_v18 = vld [vmem:[%s4049_s1 + $0x18] sm:$0xff]   ;;  %v3132_v22 = vld [vmem:[%s4049_s1 + $0x10] sm:$0xff]   ;;  %s3496_s13 = scalar_lea.vmem %s4048_s0, %s3101_s16 }
  0x12   : > { %2728 = vmatpush3.bf16.msra.mxu0 %v3116_v6  ;;  %v3125_v15 = vld [vmem:[%s4049_s1 + $0xa0] sm:$0xff]   ;;  %v3129_v19 = vld [vmem:[%s4049_s1 + $0x98] sm:$0xff]   ;;  %v3133_v23 = vld [vmem:[%s4049_s1 + $0x90] sm:$0xff]  }
  0x13   : > { %2768 = vmatpush3.bf16.msra.mxu1 %v3117_v7  ;;  %2729 = vmatprep.subr.bf16.mxu0 %v3118_v8  ;;  %v3134_v24 = vld [vmem:[%s4049_s1 + $0x48] sm:$0xff]   ;;  %v3138_v28 = vld [vmem:[%s4049_s1 + $0x40] sm:$0xff]   ;;  %v3148_v36 = vld [vmem:[%s4049_s1 + $0x178] sm:$0xff]  }
  0x14   : > { %2769 = vmatprep.subr.bf16.mxu1 %v3119_v9  ;;  %v3135_v25 = vld [vmem:[%s4049_s1 + $0xc8] sm:$0xff]   ;;  %v3139_v29 = vld [vmem:[%s4049_s1 + $0xc0] sm:$0xff]   ;;  %v3149_v37 = vld [vmem:[%s4049_s1 + $0x1f8] sm:$0xff]  }
  0x15   : > { %v3136_v26 = vld [vmem:[%s4049_s1 + $0x8] sm:$0xff]   ;;  %v3140_v30 = vld [vmem:[%s4049_s1] sm:$0xff]   ;;  %v3150_v38 = vld [vmem:[%s4049_s1 + $0x138] sm:$0xff]  }
  0x16   : > { %2730 = vmatpush3.bf16.msra.mxu0 %v3120_v10  ;;  %v3137_v27 = vld [vmem:[%s4049_s1 + $0x88] sm:$0xff]   ;;  %v3141_v31 = vld [vmem:[%s4049_s1 + $0x80] sm:$0xff]   ;;  %v3151_v39 = vld [vmem:[%s4049_s1 + $0x1b8] sm:$0xff]  }
  0x17   : > { %2770 = vmatpush3.bf16.msra.mxu1 %v3121_v11  ;;  %2731 = vmatprep.subr.bf16.mxu0 %v3122_v12  ;;  %v3142_v32 = vld [vmem:[%s3496_s13] ss:$72 sps:$4 sm:$0xff]   ;;  %v3144_v33 = vld [vmem:[%s3496_s13 + $0x4] ss:$72 sps:$4 sm:$0xff]   ;;  %v3152_v40 = vld [vmem:[%s4049_s1 + $0x170] sm:$0xff]  }
  0x18   : > { %2771 = vmatprep.subr.bf16.mxu1 %v3123_v13  ;;  %v3145_v34 = vld [vmem:[%s3496_s13 + $0x8] ss:$72 sps:$4 sm:$0xff]   ;;  %v3147_v35 = vld [vmem:[%s3496_s13 + $0xc] ss:$72 sps:$4 sm:$0xff]   ;;  %1801 = vmatprep.mubr.bf16.mxu0 %v3144_v33  ;;  %v3158_v45 = vld [vmem:[%s3496_s13 + $0x9c] ss:$72 sps:$4 sm:$0xff]  }
  0x19   : > { %1866 = vmatprep.mubr.bf16.mxu1 %v3147_v35  ;;  %v3153_v41 = vld [vmem:[%s4049_s1 + $0x1f0] sm:$0xff]   ;;  %v3161_v47 = vld [vmem:[%s3496_s13 + $0x98] ss:$72 sps:$4 sm:$0xff]   ;;  %v3162_v48 = vld [vmem:[%s4049_s1 + $0x168] sm:$0xff]  }
  0x1a   : > { %2732 = vmatpush3.bf16.msra.mxu0 %v3124_v14  ;;  %v3154_v42 = vld [vmem:[%s4049_s1 + $0x130] sm:$0xff]   ;;  %v3163_v49 = vld [vmem:[%s4049_s1 + $0x1e8] sm:$0xff]   ;;  %v3166_v52 = vld [vmem:[%s4049_s1 + $0x160] sm:$0xff]  }
  0x1b   : > { %2772 = vmatpush3.bf16.msra.mxu1 %v3125_v15  ;;  %2733 = vmatprep.subr.bf16.mxu0 %v3126_v16  ;;  %v3155_v43 = vld [vmem:[%s4049_s1 + $0x1b0] sm:$0xff]   ;;  %v3164_v50 = vld [vmem:[%s4049_s1 + $0x128] sm:$0xff]   ;;  %v3167_v53 = vld [vmem:[%s4049_s1 + $0x1e0] sm:$0xff]  }
  0x1c   : > { %2773 = vmatprep.subr.bf16.mxu1 %v3127_v17  ;;  %v3156_v44 = vld [vmem:[%s3496_s13 + $0x94] ss:$72 sps:$4 sm:$0xff]   ;;  %v3160_v46 = vld [vmem:[%s3496_s13 + $0x90] ss:$72 sps:$4 sm:$0xff]   ;;  %v3165_v51 = vld [vmem:[%s4049_s1 + $0x1a8] sm:$0xff]  }
  0x1d   : > { %v3168_v54 = vld [vmem:[%s4049_s1 + $0x120] sm:$0xff]   ;;  %v3172_v57 = vld [vmem:[%s3496_s13 + $0x12c] ss:$72 sps:$4 sm:$0xff]   ;;  %v3175_v59 = vld [vmem:[%s3496_s13 + $0x128] ss:$72 sps:$4 sm:$0xff]  }
  0x1e   : > { %2734 = vmatpush3.bf16.msra.mxu0 %v3128_v18  ;;  %v3169_v55 = vld [vmem:[%s4049_s1 + $0x1a0] sm:$0xff]   ;;  %v3176_v60 = vld [vmem:[%s4049_s1 + $0x158] sm:$0xff]   ;;  %v3180_v0 = vld [vmem:[%s4049_s1 + $0x150] sm:$0xff]  }
  0x1f   : > { %2774 = vmatpush3.bf16.msra.mxu1 %v3129_v19  ;;  %2735 = vmatprep.subr.bf16.mxu0 %v3130_v20  ;;  %v3170_v56 = vld [vmem:[%s3496_s13 + $0x124] ss:$72 sps:$4 sm:$0xff]   ;;  %v3174_v58 = vld [vmem:[%s3496_s13 + $0x120] ss:$72 sps:$4 sm:$0xff]   ;;  %v3177_v61 = vld [vmem:[%s4049_s1 + $0x1d8] sm:$0xff]  }
  0x20   : > { %2775 = vmatprep.subr.bf16.mxu1 %v3131_v21  ;;  %v3178_v62 = vld [vmem:[%s4049_s1 + $0x118] sm:$0xff]   ;;  %v3181_v1 = vld [vmem:[%s4049_s1 + $0x1d0] sm:$0xff]   ;;  %v3190_v8 = vld [vmem:[%s4049_s1 + $0x148] sm:$0xff]  }
  0x21   : > { %v3179_v63 = vld [vmem:[%s4049_s1 + $0x198] sm:$0xff]   ;;  %v3182_v2 = vld [vmem:[%s4049_s1 + $0x110] sm:$0xff]   ;;  %v3191_v9 = vld [vmem:[%s4049_s1 + $0x1c8] sm:$0xff]  }
  0x22   : > { %2736 = vmatpush3.bf16.msra.mxu0 %v3132_v22  ;;  %v3183_v3 = vld [vmem:[%s4049_s1 + $0x190] sm:$0xff]   ;;  %v3186_v5 = vld [vmem:[%s3496_s13 + $0x1bc] ss:$72 sps:$4 sm:$0xff]   ;;  %v3189_v7 = vld [vmem:[%s3496_s13 + $0x1b8] ss:$72 sps:$4 sm:$0xff]  }
  0x23   : > { %2776 = vmatpush3.bf16.msra.mxu1 %v3133_v23  ;;  %2737 = vmatprep.subr.bf16.mxu0 %v3134_v24  ;;  %v3184_v4 = vld [vmem:[%s3496_s13 + $0x1b4] ss:$72 sps:$4 sm:$0xff]   ;;  %v3188_v6 = vld [vmem:[%s3496_s13 + $0x1b0] ss:$72 sps:$4 sm:$0xff]   ;;  %v3192_v10 = vld [vmem:[%s4049_s1 + $0x108] sm:$0xff]  }
  0x24   : > { %2777 = vmatprep.subr.bf16.mxu1 %v3135_v25  ;;  %v3193_v11 = vld [vmem:[%s4049_s1 + $0x188] sm:$0xff]   ;;  %v3194_v12 = vld [vmem:[%s4049_s1 + $0x140] sm:$0xff]   ;;  %v3198_v16 = vld [vmem:[%s3496_s13 + $0x10] ss:$72 sps:$4 sm:$0xff]  }
  0x25   : > { %v3195_v13 = vld [vmem:[%s4049_s1 + $0x1c0] sm:$0xff]   ;;  %v3200_v17 = vld [vmem:[%s3496_s13 + $0x14] ss:$72 sps:$4 sm:$0xff]   ;;  %v3219_v33 = vld [vmem:[%s4049_s1 + $0x2e8] sm:$0xff]  }
  0x26   : > { %2738 = vmatpush3.bf16.msra.mxu0 %v3136_v26  ;;  %v3196_v14 = vld [vmem:[%s4049_s1 + $0x100] sm:$0xff]   ;;  %v3204_v20 = vld [vmem:[%s4049_s1 + $0x278] sm:$0xff]   ;;  %v3208_v24 = vld [vmem:[%s4049_s1 + $0x270] sm:$0xff]  }
  0x27   : > { %2778 = vmatpush3.bf16.msra.mxu1 %v3137_v27  ;;  %2739 = vmatprep.subr.bf16.mxu0 %v3138_v28  ;;  %v3197_v15 = vld [vmem:[%s4049_s1 + $0x180] sm:$0xff]   ;;  %v3205_v21 = vld [vmem:[%s4049_s1 + $0x2f8] sm:$0xff]   ;;  %v3209_v25 = vld [vmem:[%s4049_s1 + $0x2f0] sm:$0xff]  }
  0x28   : > { %2779 = vmatprep.subr.bf16.mxu1 %v3139_v29  ;;  %v3201_v18 = vld [vmem:[%s3496_s13 + $0x18] ss:$72 sps:$4 sm:$0xff]   ;;  %v3203_v19 = vld [vmem:[%s3496_s13 + $0x1c] ss:$72 sps:$4 sm:$0xff]   ;;  %v3210_v26 = vld [vmem:[%s4049_s1 + $0x230] sm:$0xff]  }
  0x29   : > { %v3206_v22 = vld [vmem:[%s4049_s1 + $0x238] sm:$0xff]   ;;  %v3211_v27 = vld [vmem:[%s4049_s1 + $0x2b0] sm:$0xff]   ;;  %v3212_v28 = vld [vmem:[%s3496_s13 + $0xa4] ss:$72 sps:$4 sm:$0xff]  }
  0x2a   : > { %2740 = vmatpush3.bf16.msra.mxu0 %v3140_v30  ;;  %v3207_v23 = vld [vmem:[%s4049_s1 + $0x2b8] sm:$0xff]   ;;  %v3214_v29 = vld [vmem:[%s3496_s13 + $0xac] ss:$72 sps:$4 sm:$0xff]   ;;  %v3216_v30 = vld [vmem:[%s3496_s13 + $0xa0] ss:$72 sps:$4 sm:$0xff]  }
  0x2b   : > { %2780 = vmatpush3.bf16.msra.mxu1 %v3141_v31  ;;  %2805 = vmatprep.subr.bf16.mxu0 %v3148_v36  ;;  %v3217_v31 = vld [vmem:[%s3496_s13 + $0xa8] ss:$72 sps:$4 sm:$0xff]   ;;  %v3222_v36 = vld [vmem:[%s4049_s1 + $0x260] sm:$0xff]  }
  0x2c   : > { %2845 = vmatprep.subr.bf16.mxu1 %v3149_v37  ;;  %v3221_v35 = vld [vmem:[%s4049_s1 + $0x2a8] sm:$0xff]   ;;  %v3223_v37 = vld [vmem:[%s4049_s1 + $0x2e0] sm:$0xff]  }
  0x2d   : > { %1802 = vmatmul.mubr.bf16.vlgmr.msra.gmra.mxu0 %v3142_v32  ;;  %v3218_v32 = vld [vmem:[%s4049_s1 + $0x268] sm:$0xff]  }
  0x2e   : > { %1867 = vmatmul.mubr.bf16.vlgmr.msra.gmra.mxu1 %v3145_v34  ;;  %2806 = vmatpush3.bf16.msra.mxu0 %v3150_v38  ;;  %v3220_v34 = vld [vmem:[%s4049_s1 + $0x228] sm:$0xff]   ;;  %v3224_v38 = vld [vmem:[%s4049_s1 + $0x220] sm:$0xff]  }
  0x2f   : > { %2846 = vmatpush3.bf16.msra.mxu1 %v3151_v39  ;;  %2807 = vmatprep.subr.bf16.mxu0 %v3152_v40  ;;  %v3225_v39 = vld [vmem:[%s4049_s1 + $0x2a0] sm:$0xff]   ;;  %v3226_v40 = vld [vmem:[%s3496_s13 + $0x134] ss:$72 sps:$4 sm:$0xff]  }
  0x30   : > { %2847 = vmatprep.subr.bf16.mxu1 %v3153_v41  ;;  %1809 = vmatprep.mubr.bf16.mxu0 %v3156_v44  ;;  %v3228_v41 = vld [vmem:[%s3496_s13 + $0x13c] ss:$72 sps:$4 sm:$0xff]  }
  0x31   : > { %1874 = vmatprep.mubr.bf16.mxu1 %v3158_v45  ;;  %v3232_v44 = vld [vmem:[%s4049_s1 + $0x258] sm:$0xff]  }
  0x32   : > { %2808 = vmatpush3.bf16.msra.mxu0 %v3154_v42  ;;  %v3230_v42 = vld [vmem:[%s3496_s13 + $0x130] ss:$72 sps:$4 sm:$0xff]  }
  0x33   : > { %2848 = vmatpush3.bf16.msra.mxu1 %v3155_v43  ;;  %2809 = vmatprep.subr.bf16.mxu0 %v3162_v48  ;;  %v3231_v43 = vld [vmem:[%s3496_s13 + $0x138] ss:$72 sps:$4 sm:$0xff]   ;;  %v3236_v48 = vld [vmem:[%s4049_s1 + $0x250] sm:$0xff]  }
  0x34   : > { %2849 = vmatprep.subr.bf16.mxu1 %v3163_v49  ;;  %v3233_v45 = vld [vmem:[%s4049_s1 + $0x2d8] sm:$0xff]   ;;  %v3237_v49 = vld [vmem:[%s4049_s1 + $0x2d0] sm:$0xff]  }
  0x35   : > { %1810 = vmatmul.mubr.bf16.gmra.mxu0 %v3160_v46  ;;  %v3234_v46 = vld [vmem:[%s4049_s1 + $0x218] sm:$0xff]  }
  0x36   : > { %1875 = vmatmul.mubr.bf16.gmra.mxu1 %v3161_v47  ;;  %2810 = vmatpush3.bf16.msra.mxu0 %v3164_v50  ;;  %v3235_v47 = vld [vmem:[%s4049_s1 + $0x298] sm:$0xff]   ;;  %v3238_v50 = vld [vmem:[%s4049_s1 + $0x210] sm:$0xff]  }
  0x37   : > { %2850 = vmatpush3.bf16.msra.mxu1 %v3165_v51  ;;  %2811 = vmatprep.subr.bf16.mxu0 %v3166_v52  ;;  %v3239_v51 = vld [vmem:[%s4049_s1 + $0x290] sm:$0xff]   ;;  %v3240_v52 = vld [vmem:[%s3496_s13 + $0x1c4] ss:$72 sps:$4 sm:$0xff]  }
  0x38   : > { %2851 = vmatprep.subr.bf16.mxu1 %v3167_v53  ;;  %1817 = vmatprep.mubr.bf16.mxu0 %v3170_v56  ;;  %v3242_v53 = vld [vmem:[%s3496_s13 + $0x1cc] ss:$72 sps:$4 sm:$0xff]  }
  0x39   : > { %1882 = vmatprep.mubr.bf16.mxu1 %v3172_v57  ;;  %v3246_v56 = vld [vmem:[%s4049_s1 + $0x248] sm:$0xff]  }
  0x3a   : > { %2812 = vmatpush3.bf16.msra.mxu0 %v3168_v54  ;;  %v3244_v54 = vld [vmem:[%s3496_s13 + $0x1c0] ss:$72 sps:$4 sm:$0xff]  }
  0x3b   : > { %2852 = vmatpush3.bf16.msra.mxu1 %v3169_v55  ;;  %2813 = vmatprep.subr.bf16.mxu0 %v3176_v60  ;;  %v3245_v55 = vld [vmem:[%s3496_s13 + $0x1c8] ss:$72 sps:$4 sm:$0xff]   ;;  %v3250_v60 = vld [vmem:[%s4049_s1 + $0x240] sm:$0xff]  }
  0x3c   : > { %2853 = vmatprep.subr.bf16.mxu1 %v3177_v61  ;;  %v3247_v57 = vld [vmem:[%s4049_s1 + $0x2c8] sm:$0xff]   ;;  %v3251_v61 = vld [vmem:[%s4049_s1 + $0x2c0] sm:$0xff]  }
  0x3d   : > { %1818 = vmatmul.mubr.bf16.gmra.mxu0 %v3174_v58  ;;  %v3248_v58 = vld [vmem:[%s4049_s1 + $0x208] sm:$0xff]  }
  0x3e   : > { %1883 = vmatmul.mubr.bf16.gmra.mxu1 %v3175_v59  ;;  %2814 = vmatpush3.bf16.msra.mxu0 %v3178_v62  ;;  %v3249_v59 = vld [vmem:[%s4049_s1 + $0x288] sm:$0xff]   ;;  %v3252_v62 = vld [vmem:[%s4049_s1 + $0x200] sm:$0xff]  }
  0x3f   : > { %2854 = vmatpush3.bf16.msra.mxu1 %v3179_v63  ;;  %2815 = vmatprep.subr.bf16.mxu0 %v3180_v0  ;;  %v3253_v63 = vld [vmem:[%s4049_s1 + $0x280] sm:$0xff]  }
  0x40   : > { %2855 = vmatprep.subr.bf16.mxu1 %v3181_v1  ;;  %1825 = vmatprep.mubr.bf16.mxu0 %v3184_v4  ;;  %v3254_v0 = vld [vmem:[%s3496_s13 + $0x20] ss:$72 sps:$4 sm:$0xff]   ;;  %v3256_v1 = vld [vmem:[%s3496_s13 + $0x24] ss:$72 sps:$4 sm:$0xff]   ;;  %v3260_v4 = vld [vmem:[%s4049_s1 + $0x378] sm:$0xff]  }
  0x41   : > { %1890 = vmatprep.mubr.bf16.mxu1 %v3186_v5  ;;  %v3261_v5 = vld [vmem:[%s4049_s1 + $0x3f8] sm:$0xff]  }
  0x42   : > { %2816 = vmatpush3.bf16.msra.mxu0 %v3182_v2  ;;  %v3257_v2 = vld [vmem:[%s3496_s13 + $0x28] ss:$72 sps:$4 sm:$0xff]  }
  0x43   : > { %2856 = vmatpush3.bf16.msra.mxu1 %v3183_v3  ;;  %2817 = vmatprep.subr.bf16.mxu0 %v3190_v8  ;;  %v3259_v3 = vld [vmem:[%s3496_s13 + $0x2c] ss:$72 sps:$4 sm:$0xff]  }
  0x44   : > { %2857 = vmatprep.subr.bf16.mxu1 %v3191_v9  ;;  %v3264_v8 = vld [vmem:[%s4049_s1 + $0x370] sm:$0xff]  }
  0x45   : > { %1826 = vmatmul.mubr.bf16.gmra.mxu0 %v3188_v6  ;;  %v3262_v6 = vld [vmem:[%s4049_s1 + $0x338] sm:$0xff]   ;;  %v3265_v9 = vld [vmem:[%s4049_s1 + $0x3f0] sm:$0xff]  }
  0x46   : > { %1891 = vmatmul.mubr.bf16.gmra.mxu1 %v3189_v7  ;;  %2818 = vmatpush3.bf16.msra.mxu0 %v3192_v10  ;;  %v3263_v7 = vld [vmem:[%s4049_s1 + $0x3b8] sm:$0xff]   ;;  %v3266_v10 = vld [vmem:[%s4049_s1 + $0x330] sm:$0xff]  }
  0x47   : > { %2858 = vmatpush3.bf16.msra.mxu1 %v3193_v11  ;;  %2819 = vmatprep.subr.bf16.mxu0 %v3194_v12  ;;  %v3267_v11 = vld [vmem:[%s4049_s1 + $0x3b0] sm:$0xff]  }
  0x48   : > { %2859 = vmatprep.subr.bf16.mxu1 %v3195_v13  ;;  %1931 = vmatprep.mubr.bf16.mxu0 %v3200_v17  ;;  %v3268_v12 = vld [vmem:[%s3496_s13 + $0xb4] ss:$72 sps:$4 sm:$0xff]   ;;  %v3275_v17 = vld [vmem:[%s4049_s1 + $0x3e8] sm:$0xff]  }
  0x49   : > { %1996 = vmatprep.mubr.bf16.mxu1 %v3203_v19  ;;  %v3270_v13 = vld [vmem:[%s3496_s13 + $0xbc] ss:$72 sps:$4 sm:$0xff]   ;;  %v3277_v19 = vld [vmem:[%s4049_s1 + $0x3a8] sm:$0xff]  }
  0x4a   : > { %2820 = vmatpush3.bf16.msra.mxu0 %v3196_v14  ;;  %v3272_v14 = vld [vmem:[%s3496_s13 + $0xb0] ss:$72 sps:$4 sm:$0xff]  }
  0x4b   : > { %2860 = vmatpush3.bf16.msra.mxu1 %v3197_v15  ;;  %2885 = vmatprep.subr.bf16.mxu0 %v3204_v20  ;;  %v3273_v15 = vld [vmem:[%s3496_s13 + $0xb8] ss:$72 sps:$4 sm:$0xff]  }
  0x4c   : > { %2925 = vmatprep.subr.bf16.mxu1 %v3205_v21  ;;  %v3278_v20 = vld [vmem:[%s4049_s1 + $0x360] sm:$0xff]  }
  0x4d   : > { %1932 = vmatmul.mubr.bf16.vlgmr.msra.gmra.mxu0 %v3198_v16  ;;  %v3274_v16 = vld [vmem:[%s4049_s1 + $0x368] sm:$0xff]   ;;  %v3279_v21 = vld [vmem:[%s4049_s1 + $0x3e0] sm:$0xff]  }
  0x4e   : > { %1997 = vmatmul.mubr.bf16.vlgmr.msra.gmra.mxu1 %v3201_v18  ;;  %2886 = vmatpush3.bf16.msra.mxu0 %v3206_v22  ;;  %v3276_v18 = vld [vmem:[%s4049_s1 + $0x328] sm:$0xff]   ;;  %v3280_v22 = vld [vmem:[%s4049_s1 + $0x320] sm:$0xff]  }
  0x4f   : > { %2926 = vmatpush3.bf16.msra.mxu1 %v3207_v23  ;;  %2887 = vmatprep.subr.bf16.mxu0 %v3208_v24  ;;  %v3281_v23 = vld [vmem:[%s4049_s1 + $0x3a0] sm:$0xff]  }
  0x50   : > { %2927 = vmatprep.subr.bf16.mxu1 %v3209_v25  ;;  %1939 = vmatprep.mubr.bf16.mxu0 %v3212_v28  ;;  %v3282_v24 = vld [vmem:[%s3496_s13 + $0x144] ss:$72 sps:$4 sm:$0xff]   ;;  %v3288_v28 = vld [vmem:[%s4049_s1 + $0x358] sm:$0xff]  }
  0x51   : > { %2004 = vmatprep.mubr.bf16.mxu1 %v3214_v29  ;;  %v3284_v25 = vld [vmem:[%s3496_s13 + $0x14c] ss:$72 sps:$4 sm:$0xff]   ;;  %v3289_v29 = vld [vmem:[%s4049_s1 + $0x3d8] sm:$0xff]  }
  0x52   : > { %2888 = vmatpush3.bf16.msra.mxu0 %v3210_v26  ;;  %v3286_v26 = vld [vmem:[%s3496_s13 + $0x140] ss:$72 sps:$4 sm:$0xff]  }
  0x53   : > { %2928 = vmatpush3.bf16.msra.mxu1 %v3211_v27  ;;  %2889 = vmatprep.subr.bf16.mxu0 %v3218_v32  ;;  %v3287_v27 = vld [vmem:[%s3496_s13 + $0x148] ss:$72 sps:$4 sm:$0xff]  }
  0x54   : > { %2929 = vmatprep.subr.bf16.mxu1 %v3219_v33  ;;  %v3292_v32 = vld [vmem:[%s4049_s1 + $0x350] sm:$0xff]  }
  0x55   : > { %1940 = vmatmul.mubr.bf16.gmra.mxu0 %v3216_v30  ;;  %v3290_v30 = vld [vmem:[%s4049_s1 + $0x318] sm:$0xff]   ;;  %v3293_v33 = vld [vmem:[%s4049_s1 + $0x3d0] sm:$0xff]  }
  0x56   : > { %2005 = vmatmul.mubr.bf16.gmra.mxu1 %v3217_v31  ;;  %2890 = vmatpush3.bf16.msra.mxu0 %v3220_v34  ;;  %v3291_v31 = vld [vmem:[%s4049_s1 + $0x398] sm:$0xff]   ;;  %v3294_v34 = vld [vmem:[%s4049_s1 + $0x310] sm:$0xff]  }
  0x57   : > { %2930 = vmatpush3.bf16.msra.mxu1 %v3221_v35  ;;  %2891 = vmatprep.subr.bf16.mxu0 %v3222_v36  ;;  %v3295_v35 = vld [vmem:[%s4049_s1 + $0x390] sm:$0xff]  }
  0x58   : > { %2931 = vmatprep.subr.bf16.mxu1 %v3223_v37  ;;  %1947 = vmatprep.mubr.bf16.mxu0 %v3226_v40  ;;  %v3296_v36 = vld [vmem:[%s3496_s13 + $0x1d4] ss:$72 sps:$4 sm:$0xff]   ;;  %v3302_v40 = vld [vmem:[%s4049_s1 + $0x348] sm:$0xff]  }
  0x59   : > { %2012 = vmatprep.mubr.bf16.mxu1 %v3228_v41  ;;  %v3298_v37 = vld [vmem:[%s3496_s13 + $0x1dc] ss:$72 sps:$4 sm:$0xff]   ;;  %v3303_v41 = vld [vmem:[%s4049_s1 + $0x3c8] sm:$0xff]  }
  0x5a   : > { %2892 = vmatpush3.bf16.msra.mxu0 %v3224_v38  ;;  %v3300_v38 = vld [vmem:[%s3496_s13 + $0x1d0] ss:$72 sps:$4 sm:$0xff]  }
  0x5b   : > { %2932 = vmatpush3.bf16.msra.mxu1 %v3225_v39  ;;  %2893 = vmatprep.subr.bf16.mxu0 %v3232_v44  ;;  %v3301_v39 = vld [vmem:[%s3496_s13 + $0x1d8] ss:$72 sps:$4 sm:$0xff]  }
  0x5c   : > { %2933 = vmatprep.subr.bf16.mxu1 %v3233_v45  ;;  %v3306_v44 = vld [vmem:[%s4049_s1 + $0x340] sm:$0xff]  }
  0x5d   : > { %1948 = vmatmul.mubr.bf16.gmra.mxu0 %v3230_v42  ;;  %v3304_v42 = vld [vmem:[%s4049_s1 + $0x308] sm:$0xff]   ;;  %v3307_v45 = vld [vmem:[%s4049_s1 + $0x3c0] sm:$0xff]  }
  0x5e   : > { %2013 = vmatmul.mubr.bf16.gmra.mxu1 %v3231_v43  ;;  %2894 = vmatpush3.bf16.msra.mxu0 %v3234_v46  ;;  %v3305_v43 = vld [vmem:[%s4049_s1 + $0x388] sm:$0xff]   ;;  %v3308_v46 = vld [vmem:[%s4049_s1 + $0x300] sm:$0xff]  }
  0x5f   : > { %2934 = vmatpush3.bf16.msra.mxu1 %v3235_v47  ;;  %2895 = vmatprep.subr.bf16.mxu0 %v3236_v48  ;;  %v3309_v47 = vld [vmem:[%s4049_s1 + $0x380] sm:$0xff]   ;;  %v3310_v48 = vld [vmem:[%s3496_s13 + $0x30] ss:$72 sps:$4 sm:$0xff]  }
  0x60   : > { %2935 = vmatprep.subr.bf16.mxu1 %v3237_v49  ;;  %1955 = vmatprep.mubr.bf16.mxu0 %v3240_v52  ;;  %v3312_v49 = vld [vmem:[%s3496_s13 + $0x34] ss:$72 sps:$4 sm:$0xff]  }
  0x61   : > { %2020 = vmatprep.mubr.bf16.mxu1 %v3242_v53  ;;  %v3316_v52 = vld [vmem:[%s4049_s1 + $0x478] sm:$0xff]  }
  0x62   : > { %2896 = vmatpush3.bf16.msra.mxu0 %v3238_v50  ;;  %v3313_v50 = vld [vmem:[%s3496_s13 + $0x38] ss:$72 sps:$4 sm:$0xff]  }
  0x63   : > { %2936 = vmatpush3.bf16.msra.mxu1 %v3239_v51  ;;  %2897 = vmatprep.subr.bf16.mxu0 %v3246_v56  ;;  %v3315_v51 = vld [vmem:[%s3496_s13 + $0x3c] ss:$72 sps:$4 sm:$0xff]  }
  0x64   : > { %2937 = vmatprep.subr.bf16.mxu1 %v3247_v57  ;;  %v3317_v53 = vld [vmem:[%s4049_s1 + $0x438] sm:$0xff]   ;;  %v3320_v56 = vld [vmem:[%s3496_s13 + $0xc4] ss:$72 sps:$4 sm:$0xff]  }
  0x65   : > { %1956 = vmatmul.mubr.bf16.gmra.mxu0 %v3244_v54  ;;  %v3318_v54 = vld [vmem:[%s4049_s1 + $0x470] sm:$0xff]  }
  0x66   : > { %2021 = vmatmul.mubr.bf16.gmra.mxu1 %v3245_v55  ;;  %2898 = vmatpush3.bf16.msra.mxu0 %v3248_v58  ;;  %v3319_v55 = vld [vmem:[%s4049_s1 + $0x430] sm:$0xff]   ;;  %v3324_v58 = vld [vmem:[%s3496_s13 + $0xc0] ss:$72 sps:$4 sm:$0xff]  }
  0x67   : > { %2938 = vmatpush3.bf16.msra.mxu1 %v3249_v59  ;;  %2899 = vmatprep.subr.bf16.mxu0 %v3250_v60  ;;  %v3322_v57 = vld [vmem:[%s3496_s13 + $0xcc] ss:$72 sps:$4 sm:$0xff]   ;;  %v3325_v59 = vld [vmem:[%s3496_s13 + $0xc8] ss:$72 sps:$4 sm:$0xff]  }
  0x68   : > { %2939 = vmatprep.subr.bf16.mxu1 %v3251_v61  ;;  %2061 = vmatprep.mubr.bf16.mxu0 %v3256_v1  ;;  %v3326_v60 = vld [vmem:[%s4049_s1 + $0x468] sm:$0xff]   ;;  %v3332_v1 = vld [vmem:[%s3496_s13 + $0x15c] ss:$72 sps:$4 sm:$0xff]  }
  0x69   : > { %2126 = vmatprep.mubr.bf16.mxu1 %v3259_v3  ;;  %v3327_v61 = vld [vmem:[%s4049_s1 + $0x428] sm:$0xff]   ;;  %v3336_v3 = vld [vmem:[%s4049_s1 + $0x458] sm:$0xff]  }
  0x6a   : > { %2900 = vmatpush3.bf16.msra.mxu0 %v3252_v62  ;;  %v3328_v62 = vld [vmem:[%s4049_s1 + $0x460] sm:$0xff]  }
  0x6b   : > { %2940 = vmatpush3.bf16.msra.mxu1 %v3253_v63  ;;  %2965 = vmatprep.subr.bf16.mxu0 %v3260_v4  ;;  %v3329_v63 = vld [vmem:[%s4049_s1 + $0x420] sm:$0xff]  }
  0x6c   : > { %3005 = vmatprep.subr.bf16.mxu1 %v3261_v5  ;;  %v3335_v4 = vld [vmem:[%s3496_s13 + $0x158] ss:$72 sps:$4 sm:$0xff]  }
  0x6d   : > { %2062 = vmatmul.mubr.bf16.vlgmr.msra.gmra.mxu0 %v3254_v0  ;;  %v3330_v0 = vld [vmem:[%s3496_s13 + $0x154] ss:$72 sps:$4 sm:$0xff]  }
  0x6e   : > { %2127 = vmatmul.mubr.bf16.vlgmr.msra.gmra.mxu1 %v3257_v2  ;;  %2966 = vmatpush3.bf16.msra.mxu0 %v3262_v6  ;;  %v3334_v2 = vld [vmem:[%s3496_s13 + $0x150] ss:$72 sps:$4 sm:$0xff]  }
  0x6f   : > { %3006 = vmatpush3.bf16.msra.mxu1 %v3263_v7  ;;  %2967 = vmatprep.subr.bf16.mxu0 %v3264_v8  ;;  %v3337_v5 = vld [vmem:[%s4049_s1 + $0x418] sm:$0xff]   ;;  %v3338_v6 = vld [vmem:[%s4049_s1 + $0x450] sm:$0xff]   ;;  %v3340_v7 = vld [vmem:[%s3496_s13 + $0x1e4] ss:$72 sps:$4 sm:$0xff]  }
  0x70   : > { %3007 = vmatprep.subr.bf16.mxu1 %v3265_v9  ;;  %2069 = vmatprep.mubr.bf16.mxu0 %v3268_v12  ;;  %v3342_v8 = vld [vmem:[%s3496_s13 + $0x1ec] ss:$72 sps:$4 sm:$0xff]   ;;  %v3345_v12 = vld [vmem:[%s3496_s13 + $0x1e8] ss:$72 sps:$4 sm:$0xff]  }
  0x71   : > { %2134 = vmatprep.mubr.bf16.mxu1 %v3270_v13  ;;  %v3339_v9 = vld [vmem:[%s4049_s1 + $0x410] sm:$0xff]   ;;  %v3347_v13 = vld [vmem:[%s4049_s1 + $0x408] sm:$0xff]  }
  0x72   : > { %2968 = vmatpush3.bf16.msra.mxu0 %v3266_v10  ;;  %v3346_v10 = vld [vmem:[%s4049_s1 + $0x448] sm:$0xff]  }
  0x73   : > { %3008 = vmatpush3.bf16.msra.mxu1 %v3267_v11  ;;  %2969 = vmatprep.subr.bf16.mxu0 %v3274_v16  ;;  %v3344_v11 = vld [vmem:[%s3496_s13 + $0x1e0] ss:$72 sps:$4 sm:$0xff]   ;;  %v3355_v16 = vld [vmem:[%s3496_s13 + $0x164] ss:$72 sps:$4 sm:$0xff]  }
  0x74   : > { %3009 = vmatprep.subr.bf16.mxu1 %v3275_v17  ;;  %v3349_v17 = vld [vmem:[%s4049_s1 + $0x400] sm:$0xff]  }
  0x75   : > { %2070 = vmatmul.mubr.bf16.gmra.mxu0 %v3272_v14  ;;  %v3348_v14 = vld [vmem:[%s4049_s1 + $0x440] sm:$0xff]  }
  0x76   : > { %2135 = vmatmul.mubr.bf16.gmra.mxu1 %v3273_v15  ;;  %2970 = vmatpush3.bf16.msra.mxu0 %v3276_v18  ;;  %v3352_v15 = vld [vmem:[%s3496_s13 + $0x44] ss:$72 sps:$4 sm:$0xff]   ;;  %v3350_v18 = vld [vmem:[%s3496_s13 + $0x40] ss:$72 sps:$4 sm:$0xff]  }
  0x77   : > { %3010 = vmatpush3.bf16.msra.mxu1 %v3277_v19  ;;  %2971 = vmatprep.subr.bf16.mxu0 %v3278_v20  ;;  %v3353_v19 = vld [vmem:[%s3496_s13 + $0x160] ss:$72 sps:$4 sm:$0xff]   ;;  %v3356_v20 = vld [vmem:[%s3496_s13 + $0xd4] ss:$72 sps:$4 sm:$0xff]  }
  0x78   : > { %3011 = vmatprep.subr.bf16.mxu1 %v3279_v21  ;;  %2077 = vmatprep.mubr.bf16.mxu0 %v3282_v24  ;;  %v3358_v21 = vld [vmem:[%s3496_s13 + $0x1f4] ss:$72 sps:$4 sm:$0xff]  }
  0x79   : > { %2142 = vmatprep.mubr.bf16.mxu1 %v3284_v25 }
  0x7a   : > { %2972 = vmatpush3.bf16.msra.mxu0 %v3280_v22  ;;  %v3360_v22 = vld [vmem:[%s3496_s13 + $0xd0] ss:$72 sps:$4 sm:$0xff]  }
  0x7b   : > { %3012 = vmatpush3.bf16.msra.mxu1 %v3281_v23  ;;  %2973 = vmatprep.subr.bf16.mxu0 %v3288_v28  ;;  %v3361_v23 = vld [vmem:[%s3496_s13 + $0x1f0] ss:$72 sps:$4 sm:$0xff]   ;;  %s2466_s13 = sshll.u32 %s4081_s19, 2 }
  0x7c   : > { %3013 = vmatprep.subr.bf16.mxu1 %v3289_v29  ;;  %s175_s18 = scalar_lea.vmem %s4051_s3, %s2466_s13 }
  0x7d   : > { %2078 = vmatmul.mubr.bf16.gmra.mxu0 %v3286_v26  ;;  %v2467_v26 = vld [vmem:[%s4050_s2] ss:$0 sm:$0xff] }
  0x7e   : > { %2143 = vmatmul.mubr.bf16.gmra.mxu1 %v3287_v27  ;;  %2974 = vmatpush3.bf16.msra.mxu0 %v3290_v30 }
  0x7f   : > { %3014 = vmatpush3.bf16.msra.mxu1 %v3291_v31  ;;  %2975 = vmatprep.subr.bf16.mxu0 %v3292_v32 }
  0x80   : > { %3015 = vmatprep.subr.bf16.mxu1 %v3293_v33  ;;  %2085 = vmatprep.mubr.bf16.mxu0 %v3296_v36 }
  0x81   : > { %2150 = vmatprep.mubr.bf16.mxu1 %v3298_v37 }
  0x82   : > { %2976 = vmatpush3.bf16.msra.mxu0 %v3294_v34 }
  0x83   : > { %3016 = vmatpush3.bf16.msra.mxu1 %v3295_v35  ;;  %2977 = vmatprep.subr.bf16.mxu0 %v3302_v40 }
  0x84   : > { %3017 = vmatprep.subr.bf16.mxu1 %v3303_v41 }
  0x85   : > { %2086 = vmatmul.mubr.bf16.gmra.mxu0 %v3300_v38 }
  0x86   : > { %2151 = vmatmul.mubr.bf16.gmra.mxu1 %v3301_v39  ;;  %2978 = vmatpush3.bf16.msra.mxu0 %v3304_v42 }
  0x87   : > { %3018 = vmatpush3.bf16.msra.mxu1 %v3305_v43  ;;  %2979 = vmatprep.subr.bf16.mxu0 %v3306_v44 }
  0x88   : > { %3019 = vmatprep.subr.bf16.mxu1 %v3307_v45  ;;  %2191 = vmatprep.mubr.bf16.mxu0 %v3312_v49 }
  0x89   : > { %2256 = vmatprep.mubr.bf16.mxu1 %v3315_v51 }
  0x8a   : > { %2980 = vmatpush3.bf16.msra.mxu0 %v3308_v46 }
  0x8b   : > { %3020 = vmatpush3.bf16.msra.mxu1 %v3309_v47  ;;  %3045 = vmatprep.subr.bf16.mxu0 %v3316_v52 }
  0x8c   : > { %3085 = vmatprep.subr.bf16.mxu1 %v3316_v52 }
  0x8d   : > { %2192 = vmatmul.mubr.bf16.vlgmr.msra.gmra.mxu0 %v3310_v48 }
  0x8e   : > { %2257 = vmatmul.mubr.bf16.vlgmr.msra.gmra.mxu1 %v3313_v50  ;;  %3046 = vmatpush3.bf16.msra.mxu0 %v3317_v53 }
  0x8f   : > { %3093 = vmatpush3.bf16.msra.mxu1 %v3317_v53  ;;  %3047 = vmatprep.subr.bf16.mxu0 %v3318_v54 }
  0x90   : > { %3086 = vmatprep.subr.bf16.mxu1 %v3318_v54  ;;  %2199 = vmatprep.mubr.bf16.mxu0 %v3320_v56 }
  0x91   : > { %2264 = vmatprep.mubr.bf16.mxu1 %v3322_v57 }
  0x92   : > { %3048 = vmatpush3.bf16.msra.mxu0 %v3319_v55 }
  0x93   : > { %3094 = vmatpush3.bf16.msra.mxu1 %v3319_v55  ;;  %3049 = vmatprep.subr.bf16.mxu0 %v3326_v60 }
  0x94   : > { %3087 = vmatprep.subr.bf16.mxu1 %v3326_v60 }
  0x95   : > { %2200 = vmatmul.mubr.bf16.gmra.mxu0 %v3324_v58 }
  0x96   : > { %2265 = vmatmul.mubr.bf16.gmra.mxu1 %v3325_v59  ;;  %3050 = vmatpush3.bf16.msra.mxu0 %v3327_v61 }
  0x97   : > { %3095 = vmatpush3.bf16.msra.mxu1 %v3327_v61  ;;  %3051 = vmatprep.subr.bf16.mxu0 %v3328_v62 }
  0x98   : > { %3088 = vmatprep.subr.bf16.mxu1 %v3328_v62  ;;  %2207 = vmatprep.mubr.bf16.mxu0 %v3330_v0 }
  0x99   : > { %2272 = vmatprep.mubr.bf16.mxu1 %v3332_v1 }
  0x9a   : > { %3052 = vmatpush3.bf16.msra.mxu0 %v3329_v63 }
  0x9b   : > { %3096 = vmatpush3.bf16.msra.mxu1 %v3329_v63  ;;  %3053 = vmatprep.subr.bf16.mxu0 %v3336_v3 }
  0x9c   : > { %3089 = vmatprep.subr.bf16.mxu1 %v3336_v3 }
  0x9d   : > { %2208 = vmatmul.mubr.bf16.gmra.mxu0 %v3334_v2 }
  0x9e   : > { %2273 = vmatmul.mubr.bf16.gmra.mxu1 %v3335_v4  ;;  %3054 = vmatpush3.bf16.msra.mxu0 %v3337_v5 }
  0x9f   : > { %2215 = vmatprep.mubr.bf16.mxu0 %v3340_v7  ;;  %3097 = vmatpush3.bf16.msra.mxu1 %v3337_v5 }
  0xa0   : > { %3055 = vmatprep.subr.bf16.mxu0 %v3338_v6  ;;  %3090 = vmatprep.subr.bf16.mxu1 %v3338_v6 }
  0xa1   : > { %2280 = vmatprep.mubr.bf16.mxu1 %v3342_v8 }
  0xa2   : > { %3056 = vmatpush3.bf16.msra.mxu0 %v3339_v9 }
  0xa3   : > { %3098 = vmatpush3.bf16.msra.mxu1 %v3339_v9  ;;  %3057 = vmatprep.subr.bf16.mxu0 %v3346_v10 }
  0xa4   : > { %3091 = vmatprep.subr.bf16.mxu1 %v3346_v10 }
  0xa5   : > { %2216 = vmatmul.mubr.bf16.gmra.mxu0 %v3344_v11 }
  0xa6   : > { %2281 = vmatmul.mubr.bf16.gmra.mxu1 %v3345_v12  ;;  %2321 = vmatprep.mubr.bf16.mxu0 %v3352_v15 }
  0xa7   : > { %3058 = vmatpush3.bf16.msra.mxu0 %v3347_v13  ;;  %3099 = vmatpush3.bf16.msra.mxu1 %v3347_v13 }
  0xa8   : > { %3059 = vmatprep.subr.bf16.mxu0 %v3348_v14  ;;  %3092 = vmatprep.subr.bf16.mxu1 %v3348_v14 }
  0xa9   : > { %2337 = vmatprep.mubr.bf16.mxu1 %v3355_v16 }
  0xab   : > { %3060 = vmatpush3.bf16.msra.mxu0 %v3349_v17  ;;  %3100 = vmatpush3.bf16.msra.mxu1 %v3349_v17 }
  0xae   : > { %2322 = vmatmul.mubr.bf16.vlgmr.msra.gmra.mxu0 %v3350_v18  ;;  %2338 = vmatmul.mubr.bf16.vlgmr.msra.gmra.mxu1 %v3353_v19 }
  0xaf   : > { %2329 = vmatprep.mubr.bf16.mxu0 %v3356_v20  ;;  %2345 = vmatprep.mubr.bf16.mxu1 %v3358_v21 }
  0xb6   : > { %2330 = vmatmul.mubr.bf16.gmra.mxu0 %v3360_v22  ;;  %2346 = vmatmul.mubr.bf16.gmra.mxu1 %v3361_v23 }
  0xed   : > { %v2741_v24 = vpop.f32.mrf.mxu0 }
  0xee   : > { %v2781_v25 = vpop.f32.mrf.mxu1 }
  0xef   : > { %v2742_v27 = vpop.f32.mrf.mxu0 }
  0xf0   : > { %v2743_v28 = vadd.f32 %v2742_v27, %v2741_v24  ;;  %v2782_v29 = vpop.f32.mrf.mxu1 }
  0xf1   : > { %v2783_v30 = vadd.f32 %v2782_v29, %v2781_v25  ;;  %v2744_v31 = vpop.f32.mrf.mxu0 }
  0xf2   : > { %v1804_v32 = vadd.f32 %v2743_v28, %v2467_v26  ;;  %v2784_v33 = vpop.f32.mrf.mxu1 }
  0xf3   : > { %v2745_v34 = vpop.f32.mrf.mxu0 }
  0xf4   : > { %v1869_v35 = vadd.f32 %v2783_v30, %v1804_v32  ;;  %v2746_v36 = vadd.f32 %v2745_v34, %v2744_v31  ;;  %v2785_v37 = vpop.f32.mrf.mxu1 }
  0xf5   : > { %v2786_v38 = vadd.f32 %v2785_v37, %v2784_v33  ;;  %v2747_v40 = vpop.f32.mrf.mxu0 }
  0xf6   : > { %v1807_v39 = vadd.f32 %v2746_v36, %v2467_v26  ;;  %v2787_v42 = vpop.f32.mrf.mxu1 }
  0xf7   : > { %v2748_v43 = vpop.f32.mrf.mxu0 }
  0xf8   : > { %v1872_v41 = vadd.f32 %v2786_v38, %v1807_v39  ;;  %v2749_v44 = vadd.f32 %v2748_v43, %v2747_v40  ;;  %v2788_v45 = vpop.f32.mrf.mxu1 }
  0xf9   : > { %v2789_v46 = vadd.f32 %v2788_v45, %v2787_v42  ;;  %v2750_v47 = vpop.f32.mrf.mxu0 }
  0xfa   : > { %v1812_v48 = vadd.f32 %v2749_v44, %v2467_v26  ;;  %v2790_v49 = vpop.f32.mrf.mxu1 }
  0xfb   : > { %v2751_v50 = vpop.f32.mrf.mxu0 }
  0xfc   : > { %v1877_v51 = vadd.f32 %v2789_v46, %v1812_v48  ;;  %v2752_v52 = vadd.f32 %v2751_v50, %v2750_v47  ;;  %v2791_v53 = vpop.f32.mrf.mxu1 }
  0xfd   : > { %v2792_v54 = vadd.f32 %v2791_v53, %v2790_v49  ;;  %v2753_v57 = vpop.f32.mrf.mxu0 }
  0xfe   : > { %v1815_v55 = vadd.f32 %v2752_v52, %v2467_v26  ;;  %v2793_v58 = vpop.f32.mrf.mxu1 }
  0xff   : > { %v2754_v59 = vpop.f32.mrf.mxu0 }
 0x100   : > { %v3915_v56 = vadd.f32 %v2792_v54, %v1815_v55  ;;  %v2755_v60 = vadd.f32 %v2754_v59, %v2753_v57  ;;  %v2794_v61 = vpop.f32.mrf.mxu1 }
 0x101   : > { %v2795_v62 = vadd.f32 %v2794_v61, %v2793_v58  ;;  %v2756_v63 = vpop.f32.mrf.mxu0 }
 0x102   : > { %v1820_v0 = vadd.f32 %v2755_v60, %v2467_v26  ;;  %v2796_v1 = vpop.f32.mrf.mxu1 }
 0x103   : > { %v2757_v2 = vpop.f32.mrf.mxu0 }
 0x104   : > { %v1885_v3 = vadd.f32 %v2795_v62, %v1820_v0  ;;  %v2758_v4 = vadd.f32 %v2757_v2, %v2756_v63  ;;  %v2797_v5 = vpop.f32.mrf.mxu1 }
 0x105   : > { %v2798_v6 = vadd.f32 %v2797_v5, %v2796_v1  ;;  %v2759_v9 = vpop.f32.mrf.mxu0 }
 0x106   : > { %v1823_v7 = vadd.f32 %v2758_v4, %v2467_v26  ;;  %v2799_v10 = vpop.f32.mrf.mxu1 }
 0x107   : > { %v2760_v11 = vpop.f32.mrf.mxu0 }
 0x108   : > { %v3917_v8 = vadd.f32 %v2798_v6, %v1823_v7  ;;  %v2800_v12 = vpop.f32.mrf.mxu1  ;;  %v2761_v13 = vadd.f32 %v2760_v11, %v2759_v9 }
 0x109   : > { %v2801_v14 = vadd.f32 %v2800_v12, %v2799_v10  ;;  %v2762_v15 = vpop.f32.mrf.mxu0 }
 0x10a   : > { %v2802_v16 = vpop.f32.mrf.mxu1  ;;  %v1828_v17 = vadd.f32 %v2761_v13, %v2467_v26 }
 0x10b   : > { %v2763_v18 = vpop.f32.mrf.mxu0 }
 0x10c   : > { %v2803_v19 = vpop.f32.mrf.mxu1  ;;  %v1893_v20 = vadd.f32 %v2801_v14, %v1828_v17  ;;  %v2764_v21 = vadd.f32 %v2763_v18, %v2762_v15 }
 0x10d   : > { %v2804_v22 = vadd.f32 %v2803_v19, %v2802_v16  ;;  %v2821_v24 = vpop.f32.mrf.mxu0 }
 0x10e   : > { %v1831_v23 = vadd.f32 %v2764_v21, %v2467_v26  ;;  %v2861_v27 = vpop.f32.mrf.mxu1 }
 0x10f   : > { %v2822_v28 = vpop.f32.mrf.mxu0 }
 0x110   : > { %v1896_v25 = vadd.f32 %v2804_v22, %v1831_v23  ;;  %v2823_v29 = vadd.f32 %v2822_v28, %v2821_v24  ;;  %v2862_v30 = vpop.f32.mrf.mxu1 }
 0x111   : > { %v2824_v31 = vpop.f32.mrf.mxu0  ;;  %v2863_v33 = vadd.f32 %v2862_v30, %v2861_v27 }
 0x112   : > { %v1934_v32 = vadd.f32 %v2823_v29, %v1869_v35  ;;  %v2864_v34 = vpop.f32.mrf.mxu1 }
 0x113   : > { %v2825_v36 = vpop.f32.mrf.mxu0 }
 0x114   : > { %v3919_v37 = vadd.f32 %v2863_v33, %v1934_v32  ;;  %v2826_v38 = vadd.f32 %v2825_v36, %v2824_v31  ;;  %v2865_v39 = vpop.f32.mrf.mxu1 }
 0x115   : > { %v2866_v42 = vadd.f32 %v2865_v39, %v2864_v34  ;;  %v2827_v26 = vpop.f32.mrf.mxu0 }
 0x116   : > { %v1937_v40 = vadd.f32 %v2826_v38, %v1872_v41  ;;  %v2867_v44 = vpop.f32.mrf.mxu1 }
 0x117   : > { %v2828_v45 = vpop.f32.mrf.mxu0 }
 0x118   : > { %v3921_v43 = vadd.f32 %v2866_v42, %v1937_v40  ;;  %v2829_v46 = vadd.f32 %v2828_v45, %v2827_v26  ;;  %v2868_v47 = vpop.f32.mrf.mxu1 }
 0x119   : > { %v2869_v48 = vadd.f32 %v2868_v47, %v2867_v44  ;;  %v2830_v49 = vpop.f32.mrf.mxu0 }
 0x11a   : > { %v1942_v50 = vadd.f32 %v2829_v46, %v1877_v51  ;;  %v2870_v35 = vpop.f32.mrf.mxu1 }
 0x11b   : > { %v2831_v52 = vpop.f32.mrf.mxu0 }
 0x11c   : > { %v3923_v53 = vadd.f32 %v2869_v48, %v1942_v50  ;;  %v2832_v54 = vadd.f32 %v2831_v52, %v2830_v49  ;;  %v2871_v55 = vpop.f32.mrf.mxu1 }
 0x11d   : > { %v2872_v57 = vadd.f32 %v2871_v55, %v2870_v35  ;;  %v2833_v59 = vpop.f32.mrf.mxu0 }
 0x11e   : > { %v1945_v41 = vadd.f32 %v2832_v54, %v3915_v56  ;;  %v2873_v60 = vpop.f32.mrf.mxu1 }
 0x11f   : > { %v2834_v61 = vpop.f32.mrf.mxu0 }
 0x120   : > { %v3926_v58 = vadd.f32 %v2872_v57, %v1945_v41  ;;  %v2874_v62 = vpop.f32.mrf.mxu1  ;;  %v2835_v63 = vadd.f32 %v2834_v61, %v2833_v59 }
 0x121   : > { %v2875_v0 = vadd.f32 %v2874_v62, %v2873_v60  ;;  %v2836_v1 = vpop.f32.mrf.mxu0 }
 0x122   : > { %v2876_v2 = vpop.f32.mrf.mxu1  ;;  %v1950_v51 = vadd.f32 %v2835_v63, %v1885_v3 }
 0x123   : > { %v2837_v4 = vpop.f32.mrf.mxu0 }
 0x124   : > { %v2877_v5 = vpop.f32.mrf.mxu1  ;;  %v3928_v6 = vadd.f32 %v2875_v0, %v1950_v51  ;;  %v2838_v7 = vadd.f32 %v2837_v4, %v2836_v1 }
 0x125   : > { %v2878_v9 = vadd.f32 %v2877_v5, %v2876_v2  ;;  %v2839_v56 = vpop.f32.mrf.mxu0 }
 0x126   : > { %v1953_v10 = vadd.f32 %v2838_v7, %v3917_v8  ;;  %v2879_v12 = vpop.f32.mrf.mxu1 }
 0x127   : > { %v2840_v13 = vpop.f32.mrf.mxu0 }
 0x128   : > { %v3931_v11 = vadd.f32 %v2878_v9, %v1953_v10  ;;  %v2841_v14 = vadd.f32 %v2840_v13, %v2839_v56  ;;  %v2880_v15 = vpop.f32.mrf.mxu1 }
 0x129   : > { %v2881_v16 = vadd.f32 %v2880_v15, %v2879_v12  ;;  %v2842_v17 = vpop.f32.mrf.mxu0 }
 0x12a   : > { %v1958_v18 = vadd.f32 %v2841_v14, %v1893_v20  ;;  %v2882_v19 = vpop.f32.mrf.mxu1 }
 0x12b   : > { %v2843_v3 = vpop.f32.mrf.mxu0 }
 0x12c   : > { %v3933_v21 = vadd.f32 %v2881_v16, %v1958_v18  ;;  %v2844_v22 = vadd.f32 %v2843_v3, %v2842_v17  ;;  %v2883_v23 = vpop.f32.mrf.mxu1 }
 0x12d   : > { %v2884_v24 = vadd.f32 %v2883_v23, %v2882_v19  ;;  %v2901_v8 = vpop.f32.mrf.mxu0 }
 0x12e   : > { %v1961_v27 = vadd.f32 %v2844_v22, %v1896_v25  ;;  %v3937_v29 = vpop.f32.mrf.mxu1 }
 0x12f   : > { %v2902_v30 = vpop.f32.mrf.mxu0 }
 0x130   : > { %v3935_v28 = vadd.f32 %v2884_v24, %v1961_v27  ;;  %v3939_v31 = vpop.f32.mrf.mxu1  ;;  %v2903_v24 = vadd.f32 %v2902_v30, %v2901_v8 }
 0x131   : > { %v2904_v32 = vpop.f32.mrf.mxu0 }
 0x132   : > { %4052 = vst [vmem:[#allocation2_spill] sm:$0xff] %v3935_v28  ;;  %v3941_v33 = vpop.f32.mrf.mxu1 }
 0x133   : > { %v2905_v20 = vpop.f32.mrf.mxu0 }
 0x134   : > { %v3943_v34 = vpop.f32.mrf.mxu1 }
 0x135   : > { %v2907_v36 = vpop.f32.mrf.mxu0 }
 0x136   : > { %v3945_v38 = vpop.f32.mrf.mxu1 }
 0x137   : > { %v2908_v39 = vpop.f32.mrf.mxu0 }
 0x138   : > { %v3947_v40 = vpop.f32.mrf.mxu1 }
 0x139   : > { %v2910_v25 = vpop.f32.mrf.mxu0 }
 0x13a   : > { %v3949_v42 = vpop.f32.mrf.mxu1 }
 0x13b   : > { %v2911_v26 = vpop.f32.mrf.mxu0 }
 0x13c   : > { %v3951_v44 = vpop.f32.mrf.mxu1 }
 0x13d   : > { %v2913_v45 = vpop.f32.mrf.mxu0 }
 0x13e   : > { %v2953_v46 = vpop.f32.mrf.mxu1 }
 0x13f   : > { %v2914_v47 = vpop.f32.mrf.mxu0 }
 0x140   : > { %v2954_v48 = vpop.f32.mrf.mxu1 }
 0x141   : > { %v2916_v49 = vpop.f32.mrf.mxu0 }
 0x142   : > { %v3953_v50 = vpop.f32.mrf.mxu1 }
 0x143   : > { %v2917_v35 = vpop.f32.mrf.mxu0 }
 0x144   : > { %v3955_v52 = vpop.f32.mrf.mxu1 }
 0x145   : > { %v2919_v54 = vpop.f32.mrf.mxu0 }
 0x146   : > { %v3957_v55 = vpop.f32.mrf.mxu1 }
 0x147   : > { %v2920_v57 = vpop.f32.mrf.mxu0 }
 0x148   : > { %v3959_v41 = vpop.f32.mrf.mxu1  ;;  %v2921_v30 = vadd.f32 %v2920_v57, %v2919_v54  ;;  %v2952_v54 = vadd.f32 %v3951_v44, %v3949_v42 }
 0x149   : > { %v3961_v59 = vpop.f32.mrf.mxu0 }
 0x14a   : > { %v3963_v60 = vpop.f32.mrf.mxu1 }
 0x14b   : > { %4053 = vst [vmem:[#allocation3_spill] sm:$0xff] %v3963_v60  ;;  %v2923_v61 = vpop.f32.mrf.mxu0 }
 0x14c   : > { %v3965_v62 = vpop.f32.mrf.mxu1 }
 0x14d   : > { %4054 = vst [vmem:[#allocation4_spill] sm:$0xff] %v3965_v62  ;;  %v2981_v63 = vpop.f32.mrf.mxu0 }
 0x14e   : > { %v3967_v0 = vpop.f32.mrf.mxu1 }
 0x14f   : > { %v2982_v1 = vpop.f32.mrf.mxu0 }
 0x150   : > { %v3969_v2 = vpop.f32.mrf.mxu1 }
 0x151   : > { %v2984_v51 = vpop.f32.mrf.mxu0 }
 0x152   : > { %v3971_v4 = vpop.f32.mrf.mxu1 }
 0x153   : > { %4055 = vst [vmem:[#allocation5_spill] sm:$0xff] %v3971_v4  ;;  %v2985_v5 = vpop.f32.mrf.mxu0  ;;  %v2912_v4 = vadd.f32 %v2911_v26, %v2910_v25  ;;  %v2958_v26 = vadd.f32 %v3955_v52, %v3953_v50 }
 0x154   : > { %v3973_v7 = vpop.f32.mrf.mxu1  ;;  %v2986_v25 = vadd.f32 %v2985_v5, %v2984_v51 }
 0x155   : > { %4056 = vst [vmem:[#allocation6_spill] sm:$0xff] %v3973_v7  ;;  %v3975_v9 = vpop.f32.mrf.mxu0  ;;  %v2943_v7 = vadd.f32 %v3939_v31, %v3937_v29  ;;  %v2946_v29 = vadd.f32 %v3943_v34, %v3941_v33  ;;  %v2075_v31 = vadd.f32 %v2912_v4, %v3926_v58  ;;  %v2924_v33 = vadd.f32 %v2923_v61, %v3961_v59 }
 0x156   : > { %4057 = vst [vmem:[#allocation7_spill] sm:$0xff] %v3975_v9  ;;  %v3977_v10 = vpop.f32.mrf.mxu1  ;;  %v2961_v58 = vadd.f32 %v3959_v41, %v3957_v55 }
 0x157   : > { %4058 = vst [vmem:[#allocation8_spill] sm:$0xff] %v3977_v10  ;;  %v3979_v56 = vpop.f32.mrf.mxu0  ;;  %v2140_v50 = vadd.f32 %v2952_v54, %v2075_v31 }
 0x158   : > { %4059 = vst [vmem:[#allocation9_spill] sm:$0xff] %v3979_v56  ;;  %v3981_v12 = vpop.f32.mrf.mxu1  ;;  %v2909_v56 = vadd.f32 %v2908_v39, %v2907_v36  ;;  %v2955_v36 = vadd.f32 %v2954_v48, %v2953_v46 }
 0x159   : > { %4060 = vst [vmem:[#allocation10_spill] sm:$0xff] %v3981_v12  ;;  %v3983_v13 = vpop.f32.mrf.mxu0  ;;  %v2915_v12 = vadd.f32 %v2914_v47, %v2913_v45 }
 0x15a   : > { %4061 = vst [vmem:[#allocation11_spill] sm:$0xff] %v3983_v13  ;;  %v3985_v14 = vpop.f32.mrf.mxu1  ;;  %v2906_v13 = vadd.f32 %v2905_v20, %v2904_v32  ;;  %v2072_v20 = vadd.f32 %v2909_v56, %v3923_v53  ;;  %v2088_v53 = vadd.f32 %v2921_v30, %v3933_v21  ;;  %v3023_v21 = vadd.f32 %v3969_v2, %v3967_v0  ;;  %v4074_v30 = vld [vmem:[#allocation3_spill] sm:$0xff] }
 0x15b   : > { %4062 = vst [vmem:[#allocation12_spill] sm:$0xff] %v3985_v14  ;;  %v3987_v15 = vpop.f32.mrf.mxu0  ;;  %v2064_v14 = vadd.f32 %v2903_v24, %v3919_v37  ;;  %v2080_v8 = vadd.f32 %v2915_v12, %v3928_v6  ;;  %v2983_v37 = vadd.f32 %v2982_v1, %v2981_v63  ;;  %v2949_v6 = vadd.f32 %v3947_v40, %v3945_v38 }
 0x15c   : > { %4063 = vst [vmem:[#allocation13_spill] sm:$0xff] %v3987_v15  ;;  %v3989_v16 = vpop.f32.mrf.mxu1  ;;  %v2067_v47 = vadd.f32 %v2906_v13, %v3921_v43  ;;  %v2153_v5 = vadd.f32 %v2961_v58, %v2088_v53  ;;  %v4067_v13 = vld [vmem:[#allocation5_spill] sm:$0xff] }
 0x15d   : > { %4064 = vst [vmem:[#allocation14_spill] sm:$0xff] %v3989_v16  ;;  %v2993_v17 = vpop.f32.mrf.mxu0  ;;  %v2918_v16 = vadd.f32 %v2917_v35, %v2916_v49  ;;  %v2129_v45 = vadd.f32 %v2943_v7, %v2064_v14  ;;  %v2145_v43 = vadd.f32 %v2955_v36, %v2080_v8  ;;  %v2137_v38 = vadd.f32 %v2949_v6, %v2072_v20  ;;  %v4066_v7 = vld [vmem:[#allocation2_spill] sm:$0xff]  ;;  %v4069_v41 = vld [vmem:[#allocation7_spill] sm:$0xff] }
 0x15e   : > { %v3033_v18 = vpop.f32.mrf.mxu1  ;;  %v2132_v48 = vadd.f32 %v2946_v29, %v2067_v47  ;;  %v2091_v56 = vadd.f32 %v2924_v33, %v4066_v7  ;;  %v4068_v14 = vld [vmem:[#allocation6_spill] sm:$0xff] }
 0x15f   : > { %v2994_v19 = vpop.f32.mrf.mxu0  ;;  %v2083_v39 = vadd.f32 %v2918_v16, %v3931_v11  ;;  %v2194_v34 = vadd.f32 %v2983_v37, %v2129_v45  ;;  %v3026_v55 = vadd.f32 %v4068_v14, %v4067_v13  ;;  %v4070_v16 = vld [vmem:[#allocation9_spill] sm:$0xff]  ;;  %v4075_v45 = vld [vmem:[#allocation4_spill] sm:$0xff] }
 0x160   : > { %v3034_v3 = vpop.f32.mrf.mxu1  ;;  %v2995_v49 = vadd.f32 %v2994_v19, %v2993_v17  ;;  %v2197_v52 = vadd.f32 %v2986_v25, %v2132_v48  ;;  %v2989_v17 = vadd.f32 %v4070_v16, %v4069_v41  ;;  %v2964_v47 = vadd.f32 %v4075_v45, %v4074_v30 }
 0x161   : > { %v2996_v22 = vpop.f32.mrf.mxu0  ;;  %v2148_v40 = vadd.f32 %v2958_v26, %v2083_v39  ;;  %v3035_v42 = vadd.f32 %v3034_v3, %v3033_v18  ;;  %v2259_v12 = vadd.f32 %v3023_v21, %v2194_v34 }
 0x162   : > { %v3991_v23 = vpop.f32.mrf.mxu1  ;;  %v2210_v63 = vadd.f32 %v2995_v49, %v2145_v43  ;;  %v2262_v37 = vadd.f32 %v3026_v55, %v2197_v52  ;;  %v2156_v43 = vadd.f32 %v2964_v47, %v2091_v56  ;;  %v2202_v26 = vadd.f32 %v2989_v17, %v2137_v38  ;;  %v4078_v52 = vld [vmem:[#allocation12_spill] sm:$0xff] }
 0x163   : > { %4065 = vst [vmem:[#allocation15_spill] sm:$0xff] %v3991_v23  ;;  %v2997_v27 = vpop.f32.mrf.mxu0  ;;  %v4072_v0 = vld [vmem:[#allocation13_spill] sm:$0xff] }
 0x164   : > { %v3037_v10 = vpop.f32.mrf.mxu1  ;;  %v2998_v46 = vadd.f32 %v2997_v27, %v2996_v22  ;;  %v4071_v22 = vld [vmem:[#allocation11_spill] sm:$0xff]  ;;  %v2275_v24 = vadd.f32 %v3035_v42, %v2210_v63 }
 0x165   : > { %v2999_v62 = vpop.f32.mrf.mxu0  ;;  %v2992_v2 = vadd.f32 %v4072_v0, %v4071_v22 }
 0x166   : > { %v3993_v60 = vpop.f32.mrf.mxu1  ;;  %v2213_v44 = vadd.f32 %v2998_v46, %v2148_v40 }
 0x167   : > { %v3000_v15 = vpop.f32.mrf.mxu0 }
 0x168   : > { %v3996_v9 = vpop.f32.mrf.mxu1  ;;  %v3001_v3 = vadd.f32 %v3000_v15, %v2999_v62  ;;  %v4077_v62 = vld [vmem:[#allocation10_spill] sm:$0xff] }
 0x169   : > { %v3002_v23 = vpop.f32.mrf.mxu0  ;;  %v3041_v34 = vadd.f32 %v3996_v9, %v3993_v60 }
 0x16a   : > { %v4001_v28 = vpop.f32.mrf.mxu1  ;;  %v4073_v27 = vld [vmem:[#allocation15_spill] sm:$0xff]  ;;  %v2218_v48 = vadd.f32 %v3001_v3, %v2153_v5 }
 0x16b   : > { %v3003_v32 = vpop.f32.mrf.mxu0  ;;  %v3038_v18 = vadd.f32 %v3037_v10, %v4073_v27  ;;  %v4076_v10 = vld [vmem:[#allocation8_spill] sm:$0xff] }
 0x16c   : > { %v4006_v35 = vpop.f32.mrf.mxu1  ;;  %v3004_v29 = vadd.f32 %v3003_v32, %v3002_v23  ;;  %v3029_v15 = vadd.f32 %v4077_v62, %v4076_v10  ;;  %v2283_v60 = vadd.f32 %v3041_v34, %v2218_v48 }
 0x16d   : > { %v2278_v49 = vadd.f32 %v3038_v18, %v2213_v44  ;;  %v3044_v9 = vadd.f32 %v4006_v35, %v4001_v28 }
 0x16e   : > { %v3061_v11 = vpop.f32.mrf.mxu0  ;;  %v3073_v57 = vpop.f32.mrf.mxu1  ;;  %v2221_v58 = vadd.f32 %v3004_v29, %v2156_v43 }
 0x170   : > { %v3062_v1 = vpop.f32.mrf.mxu0  ;;  %v3074_v4 = vpop.f32.mrf.mxu1  ;;  %v2286_v13 = vadd.f32 %v3044_v9, %v2221_v58 }
 0x171   : > { %v3063_v51 = vadd.f32 %v3062_v1, %v3061_v11  ;;  %v3075_v59 = vadd.f32 %v3074_v4, %v3073_v57  ;;  %v2205_v11 = vadd.f32 %v2992_v2, %v2140_v50  ;;  %v2267_v50 = vadd.f32 %v3029_v15, %v2202_v26 }
 0x172   : > { %v3064_v61 = vpop.f32.mrf.mxu0  ;;  %v3076_v19 = vpop.f32.mrf.mxu1 }
 0x173   : > { %v2324_v20 = vadd.f32 %v3063_v51, %v2259_v12  ;;  %v2340_v6 = vadd.f32 %v3075_v59, %v2275_v24  ;;  %v4079_v51 = vld [vmem:[#allocation14_spill] sm:$0xff] }
 0x174   : > { %v3065_v8 = vpop.f32.mrf.mxu0  ;;  %v3077_v39 = vpop.f32.mrf.mxu1  ;;  %v3032_v4 = vadd.f32 %v4079_v51, %v4078_v52 }
 0x175   : > { %v3066_v36 = vadd.f32 %v3065_v8, %v3064_v61  ;;  %v3078_v31 = vadd.f32 %v3077_v39, %v3076_v19  ;;  %v2354_v57 = vmax.f32 %v2324_v20, 0.0  ;;  %v2358_v63 = vmax.f32 %v2340_v6, 0.0 }
 0x176   : > { %v3067_v25 = vpop.f32.mrf.mxu0  ;;  %v3079_v46 = vpop.f32.mrf.mxu1  ;;  %v2270_v61 = vadd.f32 %v3032_v4, %v2205_v11 }
 0x177   : > { %v2327_v53 = vadd.f32 %v3066_v36, %v2262_v37  ;;  %v2343_v54 = vadd.f32 %v3078_v31, %v2278_v49 }
 0x178   : > { %v3068_v33 = vpop.f32.mrf.mxu0  ;;  %v3080_v40 = vpop.f32.mrf.mxu1 }
 0x179   : > { %v2355_v23 = vmax.f32 %v2327_v53, 0.0  ;;  %v3069_v32 = vadd.f32 %v3068_v33, %v3067_v25  ;;  %v2359_v38 = vmax.f32 %v2343_v54, 0.0  ;;  %v3081_v1 = vadd.f32 %v3080_v40, %v3079_v46 }
 0x17a   : > { %v3070_v21 = vpop.f32.mrf.mxu0  ;;  %v3082_v42 = vpop.f32.mrf.mxu1 }
 0x17b   : > { %v2705_v5 = vpack.c.bf16 %v2355_v23, %v2354_v57  ;;  %v2715_v44 = vpack.c.bf16 %v2359_v38, %v2358_v63  ;;  %v2332_v7 = vadd.f32 %v3069_v32, %v2267_v50  ;;  %v2348_v14 = vadd.f32 %v3081_v1, %v2283_v60 }
 0x17c   : > { %v3071_v59 = vpop.f32.mrf.mxu0  ;;  %v3083_v12 = vpop.f32.mrf.mxu1 }
 0x17d   : > { %2706 = vst [vmem:[%s175_s18] sm:$0xff] %v2705_v5   ;;  %v3072_v56 = vadd.f32 %v3071_v59, %v3070_v21  ;;  %2723 = vst [vmem:[%s175_s18 + $0x10] sm:$0xff] %v2715_v44   ;;  %v3084_v55 = vadd.f32 %v3083_v12, %v3082_v42  ;;  %v2356_v17 = vmax.f32 %v2332_v7, 0.0  ;;  %v2360_v22 = vmax.f32 %v2348_v14, 0.0 }
 0x17f   : > { %v2335_v41 = vadd.f32 %v3072_v56, %v2270_v61  ;;  %v2351_v16 = vadd.f32 %v3084_v55, %v2286_v13 }
 0x181   : > { %v2357_v19 = vmax.f32 %v2335_v41, 0.0  ;;  %v2361_v0 = vmax.f32 %v2351_v16, 0.0 }
 0x183   : > { %v2710_v2 = vpack.c.bf16 %v2357_v19, %v2356_v17  ;;  %v2720_v24 = vpack.c.bf16 %v2361_v0, %v2360_v22 }
 0x185   : > { %2722 = vst [vmem:[%s175_s18 + $0x8] sm:$0xff] %v2710_v2   ;;  %2724 = vst [vmem:[%s175_s18 + $0x18] sm:$0xff] %v2720_v24  }
 0x186 PF: > { %s13_s12 = sadd.s32 1, %s3368_s12  }
 0x187   : > { %p10_p4 = scmp.ge.s32.totalorder %s13_s12, 4  }
 0x189   :  { %12 = sbr.rel (!%p10_p4) target bundleno = 1 (0x1), region = 62 }

// kernel: _stage1.15
= control target key start
LH: loop header
LB: loop body
LE: loop exit
PB: predicated region body
PF: predicated region fallthrough
CT: control target
= control target key end

     0   :  { %s1435_s12 = smov 0   ;;  %s1688_s0 = inlined_call_operand.vmem [shape: bf16[32,1152], index: 0, kind: input, shape index: {}]   ;;  %s1689_s1 = inlined_call_operand.vmem [shape: bf16[1152,128], index: 1, kind: input, shape index: {}]   ;;  %s1690_s2 = inlined_call_operand.vmem [shape: f32[1,128], index: 2, kind: input, shape index: {}]   ;;  %s1691_s3 = inlined_call_operand.vmem [shape: bf16[32,128], index: 3, kind: output, shape index: {}]  }
   0x1 LB: > { %s1090_s13 = sadd.s32 4294967295, %s1411_s12   ;;  %p1094_p0 = scmp.ge.s32.totalorder %s1411_s12, 1  ;;  %s1411_s12 = sphi %s1435_s12, %s13_s12  }
   0x2   : > { %p139_p1 = scmp.lt.s32.totalorder %s1411_s12, 3 }
   0x4   : > { %p140_p2 = pnand %p1094_p0, %p139_p1 }
   0x5   : > { %s1095_s17 = sshll.u32 (!%p140_p2), %s1090_s13, 1 }
   0x6   : > { %143 = sbr.rel (%p140_p2) target bundleno = 312 (0x138), region = 32  ;;  %p165_p3 = scmp.lt.s32.totalorder (!%p140_p2), %s1095_s17, 3 }
   0xb   : > { %v1320_v0 = vld [vmem:[%s1689_s1 + $0x78] sm:$0xff]   ;;  %v1324_v4 = vld [vmem:[%s1689_s1 + $0x70] sm:$0xff]   ;;  %v1328_v8 = vld [vmem:[%s1689_s1 + $0x68] sm:$0xff]   ;;  %s1693_s17 = smov (!%p165_p3, %s1095_s17), 3  ;;  %vm1414_vm0 = vmmov 0  }
   0xc   : > { %v1321_v1 = vld [vmem:[%s1689_s1 + $0x38] sm:$0xff]   ;;  %1192 = vmatprep.subr.bf16.mxu0 %v1320_v0  ;;  %v1325_v5 = vld [vmem:[%s1689_s1 + $0x30] sm:$0xff]   ;;  %v1329_v9 = vld [vmem:[%s1689_s1 + $0x28] sm:$0xff]   ;;  %s1309_s14 = smul.u32 36, %s1693_s17 }
   0xd   : > { %v1322_v2 = vld [vmem:[%s1689_s1 + $0xf8] sm:$0xff]   ;;  %1193 = vmatpush3.bf16.msra.mxu0 %v1321_v1  ;;  %v1326_v6 = vld [vmem:[%s1689_s1 + $0xf0] sm:$0xff]   ;;  %v1330_v10 = vld [vmem:[%s1689_s1 + $0xe8] sm:$0xff]  }
   0xe   : > { %v1323_v3 = vld [vmem:[%s1689_s1 + $0xb8] sm:$0xff]   ;;  %1214 = vmatprep.subr.bf16.mxu1 %v1322_v2  ;;  %1194 = vmatprep.subr.bf16.mxu0 %v1324_v4  ;;  %v1327_v7 = vld [vmem:[%s1689_s1 + $0xb0] sm:$0xff]   ;;  %v1331_v11 = vld [vmem:[%s1689_s1 + $0xa8] sm:$0xff]   ;;  %s1538_s13 = scalar_lea.vmem %s1688_s0, %s1309_s14 }
   0xf   : > { %1215 = vmatpush3.bf16.msra.mxu1 %v1323_v3  ;;  %v1332_v12 = vld [vmem:[%s1689_s1 + $0x60] sm:$0xff]   ;;  %v1336_v16 = vld [vmem:[%s1689_s1 + $0x58] sm:$0xff]   ;;  %v1340_v20 = vld [vmem:[%s1689_s1 + $0x50] sm:$0xff]  }
  0x10   : > { %1216 = vmatprep.subr.bf16.mxu1 %v1326_v6  ;;  %v1333_v13 = vld [vmem:[%s1689_s1 + $0x20] sm:$0xff]   ;;  %v1337_v17 = vld [vmem:[%s1689_s1 + $0x18] sm:$0xff]   ;;  %v1341_v21 = vld [vmem:[%s1689_s1 + $0x10] sm:$0xff]   ;;  %v1413_v6 = vmov 0.0  }
  0x11   : > { %1195 = vmatpush3.bf16.msra.mxu0 %v1325_v5  ;;  %v1334_v14 = vld [vmem:[%s1689_s1 + $0xe0] sm:$0xff]   ;;  %v1338_v18 = vld [vmem:[%s1689_s1 + $0xd8] sm:$0xff]   ;;  %v1342_v22 = vld [vmem:[%s1689_s1 + $0xd0] sm:$0xff]  }
  0x12   : > { %1196 = vmatprep.subr.bf16.mxu0 %v1328_v8  ;;  %v1335_v15 = vld [vmem:[%s1689_s1 + $0xa0] sm:$0xff]   ;;  %v1339_v19 = vld [vmem:[%s1689_s1 + $0x98] sm:$0xff]   ;;  %v1343_v23 = vld [vmem:[%s1689_s1 + $0x90] sm:$0xff]  }
  0x13   : > { %1217 = vmatpush3.bf16.msra.mxu1 %v1327_v7  ;;  %v1344_v24 = vld [vmem:[%s1689_s1 + $0x48] sm:$0xff]   ;;  %v1348_v28 = vld [vmem:[%s1689_s1 + $0x40] sm:$0xff]   ;;  %v1355_v34 = vld [vmem:[%s1689_s1 + $0x178] sm:$0xff]  }
  0x14   : > { %1218 = vmatprep.subr.bf16.mxu1 %v1330_v10  ;;  %v1345_v25 = vld [vmem:[%s1689_s1 + $0x8] sm:$0xff]   ;;  %v1349_v29 = vld [vmem:[%s1689_s1] sm:$0xff]   ;;  %v1359_v37 = vld [vmem:[%s1689_s1 + $0x138] sm:$0xff]  }
  0x15   : > { %1197 = vmatpush3.bf16.msra.mxu0 %v1329_v9  ;;  %v1346_v26 = vld [vmem:[%s1689_s1 + $0xc8] sm:$0xff]   ;;  %v1350_v30 = vld [vmem:[%s1689_s1 + $0xc0] sm:$0xff]   ;;  %v1360_v38 = vld [vmem:[%s1689_s1 + $0x1f8] sm:$0xff]  }
  0x16   : > { %1198 = vmatprep.subr.bf16.mxu0 %v1332_v12  ;;  %v1347_v27 = vld [vmem:[%s1689_s1 + $0x88] sm:$0xff]   ;;  %v1351_v31 = vld [vmem:[%s1538_s13] ss:$36 sps:$4 sm:$0xff]   ;;  %v1361_v39 = vld [vmem:[%s1689_s1 + $0x1b8] sm:$0xff]  }
  0x17   : > { %1219 = vmatpush3.bf16.msra.mxu1 %v1331_v11  ;;  %v1353_v32 = vld [vmem:[%s1538_s13 + $0x4] ss:$36 sps:$4 sm:$0xff]   ;;  %v1358_v36 = vld [vmem:[%s1538_s13 + $0xc] ss:$36 sps:$4 sm:$0xff]   ;;  %v1374_v52 = vld [vmem:[%s1689_s1 + $0x158] sm:$0xff]  }
  0x18   : > { %1220 = vmatprep.subr.bf16.mxu1 %v1334_v14  ;;  %v1354_v33 = vld [vmem:[%s1689_s1 + $0x80] sm:$0xff]   ;;  %849 = vmatprep.mubr.bf16.mxu0 %v1353_v32  ;;  %v1356_v35 = vld [vmem:[%s1538_s13 + $0x8] ss:$36 sps:$4 sm:$0xff]   ;;  %v1362_v40 = vld [vmem:[%s1689_s1 + $0x170] sm:$0xff]  }
  0x19   : > { %1199 = vmatpush3.bf16.msra.mxu0 %v1333_v13  ;;  %890 = vmatprep.mubr.bf16.mxu1 %v1358_v36  ;;  %v1363_v41 = vld [vmem:[%s1689_s1 + $0x130] sm:$0xff]   ;;  %v1366_v44 = vld [vmem:[%s1689_s1 + $0x168] sm:$0xff]   ;;  %v1370_v48 = vld [vmem:[%s1689_s1 + $0x160] sm:$0xff]  }
  0x1a   : > { %1200 = vmatprep.subr.bf16.mxu0 %v1336_v16  ;;  %v1364_v42 = vld [vmem:[%s1689_s1 + $0x1f0] sm:$0xff]   ;;  %v1367_v45 = vld [vmem:[%s1689_s1 + $0x128] sm:$0xff]   ;;  %v1371_v49 = vld [vmem:[%s1689_s1 + $0x120] sm:$0xff]  }
  0x1b   : > { %1221 = vmatpush3.bf16.msra.mxu1 %v1335_v15  ;;  %v1365_v43 = vld [vmem:[%s1689_s1 + $0x1b0] sm:$0xff]   ;;  %v1368_v46 = vld [vmem:[%s1689_s1 + $0x1e8] sm:$0xff]   ;;  %v1372_v50 = vld [vmem:[%s1689_s1 + $0x1e0] sm:$0xff]  }
  0x1c   : > { %1222 = vmatprep.subr.bf16.mxu1 %v1338_v18  ;;  %v1369_v47 = vld [vmem:[%s1689_s1 + $0x1a8] sm:$0xff]   ;;  %v1373_v51 = vld [vmem:[%s1689_s1 + $0x1a0] sm:$0xff]   ;;  %v1375_v53 = vld [vmem:[%s1689_s1 + $0x118] sm:$0xff]  }
  0x1d   : > { %1201 = vmatpush3.bf16.msra.mxu0 %v1337_v17  ;;  %v1376_v54 = vld [vmem:[%s1689_s1 + $0x1d8] sm:$0xff]   ;;  %v1378_v56 = vld [vmem:[%s1689_s1 + $0x150] sm:$0xff]   ;;  %v1382_v60 = vld [vmem:[%s1689_s1 + $0x148] sm:$0xff]  }
  0x1e   : > { %1202 = vmatprep.subr.bf16.mxu0 %v1340_v20  ;;  %v1377_v55 = vld [vmem:[%s1689_s1 + $0x198] sm:$0xff]   ;;  %v1379_v57 = vld [vmem:[%s1689_s1 + $0x110] sm:$0xff]   ;;  %v1383_v61 = vld [vmem:[%s1689_s1 + $0x108] sm:$0xff]  }
  0x1f   : > { %1223 = vmatpush3.bf16.msra.mxu1 %v1339_v19  ;;  %v1380_v58 = vld [vmem:[%s1689_s1 + $0x1d0] sm:$0xff]   ;;  %v1384_v62 = vld [vmem:[%s1689_s1 + $0x1c8] sm:$0xff]   ;;  %v1386_v0 = vld [vmem:[%s1689_s1 + $0x140] sm:$0xff]  }
  0x20   : > { %1224 = vmatprep.subr.bf16.mxu1 %v1342_v22  ;;  %v1381_v59 = vld [vmem:[%s1689_s1 + $0x190] sm:$0xff]   ;;  %v1385_v63 = vld [vmem:[%s1689_s1 + $0x188] sm:$0xff]   ;;  %v1387_v1 = vld [vmem:[%s1689_s1 + $0x100] sm:$0xff]  }
  0x21   : > { %1203 = vmatpush3.bf16.msra.mxu0 %v1341_v21  ;;  %v1388_v2 = vld [vmem:[%s1689_s1 + $0x1c0] sm:$0xff]   ;;  %v1389_v3 = vld [vmem:[%s1538_s13 + $0x10] ss:$36 sps:$4 sm:$0xff]   ;;  %v1393_v7 = vld [vmem:[%s1538_s13 + $0x18] ss:$36 sps:$4 sm:$0xff]  }
  0x22   : > { %1204 = vmatprep.subr.bf16.mxu0 %v1344_v24  ;;  %v1391_v4 = vld [vmem:[%s1538_s13 + $0x14] ss:$36 sps:$4 sm:$0xff]   ;;  %v1392_v5 = vld [vmem:[%s1689_s1 + $0x180] sm:$0xff]   ;;  %v1398_v11 = vld [vmem:[%s1689_s1 + $0x228] sm:$0xff]  }
  0x23   : > { %1225 = vmatpush3.bf16.msra.mxu1 %v1343_v23  ;;  %v1395_v8 = vld [vmem:[%s1538_s13 + $0x1c] ss:$36 sps:$4 sm:$0xff]   ;;  %v1397_v10 = vld [vmem:[%s1689_s1 + $0x230] sm:$0xff]   ;;  %v1402_v15 = vld [vmem:[%s1689_s1 + $0x208] sm:$0xff]  }
  0x24   : > { %1226 = vmatprep.subr.bf16.mxu1 %v1346_v26  ;;  %v1396_v9 = vld [vmem:[%s1689_s1 + $0x238] sm:$0xff]   ;;  %v1399_v12 = vld [vmem:[%s1689_s1 + $0x220] sm:$0xff]   ;;  %v1401_v14 = vld [vmem:[%s1689_s1 + $0x210] sm:$0xff]  }
  0x25   : > { %1205 = vmatpush3.bf16.msra.mxu0 %v1345_v25  ;;  %v1400_v13 = vld [vmem:[%s1689_s1 + $0x218] sm:$0xff]   ;;  %v1403_v16 = vld [vmem:[%s1689_s1 + $0x200] sm:$0xff]  }
  0x26   : > { %1206 = vmatprep.subr.bf16.mxu0 %v1348_v28  ;;  %v1404_v17 = vld [vmem:[%s1538_s13 + $0x20] ss:$36 sps:$4 sm:$0xff]   ;;  %s1098_s13 = sshll.u32 %s1693_s17, 2 }
  0x27   : > { %1227 = vmatpush3.bf16.msra.mxu1 %v1347_v27  ;;  %s175_s20 = scalar_lea.vmem %s1691_s3, %s1098_s13 }
  0x28   : > { %1228 = vmatprep.subr.bf16.mxu1 %v1350_v30  ;;  %v1099_v30 = vld [vmem:[%s1690_s2] ss:$0 sm:$0xff] }
  0x29   : > { %1207 = vmatpush3.bf16.msra.mxu0 %v1349_v29 }
  0x2a   : > { %1236 = vmatprep.subr.bf16.mxu0 %v1355_v34 }
  0x2b   : > { %1229 = vmatpush3.bf16.msra.mxu1 %v1354_v33 }
  0x2c   : > { %850 = vmatmul.mubr.bf16.vlgmr.msra.gmra.mxu0 %v1351_v31  ;;  %1258 = vmatprep.subr.bf16.mxu1 %v1360_v38 }
  0x2d   : > { %1237 = vmatpush3.bf16.msra.mxu0 %v1359_v37  ;;  %931 = vmatprep.mubr.bf16.mxu0 %v1391_v4 }
  0x2e   : > { %891 = vmatmul.mubr.bf16.vlgmr.msra.gmra.mxu1 %v1356_v35  ;;  %1238 = vmatprep.subr.bf16.mxu0 %v1362_v40 }
  0x2f   : > { %1259 = vmatpush3.bf16.msra.mxu1 %v1361_v39  ;;  %972 = vmatprep.mubr.bf16.mxu1 %v1395_v8 }
  0x30   : > { %1260 = vmatprep.subr.bf16.mxu1 %v1364_v42 }
  0x31   : > { %1239 = vmatpush3.bf16.msra.mxu0 %v1363_v41 }
  0x32   : > { %1240 = vmatprep.subr.bf16.mxu0 %v1366_v44 }
  0x33   : > { %1261 = vmatpush3.bf16.msra.mxu1 %v1365_v43 }
  0x34   : > { %1262 = vmatprep.subr.bf16.mxu1 %v1368_v46 }
  0x35   : > { %1241 = vmatpush3.bf16.msra.mxu0 %v1367_v45 }
  0x36   : > { %1242 = vmatprep.subr.bf16.mxu0 %v1370_v48 }
  0x37   : > { %1263 = vmatpush3.bf16.msra.mxu1 %v1369_v47 }
  0x38   : > { %1264 = vmatprep.subr.bf16.mxu1 %v1372_v50 }
  0x39   : > { %1243 = vmatpush3.bf16.msra.mxu0 %v1371_v49 }
  0x3a   : > { %1244 = vmatprep.subr.bf16.mxu0 %v1374_v52 }
  0x3b   : > { %1265 = vmatpush3.bf16.msra.mxu1 %v1373_v51 }
  0x3c   : > { %1266 = vmatprep.subr.bf16.mxu1 %v1376_v54 }
  0x3d   : > { %1245 = vmatpush3.bf16.msra.mxu0 %v1375_v53 }
  0x3e   : > { %1246 = vmatprep.subr.bf16.mxu0 %v1378_v56 }
  0x3f   : > { %1267 = vmatpush3.bf16.msra.mxu1 %v1377_v55 }
  0x40   : > { %1268 = vmatprep.subr.bf16.mxu1 %v1380_v58 }
  0x41   : > { %1247 = vmatpush3.bf16.msra.mxu0 %v1379_v57 }
  0x42   : > { %1248 = vmatprep.subr.bf16.mxu0 %v1382_v60 }
  0x43   : > { %1269 = vmatpush3.bf16.msra.mxu1 %v1381_v59 }
  0x44   : > { %1270 = vmatprep.subr.bf16.mxu1 %v1384_v62 }
  0x45   : > { %1249 = vmatpush3.bf16.msra.mxu0 %v1383_v61 }
  0x46   : > { %1250 = vmatprep.subr.bf16.mxu0 %v1386_v0 }
  0x47   : > { %1271 = vmatpush3.bf16.msra.mxu1 %v1385_v63 }
  0x48   : > { %1272 = vmatprep.subr.bf16.mxu1 %v1388_v2 }
  0x49   : > { %1251 = vmatpush3.bf16.msra.mxu0 %v1387_v1 }
  0x4a   : > { %1289 = vmatprep.subr.bf16.mxu0 %v1413_v6 }
  0x4b   : > { %1273 = vmatpush3.bf16.msra.mxu1 %v1392_v5 }
  0x4c   : > { %932 = vmatmul.mubr.bf16.vlgmr.msra.gmra.mxu0 %v1389_v3 }
  0x4d   : > { %1305 = vmatprep.mubr.msk.bf16.mxu0 %vm1414_vm0, %v1413_v6  ;;  %1290 = vmatpush3.bf16.msra.mxu0 %v1396_v9 }
  0x4e   : > { %973 = vmatmul.mubr.bf16.vlgmr.msra.gmra.mxu1 %v1393_v7  ;;  %1291 = vmatprep.subr.bf16.mxu0 %v1413_v6 }
  0x51   : > { %1292 = vmatpush3.bf16.msra.mxu0 %v1397_v10 }
  0x52   : > { %1293 = vmatprep.subr.bf16.mxu0 %v1413_v6 }
  0x55   : > { %1294 = vmatpush3.bf16.msra.mxu0 %v1398_v11 }
  0x56   : > { %1295 = vmatprep.subr.bf16.mxu0 %v1413_v6 }
  0x59   : > { %1296 = vmatpush3.bf16.msra.mxu0 %v1399_v12 }
  0x5a   : > { %1297 = vmatprep.subr.bf16.mxu0 %v1413_v6 }
  0x5d   : > { %1298 = vmatpush3.bf16.msra.mxu0 %v1400_v13 }
  0x5e   : > { %1299 = vmatprep.subr.bf16.mxu0 %v1413_v6 }
  0x61   : > { %1300 = vmatpush3.bf16.msra.mxu0 %v1401_v14 }
  0x62   : > { %1301 = vmatprep.subr.bf16.mxu0 %v1413_v6 }
  0x65   : > { %1302 = vmatpush3.bf16.msra.mxu0 %v1402_v15 }
  0x66   : > { %1303 = vmatprep.subr.bf16.mxu0 %v1413_v6 }
  0x69   : > { %1304 = vmatpush3.bf16.msra.mxu0 %v1403_v16 }
  0x6c   : > { %1306 = vmatmul.mubr.bf16.vlgmr.msra.gmra.mxu0 %v1404_v17 }
  0xec   : > { %v1208_v18 = vpop.f32.mrf.mxu0 }
  0xee   : > { %v1209_v19 = vpop.f32.mrf.mxu0  ;;  %v1230_v20 = vpop.f32.mrf.mxu1 }
  0xef   : > { %v1210_v29 = vadd.f32 %v1209_v19, %v1208_v18 }
  0xf0   : > { %v1211_v21 = vpop.f32.mrf.mxu0  ;;  %v1231_v22 = vpop.f32.mrf.mxu1 }
  0xf1   : > { %v852_v34 = vadd.f32 %v1210_v29, %v1099_v30  ;;  %v1232_v35 = vadd.f32 %v1231_v22, %v1230_v20 }
  0xf2   : > { %v1212_v23 = vpop.f32.mrf.mxu0  ;;  %v1233_v24 = vpop.f32.mrf.mxu1 }
  0xf3   : > { %v1213_v33 = vadd.f32 %v1212_v23, %v1211_v21  ;;  %v893_v41 = vadd.f32 %v1232_v35, %v852_v34 }
  0xf4   : > { %v1234_v26 = vpop.f32.mrf.mxu1 }
  0xf5   : > { %v855_v38 = vadd.f32 %v1213_v33, %v1099_v30  ;;  %v1235_v39 = vadd.f32 %v1234_v26, %v1233_v24 }
  0xf7   : > { %v896_v44 = vadd.f32 %v1235_v39, %v855_v38 }
 0x10c   : > { %v1252_v25 = vpop.f32.mrf.mxu0 }
 0x10e   : > { %v1253_v27 = vpop.f32.mrf.mxu0  ;;  %v1274_v28 = vpop.f32.mrf.mxu1 }
 0x10f   : > { %v1254_v40 = vadd.f32 %v1253_v27, %v1252_v25 }
 0x110   : > { %v1255_v31 = vpop.f32.mrf.mxu0  ;;  %v1275_v32 = vpop.f32.mrf.mxu1 }
 0x111   : > { %v934_v45 = vadd.f32 %v1254_v40, %v893_v41  ;;  %v1276_v46 = vadd.f32 %v1275_v32, %v1274_v28 }
 0x112   : > { %v1256_v36 = vpop.f32.mrf.mxu0  ;;  %v1277_v37 = vpop.f32.mrf.mxu1 }
 0x113   : > { %v1257_v42 = vadd.f32 %v1256_v36, %v1255_v31  ;;  %v975_v50 = vadd.f32 %v1276_v46, %v934_v45 }
 0x114   : > { %v1278_v43 = vpop.f32.mrf.mxu1 }
 0x115   : > { %v937_v47 = vadd.f32 %v1257_v42, %v896_v44  ;;  %v1279_v48 = vadd.f32 %v1278_v43, %v1277_v37 }
 0x117   : > { %v978_v53 = vadd.f32 %v1279_v48, %v937_v47 }
 0x12c   : > { %v1015_v49 = vpop.f32.mrf.mxu0 }
 0x12d   : > { %v1016_v52 = vadd.f32 %v1015_v49, %v975_v50 }
 0x12e   : > { %v1307_v51 = vpop.f32.mrf.mxu0 }
 0x12f   : > { %v1022_v57 = vmax.f32 %v1016_v52, 0.0 }
 0x130   : > { %v1018_v54 = vpop.f32.mrf.mxu0 }
 0x131   : > { %v1019_v55 = vadd.f32 %v1018_v54, %v978_v53 }
 0x132   : > { %v1308_v56 = vpop.f32.mrf.mxu0 }
 0x133   : > { %v1023_v58 = vmax.f32 %v1019_v55, 0.0 }
 0x135   : > { %v1190_v59 = vpack.c.bf16 %v1023_v58, %v1022_v57 }
 0x137   : > { %1191 = vst [vmem:[%s175_s20] sm:$0xff] %v1190_v59  }
 0x138 PF: > { %s13_s12 = sadd.s32 1, %s1411_s12  }
 0x139   : > { %p10_p4 = scmp.ge.s32.totalorder %s13_s12, 4  }
 0x13b   :  { %12 = sbr.rel (!%p10_p4) target bundleno = 1 (0x1), region = 62 }

// kernel: _stage1.19
= control target key start
LH: loop header
LB: loop body
LE: loop exit
PB: predicated region body
PF: predicated region fallthrough
CT: control target
= control target key end

     0   :  { %v180_v0 = vmov 0.0   ;;  %vm181_vm0 = vmmov 0   ;;  %s235_s1 = inlined_call_operand.vmem [shape: bf16[128,128], index: 1, kind: input, shape index: {}]   ;;  %s236_s0 = inlined_call_operand.vmem [shape: bf16[8,128], index: 0, kind: input, shape index: {}]   ;;  %s237_s2 = inlined_call_operand.vmem [shape: f32[1,128], index: 2, kind: input, shape index: {}]   ;;  %s238_s3 = inlined_call_operand.vmem [shape: f32[8,128], index: 3, kind: output, shape index: {}]  }
   0x1   :  { %150 = vmatprep.subr.bf16.mxu0 %v180_v0  ;;  %v172_v1 = vld [vmem:[%s235_s1 + $0x38] sm:$0xff]   ;;  %166 = vmatprep.mubr.msk.bf16.mxu0 %vm181_vm0, %v180_v0  ;;  %v173_v2 = vld [vmem:[%s235_s1 + $0x30] sm:$0xff]   ;;  %v174_v3 = vld [vmem:[%s235_s1 + $0x28] sm:$0xff]  }
   0x2   :  { %151 = vmatpush3.bf16.msra.mxu0 %v172_v1  ;;  %v175_v4 = vld [vmem:[%s235_s1 + $0x20] sm:$0xff]   ;;  %v176_v5 = vld [vmem:[%s235_s1 + $0x18] sm:$0xff]   ;;  %v177_v6 = vld [vmem:[%s235_s1 + $0x10] sm:$0xff]  }
   0x3   :  { %152 = vmatprep.subr.bf16.mxu0 %v180_v0  ;;  %v178_v7 = vld [vmem:[%s235_s1 + $0x8] sm:$0xff]   ;;  %v179_v8 = vld [vmem:[%s235_s1] sm:$0xff]  }
   0x4   :  { %v15_v9 = vld [vmem:[%s236_s0] sm:$0xf] }
   0x5   :  { %v132_v10 = vld [vmem:[%s237_s2] ss:$0 sm:$0xff] }
   0x6   :  { %153 = vmatpush3.bf16.msra.mxu0 %v173_v2 }
   0x7   :  { %154 = vmatprep.subr.bf16.mxu0 %v180_v0 }
   0xa   :  { %155 = vmatpush3.bf16.msra.mxu0 %v174_v3 }
   0xb   :  { %156 = vmatprep.subr.bf16.mxu0 %v180_v0 }
   0xe   :  { %157 = vmatpush3.bf16.msra.mxu0 %v175_v4 }
   0xf   :  { %158 = vmatprep.subr.bf16.mxu0 %v180_v0 }
  0x12   :  { %159 = vmatpush3.bf16.msra.mxu0 %v176_v5 }
  0x13   :  { %160 = vmatprep.subr.bf16.mxu0 %v180_v0 }
  0x16   :  { %161 = vmatpush3.bf16.msra.mxu0 %v177_v6 }
  0x17   :  { %162 = vmatprep.subr.bf16.mxu0 %v180_v0 }
  0x1a   :  { %163 = vmatpush3.bf16.msra.mxu0 %v178_v7 }
  0x1b   :  { %164 = vmatprep.subr.bf16.mxu0 %v180_v0 }
  0x1e   :  { %165 = vmatpush3.bf16.msra.mxu0 %v179_v8 }
  0x21   :  { %167 = vmatmul.mubr.bf16.vlgmr.msra.gmra.mxu0 %v15_v9 }
  0xe1   :  { %v121_v11 = vpop.f32.mrf.mxu0 }
  0xe2   :  { %v122_v12 = vadd.f32 %v132_v10, %v121_v11 }
  0xe3   :  { %v168_v13 = vpop.f32.mrf.mxu0 }
  0xe4   :  { %127 = vst [vmem:[%s238_s3] sm:$0xff] %v122_v12 }
  0xe5   :  { %v124_v14 = vpop.f32.mrf.mxu0 }
  0xe7   :  { %v169_v15 = vpop.f32.mrf.mxu0 }

// kernel: _stage1.18
= control target key start
LH: loop header
LB: loop body
LE: loop exit
PB: predicated region body
PF: predicated region fallthrough
CT: control target
= control target key end

     0   :  { %s452_s12 = smov 0   ;;  %s496_s0 = inlined_call_operand.vmem [shape: bf16[32,128], index: 0, kind: input, shape index: {}]   ;;  %s497_s1 = inlined_call_operand.vmem [shape: bf16[128,128], index: 1, kind: input, shape index: {}]   ;;  %s498_s2 = inlined_call_operand.vmem [shape: f32[1,128], index: 2, kind: input, shape index: {}]   ;;  %s499_s3 = inlined_call_operand.vmem [shape: f32[32,128], index: 3, kind: output, shape index: {}]  }
   0x1 LB: > { %s353_s13 = sadd.s32 4294967295, %s428_s12   ;;  %p357_p0 = scmp.ge.s32.totalorder %s428_s12, 1  ;;  %s428_s12 = sphi %s452_s12, %s13_s12  }
   0x2   : > { %p138_p1 = scmp.lt.s32.totalorder %s428_s12, 3 }
   0x4   : > { %p139_p2 = pnand %p357_p0, %p138_p1 }
   0x5   : > { %s358_s18 = sshll.u32 (!%p139_p2), %s353_s13, 1 }
   0x6   : > { %142 = sbr.rel (%p139_p2) target bundleno = 244 (0xf4), region = 32  ;;  %p163_p3 = scmp.lt.s32.totalorder (!%p139_p2), %s358_s18, 3 }
   0xb   : > { %v413_v0 = vld [vmem:[%s497_s1 + $0x38] sm:$0xff]   ;;  %v430_v1 = vmov 0.0   ;;  %v414_v2 = vld [vmem:[%s497_s1 + $0x30] sm:$0xff]   ;;  %vm431_vm0 = vmmov 0   ;;  %s501_s18 = smov (!%p163_p3, %s358_s18), 3  ;;  %v415_v3 = vld [vmem:[%s497_s1 + $0x28] sm:$0xff]  }
   0xc   : > { %383 = vmatprep.subr.bf16.mxu0 %v430_v1  ;;  %399 = vmatprep.mubr.msk.bf16.mxu0 %vm431_vm0, %v430_v1  ;;  %s359_s21 = sshll.u32 %s501_s18, 2  ;;  %v416_v4 = vld [vmem:[%s497_s1 + $0x20] sm:$0xff]   ;;  %v417_v5 = vld [vmem:[%s497_s1 + $0x18] sm:$0xff]   ;;  %v418_v6 = vld [vmem:[%s497_s1 + $0x10] sm:$0xff]   ;;  %s361_s8 = sshll.u32 %s501_s18, 3 }
   0xd   : > { %384 = vmatpush3.bf16.msra.mxu0 %v413_v0  ;;  %s166_s24 = scalar_lea.vmem %s496_s0, %s359_s21  ;;  %v419_v7 = vld [vmem:[%s497_s1 + $0x8] sm:$0xff]   ;;  %v420_v8 = vld [vmem:[%s497_s1] sm:$0xff]   ;;  %s172_s14 = scalar_lea.vmem %s499_s3, %s361_s8 }
   0xe   : > { %385 = vmatprep.subr.bf16.mxu0 %v430_v1  ;;  %v421_v9 = vld [vmem:[%s166_s24] sm:$0xff]  }
   0xf   : > { %v362_v10 = vld [vmem:[%s498_s2] ss:$0 sm:$0xff] }
  0x11   : > { %386 = vmatpush3.bf16.msra.mxu0 %v414_v2 }
  0x12   : > { %387 = vmatprep.subr.bf16.mxu0 %v430_v1 }
  0x15   : > { %388 = vmatpush3.bf16.msra.mxu0 %v415_v3 }
  0x16   : > { %389 = vmatprep.subr.bf16.mxu0 %v430_v1 }
  0x19   : > { %390 = vmatpush3.bf16.msra.mxu0 %v416_v4 }
  0x1a   : > { %391 = vmatprep.subr.bf16.mxu0 %v430_v1 }
  0x1d   : > { %392 = vmatpush3.bf16.msra.mxu0 %v417_v5 }
  0x1e   : > { %393 = vmatprep.subr.bf16.mxu0 %v430_v1 }
  0x21   : > { %394 = vmatpush3.bf16.msra.mxu0 %v418_v6 }
  0x22   : > { %395 = vmatprep.subr.bf16.mxu0 %v430_v1 }
  0x25   : > { %396 = vmatpush3.bf16.msra.mxu0 %v419_v7 }
  0x26   : > { %397 = vmatprep.subr.bf16.mxu0 %v430_v1 }
  0x29   : > { %398 = vmatpush3.bf16.msra.mxu0 %v420_v8 }
  0x2c   : > { %400 = vmatmul.mubr.bf16.vlgmr.msra.gmra.mxu0 %v421_v9 }
  0xec   : > { %v288_v11 = vpop.f32.mrf.mxu0 }
  0xed   : > { %v289_v12 = vadd.f32 %v362_v10, %v288_v11 }
  0xee   : > { %v401_v13 = vpop.f32.mrf.mxu0 }
  0xef   : > { %295 = vst [vmem:[%s172_s14] sm:$0xff] %v289_v12 }
  0xf0   : > { %v291_v14 = vpop.f32.mrf.mxu0 }
  0xf1   : > { %v292_v15 = vadd.f32 %v362_v10, %v291_v14 }
  0xf2   : > { %v402_v16 = vpop.f32.mrf.mxu0 }
  0xf3   : > { %296 = vst [vmem:[%s172_s14 + $0x8] sm:$0xff] %v292_v15 }
  0xf4 PF: > { %s13_s12 = sadd.s32 1, %s428_s12  }
  0xf5   : > { %p10_p4 = scmp.ge.s32.totalorder %s13_s12, 4  }
  0xf7   :  { %12 = sbr.rel (!%p10_p4) target bundleno = 1 (0x1), region = 62 }

// kernel: _stage1.17
= control target key start
LH: loop header
LB: loop body
LE: loop exit
PB: predicated region body
PF: predicated region fallthrough
CT: control target
= control target key end

     0   :  { %s531_s12 = smov 0   ;;  %s585_s0 = inlined_call_operand.vmem [shape: bf16[128,128], index: 0, kind: input, shape index: {}]   ;;  %s586_s1 = inlined_call_operand.vmem [shape: bf16[128,128], index: 1, kind: input, shape index: {}]   ;;  %s587_s2 = inlined_call_operand.vmem [shape: f32[1,128], index: 2, kind: input, shape index: {}]   ;;  %s588_s3 = inlined_call_operand.vmem [shape: f32[128,128], index: 3, kind: output, shape index: {}]  }
   0x1 LB: > { %s407_s13 = sadd.s32 4294967295, %s509_s12   ;;  %p411_p0 = scmp.ge.s32.totalorder %s509_s12, 1  ;;  %s509_s12 = sphi %s531_s12, %s13_s12  }
   0x2   : > { %p138_p1 = scmp.lt.s32.totalorder %s509_s12, 3 }
   0x4   : > { %p139_p2 = pnand %p411_p0, %p138_p1 }
   0x5   : > { %s412_s16 = sshll.u32 (!%p139_p2), %s407_s13, 3 }
   0x6   : > { %142 = sbr.rel (%p139_p2) target bundleno = 246 (0xf6), region = 32  ;;  %p163_p3 = scmp.lt.s32.totalorder (!%p139_p2), %s412_s16, 15 }
   0xb   : > { %v491_v0 = vld [vmem:[%s586_s1 + $0x38] sm:$0xff]   ;;  %v492_v1 = vld [vmem:[%s586_s1 + $0x30] sm:$0xff]   ;;  %s590_s16 = smov (!%p163_p3, %s412_s16), 15  ;;  %v493_v2 = vld [vmem:[%s586_s1 + $0x28] sm:$0xff]  }
   0xc   : > { %443 = vmatprep.subr.bf16.mxu0 %v491_v0  ;;  %467 = vmatprep.subr.bf16.mxu1 %v491_v0  ;;  %s413_s21 = sshll.u32 %s590_s16, 2  ;;  %v494_v3 = vld [vmem:[%s586_s1 + $0x20] sm:$0xff]   ;;  %v495_v6 = vld [vmem:[%s586_s1 + $0x18] sm:$0xff]   ;;  %v496_v7 = vld [vmem:[%s586_s1 + $0x10] sm:$0xff]   ;;  %s415_s8 = sshll.u32 %s590_s16, 3 }
   0xd   : > { %444 = vmatpush3.bf16.msra.mxu0 %v491_v0  ;;  %475 = vmatpush3.bf16.msra.mxu1 %v491_v0  ;;  %s554_s24 = scalar_lea.vmem %s585_s0, %s413_s21  ;;  %v497_v8 = vld [vmem:[%s586_s1 + $0x8] sm:$0xff]   ;;  %v498_v9 = vld [vmem:[%s586_s1] sm:$0xff]   ;;  %s172_s14 = scalar_lea.vmem %s588_s3, %s415_s8 }
   0xe   : > { %445 = vmatprep.subr.bf16.mxu0 %v492_v1  ;;  %468 = vmatprep.subr.bf16.mxu1 %v492_v1  ;;  %v499_v4 = vld [vmem:[%s554_s24] sm:$0xff]   ;;  %v500_v5 = vld [vmem:[%s554_s24 + $0x10] sm:$0xff]   ;;  %v501_v10 = vld [vmem:[%s554_s24 + $0x8] sm:$0xff]  }
   0xf   : > { %459 = vmatprep.mubr.bf16.mxu0 %v499_v4  ;;  %463 = vmatprep.mubr.bf16.mxu1 %v500_v5  ;;  %v502_v11 = vld [vmem:[%s554_s24 + $0x18] sm:$0xff]   ;;  %v416_v12 = vld [vmem:[%s587_s2] ss:$0 sm:$0xff] }
  0x11   : > { %446 = vmatpush3.bf16.msra.mxu0 %v492_v1  ;;  %476 = vmatpush3.bf16.msra.mxu1 %v492_v1 }
  0x12   : > { %447 = vmatprep.subr.bf16.mxu0 %v493_v2  ;;  %469 = vmatprep.subr.bf16.mxu1 %v493_v2 }
  0x15   : > { %448 = vmatpush3.bf16.msra.mxu0 %v493_v2  ;;  %477 = vmatpush3.bf16.msra.mxu1 %v493_v2 }
  0x16   : > { %449 = vmatprep.subr.bf16.mxu0 %v494_v3  ;;  %470 = vmatprep.subr.bf16.mxu1 %v494_v3 }
  0x19   : > { %450 = vmatpush3.bf16.msra.mxu0 %v494_v3  ;;  %478 = vmatpush3.bf16.msra.mxu1 %v494_v3 }
  0x1a   : > { %451 = vmatprep.subr.bf16.mxu0 %v495_v6  ;;  %471 = vmatprep.subr.bf16.mxu1 %v495_v6 }
  0x1d   : > { %452 = vmatpush3.bf16.msra.mxu0 %v495_v6  ;;  %479 = vmatpush3.bf16.msra.mxu1 %v495_v6 }
  0x1e   : > { %453 = vmatprep.subr.bf16.mxu0 %v496_v7  ;;  %472 = vmatprep.subr.bf16.mxu1 %v496_v7 }
  0x21   : > { %454 = vmatpush3.bf16.msra.mxu0 %v496_v7  ;;  %480 = vmatpush3.bf16.msra.mxu1 %v496_v7 }
  0x22   : > { %455 = vmatprep.subr.bf16.mxu0 %v497_v8  ;;  %473 = vmatprep.subr.bf16.mxu1 %v497_v8 }
  0x25   : > { %456 = vmatpush3.bf16.msra.mxu0 %v497_v8  ;;  %481 = vmatpush3.bf16.msra.mxu1 %v497_v8 }
  0x26   : > { %457 = vmatprep.subr.bf16.mxu0 %v498_v9  ;;  %474 = vmatprep.subr.bf16.mxu1 %v498_v9 }
  0x29   : > { %458 = vmatpush3.bf16.msra.mxu0 %v498_v9  ;;  %482 = vmatpush3.bf16.msra.mxu1 %v498_v9 }
  0x2c   : > { %460 = vmatmul.mubr.bf16.vlgmr.msra.gmra.mxu0 %v501_v10  ;;  %464 = vmatmul.mubr.bf16.vlgmr.msra.gmra.mxu1 %v502_v11 }
  0xec   : > { %v461_v13 = vpop.f32.mrf.mxu0  ;;  %v465_v14 = vpop.f32.mrf.mxu1 }
  0xed   : > { %v321_v15 = vadd.f32 %v461_v13, %v416_v12  ;;  %v337_v16 = vadd.f32 %v465_v14, %v416_v12 }
  0xee   : > { %v312_v17 = vpop.f32.mrf.mxu0  ;;  %v328_v18 = vpop.f32.mrf.mxu1 }
  0xef   : > { %345 = vst [vmem:[%s172_s14 + $0x10] sm:$0xff] %v321_v15  ;;  %349 = vst [vmem:[%s172_s14 + $0x30] sm:$0xff] %v337_v16  ;;  %v313_v19 = vadd.f32 %v416_v12, %v312_v17  ;;  %v329_v20 = vadd.f32 %v416_v12, %v328_v18 }
  0xf0   : > { %v462_v21 = vpop.f32.mrf.mxu0  ;;  %v466_v22 = vpop.f32.mrf.mxu1 }
  0xf1   : > { %343 = vst [vmem:[%s172_s14] sm:$0xff] %v313_v19  ;;  %347 = vst [vmem:[%s172_s14 + $0x20] sm:$0xff] %v329_v20  ;;  %v324_v23 = vadd.f32 %v462_v21, %v416_v12  ;;  %v340_v24 = vadd.f32 %v466_v22, %v416_v12 }
  0xf2   : > { %v315_v25 = vpop.f32.mrf.mxu0  ;;  %v331_v26 = vpop.f32.mrf.mxu1 }
  0xf3   : > { %346 = vst [vmem:[%s172_s14 + $0x18] sm:$0xff] %v324_v23  ;;  %350 = vst [vmem:[%s172_s14 + $0x38] sm:$0xff] %v340_v24  ;;  %v316_v27 = vadd.f32 %v416_v12, %v315_v25  ;;  %v332_v28 = vadd.f32 %v416_v12, %v331_v26 }
  0xf5   : > { %344 = vst [vmem:[%s172_s14 + $0x8] sm:$0xff] %v316_v27  ;;  %348 = vst [vmem:[%s172_s14 + $0x28] sm:$0xff] %v332_v28 }
  0xf6 PF: > { %s13_s12 = sadd.s32 1, %s509_s12  }
  0xf7   : > { %p10_p4 = scmp.ge.s32.totalorder %s13_s12, 4  }
  0xf9   :  { %12 = sbr.rel (!%p10_p4) target bundleno = 1 (0x1), region = 62 }

// kernel: _stage1.16
= control target key start
LH: loop header
LB: loop body
LE: loop exit
PB: predicated region body
PF: predicated region fallthrough
CT: control target
= control target key end

     0   :  { %vm1125_vm0 = vmmov 0   ;;  %s1383_s1 = inlined_call_operand.vmem [shape: bf16[1152,128], index: 1, kind: input, shape index: {}]   ;;  %s1384_s0 = inlined_call_operand.vmem [shape: bf16[8,1152], index: 0, kind: input, shape index: {}]   ;;  %s1385_s2 = inlined_call_operand.vmem [shape: f32[1,128], index: 2, kind: input, shape index: {}]   ;;  %s1386_s3 = inlined_call_operand.vmem [shape: bf16[8,128], index: 3, kind: output, shape index: {}]  }
   0x1   :  { %v1043_v0 = vld [vmem:[%s1383_s1 + $0x78] sm:$0xff]   ;;  %v1047_v4 = vld [vmem:[%s1383_s1 + $0x70] sm:$0xff]   ;;  %v1051_v8 = vld [vmem:[%s1383_s1 + $0x68] sm:$0xff]  }
   0x2   :  { %v1044_v1 = vld [vmem:[%s1383_s1 + $0x38] sm:$0xff]   ;;  %924 = vmatprep.subr.bf16.mxu0 %v1043_v0  ;;  %v1048_v5 = vld [vmem:[%s1383_s1 + $0x30] sm:$0xff]   ;;  %v1052_v9 = vld [vmem:[%s1383_s1 + $0x28] sm:$0xff]  }
   0x3   :  { %v1045_v2 = vld [vmem:[%s1383_s1 + $0xf8] sm:$0xff]   ;;  %925 = vmatpush3.bf16.msra.mxu0 %v1044_v1  ;;  %v1049_v6 = vld [vmem:[%s1383_s1 + $0xf0] sm:$0xff]   ;;  %v1053_v10 = vld [vmem:[%s1383_s1 + $0xe8] sm:$0xff]  }
   0x4   :  { %v1046_v3 = vld [vmem:[%s1383_s1 + $0xb8] sm:$0xff]   ;;  %946 = vmatprep.subr.bf16.mxu1 %v1045_v2  ;;  %926 = vmatprep.subr.bf16.mxu0 %v1047_v4  ;;  %v1050_v7 = vld [vmem:[%s1383_s1 + $0xb0] sm:$0xff]   ;;  %v1054_v11 = vld [vmem:[%s1383_s1 + $0xa8] sm:$0xff]  }
   0x5   :  { %947 = vmatpush3.bf16.msra.mxu1 %v1046_v3  ;;  %v1055_v12 = vld [vmem:[%s1383_s1 + $0x60] sm:$0xff]   ;;  %v1059_v16 = vld [vmem:[%s1383_s1 + $0x58] sm:$0xff]   ;;  %v1063_v20 = vld [vmem:[%s1383_s1 + $0x50] sm:$0xff]  }
   0x6   :  { %948 = vmatprep.subr.bf16.mxu1 %v1049_v6  ;;  %v1056_v13 = vld [vmem:[%s1383_s1 + $0x20] sm:$0xff]   ;;  %v1060_v17 = vld [vmem:[%s1383_s1 + $0x18] sm:$0xff]   ;;  %v1064_v21 = vld [vmem:[%s1383_s1 + $0x10] sm:$0xff]  }
   0x7   :  { %927 = vmatpush3.bf16.msra.mxu0 %v1048_v5  ;;  %v1057_v14 = vld [vmem:[%s1383_s1 + $0xe0] sm:$0xff]   ;;  %v1061_v18 = vld [vmem:[%s1383_s1 + $0xd8] sm:$0xff]   ;;  %v1065_v22 = vld [vmem:[%s1383_s1 + $0xd0] sm:$0xff]  }
   0x8   :  { %928 = vmatprep.subr.bf16.mxu0 %v1051_v8  ;;  %v1058_v15 = vld [vmem:[%s1383_s1 + $0xa0] sm:$0xff]   ;;  %v1062_v19 = vld [vmem:[%s1383_s1 + $0x98] sm:$0xff]   ;;  %v1066_v23 = vld [vmem:[%s1383_s1 + $0x90] sm:$0xff]  }
   0x9   :  { %949 = vmatpush3.bf16.msra.mxu1 %v1050_v7  ;;  %v1067_v24 = vld [vmem:[%s1383_s1 + $0x48] sm:$0xff]   ;;  %v1071_v28 = vld [vmem:[%s1383_s1 + $0x40] sm:$0xff]   ;;  %v1077_v35 = vld [vmem:[%s1383_s1 + $0x178] sm:$0xff]  }
   0xa   :  { %950 = vmatprep.subr.bf16.mxu1 %v1053_v10  ;;  %v1068_v25 = vld [vmem:[%s1383_s1 + $0x8] sm:$0xff]   ;;  %v1072_v29 = vld [vmem:[%s1383_s1] sm:$0xff]   ;;  %v1080_v39 = vld [vmem:[%s1383_s1 + $0x138] sm:$0xff]  }
   0xb   :  { %929 = vmatpush3.bf16.msra.mxu0 %v1052_v9  ;;  %v1069_v26 = vld [vmem:[%s1383_s1 + $0xc8] sm:$0xff]   ;;  %v1073_v30 = vld [vmem:[%s1383_s1 + $0xc0] sm:$0xff]   ;;  %v1081_v40 = vld [vmem:[%s1383_s1 + $0x1f8] sm:$0xff]   ;;  %v1124_v9 = vmov 0.0  }
   0xc   :  { %930 = vmatprep.subr.bf16.mxu0 %v1055_v12  ;;  %v1070_v27 = vld [vmem:[%s1383_s1 + $0x88] sm:$0xff]   ;;  %v15_v31 = vld [vmem:[%s1384_s0] sm:$0xff]  ;;  %v1082_v41 = vld [vmem:[%s1383_s1 + $0x1b8] sm:$0xff]  }
   0xd   :  { %951 = vmatpush3.bf16.msra.mxu1 %v1054_v11  ;;  %v843_v32 = vcombine.low %v15_v31, %v15_v31  ;;  %v844_v33 = vcombine.high %v15_v31, %v15_v31  ;;  %v1076_v34 = vld [vmem:[%s1383_s1 + $0x80] sm:$0xff]   ;;  %v16_v36 = vld [vmem:[%s1384_s0 + $0x8] sm:$0xff]  ;;  %v1083_v42 = vld [vmem:[%s1383_s1 + $0x170] sm:$0xff]  }
   0xe   :  { %952 = vmatprep.subr.bf16.mxu1 %v1057_v14  ;;  %v845_v37 = vcombine.low %v16_v36, %v16_v36  ;;  %v846_v38 = vcombine.high %v16_v36, %v16_v36  ;;  %v1084_v43 = vld [vmem:[%s1383_s1 + $0x130] sm:$0xff]   ;;  %v1087_v46 = vld [vmem:[%s1383_s1 + $0x168] sm:$0xff]   ;;  %v1091_v50 = vld [vmem:[%s1383_s1 + $0x160] sm:$0xff]  }
   0xf   :  { %931 = vmatpush3.bf16.msra.mxu0 %v1056_v13  ;;  %667 = vmatprep.mubr.bf16.mxu0 %v844_v33  ;;  %v1085_v44 = vld [vmem:[%s1383_s1 + $0x1f0] sm:$0xff]   ;;  %v1088_v47 = vld [vmem:[%s1383_s1 + $0x128] sm:$0xff]   ;;  %v1092_v51 = vld [vmem:[%s1383_s1 + $0x120] sm:$0xff]  }
  0x10   :  { %932 = vmatprep.subr.bf16.mxu0 %v1059_v16  ;;  %707 = vmatprep.mubr.bf16.mxu1 %v846_v38  ;;  %v1086_v45 = vld [vmem:[%s1383_s1 + $0x1b0] sm:$0xff]   ;;  %v1089_v48 = vld [vmem:[%s1383_s1 + $0x1e8] sm:$0xff]   ;;  %v1093_v52 = vld [vmem:[%s1383_s1 + $0x1e0] sm:$0xff]  }
  0x11   :  { %953 = vmatpush3.bf16.msra.mxu1 %v1058_v15  ;;  %v1090_v49 = vld [vmem:[%s1383_s1 + $0x1a8] sm:$0xff]   ;;  %v1094_v53 = vld [vmem:[%s1383_s1 + $0x1a0] sm:$0xff]   ;;  %v1095_v54 = vld [vmem:[%s1383_s1 + $0x158] sm:$0xff]  }
  0x12   :  { %954 = vmatprep.subr.bf16.mxu1 %v1061_v18  ;;  %v1096_v55 = vld [vmem:[%s1383_s1 + $0x118] sm:$0xff]   ;;  %v1099_v58 = vld [vmem:[%s1383_s1 + $0x150] sm:$0xff]   ;;  %v1103_v62 = vld [vmem:[%s1383_s1 + $0x148] sm:$0xff]  }
  0x13   :  { %933 = vmatpush3.bf16.msra.mxu0 %v1060_v17  ;;  %v1097_v56 = vld [vmem:[%s1383_s1 + $0x1d8] sm:$0xff]   ;;  %v1100_v59 = vld [vmem:[%s1383_s1 + $0x110] sm:$0xff]   ;;  %v1104_v63 = vld [vmem:[%s1383_s1 + $0x108] sm:$0xff]  }
  0x14   :  { %934 = vmatprep.subr.bf16.mxu0 %v1063_v20  ;;  %v1098_v57 = vld [vmem:[%s1383_s1 + $0x198] sm:$0xff]   ;;  %v1101_v60 = vld [vmem:[%s1383_s1 + $0x1d0] sm:$0xff]   ;;  %v1105_v0 = vld [vmem:[%s1383_s1 + $0x1c8] sm:$0xff]  }
  0x15   :  { %955 = vmatpush3.bf16.msra.mxu1 %v1062_v19  ;;  %v1102_v61 = vld [vmem:[%s1383_s1 + $0x190] sm:$0xff]   ;;  %v1106_v1 = vld [vmem:[%s1383_s1 + $0x188] sm:$0xff]   ;;  %v1107_v2 = vld [vmem:[%s1383_s1 + $0x140] sm:$0xff]  }
  0x16   :  { %956 = vmatprep.subr.bf16.mxu1 %v1065_v22  ;;  %v1108_v3 = vld [vmem:[%s1383_s1 + $0x100] sm:$0xff]   ;;  %v17_v5 = vld [vmem:[%s1384_s0 + $0x10] sm:$0xff]  ;;  %v18_v10 = vld [vmem:[%s1384_s0 + $0x18] sm:$0xff] }
  0x17   :  { %935 = vmatpush3.bf16.msra.mxu0 %v1064_v21  ;;  %v1109_v4 = vld [vmem:[%s1383_s1 + $0x1c0] sm:$0xff]   ;;  %v847_v6 = vcombine.low %v17_v5, %v17_v5  ;;  %v848_v7 = vcombine.high %v17_v5, %v17_v5  ;;  %v849_v11 = vcombine.low %v18_v10, %v18_v10  ;;  %v850_v12 = vcombine.high %v18_v10, %v18_v10  ;;  %v1115_v13 = vld [vmem:[%s1383_s1 + $0x238] sm:$0xff]   ;;  %v1116_v14 = vld [vmem:[%s1383_s1 + $0x230] sm:$0xff]  }
  0x18   :  { %936 = vmatprep.subr.bf16.mxu0 %v1067_v24  ;;  %v1112_v8 = vld [vmem:[%s1383_s1 + $0x180] sm:$0xff]   ;;  %v1117_v15 = vld [vmem:[%s1383_s1 + $0x228] sm:$0xff]   ;;  %v1119_v17 = vld [vmem:[%s1383_s1 + $0x218] sm:$0xff]  }
  0x19   :  { %957 = vmatpush3.bf16.msra.mxu1 %v1066_v23  ;;  %v1118_v16 = vld [vmem:[%s1383_s1 + $0x220] sm:$0xff]   ;;  %v1120_v18 = vld [vmem:[%s1383_s1 + $0x210] sm:$0xff]   ;;  %v1121_v19 = vld [vmem:[%s1383_s1 + $0x208] sm:$0xff]  }
  0x1a   :  { %958 = vmatprep.subr.bf16.mxu1 %v1069_v26  ;;  %v1122_v20 = vld [vmem:[%s1383_s1 + $0x200] sm:$0xff]  }
  0x1b   :  { %937 = vmatpush3.bf16.msra.mxu0 %v1068_v25  ;;  %v1123_v21 = vld [vmem:[%s1384_s0 + $0x20] ss:$0 sps:$4 sm:$0xff]  }
  0x1c   :  { %938 = vmatprep.subr.bf16.mxu0 %v1071_v28 }
  0x1d   :  { %959 = vmatpush3.bf16.msra.mxu1 %v1070_v27 }
  0x1e   :  { %960 = vmatprep.subr.bf16.mxu1 %v1073_v30 }
  0x1f   :  { %939 = vmatpush3.bf16.msra.mxu0 %v1072_v29 }
  0x20   :  { %968 = vmatprep.subr.bf16.mxu0 %v1077_v35 }
  0x21   :  { %961 = vmatpush3.bf16.msra.mxu1 %v1076_v34 }
  0x22   :  { %668 = vmatmul.mubr.bf16.vlgmr.msra.gmra.mxu0 %v843_v32  ;;  %990 = vmatprep.subr.bf16.mxu1 %v1081_v40 }
  0x23   :  { %969 = vmatpush3.bf16.msra.mxu0 %v1080_v39  ;;  %747 = vmatprep.mubr.bf16.mxu0 %v848_v7  ;;  %v842_v39 = vld [vmem:[%s1385_s2] ss:$0 sm:$0xff] }
  0x24   :  { %708 = vmatmul.mubr.bf16.vlgmr.msra.gmra.mxu1 %v845_v37  ;;  %970 = vmatprep.subr.bf16.mxu0 %v1083_v42 }
  0x25   :  { %991 = vmatpush3.bf16.msra.mxu1 %v1082_v41  ;;  %787 = vmatprep.mubr.bf16.mxu1 %v850_v12 }
  0x26   :  { %992 = vmatprep.subr.bf16.mxu1 %v1085_v44 }
  0x27   :  { %971 = vmatpush3.bf16.msra.mxu0 %v1084_v43 }
  0x28   :  { %972 = vmatprep.subr.bf16.mxu0 %v1087_v46 }
  0x29   :  { %993 = vmatpush3.bf16.msra.mxu1 %v1086_v45 }
  0x2a   :  { %994 = vmatprep.subr.bf16.mxu1 %v1089_v48 }
  0x2b   :  { %973 = vmatpush3.bf16.msra.mxu0 %v1088_v47 }
  0x2c   :  { %974 = vmatprep.subr.bf16.mxu0 %v1091_v50 }
  0x2d   :  { %995 = vmatpush3.bf16.msra.mxu1 %v1090_v49 }
  0x2e   :  { %996 = vmatprep.subr.bf16.mxu1 %v1093_v52 }
  0x2f   :  { %975 = vmatpush3.bf16.msra.mxu0 %v1092_v51 }
  0x30   :  { %976 = vmatprep.subr.bf16.mxu0 %v1095_v54 }
  0x31   :  { %997 = vmatpush3.bf16.msra.mxu1 %v1094_v53 }
  0x32   :  { %998 = vmatprep.subr.bf16.mxu1 %v1097_v56 }
  0x33   :  { %977 = vmatpush3.bf16.msra.mxu0 %v1096_v55 }
  0x34   :  { %978 = vmatprep.subr.bf16.mxu0 %v1099_v58 }
  0x35   :  { %999 = vmatpush3.bf16.msra.mxu1 %v1098_v57 }
  0x36   :  { %1000 = vmatprep.subr.bf16.mxu1 %v1101_v60 }
  0x37   :  { %979 = vmatpush3.bf16.msra.mxu0 %v1100_v59 }
  0x38   :  { %980 = vmatprep.subr.bf16.mxu0 %v1103_v62 }
  0x39   :  { %1001 = vmatpush3.bf16.msra.mxu1 %v1102_v61 }
  0x3a   :  { %1002 = vmatprep.subr.bf16.mxu1 %v1105_v0 }
  0x3b   :  { %981 = vmatpush3.bf16.msra.mxu0 %v1104_v63 }
  0x3c   :  { %982 = vmatprep.subr.bf16.mxu0 %v1107_v2 }
  0x3d   :  { %1003 = vmatpush3.bf16.msra.mxu1 %v1106_v1 }
  0x3e   :  { %1004 = vmatprep.subr.bf16.mxu1 %v1109_v4 }
  0x3f   :  { %983 = vmatpush3.bf16.msra.mxu0 %v1108_v3 }
  0x40   :  { %1021 = vmatprep.subr.bf16.mxu0 %v1124_v9 }
  0x41   :  { %1005 = vmatpush3.bf16.msra.mxu1 %v1112_v8 }
  0x42   :  { %748 = vmatmul.mubr.bf16.vlgmr.msra.gmra.mxu0 %v847_v6 }
  0x43   :  { %1022 = vmatpush3.bf16.msra.mxu0 %v1115_v13  ;;  %1037 = vmatprep.mubr.msk.bf16.mxu0 %vm1125_vm0, %v1124_v9 }
  0x44   :  { %788 = vmatmul.mubr.bf16.vlgmr.msra.gmra.mxu1 %v849_v11  ;;  %1023 = vmatprep.subr.bf16.mxu0 %v1124_v9 }
  0x47   :  { %1024 = vmatpush3.bf16.msra.mxu0 %v1116_v14 }
  0x48   :  { %1025 = vmatprep.subr.bf16.mxu0 %v1124_v9 }
  0x4b   :  { %1026 = vmatpush3.bf16.msra.mxu0 %v1117_v15 }
  0x4c   :  { %1027 = vmatprep.subr.bf16.mxu0 %v1124_v9 }
  0x4f   :  { %1028 = vmatpush3.bf16.msra.mxu0 %v1118_v16 }
  0x50   :  { %1029 = vmatprep.subr.bf16.mxu0 %v1124_v9 }
  0x53   :  { %1030 = vmatpush3.bf16.msra.mxu0 %v1119_v17 }
  0x54   :  { %1031 = vmatprep.subr.bf16.mxu0 %v1124_v9 }
  0x57   :  { %1032 = vmatpush3.bf16.msra.mxu0 %v1120_v18 }
  0x58   :  { %1033 = vmatprep.subr.bf16.mxu0 %v1124_v9 }
  0x5b   :  { %1034 = vmatpush3.bf16.msra.mxu0 %v1121_v19 }
  0x5c   :  { %1035 = vmatprep.subr.bf16.mxu0 %v1124_v9 }
  0x5f   :  { %1036 = vmatpush3.bf16.msra.mxu0 %v1122_v20 }
  0x62   :  { %1038 = vmatmul.mubr.bf16.vlgmr.msra.gmra.mxu0 %v1123_v21 }
  0xe2   :  { %v940_v22 = vpop.f32.mrf.mxu0 }
  0xe4   :  { %v941_v23 = vpop.f32.mrf.mxu0  ;;  %v962_v24 = vpop.f32.mrf.mxu1 }
  0xe5   :  { %v942_v38 = vadd.f32 %v941_v23, %v940_v22 }
  0xe6   :  { %v943_v25 = vpop.f32.mrf.mxu0  ;;  %v963_v26 = vpop.f32.mrf.mxu1 }
  0xe7   :  { %v670_v40 = vadd.f32 %v942_v38, %v842_v39  ;;  %v964_v41 = vadd.f32 %v963_v26, %v962_v24 }
  0xe8   :  { %v944_v27 = vpop.f32.mrf.mxu0  ;;  %v965_v28 = vpop.f32.mrf.mxu1 }
  0xe9   :  { %v710_v43 = vadd.f32 %v964_v41, %v670_v40 }
  0xea   :  { %v966_v29 = vpop.f32.mrf.mxu1 }
 0x102   :  { %v984_v30 = vpop.f32.mrf.mxu0 }
 0x104   :  { %v985_v31 = vpop.f32.mrf.mxu0  ;;  %v1006_v32 = vpop.f32.mrf.mxu1 }
 0x105   :  { %v986_v42 = vadd.f32 %v985_v31, %v984_v30 }
 0x106   :  { %v987_v33 = vpop.f32.mrf.mxu0  ;;  %v1007_v34 = vpop.f32.mrf.mxu1 }
 0x107   :  { %v750_v44 = vadd.f32 %v986_v42, %v710_v43  ;;  %v1008_v45 = vadd.f32 %v1007_v34, %v1006_v32 }
 0x108   :  { %v988_v35 = vpop.f32.mrf.mxu0  ;;  %v1009_v36 = vpop.f32.mrf.mxu1 }
 0x109   :  { %v790_v46 = vadd.f32 %v1008_v45, %v750_v44 }
 0x10a   :  { %v1010_v37 = vpop.f32.mrf.mxu1 }
 0x122   :  { %v829_v47 = vpop.f32.mrf.mxu0 }
 0x123   :  { %v830_v48 = vadd.f32 %v829_v47, %v790_v46 }
 0x124   :  { %v1039_v49 = vpop.f32.mrf.mxu0 }
 0x125   :  { %v835_v50 = vmax.f32 %v830_v48, 0.0 }
 0x126   :  { %v832_v51 = vpop.f32.mrf.mxu0 }
 0x127   :  { %v836_v52 = vpack.c.bf16 %v835_v50, %v835_v50 }
 0x128   :  { %v1040_v53 = vpop.f32.mrf.mxu0 }
 0x129   :  { %837 = vst [vmem:[%s1386_s3] sm:$0xf] %v836_v52 }

// kernel: _stage1.13
= control target key start
LH: loop header
LB: loop body
LE: loop exit
PB: predicated region body
PF: predicated region fallthrough
CT: control target
= control target key end

     0   :  { %s225_s0 = inlined_call_operand.vmem [shape: bf16[2,64,256], index: 0, kind: input, shape index: {}]   ;;  %s226_s1 = inlined_call_operand.vmem [shape: f32[2,1,256], index: 1, kind: output, shape index: {}]  }
   0x1   :  { %v8_v0 = vld [vmem:[%s225_s0] sm:$0xff]  ;;  %v9_v1 = vld [vmem:[%s225_s0 + $0x8] sm:$0xff]  ;;  %v10_v2 = vld [vmem:[%s225_s0 + $0x10] sm:$0xff] }
   0x2   :  { %v24_v3 = vunpack.c.l.bf16 %v8_v0  ;;  %v25_v4 = vunpack.c.h.bf16 %v8_v0  ;;  %v26_v5 = vunpack.c.l.bf16 %v9_v1  ;;  %v27_v6 = vunpack.c.h.bf16 %v9_v1  ;;  %v11_v7 = vld [vmem:[%s225_s0 + $0x18] sm:$0xff]  ;;  %v12_v10 = vld [vmem:[%s225_s0 + $0x20] sm:$0xff]  ;;  %v17_v16 = vld [vmem:[%s225_s0 + $0x48] sm:$0xff] }
   0x3   :  { %v28_v8 = vunpack.c.l.bf16 %v10_v2  ;;  %v29_v9 = vunpack.c.h.bf16 %v10_v2  ;;  %v30_v11 = vunpack.c.l.bf16 %v11_v7  ;;  %v31_v12 = vunpack.c.h.bf16 %v11_v7  ;;  %v16_v15 = vld [vmem:[%s225_s0 + $0x40] sm:$0xff]  ;;  %v13_v17 = vld [vmem:[%s225_s0 + $0x28] sm:$0xff]  ;;  %v18_v22 = vld [vmem:[%s225_s0 + $0x50] sm:$0xff] }
   0x4   :  { %v56_v13 = vadd.f32 %v26_v5, %v24_v3  ;;  %v69_v14 = vadd.f32 %v27_v6, %v25_v4  ;;  %v32_v18 = vunpack.c.l.bf16 %v12_v10  ;;  %v33_v19 = vunpack.c.h.bf16 %v12_v10  ;;  %v14_v23 = vld [vmem:[%s225_s0 + $0x30] sm:$0xff]  ;;  %v19_v32 = vld [vmem:[%s225_s0 + $0x58] sm:$0xff]  ;;  %v20_v40 = vld [vmem:[%s225_s0 + $0x60] sm:$0xff] }
   0x5   :  { %v40_v24 = vunpack.c.l.bf16 %v16_v15  ;;  %v41_v25 = vunpack.c.h.bf16 %v16_v15  ;;  %v42_v26 = vunpack.c.l.bf16 %v17_v16  ;;  %v43_v27 = vunpack.c.h.bf16 %v17_v16  ;;  %v15_v33 = vld [vmem:[%s225_s0 + $0x38] sm:$0xff]  ;;  %v21_v49 = vld [vmem:[%s225_s0 + $0x68] sm:$0xff]  ;;  %v22_v56 = vld [vmem:[%s225_s0 + $0x70] sm:$0xff] }
   0x6   :  { %v57_v20 = vadd.f32 %v56_v13, %v28_v8  ;;  %v70_v21 = vadd.f32 %v69_v14, %v29_v9  ;;  %v34_v28 = vunpack.c.l.bf16 %v13_v17  ;;  %v35_v29 = vunpack.c.h.bf16 %v13_v17  ;;  %v23_v63 = vld [vmem:[%s225_s0 + $0x78] sm:$0xff] }
   0x7   :  { %v44_v34 = vunpack.c.l.bf16 %v18_v22  ;;  %v45_v35 = vunpack.c.h.bf16 %v18_v22  ;;  %v36_v36 = vunpack.c.l.bf16 %v14_v23  ;;  %v37_v37 = vunpack.c.h.bf16 %v14_v23 }
   0x8   :  { %v58_v30 = vadd.f32 %v57_v20, %v30_v11  ;;  %v71_v31 = vadd.f32 %v70_v21, %v31_v12  ;;  %v46_v41 = vunpack.c.l.bf16 %v19_v32  ;;  %v47_v42 = vunpack.c.h.bf16 %v19_v32 }
   0x9   :  { %v82_v43 = vadd.f32 %v42_v26, %v40_v24  ;;  %v95_v44 = vadd.f32 %v43_v27, %v41_v25  ;;  %v38_v45 = vunpack.c.l.bf16 %v15_v33  ;;  %v39_v46 = vunpack.c.h.bf16 %v15_v33 }
   0xa   :  { %v59_v38 = vadd.f32 %v58_v30, %v32_v18  ;;  %v72_v39 = vadd.f32 %v71_v31, %v33_v19  ;;  %v48_v50 = vunpack.c.l.bf16 %v20_v40  ;;  %v49_v51 = vunpack.c.h.bf16 %v20_v40 }
   0xb   :  { %v83_v52 = vadd.f32 %v82_v43, %v44_v34  ;;  %v96_v53 = vadd.f32 %v95_v44, %v45_v35  ;;  %v50_v57 = vunpack.c.l.bf16 %v21_v49  ;;  %v51_v58 = vunpack.c.h.bf16 %v21_v49 }
   0xc   :  { %v60_v47 = vadd.f32 %v59_v38, %v34_v28  ;;  %v73_v48 = vadd.f32 %v72_v39, %v35_v29  ;;  %v52_v0 = vunpack.c.l.bf16 %v22_v56  ;;  %v53_v1 = vunpack.c.h.bf16 %v22_v56 }
   0xd   :  { %v84_v59 = vadd.f32 %v83_v52, %v46_v41  ;;  %v97_v60 = vadd.f32 %v96_v53, %v47_v42  ;;  %v54_v6 = vunpack.c.l.bf16 %v23_v63  ;;  %v55_v7 = vunpack.c.h.bf16 %v23_v63 }
   0xe   :  { %v61_v54 = vadd.f32 %v60_v47, %v36_v36  ;;  %v74_v55 = vadd.f32 %v73_v48, %v37_v37  ;;  %v160_v16 = vmov 1966171168   ;;  %v121_v18 = vlaneseq }
   0xf   :  { %v85_v2 = vadd.f32 %v84_v59, %v48_v50  ;;  %v98_v3 = vadd.f32 %v97_v60, %v49_v51  ;;  %v119_v17 = vunpack.c.l.s4 %v160_v16 }
  0x10   :  { %v62_v61 = vadd.f32 %v61_v54, %v38_v45  ;;  %v75_v62 = vadd.f32 %v74_v55, %v39_v46  ;;  %v122_v28 = vshrl.u32 %v121_v18, 7  ;;  %vm151_vm0 = vcmp.lt.s32.totalorder %v121_v18, 256 }
  0x11   :  { %v86_v8 = vadd.f32 %v85_v2, %v50_v57  ;;  %v99_v9 = vadd.f32 %v98_v3, %v51_v58  ;;  %v120_v27 = vunpack.c.0.s8 %v119_v17 }
  0x12   :  { %v63_v4 = vrot.slane %v62_v61, 4  ;;  %v76_v5 = vrot.slane %v75_v62, 4 }
  0x13   :  { %v87_v12 = vadd.f32 %v86_v8, %v52_v0  ;;  %v100_v13 = vadd.f32 %v99_v9, %v53_v1  ;;  %v123_v37 = vsub.s32 %v120_v27, %v122_v28 }
  0x14   :  { %v64_v10 = vadd.f32 %v63_v4, %v62_v61  ;;  %v77_v11 = vadd.f32 %v76_v5, %v75_v62 }
  0x15   :  { %v88_v19 = vadd.f32 %v87_v12, %v54_v6  ;;  %v101_v20 = vadd.f32 %v100_v13, %v55_v7 }
  0x16   :  { %v65_v14 = vrot.slane %v64_v10, 2  ;;  %v78_v15 = vrot.slane %v77_v11, 2 }
  0x17   :  { %v89_v23 = vrot.slane %v88_v19, 4  ;;  %v102_v24 = vrot.slane %v101_v20, 4 }
  0x18   :  { %v66_v21 = vadd.f32 %v65_v14, %v64_v10  ;;  %v79_v22 = vadd.f32 %v78_v15, %v77_v11 }
  0x19   :  { %v90_v29 = vadd.f32 %v89_v23, %v88_v19  ;;  %v103_v30 = vadd.f32 %v102_v24, %v101_v20 }
  0x1a   :  { %v67_v25 = vrot.slane %v66_v21, 1  ;;  %v80_v26 = vrot.slane %v79_v22, 1 }
  0x1b   :  { %v91_v33 = vrot.slane %v90_v29, 2  ;;  %v104_v34 = vrot.slane %v103_v30, 2 }
  0x1c   :  { %v68_v31 = vadd.f32 %v67_v25, %v66_v21  ;;  %v81_v32 = vadd.f32 %v80_v26, %v79_v22 }
  0x1d   :  { %v92_v38 = vadd.f32 %v91_v33, %v90_v29  ;;  %v105_v39 = vadd.f32 %v104_v34, %v103_v30 }
  0x1e   :  { %v109_v35 = vmul.f32 0.015625, %v68_v31  ;;  %v110_v36 = vmul.f32 0.015625, %v81_v32 }
  0x1f   :  { %v93_v41 = vrot.slane %v92_v38, 1  ;;  %v106_v42 = vrot.slane %v105_v39, 1 }
  0x20   :  { %v117_v40 = vcombine.low %v109_v35, %v110_v36 }
  0x21   :  { %v94_v44 = vadd.f32 %v93_v41, %v92_v38  ;;  %v107_v45 = vadd.f32 %v106_v42, %v105_v39 }
  0x22   :  { %v124_v43 = vrot.slane %v117_v40, %v123_v37 }
  0x23   :  { %v111_v47 = vmul.f32 0.015625, %v94_v44  ;;  %v112_v48 = vmul.f32 0.015625, %v107_v45 }
  0x24   :  { %v131_v46 = vrot.slane %v124_v43, %v123_v37 }
  0x25   :  { %v132_v49 = vcombine.low %v111_v47, %v112_v48 }
  0x26   :  { %153 = vst.msk [vmem:[%s226_s1] sm:$0x3] %vm151_vm0, %v131_v46 }
  0x27   :  { %v139_v50 = vrot.slane %v132_v49, %v123_v37 }
  0x29   :  { %v146_v51 = vrot.slane %v139_v50, %v123_v37 }
  0x2b   :  { %154 = vst.msk [vmem:[%s226_s1 + $0x2] sm:$0x3] %vm151_vm0, %v146_v51 }

</bundles_post_ra>
